<compile_context>
chip_gen: v7x
topology: tpu7x:2x2x1
jax: 0.10.0
libtpu: 0.0.40
codegen_flags: <defaults>
</compile_context>

<pallas_src>
import numpy as np
import jax
import jax.numpy as jnp
from jax.experimental import pallas as pl
from jax.experimental.pallas import tpu as pltpu

INPUT_DIM = 3
HIDDEN_DIM = 32
LATENT_DIM = 16
IMG_SIDE = 64                      # forced by fc1 (64 / 2**4 == 4)
OUT_SIDE = 8                       # scaled down from 128 (output_dim = side**3)
OUTPUT_DIM = OUT_SIDE ** 3

_VMEM_SPEC = pl.BlockSpec(memory_space=pltpu.MemorySpace.VMEM)


# ------------------------------ fused kernel ------------------------------- #

def _fused_kernel(*refs):
    """refs = [x1, (S, T, bias_row) * 5 stages, out]."""
    x_ref, out_ref = refs[0], refs[-1]
    stage_refs = refs[1:-1]
    n_stages = len(stage_refs) // 3

    x = x_ref[...]                                     # (B*64, 64*3) bf16 slab
    for s in range(n_stages):
        s_ref, t_ref, b_ref = stage_refs[3 * s: 3 * s + 3]
        acc = None
        for t in range(s_ref.shape[0]):                # 3 taps (convs) / 4 (decoder)
            # 0/1 row selection: exact, so the bf16 round-trip is lossless.
            rows = jnp.dot(s_ref[t], x,
                           preferred_element_type=jnp.float32).astype(jnp.bfloat16)
            part = jnp.dot(rows, t_ref[t],
                           preferred_element_type=jnp.float32)
            acc = part if acc is None else acc + part
        acc = acc + b_ref[...]                         # f32 epilogue
        if s + 1 < n_stages:
            x = acc.astype(jnp.bfloat16)               # stays in vregs/VMEM
        else:
            # round(sigmoid(z)) == (z > 0) under round-half-to-even.
            out_ref[...] = (acc > 0.0).astype(jnp.float32)


# ---------------------------- operand construction ------------------------- #

def _conv_stage_operands(w_oihw, bias, hin, win, batch):
    """(S, T, bias_row) implementing Conv2d(k=3, s=2, p=1) on a (B*H, W*Cin) slab.
    w_oihw: (Cout, Cin, 3, 3) float32 numpy (PyTorch layout, plug real weights in as-is)."""
    cout, cin = w_oihw.shape[0], w_oihw.shape[1]
    ho, wo = hin // 2, win // 2
    S = np.zeros((3, batch * ho, batch * hin), np.float32)
    T = np.zeros((3, win * cin, wo * cout), np.float32)
    for kh in range(3):
        for b in range(batch):
            for i in range(ho):
                r = 2 * i + kh - 1                      # input row (p=1, s=2)
                if 0 <= r < hin:
                    S[kh, b * ho + i, b * hin + r] = 1.0
        for j in range(wo):
            for kw in range(3):
                c = 2 * j + kw - 1                      # input col (p=1, s=2)
                if 0 <= c < win:
                    T[kh,
                      c * cin:(c + 1) * cin,
                      j * cout:(j + 1) * cout] = w_oihw[:, :, kh, kw].T
    bias_row = np.tile(bias, wo).reshape(1, wo * cout)
    return (jnp.asarray(S, jnp.bfloat16),
            jnp.asarray(T, jnp.bfloat16),
            jnp.asarray(bias_row, jnp.float32))


def _decoder_stage_operands(w_folded, b_folded, batch):
    """Folded fc1@fc2@fc3 in the same (S, T) stage form.
    w_folded rows follow the PyTorch NCHW latent flatten (c*(4*4) + i*4 + j)."""
    out_dim = w_folded.shape[1]
    S = np.zeros((4, batch, batch * 4), np.float32)
    T = np.zeros((4, 4 * LATENT_DIM, out_dim), np.float32)
    for i in range(4):                                  # latent spatial row
        for b in range(batch):
            S[i, b, b * 4 + i] = 1.0
        for j in range(4):                              # latent spatial col
            for c in range(LATENT_DIM):
                T[i, j * LATENT_DIM + c, :] = w_folded[c * (4 * 4) + i * 4 + j, :]
    bias_row = b_folded.reshape(1, out_dim)
    return (jnp.asarray(S, jnp.bfloat16),
            jnp.asarray(T, jnp.bfloat16),
            jnp.asarray(bias_row, jnp.float32))


def init_params(key, batch):
    keys = jax.random.split(key, 14)
    cins = [INPUT_DIM, HIDDEN_DIM, HIDDEN_DIM, HIDDEN_DIM]
    couts = [HIDDEN_DIM, HIDDEN_DIM, HIDDEN_DIM, LATENT_DIM]
    sides = [IMG_SIDE, IMG_SIDE // 2, IMG_SIDE // 4, IMG_SIDE // 8]

    conv_raw, stages = [], []
    ki = 0
    for cin, cout, side in zip(cins, couts, sides):
        w = jax.random.normal(keys[ki], (cout, cin, 3, 3), jnp.float32) * 0.1
        ki += 1
        b_conv = jax.random.normal(keys[ki], (cout,), jnp.float32) * 0.01
        ki += 1
        conv_raw.append((w, b_conv))
        stages.append(_conv_stage_operands(np.asarray(w), np.asarray(b_conv),
                                           side, side, batch))

    # Decoder Linears stored as (fin, fout) so y = x @ W + b.
    # (Real torch weights: W = fc.weight.T, b = fc.bias.)
    def lin(k1, k2, fin, fout):
        return (jax.random.normal(k1, (fin, fout), jnp.float32) * 0.1,
                jax.random.normal(k2, (fout,), jnp.float32) * 0.01)

    dec_in = LATENT_DIM * 4 * 4
    w1, b1 = lin(keys[8], keys[9], dec_in, HIDDEN_DIM)
    w2, b2 = lin(keys[10], keys[11], HIDDEN_DIM, HIDDEN_DIM)
    w3, b3 = lin(keys[12], keys[13], HIDDEN_DIM, OUTPUT_DIM)

    # No nonlinearity between fc1/fc2/fc3 -> exact fold.  Fine at this scaled
    # output_dim; at the real 128**3 keep fc3 separate and tile it over N.
    w_folded = np.asarray(w1) @ np.asarray(w2) @ np.asarray(w3)
    b_folded = ((np.asarray(b1) @ np.asarray(w2) + np.asarray(b2))
                @ np.asarray(w3) + np.asarray(b3))
    stages.append(_decoder_stage_operands(w_folded, b_folded, batch))

    return {"stages": stages,
            "conv_raw": conv_raw,
            "dec_raw": (w1, b1, w2, b2, w3, b3)}


# --------------------------------- forward --------------------------------- #

def reconstruction_model_forward(x_nchw, params):
    b = x_nchw.shape[0]
    # NCHW -> (B*H, W*C) slab in bf16: the only XLA glue feeding the kernel.
    x1 = (jnp.transpose(x_nchw, (0, 2, 3, 1))
          .reshape(b * IMG_SIDE, IMG_SIDE * INPUT_DIM)
          .astype(jnp.bfloat16))
    operands = [x1]
    for stage in params["stages"]:
        operands.extend(stage)
    out = pl.pallas_call(
        _fused_kernel,
        out_shape=jax.ShapeDtypeStruct((b, OUTPUT_DIM), jnp.float32),
        in_specs=[_VMEM_SPEC] * len(operands),
        out_specs=_VMEM_SPEC,
        compiler_params=pltpu.CompilerParams(vmem_limit_bytes=32 * 1024 * 1024),
    )(*operands)
    return out.reshape(b, OUT_SIDE, OUT_SIDE, OUT_SIDE)


# ------------------------------ pure-JAX reference ------------------------- #

def _reference_logits(x_nchw, params):
    x = x_nchw.astype(jnp.float32)
    for (w, b_conv) in params["conv_raw"]:
        x = jax.lax.conv_general_dilated(
            x, w, window_strides=(2, 2), padding=((1, 1), (1, 1)),
            dimension_numbers=("NCHW", "OIHW", "NCHW"))
        x = x + b_conv.reshape(1, -1, 1, 1)
    z = x.reshape(x.shape[0], -1)                       # torch NCHW flatten
    w1, b1, w2, b2, w3, b3 = params["dec_raw"]
    h = z @ w1 + b1
    h = h @ w2 + b2
    return h @ w3 + b3                                  # pre-sigmoid logits


# ----------------------------------- main ----------------------------------- #

if __name__ == "__main__":
    key = jax.random.PRNGKey(0)
    pkey, xkey = jax.random.split(key)

    B = 2
    params = init_params(pkey, B)
    # 64x64 input is required by fc1 (latent_dim*4*4 features after 4 s2 convs).
    x = jax.random.normal(xkey, (B, INPUT_DIM, IMG_SIDE, IMG_SIDE), jnp.float32)

    fwd = jax.jit(reconstruction_model_forward)
    out = jax.block_until_ready(fwd(x, params))

    assert out.shape == (B, OUT_SIDE, OUT_SIDE, OUT_SIDE), out.shape
    assert out.dtype == jnp.float32
    # sigmoid -> round produces only 0.0 / 1.0
    assert bool(jnp.all((out == 0.0) | (out == 1.0)))

    # Kernel runs bf16 activations vs the f32 reference, so compare thresholded
    # bits and tolerate a small fraction of near-zero-logit flips.
    ref_bits = (_reference_logits(x, params) > 0.0).astype(jnp.float32)
    match = float(jnp.mean((out.reshape(B, -1) == ref_bits).astype(jnp.float32)))
    assert match > 0.95, f"kernel/reference bit agreement too low: {match}"

    print("KERNEL_OK")
</pallas_src>

<mosaic_0001>
module attributes {stable_mosaic.version = 11 : i64} {
  func.func @_fused_kernel(%arg0: memref<128x192xbf16, #tpu.memory_space<vmem>>, %arg1: memref<3x64x128xbf16, #tpu.memory_space<vmem>>, %arg2: memref<3x192x1024xbf16, #tpu.memory_space<vmem>>, %arg3: memref<1x1024xf32, #tpu.memory_space<vmem>>, %arg4: memref<3x32x64xbf16, #tpu.memory_space<vmem>>, %arg5: memref<3x1024x512xbf16, #tpu.memory_space<vmem>>, %arg6: memref<1x512xf32, #tpu.memory_space<vmem>>, %arg7: memref<3x16x32xbf16, #tpu.memory_space<vmem>>, %arg8: memref<3x512x256xbf16, #tpu.memory_space<vmem>>, %arg9: memref<1x256xf32, #tpu.memory_space<vmem>>, %arg10: memref<3x8x16xbf16, #tpu.memory_space<vmem>>, %arg11: memref<3x256x64xbf16, #tpu.memory_space<vmem>>, %arg12: memref<1x64xf32, #tpu.memory_space<vmem>>, %arg13: memref<4x2x8xbf16, #tpu.memory_space<vmem>>, %arg14: memref<4x64x512xbf16, #tpu.memory_space<vmem>>, %arg15: memref<1x512xf32, #tpu.memory_space<vmem>>, %arg16: memref<2x512xf32, #tpu.memory_space<vmem>>) attributes {dimension_semantics = [], scalar_prefetch = 0 : i64, scratch_operands = 0 : i64, tpu.core_type = #tpu.core_type<tc>} {
    %c0 = arith.constant 0 : index
    %c0_0 = arith.constant 0 : index
    %0 = vector.load %arg0[%c0, %c0_0] : memref<128x192xbf16, #tpu.memory_space<vmem>>, vector<128x192xbf16>
    %c0_1 = arith.constant 0 : index
    %c0_2 = arith.constant 0 : index
    %c0_3 = arith.constant 0 : index
    %1 = vector.load %arg1[%c0_1, %c0_2, %c0_3] : memref<3x64x128xbf16, #tpu.memory_space<vmem>>, vector<1x64x128xbf16>
    %2 = vector.shape_cast %1 : vector<1x64x128xbf16> to vector<64x128xbf16>
    %cst = arith.constant dense<0.000000e+00> : vector<64x192xf32>
    %3 = tpu.matmul %2, %0, %cst {dimension_numbers = #tpu.dot_dimension_numbers<[1], [0], [0], [1], [0, 0, 1, 1], [], []>} : vector<64x128xbf16>, vector<128x192xbf16>, vector<64x192xf32> -> vector<64x192xf32>
    %4 = arith.truncf %3 : vector<64x192xf32> to vector<64x192xbf16>
    %c0_4 = arith.constant 0 : index
    %c0_5 = arith.constant 0 : index
    %c0_6 = arith.constant 0 : index
    %5 = vector.load %arg2[%c0_4, %c0_5, %c0_6] : memref<3x192x1024xbf16, #tpu.memory_space<vmem>>, vector<1x192x1024xbf16>
    %6 = vector.shape_cast %5 : vector<1x192x1024xbf16> to vector<192x1024xbf16>
    %cst_7 = arith.constant dense<0.000000e+00> : vector<64x1024xf32>
    %7 = tpu.matmul %4, %6, %cst_7 {dimension_numbers = #tpu.dot_dimension_numbers<[1], [0], [0], [1], [0, 0, 1, 1], [], []>} : vector<64x192xbf16>, vector<192x1024xbf16>, vector<64x1024xf32> -> vector<64x1024xf32>
    %c1 = arith.constant 1 : index
    %c0_8 = arith.constant 0 : index
    %c0_9 = arith.constant 0 : index
    %8 = vector.load %arg1[%c1, %c0_8, %c0_9] : memref<3x64x128xbf16, #tpu.memory_space<vmem>>, vector<1x64x128xbf16>
    %9 = vector.shape_cast %8 : vector<1x64x128xbf16> to vector<64x128xbf16>
    %cst_10 = arith.constant dense<0.000000e+00> : vector<64x192xf32>
    %10 = tpu.matmul %9, %0, %cst_10 {dimension_numbers = #tpu.dot_dimension_numbers<[1], [0], [0], [1], [0, 0, 1, 1], [], []>} : vector<64x128xbf16>, vector<128x192xbf16>, vector<64x192xf32> -> vector<64x192xf32>
    %11 = arith.truncf %10 : vector<64x192xf32> to vector<64x192xbf16>
    %c1_11 = arith.constant 1 : index
    %c0_12 = arith.constant 0 : index
    %c0_13 = arith.constant 0 : index
    %12 = vector.load %arg2[%c1_11, %c0_12, %c0_13] : memref<3x192x1024xbf16, #tpu.memory_space<vmem>>, vector<1x192x1024xbf16>
    %13 = vector.shape_cast %12 : vector<1x192x1024xbf16> to vector<192x1024xbf16>
    %cst_14 = arith.constant dense<0.000000e+00> : vector<64x1024xf32>
    %14 = tpu.matmul %11, %13, %cst_14 {dimension_numbers = #tpu.dot_dimension_numbers<[1], [0], [0], [1], [0, 0, 1, 1], [], []>} : vector<64x192xbf16>, vector<192x1024xbf16>, vector<64x1024xf32> -> vector<64x1024xf32>
    %15 = arith.addf %7, %14 : vector<64x1024xf32>
    %c2 = arith.constant 2 : index
    %c0_15 = arith.constant 0 : index
    %c0_16 = arith.constant 0 : index
    %16 = vector.load %arg1[%c2, %c0_15, %c0_16] : memref<3x64x128xbf16, #tpu.memory_space<vmem>>, vector<1x64x128xbf16>
    %17 = vector.shape_cast %16 : vector<1x64x128xbf16> to vector<64x128xbf16>
    %cst_17 = arith.constant dense<0.000000e+00> : vector<64x192xf32>
    %18 = tpu.matmul %17, %0, %cst_17 {dimension_numbers = #tpu.dot_dimension_numbers<[1], [0], [0], [1], [0, 0, 1, 1], [], []>} : vector<64x128xbf16>, vector<128x192xbf16>, vector<64x192xf32> -> vector<64x192xf32>
    %19 = arith.truncf %18 : vector<64x192xf32> to vector<64x192xbf16>
    %c2_18 = arith.constant 2 : index
    %c0_19 = arith.constant 0 : index
    %c0_20 = arith.constant 0 : index
    %20 = vector.load %arg2[%c2_18, %c0_19, %c0_20] : memref<3x192x1024xbf16, #tpu.memory_space<vmem>>, vector<1x192x1024xbf16>
    %21 = vector.shape_cast %20 : vector<1x192x1024xbf16> to vector<192x1024xbf16>
    %cst_21 = arith.constant dense<0.000000e+00> : vector<64x1024xf32>
    %22 = tpu.matmul %19, %21, %cst_21 {dimension_numbers = #tpu.dot_dimension_numbers<[1], [0], [0], [1], [0, 0, 1, 1], [], []>} : vector<64x192xbf16>, vector<192x1024xbf16>, vector<64x1024xf32> -> vector<64x1024xf32>
    %23 = arith.addf %15, %22 : vector<64x1024xf32>
    %c0_22 = arith.constant 0 : index
    %c0_23 = arith.constant 0 : index
    %24 = vector.load %arg3[%c0_22, %c0_23] : memref<1x1024xf32, #tpu.memory_space<vmem>>, vector<1x1024xf32>
    %25 = vector.broadcast %24 : vector<1x1024xf32> to vector<64x1024xf32>
    %26 = arith.addf %23, %25 : vector<64x1024xf32>
    %27 = arith.truncf %26 : vector<64x1024xf32> to vector<64x1024xbf16>
    %c0_24 = arith.constant 0 : index
    %c0_25 = arith.constant 0 : index
    %c0_26 = arith.constant 0 : index
    %28 = vector.load %arg4[%c0_24, %c0_25, %c0_26] : memref<3x32x64xbf16, #tpu.memory_space<vmem>>, vector<1x32x64xbf16>
    %29 = vector.shape_cast %28 : vector<1x32x64xbf16> to vector<32x64xbf16>
    %cst_27 = arith.constant dense<0.000000e+00> : vector<32x1024xf32>
    %30 = tpu.matmul %29, %27, %cst_27 {dimension_numbers = #tpu.dot_dimension_numbers<[1], [0], [0], [1], [0, 0, 1, 1], [], []>} : vector<32x64xbf16>, vector<64x1024xbf16>, vector<32x1024xf32> -> vector<32x1024xf32>
    %31 = arith.truncf %30 : vector<32x1024xf32> to vector<32x1024xbf16>
    %c0_28 = arith.constant 0 : index
    %c0_29 = arith.constant 0 : index
    %c0_30 = arith.constant 0 : index
    %32 = vector.load %arg5[%c0_28, %c0_29, %c0_30] : memref<3x1024x512xbf16, #tpu.memory_space<vmem>>, vector<1x1024x512xbf16>
    %33 = vector.shape_cast %32 : vector<1x1024x512xbf16> to vector<1024x512xbf16>
    %cst_31 = arith.constant dense<0.000000e+00> : vector<32x512xf32>
    %34 = tpu.matmul %31, %33, %cst_31 {dimension_numbers = #tpu.dot_dimension_numbers<[1], [0], [0], [1], [0, 0, 1, 1], [], []>} : vector<32x1024xbf16>, vector<1024x512xbf16>, vector<32x512xf32> -> vector<32x512xf32>
    %c1_32 = arith.constant 1 : index
    %c0_33 = arith.constant 0 : index
    %c0_34 = arith.constant 0 : index
    %35 = vector.load %arg4[%c1_32, %c0_33, %c0_34] : memref<3x32x64xbf16, #tpu.memory_space<vmem>>, vector<1x32x64xbf16>
    %36 = vector.shape_cast %35 : vector<1x32x64xbf16> to vector<32x64xbf16>
    %cst_35 = arith.constant dense<0.000000e+00> : vector<32x1024xf32>
    %37 = tpu.matmul %36, %27, %cst_35 {dimension_numbers = #tpu.dot_dimension_numbers<[1], [0], [0], [1], [0, 0, 1, 1], [], []>} : vector<32x64xbf16>, vector<64x1024xbf16>, vector<32x1024xf32> -> vector<32x1024xf32>
    %38 = arith.truncf %37 : vector<32x1024xf32> to vector<32x1024xbf16>
    %c1_36 = arith.constant 1 : index
    %c0_37 = arith.constant 0 : index
    %c0_38 = arith.constant 0 : index
    %39 = vector.load %arg5[%c1_36, %c0_37, %c0_38] : memref<3x1024x512xbf16, #tpu.memory_space<vmem>>, vector<1x1024x512xbf16>
    %40 = vector.shape_cast %39 : vector<1x1024x512xbf16> to vector<1024x512xbf16>
    %cst_39 = arith.constant dense<0.000000e+00> : vector<32x512xf32>
    %41 = tpu.matmul %38, %40, %cst_39 {dimension_numbers = #tpu.dot_dimension_numbers<[1], [0], [0], [1], [0, 0, 1, 1], [], []>} : vector<32x1024xbf16>, vector<1024x512xbf16>, vector<32x512xf32> -> vector<32x512xf32>
    %42 = arith.addf %34, %41 : vector<32x512xf32>
    %c2_40 = arith.constant 2 : index
    %c0_41 = arith.constant 0 : index
    %c0_42 = arith.constant 0 : index
    %43 = vector.load %arg4[%c2_40, %c0_41, %c0_42] : memref<3x32x64xbf16, #tpu.memory_space<vmem>>, vector<1x32x64xbf16>
    %44 = vector.shape_cast %43 : vector<1x32x64xbf16> to vector<32x64xbf16>
    %cst_43 = arith.constant dense<0.000000e+00> : vector<32x1024xf32>
    %45 = tpu.matmul %44, %27, %cst_43 {dimension_numbers = #tpu.dot_dimension_numbers<[1], [0], [0], [1], [0, 0, 1, 1], [], []>} : vector<32x64xbf16>, vector<64x1024xbf16>, vector<32x1024xf32> -> vector<32x1024xf32>
    %46 = arith.truncf %45 : vector<32x1024xf32> to vector<32x1024xbf16>
    %c2_44 = arith.constant 2 : index
    %c0_45 = arith.constant 0 : index
    %c0_46 = arith.constant 0 : index
    %47 = vector.load %arg5[%c2_44, %c0_45, %c0_46] : memref<3x1024x512xbf16, #tpu.memory_space<vmem>>, vector<1x1024x512xbf16>
    %48 = vector.shape_cast %47 : vector<1x1024x512xbf16> to vector<1024x512xbf16>
    %cst_47 = arith.constant dense<0.000000e+00> : vector<32x512xf32>
    %49 = tpu.matmul %46, %48, %cst_47 {dimension_numbers = #tpu.dot_dimension_numbers<[1], [0], [0], [1], [0, 0, 1, 1], [], []>} : vector<32x1024xbf16>, vector<1024x512xbf16>, vector<32x512xf32> -> vector<32x512xf32>
    %50 = arith.addf %42, %49 : vector<32x512xf32>
    %c0_48 = arith.constant 0 : index
    %c0_49 = arith.constant 0 : index
    %51 = vector.load %arg6[%c0_48, %c0_49] : memref<1x512xf32, #tpu.memory_space<vmem>>, vector<1x512xf32>
    %52 = vector.broadcast %51 : vector<1x512xf32> to vector<32x512xf32>
    %53 = arith.addf %50, %52 : vector<32x512xf32>
    %54 = arith.truncf %53 : vector<32x512xf32> to vector<32x512xbf16>
    %c0_50 = arith.constant 0 : index
    %c0_51 = arith.constant 0 : index
    %c0_52 = arith.constant 0 : index
    %55 = vector.load %arg7[%c0_50, %c0_51, %c0_52] : memref<3x16x32xbf16, #tpu.memory_space<vmem>>, vector<1x16x32xbf16>
    %56 = vector.shape_cast %55 : vector<1x16x32xbf16> to vector<16x32xbf16>
    %cst_53 = arith.constant dense<0.000000e+00> : vector<16x512xf32>
    %57 = tpu.matmul %56, %54, %cst_53 {dimension_numbers = #tpu.dot_dimension_numbers<[1], [0], [0], [1], [0, 0, 1, 1], [], []>} : vector<16x32xbf16>, vector<32x512xbf16>, vector<16x512xf32> -> vector<16x512xf32>
    %58 = arith.truncf %57 : vector<16x512xf32> to vector<16x512xbf16>
    %c0_54 = arith.constant 0 : index
    %c0_55 = arith.constant 0 : index
    %c0_56 = arith.constant 0 : index
    %59 = vector.load %arg8[%c0_54, %c0_55, %c0_56] : memref<3x512x256xbf16, #tpu.memory_space<vmem>>, vector<1x512x256xbf16>
    %60 = vector.shape_cast %59 : vector<1x512x256xbf16> to vector<512x256xbf16>
    %cst_57 = arith.constant dense<0.000000e+00> : vector<16x256xf32>
    %61 = tpu.matmul %58, %60, %cst_57 {dimension_numbers = #tpu.dot_dimension_numbers<[1], [0], [0], [1], [0, 0, 1, 1], [], []>} : vector<16x512xbf16>, vector<512x256xbf16>, vector<16x256xf32> -> vector<16x256xf32>
    %c1_58 = arith.constant 1 : index
    %c0_59 = arith.constant 0 : index
    %c0_60 = arith.constant 0 : index
    %62 = vector.load %arg7[%c1_58, %c0_59, %c0_60] : memref<3x16x32xbf16, #tpu.memory_space<vmem>>, vector<1x16x32xbf16>
    %63 = vector.shape_cast %62 : vector<1x16x32xbf16> to vector<16x32xbf16>
    %cst_61 = arith.constant dense<0.000000e+00> : vector<16x512xf32>
    %64 = tpu.matmul %63, %54, %cst_61 {dimension_numbers = #tpu.dot_dimension_numbers<[1], [0], [0], [1], [0, 0, 1, 1], [], []>} : vector<16x32xbf16>, vector<32x512xbf16>, vector<16x512xf32> -> vector<16x512xf32>
    %65 = arith.truncf %64 : vector<16x512xf32> to vector<16x512xbf16>
    %c1_62 = arith.constant 1 : index
    %c0_63 = arith.constant 0 : index
    %c0_64 = arith.constant 0 : index
    %66 = vector.load %arg8[%c1_62, %c0_63, %c0_64] : memref<3x512x256xbf16, #tpu.memory_space<vmem>>, vector<1x512x256xbf16>
    %67 = vector.shape_cast %66 : vector<1x512x256xbf16> to vector<512x256xbf16>
    %cst_65 = arith.constant dense<0.000000e+00> : vector<16x256xf32>
    %68 = tpu.matmul %65, %67, %cst_65 {dimension_numbers = #tpu.dot_dimension_numbers<[1], [0], [0], [1], [0, 0, 1, 1], [], []>} : vector<16x512xbf16>, vector<512x256xbf16>, vector<16x256xf32> -> vector<16x256xf32>
    %69 = arith.addf %61, %68 : vector<16x256xf32>
    %c2_66 = arith.constant 2 : index
    %c0_67 = arith.constant 0 : index
    %c0_68 = arith.constant 0 : index
    %70 = vector.load %arg7[%c2_66, %c0_67, %c0_68] : memref<3x16x32xbf16, #tpu.memory_space<vmem>>, vector<1x16x32xbf16>
    %71 = vector.shape_cast %70 : vector<1x16x32xbf16> to vector<16x32xbf16>
    %cst_69 = arith.constant dense<0.000000e+00> : vector<16x512xf32>
    %72 = tpu.matmul %71, %54, %cst_69 {dimension_numbers = #tpu.dot_dimension_numbers<[1], [0], [0], [1], [0, 0, 1, 1], [], []>} : vector<16x32xbf16>, vector<32x512xbf16>, vector<16x512xf32> -> vector<16x512xf32>
    %73 = arith.truncf %72 : vector<16x512xf32> to vector<16x512xbf16>
    %c2_70 = arith.constant 2 : index
    %c0_71 = arith.constant 0 : index
    %c0_72 = arith.constant 0 : index
    %74 = vector.load %arg8[%c2_70, %c0_71, %c0_72] : memref<3x512x256xbf16, #tpu.memory_space<vmem>>, vector<1x512x256xbf16>
    %75 = vector.shape_cast %74 : vector<1x512x256xbf16> to vector<512x256xbf16>
    %cst_73 = arith.constant dense<0.000000e+00> : vector<16x256xf32>
    %76 = tpu.matmul %73, %75, %cst_73 {dimension_numbers = #tpu.dot_dimension_numbers<[1], [0], [0], [1], [0, 0, 1, 1], [], []>} : vector<16x512xbf16>, vector<512x256xbf16>, vector<16x256xf32> -> vector<16x256xf32>
    %77 = arith.addf %69, %76 : vector<16x256xf32>
    %c0_74 = arith.constant 0 : index
    %c0_75 = arith.constant 0 : index
    %78 = vector.load %arg9[%c0_74, %c0_75] : memref<1x256xf32, #tpu.memory_space<vmem>>, vector<1x256xf32>
    %79 = vector.broadcast %78 : vector<1x256xf32> to vector<16x256xf32>
    %80 = arith.addf %77, %79 : vector<16x256xf32>
    %81 = arith.truncf %80 : vector<16x256xf32> to vector<16x256xbf16>
    %c0_76 = arith.constant 0 : index
    %c0_77 = arith.constant 0 : index
    %c0_78 = arith.constant 0 : index
    %82 = vector.load %arg10[%c0_76, %c0_77, %c0_78] : memref<3x8x16xbf16, #tpu.memory_space<vmem>>, vector<1x8x16xbf16>
    %83 = vector.shape_cast %82 : vector<1x8x16xbf16> to vector<8x16xbf16>
    %cst_79 = arith.constant dense<0.000000e+00> : vector<8x256xf32>
    %84 = tpu.matmul %83, %81, %cst_79 {dimension_numbers = #tpu.dot_dimension_numbers<[1], [0], [0], [1], [0, 0, 1, 1], [], []>} : vector<8x16xbf16>, vector<16x256xbf16>, vector<8x256xf32> -> vector<8x256xf32>
    %85 = arith.truncf %84 : vector<8x256xf32> to vector<8x256xbf16>
    %c0_80 = arith.constant 0 : index
    %c0_81 = arith.constant 0 : index
    %c0_82 = arith.constant 0 : index
    %86 = vector.load %arg11[%c0_80, %c0_81, %c0_82] : memref<3x256x64xbf16, #tpu.memory_space<vmem>>, vector<1x256x64xbf16>
    %87 = vector.shape_cast %86 : vector<1x256x64xbf16> to vector<256x64xbf16>
    %cst_83 = arith.constant dense<0.000000e+00> : vector<8x64xf32>
    %88 = tpu.matmul %85, %87, %cst_83 {dimension_numbers = #tpu.dot_dimension_numbers<[1], [0], [0], [1], [0, 0, 1, 1], [], []>} : vector<8x256xbf16>, vector<256x64xbf16>, vector<8x64xf32> -> vector<8x64xf32>
    %c1_84 = arith.constant 1 : index
    %c0_85 = arith.constant 0 : index
    %c0_86 = arith.constant 0 : index
    %89 = vector.load %arg10[%c1_84, %c0_85, %c0_86] : memref<3x8x16xbf16, #tpu.memory_space<vmem>>, vector<1x8x16xbf16>
    %90 = vector.shape_cast %89 : vector<1x8x16xbf16> to vector<8x16xbf16>
    %cst_87 = arith.constant dense<0.000000e+00> : vector<8x256xf32>
    %91 = tpu.matmul %90, %81, %cst_87 {dimension_numbers = #tpu.dot_dimension_numbers<[1], [0], [0], [1], [0, 0, 1, 1], [], []>} : vector<8x16xbf16>, vector<16x256xbf16>, vector<8x256xf32> -> vector<8x256xf32>
    %92 = arith.truncf %91 : vector<8x256xf32> to vector<8x256xbf16>
    %c1_88 = arith.constant 1 : index
    %c0_89 = arith.constant 0 : index
    %c0_90 = arith.constant 0 : index
    %93 = vector.load %arg11[%c1_88, %c0_89, %c0_90] : memref<3x256x64xbf16, #tpu.memory_space<vmem>>, vector<1x256x64xbf16>
    %94 = vector.shape_cast %93 : vector<1x256x64xbf16> to vector<256x64xbf16>
    %cst_91 = arith.constant dense<0.000000e+00> : vector<8x64xf32>
    %95 = tpu.matmul %92, %94, %cst_91 {dimension_numbers = #tpu.dot_dimension_numbers<[1], [0], [0], [1], [0, 0, 1, 1], [], []>} : vector<8x256xbf16>, vector<256x64xbf16>, vector<8x64xf32> -> vector<8x64xf32>
    %96 = arith.addf %88, %95 : vector<8x64xf32>
    %c2_92 = arith.constant 2 : index
    %c0_93 = arith.constant 0 : index
    %c0_94 = arith.constant 0 : index
    %97 = vector.load %arg10[%c2_92, %c0_93, %c0_94] : memref<3x8x16xbf16, #tpu.memory_space<vmem>>, vector<1x8x16xbf16>
    %98 = vector.shape_cast %97 : vector<1x8x16xbf16> to vector<8x16xbf16>
    %cst_95 = arith.constant dense<0.000000e+00> : vector<8x256xf32>
    %99 = tpu.matmul %98, %81, %cst_95 {dimension_numbers = #tpu.dot_dimension_numbers<[1], [0], [0], [1], [0, 0, 1, 1], [], []>} : vector<8x16xbf16>, vector<16x256xbf16>, vector<8x256xf32> -> vector<8x256xf32>
    %100 = arith.truncf %99 : vector<8x256xf32> to vector<8x256xbf16>
    %c2_96 = arith.constant 2 : index
    %c0_97 = arith.constant 0 : index
    %c0_98 = arith.constant 0 : index
    %101 = vector.load %arg11[%c2_96, %c0_97, %c0_98] : memref<3x256x64xbf16, #tpu.memory_space<vmem>>, vector<1x256x64xbf16>
    %102 = vector.shape_cast %101 : vector<1x256x64xbf16> to vector<256x64xbf16>
    %cst_99 = arith.constant dense<0.000000e+00> : vector<8x64xf32>
    %103 = tpu.matmul %100, %102, %cst_99 {dimension_numbers = #tpu.dot_dimension_numbers<[1], [0], [0], [1], [0, 0, 1, 1], [], []>} : vector<8x256xbf16>, vector<256x64xbf16>, vector<8x64xf32> -> vector<8x64xf32>
    %104 = arith.addf %96, %103 : vector<8x64xf32>
    %c0_100 = arith.constant 0 : index
    %c0_101 = arith.constant 0 : index
    %105 = vector.load %arg12[%c0_100, %c0_101] : memref<1x64xf32, #tpu.memory_space<vmem>>, vector<1x64xf32>
    %106 = vector.broadcast %105 : vector<1x64xf32> to vector<8x64xf32>
    %107 = arith.addf %104, %106 : vector<8x64xf32>
    %108 = arith.truncf %107 : vector<8x64xf32> to vector<8x64xbf16>
    %c0_102 = arith.constant 0 : index
    %c0_103 = arith.constant 0 : index
    %c0_104 = arith.constant 0 : index
    %109 = vector.load %arg13[%c0_102, %c0_103, %c0_104] : memref<4x2x8xbf16, #tpu.memory_space<vmem>>, vector<1x2x8xbf16>
    %110 = vector.shape_cast %109 : vector<1x2x8xbf16> to vector<2x8xbf16>
    %cst_105 = arith.constant dense<0.000000e+00> : vector<2x64xf32>
    %111 = tpu.matmul %110, %108, %cst_105 {dimension_numbers = #tpu.dot_dimension_numbers<[1], [0], [0], [1], [0, 0, 1, 1], [], []>} : vector<2x8xbf16>, vector<8x64xbf16>, vector<2x64xf32> -> vector<2x64xf32>
    %112 = arith.truncf %111 : vector<2x64xf32> to vector<2x64xbf16>
    %c0_106 = arith.constant 0 : index
    %c0_107 = arith.constant 0 : index
    %c0_108 = arith.constant 0 : index
    %113 = vector.load %arg14[%c0_106, %c0_107, %c0_108] : memref<4x64x512xbf16, #tpu.memory_space<vmem>>, vector<1x64x512xbf16>
    %114 = vector.shape_cast %113 : vector<1x64x512xbf16> to vector<64x512xbf16>
    %cst_109 = arith.constant dense<0.000000e+00> : vector<2x512xf32>
    %115 = tpu.matmul %112, %114, %cst_109 {dimension_numbers = #tpu.dot_dimension_numbers<[1], [0], [0], [1], [0, 0, 1, 1], [], []>} : vector<2x64xbf16>, vector<64x512xbf16>, vector<2x512xf32> -> vector<2x512xf32>
    %c1_110 = arith.constant 1 : index
    %c0_111 = arith.constant 0 : index
    %c0_112 = arith.constant 0 : index
    %116 = vector.load %arg13[%c1_110, %c0_111, %c0_112] : memref<4x2x8xbf16, #tpu.memory_space<vmem>>, vector<1x2x8xbf16>
    %117 = vector.shape_cast %116 : vector<1x2x8xbf16> to vector<2x8xbf16>
    %cst_113 = arith.constant dense<0.000000e+00> : vector<2x64xf32>
    %118 = tpu.matmul %117, %108, %cst_113 {dimension_numbers = #tpu.dot_dimension_numbers<[1], [0], [0], [1], [0, 0, 1, 1], [], []>} : vector<2x8xbf16>, vector<8x64xbf16>, vector<2x64xf32> -> vector<2x64xf32>
    %119 = arith.truncf %118 : vector<2x64xf32> to vector<2x64xbf16>
    %c1_114 = arith.constant 1 : index
    %c0_115 = arith.constant 0 : index
    %c0_116 = arith.constant 0 : index
    %120 = vector.load %arg14[%c1_114, %c0_115, %c0_116] : memref<4x64x512xbf16, #tpu.memory_space<vmem>>, vector<1x64x512xbf16>
    %121 = vector.shape_cast %120 : vector<1x64x512xbf16> to vector<64x512xbf16>
    %cst_117 = arith.constant dense<0.000000e+00> : vector<2x512xf32>
    %122 = tpu.matmul %119, %121, %cst_117 {dimension_numbers = #tpu.dot_dimension_numbers<[1], [0], [0], [1], [0, 0, 1, 1], [], []>} : vector<2x64xbf16>, vector<64x512xbf16>, vector<2x512xf32> -> vector<2x512xf32>
    %123 = arith.addf %115, %122 : vector<2x512xf32>
    %c2_118 = arith.constant 2 : index
    %c0_119 = arith.constant 0 : index
    %c0_120 = arith.constant 0 : index
    %124 = vector.load %arg13[%c2_118, %c0_119, %c0_120] : memref<4x2x8xbf16, #tpu.memory_space<vmem>>, vector<1x2x8xbf16>
    %125 = vector.shape_cast %124 : vector<1x2x8xbf16> to vector<2x8xbf16>
    %cst_121 = arith.constant dense<0.000000e+00> : vector<2x64xf32>
    %126 = tpu.matmul %125, %108, %cst_121 {dimension_numbers = #tpu.dot_dimension_numbers<[1], [0], [0], [1], [0, 0, 1, 1], [], []>} : vector<2x8xbf16>, vector<8x64xbf16>, vector<2x64xf32> -> vector<2x64xf32>
    %127 = arith.truncf %126 : vector<2x64xf32> to vector<2x64xbf16>
    %c2_122 = arith.constant 2 : index
    %c0_123 = arith.constant 0 : index
    %c0_124 = arith.constant 0 : index
    %128 = vector.load %arg14[%c2_122, %c0_123, %c0_124] : memref<4x64x512xbf16, #tpu.memory_space<vmem>>, vector<1x64x512xbf16>
    %129 = vector.shape_cast %128 : vector<1x64x512xbf16> to vector<64x512xbf16>
    %cst_125 = arith.constant dense<0.000000e+00> : vector<2x512xf32>
    %130 = tpu.matmul %127, %129, %cst_125 {dimension_numbers = #tpu.dot_dimension_numbers<[1], [0], [0], [1], [0, 0, 1, 1], [], []>} : vector<2x64xbf16>, vector<64x512xbf16>, vector<2x512xf32> -> vector<2x512xf32>
    %131 = arith.addf %123, %130 : vector<2x512xf32>
    %c3 = arith.constant 3 : index
    %c0_126 = arith.constant 0 : index
    %c0_127 = arith.constant 0 : index
    %132 = vector.load %arg13[%c3, %c0_126, %c0_127] : memref<4x2x8xbf16, #tpu.memory_space<vmem>>, vector<1x2x8xbf16>
    %133 = vector.shape_cast %132 : vector<1x2x8xbf16> to vector<2x8xbf16>
    %cst_128 = arith.constant dense<0.000000e+00> : vector<2x64xf32>
    %134 = tpu.matmul %133, %108, %cst_128 {dimension_numbers = #tpu.dot_dimension_numbers<[1], [0], [0], [1], [0, 0, 1, 1], [], []>} : vector<2x8xbf16>, vector<8x64xbf16>, vector<2x64xf32> -> vector<2x64xf32>
    %135 = arith.truncf %134 : vector<2x64xf32> to vector<2x64xbf16>
    %c3_129 = arith.constant 3 : index
    %c0_130 = arith.constant 0 : index
    %c0_131 = arith.constant 0 : index
    %136 = vector.load %arg14[%c3_129, %c0_130, %c0_131] : memref<4x64x512xbf16, #tpu.memory_space<vmem>>, vector<1x64x512xbf16>
    %137 = vector.shape_cast %136 : vector<1x64x512xbf16> to vector<64x512xbf16>
    %cst_132 = arith.constant dense<0.000000e+00> : vector<2x512xf32>
    %138 = tpu.matmul %135, %137, %cst_132 {dimension_numbers = #tpu.dot_dimension_numbers<[1], [0], [0], [1], [0, 0, 1, 1], [], []>} : vector<2x64xbf16>, vector<64x512xbf16>, vector<2x512xf32> -> vector<2x512xf32>
    %139 = arith.addf %131, %138 : vector<2x512xf32>
    %c0_133 = arith.constant 0 : index
    %c0_134 = arith.constant 0 : index
    %140 = vector.load %arg15[%c0_133, %c0_134] : memref<1x512xf32, #tpu.memory_space<vmem>>, vector<1x512xf32>
    %141 = vector.broadcast %140 : vector<1x512xf32> to vector<2x512xf32>
    %142 = arith.addf %139, %141 : vector<2x512xf32>
    %cst_135 = arith.constant 0.000000e+00 : f32
    %143 = vector.broadcast %cst_135 : f32 to vector<2x512xf32>
    %144 = arith.cmpf ogt, %142, %143 : vector<2x512xf32>
    %145 = arith.extui %144 : vector<2x512xi1> to vector<2x512xi32>
    %146 = arith.sitofp %145 : vector<2x512xi32> to vector<2x512xf32>
    %c0_136 = arith.constant 0 : index
    %c0_137 = arith.constant 0 : index
    %147 = vector.load %arg16[%c0_136, %c0_137] : memref<2x512xf32, #tpu.memory_space<vmem>>, vector<2x512xf32>
    tpu.vector_store %arg16[%c0_136, %c0_137], %146 {strides = array<i32>} : memref<2x512xf32, #tpu.memory_space<vmem>>, vector<2x512xf32>,
    return
  }
}

</mosaic_0001>

<bundles_post_ra>
// kernel: reconstruction_model_forward.1
= control target key start
LH: loop header
LB: loop body
LE: loop exit
PB: predicated region body
PF: predicated region fallthrough
CT: control target
= control target key end

     0   :  { %s19038_s0 = inlined_call_operand.vmem [shape: bf16[128,192], index: 0, kind: input, shape index: {}]   ;;  %s19039_s1 = inlined_call_operand.hbm [shape: bf16[3,64,128], index: 1, kind: input, shape index: {}]   ;;  %s19040_s2 = inlined_call_operand.hbm [shape: bf16[3,192,1024], index: 2, kind: input, shape index: {}]   ;;  %s19041_s3 = inlined_call_operand.hbm [shape: f32[1,1024], index: 3, kind: input, shape index: {}]   ;;  %s19042_s4 = inlined_call_operand.hbm [shape: bf16[3,32,64], index: 4, kind: input, shape index: {}]   ;;  %s19043_s5 = inlined_call_operand.hbm [shape: bf16[3,1024,512], index: 5, kind: input, shape index: {}]   ;;  %s19044_s6 = inlined_call_operand.hbm [shape: f32[1,512], index: 6, kind: input, shape index: {}]   ;;  %s19045_s7 = inlined_call_operand.hbm [shape: bf16[3,16,32], index: 7, kind: input, shape index: {}]   ;;  %s19046_s8 = inlined_call_operand.hbm [shape: bf16[3,512,256], index: 8, kind: input, shape index: {}]   ;;  %s19047_s9 = inlined_call_operand.hbm [shape: f32[1,256], index: 9, kind: input, shape index: {}]   ;;  %s19048_s10 = inlined_call_operand.hbm [shape: bf16[3,8,16], index: 10, kind: input, shape index: {}]   ;;  %s19049_s11 = inlined_call_operand.vmem [shape: bf16[3,256,64], index: 11, kind: input, shape index: {}]   ;;  %s19050_s12 = inlined_call_operand.hbm [shape: f32[1,64], index: 12, kind: input, shape index: {}]   ;;  %s19051_s13 = inlined_call_operand.hbm [shape: bf16[4,2,8], index: 13, kind: input, shape index: {}]   ;;  %s19052_s14 = inlined_call_operand.hbm [shape: bf16[4,64,512], index: 14, kind: input, shape index: {}]   ;;  %s19053_s15 = inlined_call_operand.hbm [shape: f32[1,512], index: 15, kind: input, shape index: {}]   ;;  %s19054_s16 = inlined_call_operand.vmem [shape: f32[2,512], index: 16, kind: output, shape index: {}]  }
   0x1   :  { %19075 = sst [smem:[#allocation45_spill]] %s19038_s0 }
   0x2   :  { %19076 = sst [smem:[#allocation46_spill]] %s19054_s16 }
   0x3   :  { %21 = vsyncpa [#allocation3], 0 }
   0x4   :  { %22 = vsyncpa [#allocation5], 0 }
   0x5   :  { %23 = vsyncpa [#allocation8], 0 }
   0x6   :  { %24 = vsyncpa [#allocation11], 0 }
   0x7   :  { %25 = vsyncpa [#allocation14], 0 }
   0x8   :  { %26 = vsyncpa [#allocation17], 0 }
   0x9   :  { %27 = vsyncpa [#allocation20], 0 }
   0xa   :  { %28 = vsyncpa [#allocation23], 0  ;;  %s17576_s21 = smov [#allocation4]   ;;  %s17252_s25 = scalar_lea.hbm %s19040_s2, 36864 }
   0xb   :  { %s48_s22 = sshll.u32 %s17576_s21, 4  ;;  %p17253_p0 = scmp.ne.s32.totalorder %s19040_s2, %s17252_s25  ;;  %s49_s22 = int_to_ptr.vmem [resolvable:$true] %s48_s22 }
   0xc   :  { %p17256_p1 = scmp.lt.u32.totalorder %s17252_s25, %s19040_s2 }
   0xe   :  { %p17258_p2 = pnand %p17256_p1, %p17253_p0 }
  0x10   :  { %17261 = shalt.err (!%p17258_p2)
}
  0x11   :  { %s17262_s30 = scalar_lea.vmem %s49_s22, 36864  ;;  %p17267_p4 = scmp.lt.s32.totalorder %s49_s22, %s49_s22 }
  0x12   :  { %p17263_p3 = scmp.ne.s32.totalorder %s49_s22, %s17262_s30  ;;  %p17268_p5 = scmp.lt.s32.totalorder %s17262_s30, %s17262_s30 }
  0x14   :  { %p17269_p6 = por %p17268_p5, %p17267_p4 }
  0x16   :  { %p17270_p7 = pnand %p17269_p6, %p17263_p3 }
  0x18   :  { %17273 = shalt.err (!%p17270_p7)
}
  0x19   :  { %s17577_s0 = smov 512   ;;  %s17578_s17 = smov 32  }
  0x1a   :  { %54 = dma.hbm_to_vmem [thread:$0]  %s19040_s2, 36864, %s49_s22, [#allocation5], %s17577_s0, %s17577_s0, %s17578_s17  }
  0x1b   :  { %s17579_s20 = smov [#allocation7]   ;;  %s17580_s23 = smov [#allocation10]  }
  0x1c   :  { %s70_s21 = sshll.u32 %s17579_s20, 4  ;;  %s95_s24 = sshll.u32 %s17580_s23, 4  ;;  %s71_s21 = int_to_ptr.vmem [resolvable:$true] %s70_s21  ;;  %s96_s24 = int_to_ptr.vmem [resolvable:$true] %s95_s24 }
  0x1d   :  { %s17274_s27 = scalar_lea.hbm %s19042_s4, 768 }
  0x1e   :  { %p17275_p8 = scmp.ne.s32.totalorder %s19042_s4, %s17274_s27  ;;  %p17278_p9 = scmp.lt.u32.totalorder %s17274_s27, %s19042_s4 }
  0x20   :  { %p17280_p10 = pnand %p17278_p9, %p17275_p8 }
  0x22   :  { %17283 = shalt.err (!%p17280_p10)
}
  0x23   :  { %s17284_s2 = scalar_lea.vmem %s71_s21, 768  ;;  %p17289_p12 = scmp.lt.s32.totalorder %s71_s21, %s71_s21 }
  0x24   :  { %p17285_p11 = scmp.ne.s32.totalorder %s71_s21, %s17284_s2  ;;  %p17290_p13 = scmp.lt.s32.totalorder %s17284_s2, %s17284_s2 }
  0x26   :  { %p17291_p0 = por %p17290_p13, %p17289_p12 }
  0x28   :  { %p17292_p1 = pnand %p17291_p0, %p17285_p11 }
  0x2a   :  { %17295 = shalt.err (!%p17292_p1)
}
  0x2b   :  { %s17581_s22 = smov 64   ;;  %s17582_s0 = smov 4  }
  0x2c   :  { %76 = dma.hbm_to_vmem [thread:$0]  %s19042_s4, 768, %s71_s21, [#allocation8], %s17581_s22, %s17581_s22, %s17582_s0  }
  0x2d   :  { %s17296_s20 = scalar_lea.hbm %s19044_s6, 64 }
  0x2e   :  { %p17297_p2 = scmp.ne.s32.totalorder %s19044_s6, %s17296_s20  ;;  %p17300_p3 = scmp.lt.u32.totalorder %s17296_s20, %s19044_s6 }
  0x30   :  { %p17302_p4 = pnand %p17300_p3, %p17297_p2 }
  0x32   :  { %17305 = shalt.err (!%p17302_p4)
}
  0x33   :  { %s17306_s28 = scalar_lea.vmem %s96_s24, 64  ;;  %p17311_p6 = scmp.lt.s32.totalorder %s96_s24, %s96_s24 }
  0x34   :  { %p17307_p5 = scmp.ne.s32.totalorder %s96_s24, %s17306_s28  ;;  %p17312_p7 = scmp.lt.s32.totalorder %s17306_s28, %s17306_s28 }
  0x36   :  { %p17313_p8 = por %p17312_p7, %p17311_p6 }
  0x38   :  { %p17314_p9 = pnand %p17313_p8, %p17307_p5 }
  0x3a   :  { %17317 = shalt.err (!%p17314_p9)
}
  0x3b   :  { %98 = dma.hbm_to_vmem [thread:$0]  %s19044_s6, 64, %s96_s24, [#allocation11]  }
  0x3c   :  { %s17583_s29 = smov [#allocation13]   ;;  %s17318_s18 = scalar_lea.hbm %s19046_s8, 24576 }
  0x3d   :  { %s116_s30 = sshll.u32 %s17583_s29, 4  ;;  %p17319_p10 = scmp.ne.s32.totalorder %s19046_s8, %s17318_s18  ;;  %s117_s30 = int_to_ptr.vmem [resolvable:$true] %s116_s30 }
  0x3e   :  { %p17322_p11 = scmp.lt.u32.totalorder %s17318_s18, %s19046_s8 }
  0x40   :  { %p17324_p12 = pnand %p17322_p11, %p17319_p10 }
  0x42   :  { %17327 = shalt.err (!%p17324_p12)
}
  0x43   :  { %s17328_s25 = scalar_lea.vmem %s117_s30, 24576  ;;  %p17333_p0 = scmp.lt.s32.totalorder %s117_s30, %s117_s30 }
  0x44   :  { %p17329_p13 = scmp.ne.s32.totalorder %s117_s30, %s17328_s25  ;;  %p17334_p1 = scmp.lt.s32.totalorder %s17328_s25, %s17328_s25 }
  0x46   :  { %p17335_p2 = por %p17334_p1, %p17333_p0 }
  0x48   :  { %p17336_p3 = pnand %p17335_p2, %p17329_p13 }
  0x4a   :  { %17339 = shalt.err (!%p17336_p3)
}
  0x4b   :  { %s17584_s6 = smov 128   ;;  %s17585_s24 = smov 8  }
  0x4c   :  { %122 = dma.hbm_to_vmem [thread:$0]  %s19046_s8, 24576, %s117_s30, [#allocation14], %s17584_s6, %s17584_s6, %s17585_s24  }
  0x4d   :  { %s17586_s28 = smov [#allocation16]   ;;  %s17587_s21 = smov [#allocation19]  }
  0x4e   :  { %s138_s4 = sshll.u32 %s17586_s28, 4  ;;  %s162_s29 = sshll.u32 %s17587_s21, 4  ;;  %s139_s4 = int_to_ptr.vmem [resolvable:$true] %s138_s4  ;;  %s163_s29 = int_to_ptr.vmem [resolvable:$true] %s162_s29 }
  0x4f   :  { %s17340_s18 = scalar_lea.hbm %s19048_s10, 192 }
  0x50   :  { %p17341_p4 = scmp.ne.s32.totalorder %s19048_s10, %s17340_s18  ;;  %p17344_p5 = scmp.lt.u32.totalorder %s17340_s18, %s19048_s10 }
  0x52   :  { %p17346_p6 = pnand %p17344_p5, %p17341_p4 }
  0x54   :  { %17349 = shalt.err (!%p17346_p6)
}
  0x55   :  { %s17350_s8 = scalar_lea.vmem %s139_s4, 192  ;;  %p17355_p8 = scmp.lt.s32.totalorder %s139_s4, %s139_s4 }
  0x56   :  { %p17351_p7 = scmp.ne.s32.totalorder %s139_s4, %s17350_s8  ;;  %p17356_p9 = scmp.lt.s32.totalorder %s17350_s8, %s17350_s8 }
  0x58   :  { %p17357_p10 = por %p17356_p9, %p17355_p8 }
  0x5a   :  { %p17358_p11 = pnand %p17357_p10, %p17351_p7 }
  0x5c   :  { %17361 = shalt.err (!%p17358_p11)
}
  0x5d   :  { %144 = dma.hbm_to_vmem [thread:$0]  %s19048_s10, 192, %s139_s4, [#allocation17], %s17581_s22, %s17581_s22, %s17582_s0  }
  0x5e   :  { %s17362_s26 = scalar_lea.hbm %s19051_s13, 64 }
  0x5f   :  { %p17363_p12 = scmp.ne.s32.totalorder %s19051_s13, %s17362_s26  ;;  %p17366_p13 = scmp.lt.u32.totalorder %s17362_s26, %s19051_s13 }
  0x61   :  { %p17368_p0 = pnand %p17366_p13, %p17363_p12 }
  0x63   :  { %17371 = shalt.err (!%p17368_p0)
}
  0x64   :  { %s17372_s17 = scalar_lea.vmem %s163_s29, 64  ;;  %p17377_p2 = scmp.lt.s32.totalorder %s163_s29, %s163_s29 }
  0x65   :  { %p17373_p1 = scmp.ne.s32.totalorder %s163_s29, %s17372_s17  ;;  %p17378_p3 = scmp.lt.s32.totalorder %s17372_s17, %s17372_s17 }
  0x67   :  { %p17379_p4 = por %p17378_p3, %p17377_p2 }
  0x69   :  { %p17380_p5 = pnand %p17379_p4, %p17373_p1 }
  0x6b   :  { %17383 = shalt.err (!%p17380_p5)
}
  0x6c   :  { %s17588_s10 = smov 16   ;;  %s17589_s4 = smov 1  }
  0x6d   :  { %168 = dma.hbm_to_vmem [thread:$0]  %s19051_s13, 64, %s163_s29, [#allocation20], %s17588_s10, %s17588_s10, %s17589_s4  }
  0x6e   :  { %s17590_s19 = smov [#allocation2]   ;;  %s17591_s23 = smov [#allocation6]  }
  0x6f   :  { %s36_s20 = sshll.u32 %s17590_s19, 4  ;;  %s61_s8 = sshll.u32 %s17591_s23, 4  ;;  %s37_s20 = int_to_ptr.vmem [resolvable:$true] %s36_s20  ;;  %s62_s8 = int_to_ptr.vmem [resolvable:$true] %s61_s8 }
  0x70   :  { %s17384_s6 = scalar_lea.hbm %s19039_s1, 1536 }
  0x71   :  { %p17385_p6 = scmp.ne.s32.totalorder %s19039_s1, %s17384_s6  ;;  %p17388_p7 = scmp.lt.u32.totalorder %s17384_s6, %s19039_s1 }
  0x73   :  { %p17390_p8 = pnand %p17388_p7, %p17385_p6 }
  0x75   :  { %17393 = shalt.err (!%p17390_p8)
}
  0x76   :  { %s17394_s13 = scalar_lea.vmem %s37_s20, 1536  ;;  %p17399_p10 = scmp.lt.s32.totalorder %s37_s20, %s37_s20 }
  0x77   :  { %p17395_p9 = scmp.ne.s32.totalorder %s37_s20, %s17394_s13  ;;  %p17400_p11 = scmp.lt.s32.totalorder %s17394_s13, %s17394_s13 }
  0x79   :  { %p17401_p12 = por %p17400_p11, %p17399_p10 }
  0x7b   :  { %p17402_p13 = pnand %p17401_p12, %p17395_p9 }
  0x7d   :  { %17405 = shalt.err (!%p17402_p13)
}
  0x7e   :  { %42 = dma.hbm_to_vmem [thread:$0]  %s19039_s1, 1536, %s37_s20, [#allocation3], %s17581_s22, %s17581_s22, %s17582_s0  }
  0x7f   :  { %s17406_s4 = scalar_lea.hbm %s19041_s3, 128 }
  0x80   :  { %p17407_p0 = scmp.ne.s32.totalorder %s19041_s3, %s17406_s4  ;;  %p17410_p1 = scmp.lt.u32.totalorder %s17406_s4, %s19041_s3 }
  0x82   :  { %p17412_p2 = pnand %p17410_p1, %p17407_p0 }
  0x84   :  { %17415 = shalt.err (!%p17412_p2)
}
  0x85   :  { %s17416_s30 = scalar_lea.vmem %s62_s8, 128  ;;  %p17421_p4 = scmp.lt.s32.totalorder %s62_s8, %s62_s8 }
  0x86   :  { %p17417_p3 = scmp.ne.s32.totalorder %s62_s8, %s17416_s30  ;;  %p17422_p5 = scmp.lt.s32.totalorder %s17416_s30, %s17416_s30 }
  0x88   :  { %p17423_p6 = por %p17422_p5, %p17421_p4 }
  0x8a   :  { %p17424_p7 = pnand %p17423_p6, %p17417_p3 }
  0x8c   :  { %17427 = shalt.err (!%p17424_p7)
}
  0x8d   :  { %64 = dma.hbm_to_vmem [thread:$0]  %s19041_s3, 128, %s62_s8, [#allocation5]  }
  0x8e   :  { %s17592_s25 = smov [#allocation9]   ;;  %s17593_s24 = smov [#allocation12]  }
  0x8f   :  { %s82_s6 = sshll.u32 %s17592_s25, 4  ;;  %s104_s26 = sshll.u32 %s17593_s24, 4  ;;  %s83_s6 = int_to_ptr.vmem [resolvable:$true] %s82_s6  ;;  %s105_s26 = int_to_ptr.vmem [resolvable:$true] %s104_s26 }
  0x90   :  { %s17428_s13 = scalar_lea.hbm %s19043_s5, 98304 }
  0x91   :  { %p17429_p8 = scmp.ne.s32.totalorder %s19043_s5, %s17428_s13  ;;  %p17432_p9 = scmp.lt.u32.totalorder %s17428_s13, %s19043_s5 }
  0x93   :  { %p17434_p10 = pnand %p17432_p9, %p17429_p8 }
  0x95   :  { %17437 = shalt.err (!%p17434_p10)
}
  0x96   :  { %s17438_s3 = scalar_lea.vmem %s83_s6, 98304  ;;  %p17443_p12 = scmp.lt.s32.totalorder %s83_s6, %s83_s6 }
  0x97   :  { %p17439_p11 = scmp.ne.s32.totalorder %s83_s6, %s17438_s3  ;;  %p17444_p13 = scmp.lt.s32.totalorder %s17438_s3, %s17438_s3 }
  0x99   :  { %p17445_p0 = por %p17444_p13, %p17443_p12 }
  0x9b   :  { %p17446_p1 = pnand %p17445_p0, %p17439_p11 }
  0x9d   :  { %17449 = shalt.err (!%p17446_p1)
}
  0x9e   :  { %s17594_s8 = smov 256   ;;  %s17450_s23 = scalar_lea.hbm %s19045_s7, 384 }
  0x9f   :  { %88 = dma.hbm_to_vmem [thread:$0]  %s19043_s5, 98304, %s83_s6, [#allocation8], %s17594_s8, %s17594_s8, %s17588_s10  }
  0xa0   :  { %p17451_p2 = scmp.ne.s32.totalorder %s19045_s7, %s17450_s23  ;;  %p17454_p3 = scmp.lt.u32.totalorder %s17450_s23, %s19045_s7 }
  0xa2   :  { %p17456_p4 = pnand %p17454_p3, %p17451_p2 }
  0xa4   :  { %17459 = shalt.err (!%p17456_p4)
}
  0xa5   :  { %s17460_s24 = scalar_lea.vmem %s105_s26, 384  ;;  %p17465_p6 = scmp.lt.s32.totalorder %s105_s26, %s105_s26 }
  0xa6   :  { %p17461_p5 = scmp.ne.s32.totalorder %s105_s26, %s17460_s24  ;;  %p17466_p7 = scmp.lt.s32.totalorder %s17460_s24, %s17460_s24 }
  0xa8   :  { %p17467_p8 = por %p17466_p7, %p17465_p6 }
  0xaa   :  { %p17468_p9 = pnand %p17467_p8, %p17461_p5 }
  0xac   :  { %17471 = shalt.err (!%p17468_p9)
}
  0xad   :  { %110 = dma.hbm_to_vmem [thread:$0]  %s19045_s7, 384, %s105_s26, [#allocation11], %s17581_s22, %s17581_s22, %s17582_s0  }
  0xae   :  { %s17595_s27 = smov [#allocation15]   ;;  %s17596_s13 = smov [#allocation18]  }
  0xaf   :  { %s129_s28 = sshll.u32 %s17595_s27, 4  ;;  %s153_s29 = sshll.u32 %s17596_s13, 4  ;;  %s130_s28 = int_to_ptr.vmem [resolvable:$true] %s129_s28  ;;  %s154_s29 = int_to_ptr.vmem [resolvable:$true] %s153_s29 }
  0xb0   :  { %s17472_s17 = scalar_lea.hbm %s19047_s9, 32 }
  0xb1   :  { %p17473_p10 = scmp.ne.s32.totalorder %s19047_s9, %s17472_s17  ;;  %p17476_p11 = scmp.lt.u32.totalorder %s17472_s17, %s19047_s9 }
  0xb3   :  { %p17478_p12 = pnand %p17476_p11, %p17473_p10 }
  0xb5   :  { %17481 = shalt.err (!%p17478_p12)
}
  0xb6   :  { %s17482_s7 = scalar_lea.vmem %s130_s28, 32  ;;  %p17487_p0 = scmp.lt.s32.totalorder %s130_s28, %s130_s28 }
  0xb7   :  { %p17483_p13 = scmp.ne.s32.totalorder %s130_s28, %s17482_s7  ;;  %p17488_p1 = scmp.lt.s32.totalorder %s17482_s7, %s17482_s7 }
  0xb9   :  { %p17489_p2 = por %p17488_p1, %p17487_p0 }
  0xbb   :  { %p17490_p3 = pnand %p17489_p2, %p17483_p13 }
  0xbd   :  { %17493 = shalt.err (!%p17490_p3)
}
  0xbe   :  { %132 = dma.hbm_to_vmem [thread:$0]  %s19047_s9, 32, %s130_s28, [#allocation14]  }
  0xbf   :  { %s17494_s23 = scalar_lea.hbm %s19050_s12, 16 }
  0xc0   :  { %p17495_p4 = scmp.ne.s32.totalorder %s19050_s12, %s17494_s23  ;;  %p17498_p5 = scmp.lt.u32.totalorder %s17494_s23, %s19050_s12 }
  0xc2   :  { %p17500_p6 = pnand %p17498_p5, %p17495_p4 }
  0xc4   :  { %17503 = shalt.err (!%p17500_p6)
}
  0xc5   :  { %s17504_s24 = scalar_lea.vmem %s154_s29, 16  ;;  %s17508_s5 = scalar_lea.vmem %s154_s29, 32 }
  0xc6   :  { %p17505_p7 = scmp.ne.s32.totalorder %s154_s29, %s17504_s24  ;;  %p17509_p8 = scmp.lt.s32.totalorder %s154_s29, %s154_s29 }
  0xc7   :  { %p17510_p9 = scmp.lt.s32.totalorder %s17508_s5, %s17504_s24 }
  0xc9   :  { %p17511_p10 = por %p17510_p9, %p17509_p8 }
  0xcb   :  { %p17512_p11 = pnand %p17511_p10, %p17505_p7 }
  0xcd   :  { %17515 = shalt.err (!%p17512_p11)
}
  0xce   :  { %156 = dma.hbm_to_vmem [thread:$0]  %s19050_s12, 16, %s154_s29, [#allocation17]  }
  0xcf   :  { %s17597_s27 = smov [#allocation21]   ;;  %s17598_s13 = smov [#allocation22]  }
  0xd0   :  { %s174_s28 = sshll.u32 %s17597_s27, 4  ;;  %s187_s21 = sshll.u32 %s17598_s13, 4  ;;  %s175_s28 = int_to_ptr.vmem [resolvable:$true] %s174_s28  ;;  %s188_s21 = int_to_ptr.vmem [resolvable:$true] %s187_s21 }
  0xd1   :  { %s17516_s3 = scalar_lea.hbm %s19052_s14, 8192 }
  0xd2   :  { %p17517_p12 = scmp.ne.s32.totalorder %s19052_s14, %s17516_s3  ;;  %p17520_p13 = scmp.lt.u32.totalorder %s17516_s3, %s19052_s14 }
  0xd4   :  { %p17522_p0 = pnand %p17520_p13, %p17517_p12 }
  0xd6   :  { %17525 = shalt.err (!%p17522_p0)
}
  0xd7   :  { %s17526_s12 = scalar_lea.vmem %s175_s28, 8192  ;;  %p17531_p2 = scmp.lt.s32.totalorder %s175_s28, %s175_s28 }
  0xd8   :  { %p17527_p1 = scmp.ne.s32.totalorder %s175_s28, %s17526_s12  ;;  %p17532_p3 = scmp.lt.s32.totalorder %s17526_s12, %s17526_s12 }
  0xda   :  { %p17533_p4 = por %p17532_p3, %p17531_p2 }
  0xdc   :  { %p17534_p5 = pnand %p17533_p4, %p17527_p1 }
  0xde   :  { %17537 = shalt.err (!%p17534_p5)
}
  0xdf   :  { %180 = dma.hbm_to_vmem [thread:$0]  %s19052_s14, 8192, %s175_s28, [#allocation20], %s17594_s8, %s17594_s8, %s17588_s10  }
  0xe0   :  { %s17538_s19 = scalar_lea.hbm %s19053_s15, 64 }
  0xe1   :  { %p17539_p6 = scmp.ne.s32.totalorder %s19053_s15, %s17538_s19  ;;  %p17542_p7 = scmp.lt.u32.totalorder %s17538_s19, %s19053_s15 }
  0xe3   :  { %p17544_p8 = pnand %p17542_p7, %p17539_p6 }
  0xe5   :  { %17547 = shalt.err (!%p17544_p8)
}
  0xe6   :  { %s17548_s25 = scalar_lea.vmem %s188_s21, 64  ;;  %p17553_p10 = scmp.lt.s32.totalorder %s188_s21, %s188_s21 }
  0xe7   :  { %p17549_p9 = scmp.ne.s32.totalorder %s188_s21, %s17548_s25  ;;  %p17554_p11 = scmp.lt.s32.totalorder %s17548_s25, %s17548_s25 }
  0xe9   :  { %p17555_p12 = por %p17554_p11, %p17553_p10 }
  0xeb   :  { %p17556_p13 = pnand %p17555_p12, %p17549_p9 }
  0xed   :  { %17559 = shalt.err (!%p17556_p13)
}
  0xee   :  { %190 = dma.hbm_to_vmem [thread:$0]  %s19053_s15, 64, %s188_s21, [#allocation23]  }
  0xef   :  { %17560 = dma.done.wait [#allocation3], 1536  }
  0xf0   :  { %17561 = vsyncadd [#allocation3], 4294965760 }
  0xf1   :  { %17562 = dma.done.wait [#allocation5], 36992  }
  0xf2   :  { %17563 = vsyncadd [#allocation5], 4294930304 }
  0xf3   :  { %17564 = dma.done.wait [#allocation8], 99072  }
  0xf4   :  { %17565 = vsyncadd [#allocation8], 4294868224 }
  0xf5   :  { %17566 = dma.done.wait [#allocation11], 448  }
  0xf6   :  { %17567 = vsyncadd [#allocation11], 4294966848 }
  0xf7   :  { %17568 = dma.done.wait [#allocation14], 24608  }
  0xf8   :  { %17569 = vsyncadd [#allocation14], 4294942688 }
  0xf9   :  { %17570 = dma.done.wait [#allocation17], 208  }
  0xfa   :  { %17571 = vsyncadd [#allocation17], 4294967088 }
  0xfb   :  { %17572 = dma.done.wait [#allocation20], 8256  }
  0xfc   :  { %17573 = vsyncadd [#allocation20], 4294959040 }
  0xfd   :  { %17574 = dma.done.wait [#allocation23], 64  }
  0xfe   :  { %17575 = vsyncadd [#allocation23], 4294967232  ;;  %v19056_v0 = vmov 0   ;;  %s19077_s24 = sld [smem:[#allocation45_spill]]  ;;  %v654_v16 = vld [vmem:[#allocation4 + $0x300] sm:$0xff]  ;;  %v656_v18 = vld [vmem:[#allocation4 + $0x310] sm:$0xff] }
  0xff   :  { %604 = vmatprep.mubr.bf16.mxu1 %v19056_v0  ;;  %394 = vmatprep.mubr.bf16.mxu0 %v19056_v0  ;;  %v658_v17 = vld [vmem:[#allocation4 + $0x320] sm:$0xff]  ;;  %v660_v19 = vld [vmem:[#allocation4 + $0x330] sm:$0xff]  ;;  %v15632_v37 = vld [vmem:[#allocation2 + $0x28] sm:$0xff]   ;;  %vm1230_vm0 = vcmask 523264   ;;  %vm10213_vm1 = vcmask 261120   ;;  %vm11944_vm2 = vcmask 130048  }
 0x100   :  { %v13624_v21 = vcombine.high %v654_v16, %v658_v17  ;;  %v13628_v22 = vcombine.high %v656_v18, %v660_v19  ;;  %v15631_v23 = vld [vmem:[#allocation2 + $0x20] sm:$0xff]   ;;  %v664_v27 = vld [vmem:[#allocation4 + $0x350] sm:$0xff]  ;;  %v13623_v29 = vcombine.low %v654_v16, %v658_v17  ;;  %v13627_v30 = vcombine.low %v656_v18, %v660_v19  ;;  %v15636_v38 = vld [vmem:[#allocation2 + $0x8] sm:$0xff]   ;;  %s19105_s4 = sld [smem:[#allocation46_spill]] }
 0x101   :  { %v15635_v24 = vld [vmem:[#allocation2] sm:$0xff]   ;;  %v668_v28 = vld [vmem:[#allocation4 + $0x370] sm:$0xff]  ;;  %vm17601_vm3 = vmmov 0   ;;  %vm12608_vm4 = vcmask 1043456   ;;  %vm12604_vm5 = vcmask 64512  }
 0x102   :  { %v662_v25 = vld [vmem:[#allocation4 + $0x340] sm:$0xff]  ;;  %v672_v33 = vld [vmem:[#allocation4 + $0x390] sm:$0xff]  ;;  %v13636_v35 = vcombine.high %v664_v27, %v668_v28  ;;  %v13635_v40 = vcombine.low %v664_v27, %v668_v28 }
 0x103   :  { %v666_v26 = vld [vmem:[#allocation4 + $0x360] sm:$0xff]  ;;  %v676_v36 = vld [vmem:[#allocation4 + $0x3b0] sm:$0xff] }
 0x104   :  { %v15607_v1 = vld [vmem:[%s19077_s24 + $0x4] ss:$8 sps:$4 sm:$0xff]   ;;  %v15609_v2 = vld [vmem:[%s19077_s24] ss:$8 sps:$4 sm:$0xff]   ;;  %v15610_v3 = vld [vmem:[%s19077_s24 + $0x14] ss:$8 sps:$4 sm:$0xff]   ;;  %v13632_v34 = vcombine.high %v662_v25, %v666_v26  ;;  %v13631_v39 = vcombine.low %v662_v25, %v666_v26  ;;  %v13644_v46 = vcombine.high %v672_v33, %v676_v36  ;;  %v13643_v48 = vcombine.low %v672_v33, %v676_v36 }
 0x105   :  { %572 = vmatprep.subr.bf16.mxu1 %v15607_v1  ;;  %362 = vmatprep.subr.bf16.mxu0 %v15607_v1  ;;  %v15612_v4 = vld [vmem:[%s19077_s24 + $0x10] ss:$8 sps:$4 sm:$0xff]   ;;  %v15613_v5 = vld [vmem:[%s19077_s24 + $0x24] ss:$8 sps:$4 sm:$0xff]   ;;  %v15615_v6 = vld [vmem:[%s19077_s24 + $0x20] ss:$8 sps:$4 sm:$0xff]  }
 0x106   :  { %573 = vmatpush1.bf16.msra.mxu1 %v15609_v2  ;;  %363 = vmatpush1.bf16.msra.mxu0 %v15609_v2  ;;  %v15616_v7 = vld [vmem:[%s19077_s24 + $0x34] ss:$8 sps:$4 sm:$0xff]   ;;  %v15618_v8 = vld [vmem:[%s19077_s24 + $0x30] ss:$8 sps:$4 sm:$0xff]   ;;  %v15619_v9 = vld [vmem:[%s19077_s24 + $0x44] ss:$8 sps:$4 sm:$0xff]  }
 0x107   :  { %574 = vmatprep.subr.bf16.mxu1 %v15610_v3  ;;  %364 = vmatprep.subr.bf16.mxu0 %v15610_v3  ;;  %v15621_v10 = vld [vmem:[%s19077_s24 + $0x40] ss:$8 sps:$4 sm:$0xff]   ;;  %v15622_v11 = vld [vmem:[%s19077_s24 + $0x54] ss:$8 sps:$4 sm:$0xff]   ;;  %v15624_v12 = vld [vmem:[%s19077_s24 + $0x50] ss:$8 sps:$4 sm:$0xff]  }
 0x108   :  { %v15625_v13 = vld [vmem:[%s19077_s24 + $0x64] ss:$8 sps:$4 sm:$0xff]   ;;  %v15627_v14 = vld [vmem:[%s19077_s24 + $0x60] ss:$8 sps:$4 sm:$0xff]   ;;  %v15628_v15 = vld [vmem:[%s19077_s24 + $0x74] ss:$8 sps:$4 sm:$0xff]  }
 0x109   :  { %v15630_v20 = vld [vmem:[%s19077_s24 + $0x70] ss:$8 sps:$4 sm:$0xff]   ;;  %v670_v31 = vld [vmem:[#allocation4 + $0x380] sm:$0xff] }
 0x10a   :  { %575 = vmatpush1.bf16.msra.mxu1 %v15612_v4  ;;  %365 = vmatpush1.bf16.msra.mxu0 %v15612_v4  ;;  %v674_v32 = vld [vmem:[#allocation4 + $0x3a0] sm:$0xff]  ;;  %v680_v43 = vld [vmem:[#allocation4 + $0x3d0] sm:$0xff] }
 0x10b   :  { %576 = vmatprep.subr.bf16.mxu1 %v15613_v5  ;;  %366 = vmatprep.subr.bf16.mxu0 %v15613_v5  ;;  %v678_v41 = vld [vmem:[#allocation4 + $0x3c0] sm:$0xff]  ;;  %v684_v44 = vld [vmem:[#allocation4 + $0x3f0] sm:$0xff]  ;;  %v13640_v45 = vcombine.high %v670_v31, %v674_v32  ;;  %v13639_v47 = vcombine.low %v670_v31, %v674_v32 }
 0x10c   :  { %v682_v42 = vld [vmem:[#allocation4 + $0x3e0] sm:$0xff]  ;;  %v688_v51 = vld [vmem:[#allocation4 + $0x410] sm:$0xff]  ;;  %v13652_v54 = vcombine.high %v680_v43, %v684_v44  ;;  %v13651_v58 = vcombine.low %v680_v43, %v684_v44 }
 0x10d   :  { %v686_v49 = vld [vmem:[#allocation4 + $0x400] sm:$0xff]  ;;  %v692_v52 = vld [vmem:[#allocation4 + $0x430] sm:$0xff]  ;;  %v13648_v53 = vcombine.high %v678_v41, %v682_v42  ;;  %v13647_v57 = vcombine.low %v678_v41, %v682_v42 }
 0x10e   :  { %577 = vmatpush1.bf16.msra.mxu1 %v15615_v6  ;;  %367 = vmatpush1.bf16.msra.mxu0 %v15615_v6  ;;  %v690_v50 = vld [vmem:[#allocation4 + $0x420] sm:$0xff]  ;;  %v15633_v55 = vld [vmem:[#allocation2 + $0x30] sm:$0xff]   ;;  %v13660_v1 = vcombine.high %v688_v51, %v692_v52  ;;  %v13659_v3 = vcombine.low %v688_v51, %v692_v52 }
 0x10f   :  { %578 = vmatprep.subr.bf16.mxu1 %v15616_v7  ;;  %368 = vmatprep.subr.bf16.mxu0 %v15616_v7  ;;  %v15637_v56 = vld [vmem:[#allocation2 + $0x10] sm:$0xff]   ;;  %v694_v59 = vld [vmem:[#allocation4 + $0x440] sm:$0xff]  ;;  %v13656_v63 = vcombine.high %v686_v49, %v690_v50  ;;  %v13655_v2 = vcombine.low %v686_v49, %v690_v50 }
 0x110   :  { %v698_v60 = vld [vmem:[#allocation4 + $0x460] sm:$0xff]  ;;  %v696_v61 = vld [vmem:[#allocation4 + $0x450] sm:$0xff] }
 0x111   :  { %v700_v62 = vld [vmem:[#allocation4 + $0x470] sm:$0xff]  ;;  %v702_v4 = vld [vmem:[#allocation4 + $0x480] sm:$0xff] }
 0x112   :  { %579 = vmatpush1.bf16.msra.mxu1 %v15618_v8  ;;  %369 = vmatpush1.bf16.msra.mxu0 %v15618_v8  ;;  %v706_v5 = vld [vmem:[#allocation4 + $0x4a0] sm:$0xff]  ;;  %v704_v6 = vld [vmem:[#allocation4 + $0x490] sm:$0xff]  ;;  %v13664_v8 = vcombine.high %v694_v59, %v698_v60 }
 0x113   :  { %580 = vmatprep.subr.bf16.mxu1 %v15619_v9  ;;  %370 = vmatprep.subr.bf16.mxu0 %v15619_v9  ;;  %v708_v7 = vld [vmem:[#allocation4 + $0x4b0] sm:$0xff]  ;;  %v13668_v9 = vcombine.high %v696_v61, %v700_v62  ;;  %v13672_v18 = vcombine.high %v702_v4, %v706_v5  ;;  %v730_v31 = vld [vmem:[#allocation4 + $0x560] sm:$0xff] }
 0x114   :  { %v712_v16 = vld [vmem:[#allocation4 + $0x4d0] sm:$0xff]  ;;  %v13676_v19 = vcombine.high %v704_v6, %v708_v7  ;;  %v742_v50 = vld [vmem:[#allocation4 + $0x5c0] sm:$0xff] }
 0x115   :  { %v716_v17 = vld [vmem:[#allocation4 + $0x4f0] sm:$0xff]  ;;  %v746_v51 = vld [vmem:[#allocation4 + $0x5e0] sm:$0xff] }
 0x116   :  { %581 = vmatpush1.bf16.msra.mxu1 %v15621_v10  ;;  %371 = vmatpush1.bf16.msra.mxu0 %v15621_v10  ;;  %v15634_v10 = vld [vmem:[#allocation2 + $0x38] sm:$0xff]   ;;  %v724_v25 = vld [vmem:[#allocation4 + $0x530] sm:$0xff]  ;;  %v13684_v27 = vcombine.high %v712_v16, %v716_v17 }
 0x117   :  { %582 = vmatprep.subr.bf16.mxu1 %v15622_v11  ;;  %372 = vmatprep.subr.bf16.mxu0 %v15622_v11  ;;  %v15638_v11 = vld [vmem:[#allocation2 + $0x18] sm:$0xff]   ;;  %v728_v32 = vld [vmem:[#allocation4 + $0x550] sm:$0xff] }
 0x118   :  { %v732_v33 = vld [vmem:[#allocation4 + $0x570] sm:$0xff] }
 0x119   :  { %v740_v41 = vld [vmem:[#allocation4 + $0x5b0] sm:$0xff]  ;;  %v13700_v43 = vcombine.high %v728_v32, %v732_v33 }
 0x11a   :  { %583 = vmatpush1.bf16.msra.mxu1 %v15624_v12  ;;  %373 = vmatpush1.bf16.msra.mxu0 %v15624_v12  ;;  %v13663_v12 = vcombine.low %v694_v59, %v698_v60  ;;  %v744_v52 = vld [vmem:[#allocation4 + $0x5d0] sm:$0xff]  ;;  %v659_v59 = vld [vmem:[#allocation4 + $0x328] sm:$0xff]  ;;  %v443_v60 = vld [vmem:[#allocation4] sm:$0xff] }
 0x11b   :  { %584 = vmatprep.subr.bf16.mxu1 %v15625_v13  ;;  %374 = vmatprep.subr.bf16.mxu0 %v15625_v13  ;;  %v13667_v13 = vcombine.low %v696_v61, %v700_v62  ;;  %v447_v62 = vld [vmem:[#allocation4 + $0x20] sm:$0xff] }
 0x11e   :  { %585 = vmatpush1.bf16.msra.mxu1 %v15627_v14  ;;  %375 = vmatpush1.bf16.msra.mxu0 %v15627_v14  ;;  %v710_v14 = vld [vmem:[#allocation4 + $0x4c0] sm:$0xff] }
 0x11f   :  { %586 = vmatprep.subr.bf16.mxu1 %v15628_v15  ;;  %376 = vmatprep.subr.bf16.mxu0 %v15628_v15  ;;  %v714_v15 = vld [vmem:[#allocation4 + $0x4e0] sm:$0xff] }
 0x120   :  { %v13680_v26 = vcombine.high %v710_v14, %v714_v15  ;;  %v13679_v28 = vcombine.low %v710_v14, %v714_v15 }
 0x122   :  { %587 = vmatpush1.bf16.msra.mxu1 %v15630_v20  ;;  %377 = vmatpush1.bf16.msra.mxu0 %v15630_v20  ;;  %v13671_v20 = vcombine.low %v702_v4, %v706_v5  ;;  %v663_v4 = vld [vmem:[#allocation4 + $0x348] sm:$0xff] }
 0x123   :  { %1243 = vmatprep.subr.bf16.mxu1 %v13624_v21  ;;  %1389 = vmatprep.subr.bf16.mxu0 %v13628_v22  ;;  %v13675_v21 = vcombine.low %v704_v6, %v708_v7  ;;  %v718_v22 = vld [vmem:[#allocation4 + $0x500] sm:$0xff]  ;;  %v667_v5 = vld [vmem:[#allocation4 + $0x368] sm:$0xff] }
 0x125   :  { %605 = vmatmul.mubr.bf16.vlgmr.msra.gmra.mrb[0].mxu1 %v15631_v23  ;;  %395 = vmatmul.mubr.bf16.vlgmr.msra.gmra.mrb[0].mxu0 %v15635_v24  ;;  %v722_v23 = vld [vmem:[#allocation4 + $0x520] sm:$0xff]  ;;  %v720_v24 = vld [vmem:[#allocation4 + $0x510] sm:$0xff] }
 0x126   :  { %614 = vmatprep.mubr.bf16.mxu1 %v19056_v0  ;;  %404 = vmatprep.mubr.bf16.mxu0 %v19056_v0  ;;  %v13687_v36 = vcombine.low %v718_v22, %v722_v23 }
 0x127   :  { %1244 = vmatpush1.bf16.msra.mxu1 %v13623_v29  ;;  %1390 = vmatpush1.bf16.msra.mxu0 %v13627_v30  ;;  %v13683_v29 = vcombine.low %v712_v16, %v716_v17  ;;  %v726_v30 = vld [vmem:[#allocation4 + $0x540] sm:$0xff] }
 0x128   :  { %1245 = vmatprep.subr.bf16.mxu1 %v13632_v34  ;;  %1391 = vmatprep.subr.bf16.mxu0 %v13636_v35  ;;  %v13688_v34 = vcombine.high %v718_v22, %v722_v23  ;;  %v13692_v35 = vcombine.high %v720_v24, %v724_v25  ;;  %v13696_v42 = vcombine.high %v726_v30, %v730_v31  ;;  %v675_v22 = vld [vmem:[#allocation4 + $0x3a8] sm:$0xff]  ;;  %v459_v23 = vld [vmem:[#allocation4 + $0x80] sm:$0xff] }
 0x129   :  { %v13695_v44 = vcombine.low %v726_v30, %v730_v31 }
 0x12b   :  { %1246 = vmatpush1.bf16.msra.mxu1 %v13631_v39  ;;  %1392 = vmatpush1.bf16.msra.mxu0 %v13635_v40  ;;  %v738_v39 = vld [vmem:[#allocation4 + $0x5a0] sm:$0xff]  ;;  %v736_v40 = vld [vmem:[#allocation4 + $0x590] sm:$0xff] }
 0x12c   :  { %1247 = vmatprep.subr.bf16.mxu1 %v13640_v45  ;;  %1393 = vmatprep.subr.bf16.mxu0 %v13644_v46  ;;  %v13699_v45 = vcombine.low %v728_v32, %v732_v33  ;;  %v13707_v49 = vcombine.low %v736_v40, %v740_v41 }
 0x12d   :  { %615 = vmatmul.mubr.bf16.gmra.mrb[4].mxu1 %v15632_v37  ;;  %405 = vmatmul.mubr.bf16.gmra.mrb[4].mxu0 %v15636_v38  ;;  %v13691_v37 = vcombine.low %v720_v24, %v724_v25  ;;  %v734_v38 = vld [vmem:[#allocation4 + $0x580] sm:$0xff] }
 0x12e   :  { %624 = vmatprep.mubr.bf16.mxu1 %v19056_v0  ;;  %414 = vmatprep.mubr.bf16.mxu0 %v19056_v0  ;;  %v13704_v46 = vcombine.high %v734_v38, %v738_v39  ;;  %v463_v24 = vld [vmem:[#allocation4 + $0xa0] sm:$0xff] }
 0x12f   :  { %1248 = vmatpush1.bf16.msra.mxu1 %v13639_v47  ;;  %1394 = vmatpush1.bf16.msra.mxu0 %v13643_v48  ;;  %v13708_v47 = vcombine.high %v736_v40, %v740_v41  ;;  %v13703_v48 = vcombine.low %v734_v38, %v738_v39  ;;  %v13752_v33 = vcombine.high %v459_v23, %v463_v24 }
 0x130   :  { %1249 = vmatprep.subr.bf16.mxu1 %v13648_v53  ;;  %1395 = vmatprep.subr.bf16.mxu0 %v13652_v54  ;;  %v13712_v53 = vcombine.high %v742_v50, %v746_v51  ;;  %v748_v54 = vld [vmem:[#allocation4 + $0x5f0] sm:$0xff] }
 0x133   :  { %1250 = vmatpush1.bf16.msra.mxu1 %v13647_v57  ;;  %1396 = vmatpush1.bf16.msra.mxu0 %v13651_v58  ;;  %v13716_v57 = vcombine.high %v744_v52, %v748_v54  ;;  %v655_v58 = vld [vmem:[#allocation4 + $0x308] sm:$0xff] }
 0x134   :  { %1251 = vmatprep.subr.bf16.mxu1 %v13656_v63  ;;  %1397 = vmatprep.subr.bf16.mxu0 %v13660_v1  ;;  %v13626_v61 = vcombine.high %v655_v58, %v659_v59  ;;  %v13625_v63 = vcombine.low %v655_v58, %v659_v59  ;;  %v13735_v1 = vcombine.low %v443_v60, %v447_v62 }
 0x135   :  { %625 = vmatmul.mubr.bf16.gmra.mrb[8].mxu1 %v15633_v55  ;;  %415 = vmatmul.mubr.bf16.gmra.mrb[8].mxu0 %v15637_v56  ;;  %v13711_v55 = vcombine.low %v742_v50, %v746_v51  ;;  %v13715_v56 = vcombine.low %v744_v52, %v748_v54  ;;  %v691_v50 = vld [vmem:[#allocation4 + $0x428] sm:$0xff]  ;;  %v475_v51 = vld [vmem:[#allocation4 + $0x100] sm:$0xff] }
 0x136   :  { %634 = vmatprep.mubr.bf16.mxu1 %v19056_v0  ;;  %424 = vmatprep.mubr.bf16.mxu0 %v19056_v0  ;;  %v479_v52 = vld [vmem:[#allocation4 + $0x120] sm:$0xff] }
 0x137   :  { %1252 = vmatpush1.bf16.msra.mxu1 %v13655_v2  ;;  %1398 = vmatpush1.bf16.msra.mxu0 %v13659_v3  ;;  %v13736_v2 = vcombine.high %v443_v60, %v447_v62  ;;  %v483_v62 = vld [vmem:[#allocation4 + $0x140] sm:$0xff] }
 0x138   :  { %1253 = vmatprep.subr.bf16.mxu1 %v13664_v8  ;;  %1399 = vmatprep.subr.bf16.mxu0 %v13668_v9 }
 0x13b   :  { %1254 = vmatpush1.bf16.msra.mxu1 %v13663_v12  ;;  %1400 = vmatpush1.bf16.msra.mxu0 %v13667_v13 }
 0x13c   :  { %1255 = vmatprep.subr.bf16.mxu1 %v13672_v18  ;;  %1401 = vmatprep.subr.bf16.mxu0 %v13676_v19  ;;  %v671_v18 = vld [vmem:[#allocation4 + $0x388] sm:$0xff] }
 0x13d   :  { %635 = vmatmul.mubr.bf16.gmra.mrb[12].mxu1 %v15634_v10  ;;  %425 = vmatmul.mubr.bf16.gmra.mrb[12].mxu0 %v15638_v11  ;;  %v451_v10 = vld [vmem:[#allocation4 + $0x40] sm:$0xff]  ;;  %v13642_v32 = vcombine.high %v671_v18, %v675_v22  ;;  %v13641_v41 = vcombine.low %v671_v18, %v675_v22 }
 0x13e   :  { %v455_v11 = vld [vmem:[#allocation4 + $0x60] sm:$0xff] }
 0x13f   :  { %1256 = vmatpush1.bf16.msra.mxu1 %v13671_v20  ;;  %1402 = vmatpush1.bf16.msra.mxu0 %v13675_v21  ;;  %v13634_v20 = vcombine.high %v663_v4, %v667_v5  ;;  %v13744_v21 = vcombine.high %v451_v10, %v455_v11 }
 0x140   :  { %1257 = vmatprep.subr.bf16.mxu1 %v13680_v26  ;;  %1403 = vmatprep.subr.bf16.mxu0 %v13684_v27  ;;  %v13633_v26 = vcombine.low %v663_v4, %v667_v5  ;;  %v13743_v27 = vcombine.low %v451_v10, %v455_v11  ;;  %v13767_v10 = vcombine.low %v475_v51, %v479_v52  ;;  %v703_v11 = vld [vmem:[#allocation4 + $0x488] sm:$0xff] }
 0x143   :  { %1258 = vmatpush1.bf16.msra.mxu1 %v13679_v28  ;;  %1404 = vmatpush1.bf16.msra.mxu0 %v13683_v29  ;;  %v679_v28 = vld [vmem:[#allocation4 + $0x3c8] sm:$0xff] }
 0x144   :  { %1259 = vmatprep.subr.bf16.mxu1 %v13688_v34  ;;  %1405 = vmatprep.subr.bf16.mxu0 %v13692_v35  ;;  %v683_v29 = vld [vmem:[#allocation4 + $0x3e8] sm:$0xff]  ;;  %v467_v34 = vld [vmem:[#allocation4 + $0xc0] sm:$0xff] }
 0x145   :  { %v471_v35 = vld [vmem:[#allocation4 + $0xe0] sm:$0xff]  ;;  %v13649_v54 = vcombine.low %v679_v28, %v683_v29 }
 0x147   :  { %1260 = vmatpush1.bf16.msra.mxu1 %v13687_v36  ;;  %1406 = vmatpush1.bf16.msra.mxu0 %v13691_v37 }
 0x148   :  { %1261 = vmatprep.subr.bf16.mxu1 %v13696_v42  ;;  %1407 = vmatprep.subr.bf16.mxu0 %v13700_v43 }
 0x14b   :  { %1262 = vmatpush1.bf16.msra.mxu1 %v13695_v44  ;;  %1408 = vmatpush1.bf16.msra.mxu0 %v13699_v45  ;;  %v13751_v45 = vcombine.low %v459_v23, %v463_v24 }
 0x14c   :  { %1263 = vmatprep.subr.bf16.mxu1 %v13704_v46  ;;  %1409 = vmatprep.subr.bf16.mxu0 %v13708_v47  ;;  %v687_v46 = vld [vmem:[#allocation4 + $0x408] sm:$0xff] }
 0x14d   :  { %v13658_v60 = vcombine.high %v687_v46, %v691_v50 }
 0x14f   :  { %1264 = vmatpush1.bf16.msra.mxu1 %v13703_v48  ;;  %1410 = vmatpush1.bf16.msra.mxu0 %v13707_v49  ;;  %v13650_v48 = vcombine.high %v679_v28, %v683_v29  ;;  %v13760_v49 = vcombine.high %v467_v34, %v471_v35 }
 0x150   :  { %1265 = vmatprep.subr.bf16.mxu1 %v13712_v53  ;;  %1411 = vmatprep.subr.bf16.mxu0 %v13716_v57  ;;  %v699_v57 = vld [vmem:[#allocation4 + $0x468] sm:$0xff] }
 0x153   :  { %1266 = vmatpush1.bf16.msra.mxu1 %v13711_v55  ;;  %1412 = vmatpush1.bf16.msra.mxu0 %v13715_v56  ;;  %v13759_v55 = vcombine.low %v467_v34, %v471_v35  ;;  %v695_v56 = vld [vmem:[#allocation4 + $0x448] sm:$0xff]  ;;  %v503_v34 = vld [vmem:[#allocation4 + $0x1e0] sm:$0xff] }
 0x154   :  { %1316 = vmatprep.subr.bf16.mxu1 %v13626_v61  ;;  %2027 = vmatprep.subr.bf16.mxu0 %v13736_v2  ;;  %v13768_v61 = vcombine.high %v475_v51, %v479_v52  ;;  %v13665_v23 = vcombine.low %v695_v56, %v699_v57  ;;  %v507_v52 = vld [vmem:[#allocation4 + $0x200] sm:$0xff] }
 0x1f8   :  { %v606_v3 = vpop.f32.mrb[0].mxu1  ;;  %v396_v6 = vpop.f32.mrb[0].mxu0 }
 0x1f9   :  { %v608_v7 = vpop.f32.mrb[1].mxu1  ;;  %v398_v8 = vpop.f32.mrb[1].mxu0 }
 0x1fa   :  { %v610_v9 = vpop.f32.mrb[2].mxu1  ;;  %v400_v12 = vpop.f32.mrb[2].mxu0 }
 0x1fb   :  { %v17932_v13 = vpack.c.bf16 %v610_v9, %v606_v3  ;;  %v612_v14 = vpop.f32.mrb[3].mxu1  ;;  %v17934_v15 = vpack.c.bf16 %v400_v12, %v396_v6  ;;  %v402_v16 = vpop.f32.mrb[3].mxu0  ;;  %v13657_v6 = vcombine.low %v687_v46, %v691_v50  ;;  %v707_v12 = vld [vmem:[#allocation4 + $0x4a8] sm:$0xff] }
 0x1fc   :  { %v17936_v17 = vpack.c.bf16 %v612_v14, %v608_v7  ;;  %v17938_v19 = vpack.c.bf16 %v402_v16, %v398_v8  ;;  %v13666_v16 = vcombine.high %v695_v56, %v699_v57  ;;  %v13674_v29 = vcombine.high %v703_v11, %v707_v12  ;;  %v719_v46 = vld [vmem:[#allocation4 + $0x508] sm:$0xff] }
 0x1fd   :  { %v727_v56 = vld [vmem:[#allocation4 + $0x548] sm:$0xff] }
 0x1fe   :  { %13719 = vmatprep.mubr.msk.bf16.mxu1 %vm1230_vm0, %v17936_v17  ;;  %13727 = vmatprep.mubr.msk.bf16.mxu0 %vm1230_vm0, %v17936_v17  ;;  %v731_v57 = vld [vmem:[#allocation4 + $0x568] sm:$0xff] }
 0x1ff   :  { %1276 = vmatmul.mubr.bf16.vlgmr.msra.gmra.mrb[16].mxu1 %v17932_v13  ;;  %1422 = vmatmul.mubr.bf16.vlgmr.msra.gmra.mrb[16].mxu0 %v17932_v13 }
 0x200   :  { %1317 = vmatpush1.bf16.msra.mxu1 %v13625_v63  ;;  %2028 = vmatpush1.bf16.msra.mxu0 %v13735_v1  ;;  %v616_v25 = vpop.f32.mrb[4].mxu1  ;;  %v406_v30 = vpop.f32.mrb[4].mxu0  ;;  %v487_v63 = vld [vmem:[#allocation4 + $0x160] sm:$0xff] }
 0x201   :  { %v618_v31 = vpop.f32.mrb[5].mxu1  ;;  %1318 = vmatprep.subr.bf16.mxu1 %v13634_v20  ;;  %2029 = vmatprep.subr.bf16.mxu0 %v13744_v21  ;;  %v408_v36 = vpop.f32.mrb[5].mxu0  ;;  %v13776_v18 = vcombine.high %v483_v62, %v487_v63  ;;  %v491_v20 = vld [vmem:[#allocation4 + $0x180] sm:$0xff]  ;;  %v13775_v24 = vcombine.low %v483_v62, %v487_v63 }
 0x202   :  { %v620_v37 = vpop.f32.mrb[6].mxu1  ;;  %v410_v38 = vpop.f32.mrb[6].mxu0  ;;  %v495_v21 = vld [vmem:[#allocation4 + $0x1a0] sm:$0xff] }
 0x203   :  { %v17946_v39 = vpack.c.bf16 %v620_v37, %v616_v25  ;;  %v622_v40 = vpop.f32.mrb[7].mxu1  ;;  %v17948_v42 = vpack.c.bf16 %v410_v38, %v406_v30  ;;  %v412_v43 = vpop.f32.mrb[7].mxu0  ;;  %v711_v25 = vld [vmem:[#allocation4 + $0x4c8] sm:$0xff]  ;;  %v13784_v30 = vcombine.high %v491_v20, %v495_v21  ;;  %v13673_v38 = vcombine.low %v703_v11, %v707_v12 }
 0x204   :  { %v17950_v44 = vpack.c.bf16 %v622_v40, %v618_v31  ;;  %1319 = vmatpush1.bf16.msra.mxu1 %v13633_v26  ;;  %2030 = vmatpush1.bf16.msra.mxu0 %v13743_v27  ;;  %v17952_v47 = vpack.c.bf16 %v412_v43, %v408_v36  ;;  %v715_v26 = vld [vmem:[#allocation4 + $0x4e8] sm:$0xff] }
 0x205   :  { %1320 = vmatprep.subr.bf16.mxu1 %v13642_v32  ;;  %2031 = vmatprep.subr.bf16.mxu0 %v13752_v33  ;;  %v499_v33 = vld [vmem:[#allocation4 + $0x1c0] sm:$0xff]  ;;  %v13682_v50 = vcombine.high %v711_v25, %v715_v26  ;;  %v743_v12 = vld [vmem:[#allocation4 + $0x5c8] sm:$0xff] }
 0x206   :  { %13720 = vmatprep.mubr.msk.bf16.mxu1 %vm1230_vm0, %v17950_v44  ;;  %13728 = vmatprep.mubr.msk.bf16.mxu0 %vm1230_vm0, %v17950_v44  ;;  %v13792_v51 = vcombine.high %v499_v33, %v503_v34 }
 0x207   :  { %1286 = vmatmul.mubr.bf16.gmra.mrb[20].mxu1 %v17946_v39  ;;  %1432 = vmatmul.mubr.bf16.gmra.mrb[20].mxu0 %v17946_v39 }
 0x208   :  { %1321 = vmatpush1.bf16.msra.mxu1 %v13641_v41  ;;  %2032 = vmatpush1.bf16.msra.mxu0 %v13751_v45  ;;  %v626_v53 = vpop.f32.mrb[8].mxu1  ;;  %v416_v58 = vpop.f32.mrb[8].mxu0  ;;  %v13783_v45 = vcombine.low %v491_v20, %v495_v21  ;;  %v531_v21 = vld [vmem:[#allocation4 + $0x2c0] sm:$0xff] }
 0x209   :  { %v628_v59 = vpop.f32.mrb[9].mxu1  ;;  %1322 = vmatprep.subr.bf16.mxu1 %v13650_v48  ;;  %2033 = vmatprep.subr.bf16.mxu0 %v13760_v49  ;;  %v418_v1 = vpop.f32.mrb[9].mxu0  ;;  %v723_v48 = vld [vmem:[#allocation4 + $0x528] sm:$0xff] }
 0x20a   :  { %v630_v2 = vpop.f32.mrb[10].mxu1  ;;  %v420_v3 = vpop.f32.mrb[10].mxu0  ;;  %v13689_v62 = vcombine.low %v719_v46, %v723_v48 }
 0x20b   :  { %v17960_v4 = vpack.c.bf16 %v630_v2, %v626_v53  ;;  %v632_v5 = vpop.f32.mrb[11].mxu1  ;;  %v17962_v7 = vpack.c.bf16 %v420_v3, %v416_v58  ;;  %v422_v8 = vpop.f32.mrb[11].mxu0  ;;  %v511_v53 = vld [vmem:[#allocation4 + $0x220] sm:$0xff]  ;;  %v13690_v58 = vcombine.high %v719_v46, %v723_v48  ;;  %v739_v2 = vld [vmem:[#allocation4 + $0x5a8] sm:$0xff]  ;;  %v13698_v3 = vcombine.high %v727_v56, %v731_v57  ;;  %v673_v46 = vld [vmem:[#allocation4 + $0x398] sm:$0xff] }
 0x20c   :  { %v17964_v9 = vpack.c.bf16 %v632_v5, %v628_v59  ;;  %1323 = vmatpush1.bf16.msra.mxu1 %v13649_v54  ;;  %2034 = vmatpush1.bf16.msra.mxu0 %v13759_v55  ;;  %v17966_v14 = vpack.c.bf16 %v422_v8, %v418_v1  ;;  %v13681_v54 = vcombine.low %v711_v25, %v715_v26  ;;  %v735_v1 = vld [vmem:[#allocation4 + $0x588] sm:$0xff]  ;;  %v527_v8 = vld [vmem:[#allocation4 + $0x2a0] sm:$0xff]  ;;  %v657_v25 = vld [vmem:[#allocation4 + $0x318] sm:$0xff] }
 0x20d   :  { %1324 = vmatprep.subr.bf16.mxu1 %v13658_v60  ;;  %2035 = vmatprep.subr.bf16.mxu0 %v13768_v61  ;;  %v13791_v55 = vcombine.low %v499_v33, %v503_v34  ;;  %v13800_v59 = vcombine.high %v507_v52, %v511_v53  ;;  %v515_v60 = vld [vmem:[#allocation4 + $0x240] sm:$0xff]  ;;  %v13799_v63 = vcombine.low %v507_v52, %v511_v53  ;;  %v661_v26 = vld [vmem:[#allocation4 + $0x338] sm:$0xff]  ;;  %v461_v53 = vld [vmem:[#allocation4 + $0x90] sm:$0xff] }
 0x20e   :  { %13721 = vmatprep.mubr.msk.bf16.mxu1 %vm1230_vm0, %v17964_v9  ;;  %13729 = vmatprep.mubr.msk.bf16.mxu0 %vm1230_vm0, %v17964_v9  ;;  %v519_v61 = vld [vmem:[#allocation4 + $0x260] sm:$0xff]  ;;  %v665_v33 = vld [vmem:[#allocation4 + $0x358] sm:$0xff] }
 0x20f   :  { %1296 = vmatmul.mubr.bf16.gmra.mrb[24].mxu1 %v17960_v4  ;;  %1442 = vmatmul.mubr.bf16.gmra.mrb[24].mxu0 %v17960_v4  ;;  %v13808_v5 = vcombine.high %v515_v60, %v519_v61  ;;  %v13807_v11 = vcombine.low %v515_v60, %v519_v61  ;;  %v669_v34 = vld [vmem:[#allocation4 + $0x378] sm:$0xff]  ;;  %v469_v61 = vld [vmem:[#allocation4 + $0xd0] sm:$0xff] }
 0x210   :  { %1325 = vmatpush1.bf16.msra.mxu1 %v13657_v6  ;;  %2036 = vmatpush1.bf16.msra.mxu0 %v13767_v10  ;;  %v636_v22 = vpop.f32.mrb[12].mxu1  ;;  %v426_v27 = vpop.f32.mrb[12].mxu0  ;;  %v523_v6 = vld [vmem:[#allocation4 + $0x280] sm:$0xff]  ;;  %v13697_v10 = vcombine.low %v727_v56, %v731_v57  ;;  %v677_v48 = vld [vmem:[#allocation4 + $0x3b8] sm:$0xff] }
 0x211   :  { %v638_v28 = vpop.f32.mrb[13].mxu1  ;;  %1326 = vmatprep.subr.bf16.mxu1 %v13666_v16  ;;  %2037 = vmatprep.subr.bf16.mxu0 %v13776_v18  ;;  %v428_v31 = vpop.f32.mrb[13].mxu0  ;;  %v747_v16 = vld [vmem:[#allocation4 + $0x5e8] sm:$0xff]  ;;  %v13706_v18 = vcombine.high %v735_v1, %v739_v2  ;;  %v13816_v20 = vcombine.high %v523_v6, %v527_v8  ;;  %v681_v56 = vld [vmem:[#allocation4 + $0x3d8] sm:$0xff] }
 0x212   :  { %v640_v32 = vpop.f32.mrb[14].mxu1  ;;  %v430_v35 = vpop.f32.mrb[14].mxu0  ;;  %v685_v57 = vld [vmem:[#allocation4 + $0x3f8] sm:$0xff] }
 0x213   :  { %v17974_v36 = vpack.c.bf16 %v640_v32, %v636_v22  ;;  %v642_v37 = vpop.f32.mrb[15].mxu1  ;;  %v17976_v40 = vpack.c.bf16 %v430_v35, %v426_v27  ;;  %v432_v41 = vpop.f32.mrb[15].mxu0  ;;  %v535_v22 = vld [vmem:[#allocation4 + $0x2e0] sm:$0xff]  ;;  %v13714_v27 = vcombine.high %v743_v12, %v747_v16  ;;  %v13630_v35 = vcombine.high %v657_v25, %v661_v26 }
 0x214   :  { %v17978_v43 = vpack.c.bf16 %v642_v37, %v638_v28  ;;  %1327 = vmatpush1.bf16.msra.mxu1 %v13665_v23  ;;  %2038 = vmatpush1.bf16.msra.mxu0 %v13775_v24  ;;  %v17980_v49 = vpack.c.bf16 %v432_v41, %v428_v31  ;;  %v13705_v23 = vcombine.low %v735_v1, %v739_v2  ;;  %v457_v41 = vld [vmem:[#allocation4 + $0x70] sm:$0xff]  ;;  %v689_v1 = vld [vmem:[#allocation4 + $0x418] sm:$0xff] }
 0x215   :  { %1328 = vmatprep.subr.bf16.mxu1 %v13674_v29  ;;  %2039 = vmatprep.subr.bf16.mxu0 %v13784_v30  ;;  %v13815_v24 = vcombine.low %v523_v6, %v527_v8  ;;  %v13824_v28 = vcombine.high %v531_v21, %v535_v22  ;;  %v445_v29 = vld [vmem:[#allocation4 + $0x10] sm:$0xff]  ;;  %v13713_v31 = vcombine.low %v743_v12, %v747_v16  ;;  %v693_v2 = vld [vmem:[#allocation4 + $0x438] sm:$0xff] }
 0x216   :  { %13722 = vmatprep.mubr.msk.bf16.mxu1 %vm1230_vm0, %v17978_v43  ;;  %13730 = vmatprep.mubr.msk.bf16.mxu0 %vm1230_vm0, %v17978_v43  ;;  %v449_v30 = vld [vmem:[#allocation4 + $0x30] sm:$0xff]  ;;  %v13823_v32 = vcombine.low %v531_v21, %v535_v22  ;;  %v697_v12 = vld [vmem:[#allocation4 + $0x458] sm:$0xff] }
 0x217   :  { %1306 = vmatmul.mubr.bf16.gmra.mrb[28].mxu1 %v17974_v36  ;;  %1452 = vmatmul.mubr.bf16.gmra.mrb[28].mxu0 %v17974_v36  ;;  %v13740_v37 = vcombine.high %v445_v29, %v449_v30  ;;  %v477_v8 = vld [vmem:[#allocation4 + $0x110] sm:$0xff]  ;;  %v701_v16 = vld [vmem:[#allocation4 + $0x478] sm:$0xff] }
 0x218   :  { %1329 = vmatpush1.bf16.msra.mxu1 %v13673_v38  ;;  %2040 = vmatpush1.bf16.msra.mxu0 %v13783_v45  ;;  %v453_v38 = vld [vmem:[#allocation4 + $0x50] sm:$0xff]  ;;  %v13629_v45 = vcombine.low %v657_v25, %v661_v26  ;;  %v705_v25 = vld [vmem:[#allocation4 + $0x498] sm:$0xff] }
 0x219   :  { %13723 = vmatprep.mubr.msk.bf16.mxu1 %vm1230_vm0, %v17936_v17  ;;  %1330 = vmatprep.subr.bf16.mxu1 %v13682_v50  ;;  %v13739_v50 = vcombine.low %v445_v29, %v449_v30  ;;  %v13748_v52 = vcombine.high %v453_v38, %v457_v41  ;;  %v485_v22 = vld [vmem:[#allocation4 + $0x150] sm:$0xff]  ;;  %v709_v26 = vld [vmem:[#allocation4 + $0x4b8] sm:$0xff] }
 0x21a   :  { %2041 = vmatprep.subr.bf16.mxu0 %v13792_v51  ;;  %13831 = vmatprep.mubr.msk.bf16.mxu0 %vm1230_vm0, %v17938_v19  ;;  %v13638_v51 = vcombine.high %v665_v33, %v669_v34  ;;  %v493_v29 = vld [vmem:[#allocation4 + $0x190] sm:$0xff] }
 0x21b   :  { %v497_v30 = vld [vmem:[#allocation4 + $0x1b0] sm:$0xff] }
 0x21c   :  { %1331 = vmatpush1.bf16.msra.mxu1 %v13681_v54  ;;  %2042 = vmatpush1.bf16.msra.mxu0 %v13791_v55  ;;  %v465_v54 = vld [vmem:[#allocation4 + $0xb0] sm:$0xff]  ;;  %v13637_v55 = vcombine.low %v665_v33, %v669_v34  ;;  %v13678_v34 = vcombine.high %v705_v25, %v709_v26 }
 0x21d   :  { %1332 = vmatprep.subr.bf16.mxu1 %v13690_v58  ;;  %2043 = vmatprep.subr.bf16.mxu0 %v13800_v59  ;;  %v13747_v58 = vcombine.low %v453_v38, %v457_v41  ;;  %v13646_v59 = vcombine.high %v673_v46, %v677_v48  ;;  %v13756_v60 = vcombine.high %v461_v53, %v465_v54  ;;  %v501_v38 = vld [vmem:[#allocation4 + $0x1d0] sm:$0xff] }
 0x21e   :  { %v505_v41 = vld [vmem:[#allocation4 + $0x1f0] sm:$0xff] }
 0x220   :  { %1333 = vmatpush1.bf16.msra.mxu1 %v13689_v62  ;;  %2044 = vmatpush1.bf16.msra.mxu0 %v13799_v63  ;;  %v473_v62 = vld [vmem:[#allocation4 + $0xf0] sm:$0xff]  ;;  %v13645_v63 = vcombine.low %v673_v46, %v677_v48  ;;  %v13677_v46 = vcombine.low %v705_v25, %v709_v26  ;;  %v721_v48 = vld [vmem:[#allocation4 + $0x518] sm:$0xff]  ;;  %v444_v25 = vld [vmem:[#allocation4 + $0x8] sm:$0xff] }
 0x221   :  { %1334 = vmatprep.subr.bf16.mxu1 %v13698_v3  ;;  %2045 = vmatprep.subr.bf16.mxu0 %v13808_v5  ;;  %v13755_v3 = vcombine.low %v461_v53, %v465_v54  ;;  %v13654_v5 = vcombine.high %v681_v56, %v685_v57  ;;  %v13764_v6 = vcombine.high %v469_v61, %v473_v62  ;;  %v513_v53 = vld [vmem:[#allocation4 + $0x230] sm:$0xff]  ;;  %v448_v26 = vld [vmem:[#allocation4 + $0x28] sm:$0xff] }
 0x224   :  { %1335 = vmatpush1.bf16.msra.mxu1 %v13697_v10  ;;  %2046 = vmatpush1.bf16.msra.mxu0 %v13807_v11  ;;  %v481_v10 = vld [vmem:[#allocation4 + $0x130] sm:$0xff]  ;;  %v13653_v11 = vcombine.low %v681_v56, %v685_v57  ;;  %v729_v57 = vld [vmem:[#allocation4 + $0x558] sm:$0xff] }
 0x225   :  { %1336 = vmatprep.subr.bf16.mxu1 %v13706_v18  ;;  %2047 = vmatprep.subr.bf16.mxu0 %v13816_v20  ;;  %v13763_v18 = vcombine.low %v469_v61, %v473_v62  ;;  %v13662_v20 = vcombine.high %v689_v1, %v693_v2  ;;  %v13772_v21 = vcombine.high %v477_v8, %v481_v10  ;;  %v517_v61 = vld [vmem:[#allocation4 + $0x250] sm:$0xff] }
 0x226   :  { %v521_v62 = vld [vmem:[#allocation4 + $0x270] sm:$0xff] }
 0x228   :  { %1337 = vmatpush1.bf16.msra.mxu1 %v13705_v23  ;;  %2048 = vmatpush1.bf16.msra.mxu0 %v13815_v24  ;;  %v489_v23 = vld [vmem:[#allocation4 + $0x170] sm:$0xff]  ;;  %v13661_v24 = vcombine.low %v689_v1, %v693_v2  ;;  %v737_v2 = vld [vmem:[#allocation4 + $0x598] sm:$0xff] }
 0x229   :  { %1338 = vmatprep.subr.bf16.mxu1 %v13714_v27  ;;  %2049 = vmatprep.subr.bf16.mxu0 %v13824_v28  ;;  %v13771_v27 = vcombine.low %v477_v8, %v481_v10  ;;  %v13670_v28 = vcombine.high %v697_v12, %v701_v16  ;;  %v13779_v33 = vcombine.low %v485_v22, %v489_v23  ;;  %v529_v8 = vld [vmem:[#allocation4 + $0x2b0] sm:$0xff] }
 0x22a   :  { %v13812_v10 = vcombine.high %v517_v61, %v521_v62 }
 0x22c   :  { %1339 = vmatpush1.bf16.msra.mxu1 %v13713_v31  ;;  %2050 = vmatpush1.bf16.msra.mxu0 %v13823_v32  ;;  %v13780_v31 = vcombine.high %v485_v22, %v489_v23  ;;  %v13669_v32 = vcombine.low %v697_v12, %v701_v16  ;;  %v745_v12 = vld [vmem:[#allocation4 + $0x5d8] sm:$0xff]  ;;  %v537_v22 = vld [vmem:[#allocation4 + $0x2f0] sm:$0xff] }
 0x22d   :  { %1462 = vmatprep.subr.bf16.mxu1 %v13630_v35  ;;  %2173 = vmatprep.subr.bf16.mxu0 %v13740_v37  ;;  %v713_v35 = vld [vmem:[#allocation4 + $0x4d8] sm:$0xff] }
 0x22e   :  { %v717_v37 = vld [vmem:[#allocation4 + $0x4f8] sm:$0xff] }
 0x22f   :  { %1349 = vmatmul.mubr.bf16.vlgmr.msra.gmra.mrb[32].mxu1 %v17932_v13  ;;  %2060 = vmatmul.mubr.bf16.vlgmr.msra.gmra.mrb[32].mxu0 %v17934_v15  ;;  %v13686_v54 = vcombine.high %v713_v35, %v717_v37  ;;  %v13685_v56 = vcombine.low %v713_v35, %v717_v37  ;;  %v749_v16 = vld [vmem:[#allocation4 + $0x5f8] sm:$0xff]  ;;  %v13737_v35 = vcombine.low %v444_v25, %v448_v26  ;;  %v460_v37 = vld [vmem:[#allocation4 + $0x88] sm:$0xff] }
 0x230   :  { %13724 = vmatprep.mubr.msk.bf16.mxu1 %vm1230_vm0, %v17950_v44  ;;  %1463 = vmatpush1.bf16.msra.mxu1 %v13629_v45  ;;  %v13788_v45 = vcombine.high %v493_v29, %v497_v30 }
 0x231   :  { %2174 = vmatpush1.bf16.msra.mxu0 %v13739_v50  ;;  %1464 = vmatprep.subr.bf16.mxu1 %v13638_v51  ;;  %v725_v50 = vld [vmem:[#allocation4 + $0x538] sm:$0xff]  ;;  %v13787_v51 = vcombine.low %v493_v29, %v497_v30  ;;  %v13717_v30 = vcombine.low %v745_v12, %v749_v16 }
 0x232   :  { %2175 = vmatprep.subr.bf16.mxu0 %v13748_v52  ;;  %13832 = vmatprep.mubr.msk.bf16.mxu0 %vm1230_vm0, %v17952_v47  ;;  %v509_v52 = vld [vmem:[#allocation4 + $0x210] sm:$0xff]  ;;  %v13693_v1 = vcombine.low %v721_v48, %v725_v50 }
 0x234   :  { %1465 = vmatpush1.bf16.msra.mxu1 %v13637_v55  ;;  %v13796_v55 = vcombine.high %v501_v38, %v505_v41 }
 0x235   :  { %2176 = vmatpush1.bf16.msra.mxu0 %v13747_v58  ;;  %1466 = vmatprep.subr.bf16.mxu1 %v13646_v59  ;;  %v733_v58 = vld [vmem:[#allocation4 + $0x578] sm:$0xff]  ;;  %v13795_v59 = vcombine.low %v501_v38, %v505_v41  ;;  %v464_v38 = vld [vmem:[#allocation4 + $0xa8] sm:$0xff] }
 0x236   :  { %2177 = vmatprep.subr.bf16.mxu0 %v13756_v60  ;;  %v13694_v60 = vcombine.high %v721_v48, %v725_v50  ;;  %v17236_v41 = vld [vmem:[%s19077_s24 + $0x4] ss:$8 sps:$4 sm:$0xff]  }
 0x237   :  { %1359 = vmatmul.mubr.bf16.gmra.mrb[36].mxu1 %v17946_v39  ;;  %2070 = vmatmul.mubr.bf16.gmra.mrb[36].mxu0 %v17948_v42  ;;  %v468_v48 = vld [vmem:[#allocation4 + $0xc8] sm:$0xff] }
 0x238   :  { %13725 = vmatprep.mubr.msk.bf16.mxu1 %vm1230_vm0, %v17964_v9  ;;  %1467 = vmatpush1.bf16.msra.mxu1 %v13645_v63  ;;  %v13804_v63 = vcombine.high %v509_v52, %v513_v53  ;;  %v472_v50 = vld [vmem:[#allocation4 + $0xe8] sm:$0xff] }
 0x239   :  { %2178 = vmatpush1.bf16.msra.mxu0 %v13755_v3  ;;  %1468 = vmatprep.subr.bf16.mxu1 %v13654_v5  ;;  %v741_v3 = vld [vmem:[#allocation4 + $0x5b8] sm:$0xff]  ;;  %v13702_v5 = vcombine.high %v729_v57, %v733_v58 }
 0x23a   :  { %2179 = vmatprep.subr.bf16.mxu0 %v13764_v6  ;;  %13833 = vmatprep.mubr.msk.bf16.mxu0 %vm1230_vm0, %v17966_v14  ;;  %v525_v6 = vld [vmem:[#allocation4 + $0x290] sm:$0xff] }
 0x23b   :  { %v13820_v23 = vcombine.high %v525_v6, %v529_v8 }
 0x23c   :  { %1469 = vmatpush1.bf16.msra.mxu1 %v13653_v11  ;;  %v13701_v11 = vcombine.low %v729_v57, %v733_v58  ;;  %v17240_v57 = vld [vmem:[%s19077_s24 + $0x24] ss:$8 sps:$4 sm:$0xff]   ;;  %v13761_v58 = vcombine.low %v468_v48, %v472_v50 }
 0x23d   :  { %2180 = vmatpush1.bf16.msra.mxu0 %v13763_v18  ;;  %1470 = vmatprep.subr.bf16.mxu1 %v13662_v20  ;;  %v13811_v18 = vcombine.low %v517_v61, %v521_v62  ;;  %v13710_v20 = vcombine.high %v737_v2, %v741_v3  ;;  %v17242_v62 = vld [vmem:[%s19077_s24 + $0x34] ss:$8 sps:$4 sm:$0xff]  }
 0x23e   :  { %2181 = vmatprep.subr.bf16.mxu0 %v13772_v21  ;;  %v533_v21 = vld [vmem:[#allocation4 + $0x2d0] sm:$0xff] }
 0x23f   :  { %1369 = vmatmul.mubr.bf16.gmra.mrb[40].mxu1 %v17960_v4  ;;  %2080 = vmatmul.mubr.bf16.gmra.mrb[40].mxu0 %v17962_v7  ;;  %v13828_v29 = vcombine.high %v533_v21, %v537_v22 }
 0x240   :  { %13726 = vmatprep.mubr.msk.bf16.mxu1 %vm1230_vm0, %v17978_v43  ;;  %1471 = vmatpush1.bf16.msra.mxu1 %v13661_v24  ;;  %v13709_v24 = vcombine.low %v737_v2, %v741_v3  ;;  %v17244_v2 = vld [vmem:[%s19077_s24 + $0x44] ss:$8 sps:$4 sm:$0xff]  }
 0x241   :  { %2182 = vmatpush1.bf16.msra.mxu0 %v13771_v27  ;;  %1472 = vmatprep.subr.bf16.mxu1 %v13670_v28  ;;  %v13819_v27 = vcombine.low %v525_v6, %v529_v8  ;;  %v13718_v28 = vcombine.high %v745_v12, %v749_v16  ;;  %v492_v3 = vld [vmem:[#allocation4 + $0x188] sm:$0xff]  ;;  %v17246_v8 = vld [vmem:[%s19077_s24 + $0x54] ss:$8 sps:$4 sm:$0xff]   ;;  %v17247_v12 = vld [vmem:[%s19077_s24 + $0x50] ss:$8 sps:$4 sm:$0xff]  }
 0x242   :  { %2183 = vmatprep.subr.bf16.mxu0 %v13780_v31  ;;  %13834 = vmatprep.mubr.msk.bf16.mxu0 %vm1230_vm0, %v17980_v49  ;;  %v13827_v31 = vcombine.low %v533_v21, %v537_v22  ;;  %v512_v21 = vld [vmem:[#allocation4 + $0x228] sm:$0xff]  ;;  %v2434_v22 = vld [vmem:[#allocation4 + $0x600] sm:$0xff] }
 0x244   :  { %1473 = vmatpush1.bf16.msra.mxu1 %v13669_v32  ;;  %v13738_v32 = vcombine.high %v444_v25, %v448_v26  ;;  %v516_v26 = vld [vmem:[#allocation4 + $0x248] sm:$0xff] }
 0x245   :  { %2184 = vmatpush1.bf16.msra.mxu0 %v13779_v33  ;;  %1474 = vmatprep.subr.bf16.mxu1 %v13678_v34  ;;  %v452_v33 = vld [vmem:[#allocation4 + $0x48] sm:$0xff] }
 0x246   :  { %2185 = vmatprep.subr.bf16.mxu0 %v13788_v45  ;;  %v456_v34 = vld [vmem:[#allocation4 + $0x68] sm:$0xff] }
 0x247   :  { %1379 = vmatmul.mubr.bf16.gmra.mrb[44].mxu1 %v17974_v36  ;;  %2090 = vmatmul.mubr.bf16.gmra.mrb[44].mxu0 %v17976_v40  ;;  %v13746_v45 = vcombine.high %v452_v33, %v456_v34 }
 0x248   :  { %1475 = vmatpush1.bf16.msra.mxu1 %v13677_v46  ;;  %13731 = vmatprep.mubr.msk.bf16.mxu1 %vm1230_vm0, %v17936_v17  ;;  %v13803_v17 = vcombine.low %v509_v52, %v513_v53  ;;  %v13745_v46 = vcombine.low %v452_v33, %v456_v34  ;;  %v13754_v52 = vcombine.high %v460_v37, %v464_v38  ;;  %v476_v53 = vld [vmem:[#allocation4 + $0x108] sm:$0xff] }
 0x249   :  { %2186 = vmatpush1.bf16.msra.mxu0 %v13787_v51  ;;  %13839 = vmatprep.mubr.msk.bf16.mxu0 %vm1230_vm0, %v17938_v19  ;;  %v17237_v51 = vld [vmem:[%s19077_s24] ss:$8 sps:$4 sm:$0xff]  }
 0x24a   :  { %1476 = vmatprep.subr.bf16.mxu1 %v13686_v54  ;;  %2187 = vmatprep.subr.bf16.mxu0 %v13796_v55  ;;  %v480_v54 = vld [vmem:[#allocation4 + $0x128] sm:$0xff]  ;;  %v17239_v55 = vld [vmem:[%s19077_s24 + $0x10] ss:$8 sps:$4 sm:$0xff]  }
 0x24b   :  { %v13770_v61 = vcombine.high %v476_v53, %v480_v54  ;;  %v524_v34 = vld [vmem:[#allocation4 + $0x288] sm:$0xff] }
 0x24c   :  { %1477 = vmatpush1.bf16.msra.mxu1 %v13685_v56  ;;  %v13762_v56 = vcombine.high %v468_v48, %v472_v50 }
 0x24d   :  { %2188 = vmatpush1.bf16.msra.mxu0 %v13795_v59  ;;  %1478 = vmatprep.subr.bf16.mxu1 %v13694_v60  ;;  %v484_v59 = vld [vmem:[#allocation4 + $0x148] sm:$0xff] }
 0x24e   :  { %2189 = vmatprep.subr.bf16.mxu0 %v13804_v63  ;;  %v488_v60 = vld [vmem:[#allocation4 + $0x168] sm:$0xff]  ;;  %v17243_v63 = vld [vmem:[%s19077_s24 + $0x30] ss:$8 sps:$4 sm:$0xff]  }
 0x250   :  { %1479 = vmatpush1.bf16.msra.mxu1 %v13693_v1  ;;  %v13778_v1 = vcombine.high %v484_v59, %v488_v60 }
 0x251   :  { %2190 = vmatpush1.bf16.msra.mxu0 %v13803_v17  ;;  %1480 = vmatprep.subr.bf16.mxu1 %v13702_v5  ;;  %v496_v17 = vld [vmem:[#allocation4 + $0x1a8] sm:$0xff]  ;;  %v13777_v5 = vcombine.low %v484_v59, %v488_v60  ;;  %v450_v59 = vld [vmem:[#allocation4 + $0x38] sm:$0xff] }
 0x252   :  { %2191 = vmatprep.subr.bf16.mxu0 %v13812_v10  ;;  %v13786_v6 = vcombine.high %v492_v3, %v496_v17  ;;  %v500_v10 = vld [vmem:[#allocation4 + $0x1c8] sm:$0xff] }
 0x254   :  { %1481 = vmatpush1.bf16.msra.mxu1 %v13701_v11  ;;  %v504_v11 = vld [vmem:[#allocation4 + $0x1e8] sm:$0xff] }
 0x255   :  { %2192 = vmatpush1.bf16.msra.mxu0 %v13811_v18  ;;  %1482 = vmatprep.subr.bf16.mxu1 %v13710_v20  ;;  %v13794_v16 = vcombine.high %v500_v10, %v504_v11  ;;  %v17248_v18 = vld [vmem:[%s19077_s24 + $0x64] ss:$8 sps:$4 sm:$0xff]  }
 0x256   :  { %2193 = vmatprep.subr.bf16.mxu0 %v13820_v23  ;;  %v508_v20 = vld [vmem:[#allocation4 + $0x208] sm:$0xff]  ;;  %v2438_v23 = vld [vmem:[#allocation4 + $0x620] sm:$0xff] }
 0x257   :  { %v13802_v25 = vcombine.high %v508_v20, %v512_v21  ;;  %v13801_v33 = vcombine.low %v508_v20, %v512_v21  ;;  %v2486_v20 = vld [vmem:[#allocation4 + $0x7a0] sm:$0xff] }
 0x258   :  { %1483 = vmatpush1.bf16.msra.mxu1 %v13709_v24  ;;  %v13793_v24 = vcombine.low %v500_v10, %v504_v11  ;;  %v462_v11 = vld [vmem:[#allocation4 + $0x98] sm:$0xff] }
 0x259   :  { %2194 = vmatpush1.bf16.msra.mxu0 %v13819_v27  ;;  %1484 = vmatprep.subr.bf16.mxu1 %v13718_v28  ;;  %v520_v27 = vld [vmem:[#allocation4 + $0x268] sm:$0xff]  ;;  %v17250_v28 = vld [vmem:[%s19077_s24 + $0x74] ss:$8 sps:$4 sm:$0xff]  }
 0x25a   :  { %2195 = vmatprep.subr.bf16.mxu0 %v13828_v29  ;;  %v15639_v29 = vld [vmem:[#allocation2 + $0x40] sm:$0xff]   ;;  %v13809_v50 = vcombine.low %v516_v26, %v520_v27 }
 0x25c   :  { %1485 = vmatpush1.bf16.msra.mxu1 %v13717_v30  ;;  %v13852_v30 = vcombine.high %v2434_v22, %v2438_v23 }
 0x25d   :  { %2196 = vmatpush1.bf16.msra.mxu0 %v13827_v31  ;;  %2100 = vmatprep.subr.bf16.mxu1 %v13738_v32  ;;  %v2442_v31 = vld [vmem:[#allocation4 + $0x640] sm:$0xff] }
 0x25e   :  { %2352 = vmatprep.subr.bf16.mxu0 %v17236_v41  ;;  %v2446_v32 = vld [vmem:[#allocation4 + $0x660] sm:$0xff]  ;;  %v13851_v41 = vcombine.low %v2434_v22, %v2438_v23  ;;  %v470_v23 = vld [vmem:[#allocation4 + $0xd8] sm:$0xff] }
 0x25f   :  { %1495 = vmatmul.mubr.bf16.vlgmr.msra.gmra.mrb[48].mxu1 %v17932_v13  ;;  %v17238_v13 = vld [vmem:[%s19077_s24 + $0x14] ss:$8 sps:$4 sm:$0xff]   ;;  %v13860_v48 = vcombine.high %v2442_v31, %v2446_v32 }
 0x260   :  { %2206 = vmatmul.mubr.bf16.vlgmr.msra.gmra.mrb[16].mxu0 %v17934_v15  ;;  %13732 = vmatprep.mubr.msk.bf16.mxu1 %vm1230_vm0, %v17950_v44  ;;  %v13753_v44 = vcombine.low %v460_v37, %v464_v38  ;;  %v17251_v37 = vld [vmem:[%s19077_s24 + $0x70] ss:$8 sps:$4 sm:$0xff]   ;;  %v13810_v38 = vcombine.high %v516_v26, %v520_v27  ;;  %v2490_v27 = vld [vmem:[#allocation4 + $0x7c0] sm:$0xff] }
 0x261   :  { %2101 = vmatpush1.bf16.msra.mxu1 %v13737_v35  ;;  %13840 = vmatprep.mubr.msk.bf16.mxu0 %vm1230_vm0, %v17952_v47  ;;  %v528_v35 = vld [vmem:[#allocation4 + $0x2a8] sm:$0xff] }
 0x262   :  { %2353 = vmatpush1.bf16.msra.mxu0 %v17237_v51  ;;  %2102 = vmatprep.subr.bf16.mxu1 %v13746_v45  ;;  %v2450_v45 = vld [vmem:[#allocation4 + $0x680] sm:$0xff]  ;;  %v532_v51 = vld [vmem:[#allocation4 + $0x2c8] sm:$0xff] }
 0x263   :  { %2354 = vmatprep.subr.bf16.mxu0 %v17238_v13  ;;  %v13818_v13 = vcombine.high %v524_v34, %v528_v35 }
 0x265   :  { %2103 = vmatpush1.bf16.msra.mxu1 %v13745_v46  ;;  %v2454_v46 = vld [vmem:[#allocation4 + $0x6a0] sm:$0xff] }
 0x266   :  { %2355 = vmatpush1.bf16.msra.mxu0 %v17239_v55  ;;  %2104 = vmatprep.subr.bf16.mxu1 %v13754_v52  ;;  %v536_v52 = vld [vmem:[#allocation4 + $0x2e8] sm:$0xff]  ;;  %v2462_v55 = vld [vmem:[#allocation4 + $0x6e0] sm:$0xff] }
 0x267   :  { %1505 = vmatmul.mubr.bf16.gmra.mrb[52].mxu1 %v17946_v39  ;;  %2356 = vmatprep.subr.bf16.mxu0 %v17240_v57  ;;  %v17241_v39 = vld [vmem:[%s19077_s24 + $0x20] ss:$8 sps:$4 sm:$0xff]   ;;  %v13817_v57 = vcombine.low %v524_v34, %v528_v35  ;;  %v13826_v60 = vcombine.high %v532_v51, %v536_v52 }
 0x268   :  { %2216 = vmatmul.mubr.bf16.gmra.mrb[20].mxu0 %v17948_v42  ;;  %13733 = vmatprep.mubr.msk.bf16.mxu1 %vm1230_vm0, %v17964_v9  ;;  %v13769_v9 = vcombine.low %v476_v53, %v480_v54  ;;  %v13859_v53 = vcombine.low %v2442_v31, %v2446_v32  ;;  %v2458_v54 = vld [vmem:[#allocation4 + $0x6c0] sm:$0xff]  ;;  %v478_v31 = vld [vmem:[#allocation4 + $0x118] sm:$0xff] }
 0x269   :  { %2105 = vmatpush1.bf16.msra.mxu1 %v13753_v44  ;;  %13841 = vmatprep.mubr.msk.bf16.mxu0 %vm1230_vm0, %v17966_v14  ;;  %v15640_v44 = vld [vmem:[#allocation2 + $0x48] sm:$0xff]   ;;  %v482_v32 = vld [vmem:[#allocation4 + $0x138] sm:$0xff]  ;;  %v2498_v35 = vld [vmem:[#allocation4 + $0x800] sm:$0xff] }
 0x26a   :  { %2357 = vmatpush1.bf16.msra.mxu0 %v17241_v39  ;;  %2106 = vmatprep.subr.bf16.mxu1 %v13762_v56  ;;  %v13868_v56 = vcombine.high %v2450_v45, %v2454_v46  ;;  %v13867_v39 = vcombine.low %v2450_v45, %v2454_v46  ;;  %v486_v45 = vld [vmem:[#allocation4 + $0x158] sm:$0xff] }
 0x26b   :  { %2358 = vmatprep.subr.bf16.mxu0 %v17242_v62  ;;  %v2470_v62 = vld [vmem:[#allocation4 + $0x720] sm:$0xff]  ;;  %v490_v46 = vld [vmem:[#allocation4 + $0x178] sm:$0xff] }
 0x26d   :  { %2107 = vmatpush1.bf16.msra.mxu1 %v13761_v58  ;;  %v446_v58 = vld [vmem:[#allocation4 + $0x18] sm:$0xff] }
 0x26e   :  { %2359 = vmatpush1.bf16.msra.mxu0 %v17243_v63  ;;  %2108 = vmatprep.subr.bf16.mxu1 %v13770_v61  ;;  %v2466_v61 = vld [vmem:[#allocation4 + $0x700] sm:$0xff]  ;;  %v13825_v63 = vcombine.low %v532_v51, %v536_v52  ;;  %v13741_v10 = vcombine.low %v446_v58, %v450_v59 }
 0x26f   :  { %1515 = vmatmul.mubr.bf16.gmra.mrb[56].mxu1 %v17960_v4  ;;  %2360 = vmatprep.subr.bf16.mxu0 %v17244_v2  ;;  %v17245_v4 = vld [vmem:[%s19077_s24 + $0x40] ss:$8 sps:$4 sm:$0xff]   ;;  %v454_v2 = vld [vmem:[#allocation4 + $0x58] sm:$0xff] }
 0x270   :  { %2226 = vmatmul.mubr.bf16.gmra.mrb[24].mxu0 %v17962_v7  ;;  %13734 = vmatprep.mubr.msk.bf16.mxu1 %vm1230_vm0, %v17978_v43  ;;  %v13785_v43 = vcombine.low %v492_v3, %v496_v17  ;;  %v458_v3 = vld [vmem:[#allocation4 + $0x78] sm:$0xff]  ;;  %v15641_v17 = vld [vmem:[#allocation2 + $0x50] sm:$0xff]   ;;  %v2506_v51 = vld [vmem:[#allocation4 + $0x840] sm:$0xff] }
 0x271   :  { %2109 = vmatpush1.bf16.msra.mxu1 %v13769_v9  ;;  %13842 = vmatprep.mubr.msk.bf16.mxu0 %vm1230_vm0, %v17980_v49  ;;  %v13876_v9 = vcombine.high %v2458_v54, %v2462_v55  ;;  %v13749_v22 = vcombine.low %v454_v2, %v458_v3  ;;  %v2510_v52 = vld [vmem:[#allocation4 + $0x860] sm:$0xff] }
 0x272   :  { %2361 = vmatpush1.bf16.msra.mxu0 %v17245_v4  ;;  %2110 = vmatprep.subr.bf16.mxu1 %v13778_v1  ;;  %v13742_v1 = vcombine.high %v446_v58, %v450_v59  ;;  %v2474_v4 = vld [vmem:[#allocation4 + $0x740] sm:$0xff]  ;;  %v13924_v59 = vcombine.high %v2506_v51, %v2510_v52 }
 0x273   :  { %2362 = vmatprep.subr.bf16.mxu0 %v17246_v8  ;;  %v13884_v8 = vcombine.high %v2466_v61, %v2470_v62  ;;  %v2518_v58 = vld [vmem:[#allocation4 + $0x8a0] sm:$0xff] }
 0x275   :  { %2111 = vmatpush1.bf16.msra.mxu1 %v13777_v5  ;;  %v13875_v5 = vcombine.low %v2458_v54, %v2462_v55  ;;  %v498_v54 = vld [vmem:[#allocation4 + $0x1b8] sm:$0xff]  ;;  %v13782_v55 = vcombine.high %v486_v45, %v490_v46 }
 0x276   :  { %2363 = vmatpush1.bf16.msra.mxu0 %v17247_v12  ;;  %2112 = vmatprep.subr.bf16.mxu1 %v13786_v6  ;;  %v2478_v6 = vld [vmem:[#allocation4 + $0x760] sm:$0xff]  ;;  %v13750_v12 = vcombine.high %v454_v2, %v458_v3  ;;  %v510_v2 = vld [vmem:[#allocation4 + $0x218] sm:$0xff] }
 0x277   :  { %1525 = vmatmul.mubr.bf16.gmra.mrb[60].mxu1 %v17974_v36  ;;  %2364 = vmatprep.subr.bf16.mxu0 %v17248_v18  ;;  %v17249_v36 = vld [vmem:[%s19077_s24 + $0x60] ss:$8 sps:$4 sm:$0xff]   ;;  %v13892_v21 = vcombine.high %v2474_v4, %v2478_v6  ;;  %v13891_v26 = vcombine.low %v2474_v4, %v2478_v6  ;;  %v514_v3 = vld [vmem:[#allocation4 + $0x238] sm:$0xff] }
 0x278   :  { %2236 = vmatmul.mubr.bf16.gmra.mrb[28].mxu0 %v17976_v40  ;;  %13835 = vmatprep.mubr.msk.bf16.mxu1 %vm1230_vm0, %v17938_v19  ;;  %v2482_v18 = vld [vmem:[#allocation4 + $0x780] sm:$0xff]  ;;  %v518_v6 = vld [vmem:[#allocation4 + $0x258] sm:$0xff] }
 0x279   :  { %2113 = vmatpush1.bf16.msra.mxu1 %v13785_v43  ;;  %2384 = vmatprep.mubr.bf16.mxu0 %v19056_v0  ;;  %v466_v43 = vld [vmem:[#allocation4 + $0xb8] sm:$0xff]  ;;  %v13899_v34 = vcombine.low %v2482_v18, %v2486_v20 }
 0x27a   :  { %2365 = vmatpush1.bf16.msra.mxu0 %v17249_v36  ;;  %2114 = vmatprep.subr.bf16.mxu1 %v13794_v16  ;;  %v13883_v16 = vcombine.low %v2466_v61, %v2470_v62  ;;  %v13758_v36 = vcombine.high %v462_v11, %v466_v43  ;;  %v506_v61 = vld [vmem:[#allocation4 + $0x1f8] sm:$0xff] }
 0x27b   :  { %2366 = vmatprep.subr.bf16.mxu0 %v17250_v28  ;;  %v2494_v28 = vld [vmem:[#allocation4 + $0x7e0] sm:$0xff] }
 0x27d   :  { %2115 = vmatpush1.bf16.msra.mxu1 %v13793_v24  ;;  %v474_v24 = vld [vmem:[#allocation4 + $0xf8] sm:$0xff] }
 0x27e   :  { %2367 = vmatpush1.bf16.msra.mxu0 %v17251_v37  ;;  %2116 = vmatprep.subr.bf16.mxu1 %v13802_v25  ;;  %v15642_v25 = vld [vmem:[#allocation2 + $0x58] sm:$0xff]   ;;  %v2502_v37 = vld [vmem:[#allocation4 + $0x820] sm:$0xff] }
 0x27f   :  { %3022 = vmatprep.subr.bf16.mxu0 %v13852_v30  ;;  %v13757_v30 = vcombine.low %v462_v11, %v466_v43  ;;  %v13805_v11 = vcombine.low %v510_v2, %v514_v3  ;;  %v526_v43 = vld [vmem:[#allocation4 + $0x298] sm:$0xff] }
 0x281   :  { %2385 = vmatmul.mubr.bf16.vlgmr.msra.gmra.mrb[48].mxu0 %v15639_v29  ;;  %2117 = vmatpush1.bf16.msra.mxu1 %v13801_v33  ;;  %v13900_v29 = vcombine.high %v2482_v18, %v2486_v20  ;;  %v13766_v33 = vcombine.high %v470_v23, %v474_v24  ;;  %v534_v20 = vld [vmem:[#allocation4 + $0x2d8] sm:$0xff] }
 0x282   :  { %2118 = vmatprep.subr.bf16.mxu1 %v13810_v38  ;;  %2394 = vmatprep.mubr.bf16.mxu0 %v19056_v0  ;;  %v13908_v38 = vcombine.high %v2490_v27, %v2494_v28 }
 0x283   :  { %3023 = vmatpush1.bf16.msra.mxu0 %v13851_v41  ;;  %v13765_v41 = vcombine.low %v470_v23, %v474_v24  ;;  %v2435_v23 = vld [vmem:[#allocation4 + $0x608] sm:$0xff] }
 0x284   :  { %3024 = vmatprep.subr.bf16.mxu0 %v13860_v48  ;;  %v13774_v48 = vcombine.high %v478_v31, %v482_v32  ;;  %v2439_v24 = vld [vmem:[#allocation4 + $0x628] sm:$0xff] }
 0x285   :  { %2119 = vmatpush1.bf16.msra.mxu1 %v13809_v50  ;;  %v13907_v50 = vcombine.low %v2490_v27, %v2494_v28  ;;  %v2447_v27 = vld [vmem:[#allocation4 + $0x668] sm:$0xff]  ;;  %v13854_v28 = vcombine.high %v2435_v23, %v2439_v24 }
 0x286   :  { %2120 = vmatprep.subr.bf16.mxu1 %v13818_v13  ;;  %v13916_v13 = vcombine.high %v2498_v35, %v2502_v37 }
 0x287   :  { %3025 = vmatpush1.bf16.msra.mxu0 %v13859_v53  ;;  %v494_v53 = vld [vmem:[#allocation4 + $0x198] sm:$0xff] }
 0x288   :  { %3026 = vmatprep.subr.bf16.mxu0 %v13868_v56  ;;  %v13915_v56 = vcombine.low %v2498_v35, %v2502_v37  ;;  %v13790_v62 = vcombine.high %v494_v53, %v498_v54  ;;  %v2463_v35 = vld [vmem:[#allocation4 + $0x6e8] sm:$0xff] }
 0x289   :  { %2395 = vmatmul.mubr.bf16.gmra.mrb[52].mxu0 %v15640_v44  ;;  %2121 = vmatpush1.bf16.msra.mxu1 %v13817_v57  ;;  %v13773_v44 = vcombine.low %v478_v31, %v482_v32  ;;  %v2514_v57 = vld [vmem:[#allocation4 + $0x880] sm:$0xff]  ;;  %v2455_v31 = vld [vmem:[#allocation4 + $0x6a8] sm:$0xff] }
 0x28a   :  { %2122 = vmatprep.subr.bf16.mxu1 %v13826_v60  ;;  %2404 = vmatprep.mubr.bf16.mxu0 %v19056_v0  ;;  %v13781_v60 = vcombine.low %v486_v45, %v490_v46  ;;  %v2471_v45 = vld [vmem:[#allocation4 + $0x728] sm:$0xff] }
 0x28b   :  { %3027 = vmatpush1.bf16.msra.mxu0 %v13867_v39  ;;  %v502_v39 = vld [vmem:[#allocation4 + $0x1d8] sm:$0xff] }
 0x28c   :  { %3028 = vmatprep.subr.bf16.mxu0 %v13876_v9  ;;  %v13923_v9 = vcombine.low %v2506_v51, %v2510_v52  ;;  %v13797_v4 = vcombine.low %v502_v39, %v506_v61  ;;  %v2483_v52 = vld [vmem:[#allocation4 + $0x788] sm:$0xff] }
 0x28d   :  { %2123 = vmatpush1.bf16.msra.mxu1 %v13825_v63  ;;  %v13932_v63 = vcombine.high %v2514_v57, %v2518_v58 }
 0x28e   :  { %2246 = vmatprep.subr.bf16.mxu1 %v13742_v1  ;;  %v13789_v1 = vcombine.low %v494_v53, %v498_v54 }
 0x28f   :  { %3029 = vmatpush1.bf16.msra.mxu0 %v13875_v5  ;;  %v13931_v5 = vcombine.low %v2514_v57, %v2518_v58  ;;  %v2526_v57 = vld [vmem:[#allocation4 + $0x8e0] sm:$0xff] }
 0x290   :  { %2133 = vmatmul.mubr.bf16.vlgmr.msra.gmra.mrb[32].mxu1 %v17934_v15  ;;  %3030 = vmatprep.subr.bf16.mxu0 %v13884_v8  ;;  %v522_v8 = vld [vmem:[#allocation4 + $0x278] sm:$0xff] }
 0x291   :  { %2405 = vmatmul.mubr.bf16.gmra.mrb[56].mxu0 %v15641_v17  ;;  %13836 = vmatprep.mubr.msk.bf16.mxu1 %vm1230_vm0, %v17952_v47  ;;  %v13798_v17 = vcombine.high %v502_v39, %v506_v61  ;;  %v13813_v18 = vcombine.low %v518_v6, %v522_v8  ;;  %v2499_v61 = vld [vmem:[#allocation4 + $0x808] sm:$0xff] }
 0x292   :  { %2247 = vmatpush1.bf16.msra.mxu1 %v13741_v10  ;;  %2414 = vmatprep.mubr.bf16.mxu0 %v19056_v0  ;;  %v13806_v10 = vcombine.high %v510_v2, %v514_v3  ;;  %v18123_v2 = vld [vmem:[#allocation4 + $0x618] sm:$0xff] }
 0x293   :  { %2248 = vmatprep.subr.bf16.mxu1 %v13750_v12  ;;  %3031 = vmatpush1.bf16.msra.mxu0 %v13883_v16  ;;  %v530_v12 = vld [vmem:[#allocation4 + $0x2b8] sm:$0xff]  ;;  %v13814_v16 = vcombine.high %v518_v6, %v522_v8 }
 0x294   :  { %3032 = vmatprep.subr.bf16.mxu0 %v13892_v21  ;;  %v538_v21 = vld [vmem:[#allocation4 + $0x2f8] sm:$0xff] }
 0x296   :  { %2249 = vmatpush1.bf16.msra.mxu1 %v13749_v22  ;;  %v13822_v22 = vcombine.high %v526_v43, %v530_v12 }
 0x297   :  { %2250 = vmatprep.subr.bf16.mxu1 %v13758_v36  ;;  %3033 = vmatpush1.bf16.msra.mxu0 %v13891_v26  ;;  %v13830_v36 = vcombine.high %v534_v20, %v538_v21  ;;  %v2443_v26 = vld [vmem:[#allocation4 + $0x648] sm:$0xff] }
 0x298   :  { %2143 = vmatmul.mubr.bf16.gmra.mrb[36].mxu1 %v17948_v42  ;;  %3034 = vmatprep.subr.bf16.mxu0 %v13900_v29  ;;  %v13853_v29 = vcombine.low %v2435_v23, %v2439_v24  ;;  %v13862_v32 = vcombine.high %v2443_v26, %v2447_v27 }
 0x299   :  { %2415 = vmatmul.mubr.bf16.gmra.mrb[60].mxu0 %v15642_v25  ;;  %13837 = vmatprep.mubr.msk.bf16.mxu1 %vm1230_vm0, %v17966_v14  ;;  %v13829_v25 = vcombine.low %v534_v20, %v538_v21  ;;  %v2515_v21 = vld [vmem:[#allocation4 + $0x888] sm:$0xff] }
 0x29a   :  { %2251 = vmatpush1.bf16.msra.mxu1 %v13757_v30  ;;  %v2451_v30 = vld [vmem:[#allocation4 + $0x688] sm:$0xff] }
 0x29b   :  { %2252 = vmatprep.subr.bf16.mxu1 %v13766_v33  ;;  %3035 = vmatpush1.bf16.msra.mxu0 %v13899_v34  ;;  %v13861_v33 = vcombine.low %v2443_v26, %v2447_v27  ;;  %v2459_v34 = vld [vmem:[#allocation4 + $0x6c8] sm:$0xff]  ;;  %v13870_v37 = vcombine.high %v2451_v30, %v2455_v31 }
 0x29c   :  { %3036 = vmatprep.subr.bf16.mxu0 %v13908_v38  ;;  %v13869_v38 = vcombine.low %v2451_v30, %v2455_v31  ;;  %v13878_v46 = vcombine.high %v2459_v34, %v2463_v35  ;;  %v2523_v26 = vld [vmem:[#allocation4 + $0x8c8] sm:$0xff] }
 0x29d   :  { %v2527_v27 = vld [vmem:[#allocation4 + $0x8e8] sm:$0xff] }
 0x29e   :  { %2253 = vmatpush1.bf16.msra.mxu1 %v13765_v41  ;;  %v2467_v41 = vld [vmem:[#allocation4 + $0x708] sm:$0xff]  ;;  %v13942_v30 = vcombine.high %v2523_v26, %v2527_v27 }
 0x29f   :  { %2254 = vmatprep.subr.bf16.mxu1 %v13774_v48  ;;  %3037 = vmatpush1.bf16.msra.mxu0 %v13907_v50  ;;  %v2479_v48 = vld [vmem:[#allocation4 + $0x768] sm:$0xff]  ;;  %v13886_v50 = vcombine.high %v2467_v41, %v2471_v45  ;;  %v13885_v51 = vcombine.low %v2467_v41, %v2471_v45  ;;  %v2444_v45 = vld [vmem:[#allocation4 + $0x650] sm:$0xff] }
 0x2a0   :  { %2153 = vmatmul.mubr.bf16.gmra.mrb[40].mxu1 %v17962_v7  ;;  %3038 = vmatprep.subr.bf16.mxu0 %v13916_v13  ;;  %v2487_v13 = vld [vmem:[#allocation4 + $0x7a8] sm:$0xff] }
 0x2a1   :  { %13838 = vmatprep.mubr.msk.bf16.mxu1 %vm1230_vm0, %v17980_v49  ;;  %v13902_v54 = vcombine.high %v2483_v52, %v2487_v13 }
 0x2a2   :  { %2255 = vmatpush1.bf16.msra.mxu1 %v13773_v44 }
 0x2a3   :  { %2256 = vmatprep.subr.bf16.mxu1 %v13782_v55  ;;  %3039 = vmatpush1.bf16.msra.mxu0 %v13915_v56  ;;  %v2491_v55 = vld [vmem:[#allocation4 + $0x7c8] sm:$0xff]  ;;  %v2522_v56 = vld [vmem:[#allocation4 + $0x8c0] sm:$0xff] }
 0x2a4   :  { %3040 = vmatprep.subr.bf16.mxu0 %v13924_v59  ;;  %v2495_v59 = vld [vmem:[#allocation4 + $0x7e8] sm:$0xff] }
 0x2a5   :  { %v13909_v8 = vcombine.low %v2491_v55, %v2495_v59 }
 0x2a6   :  { %2257 = vmatpush1.bf16.msra.mxu1 %v13781_v60  ;;  %v13940_v60 = vcombine.high %v2522_v56, %v2526_v57 }
 0x2a7   :  { %2258 = vmatprep.subr.bf16.mxu1 %v13790_v62  ;;  %3041 = vmatpush1.bf16.msra.mxu0 %v13923_v9  ;;  %v2503_v62 = vld [vmem:[#allocation4 + $0x828] sm:$0xff]  ;;  %v13910_v9 = vcombine.high %v2491_v55, %v2495_v59  ;;  %v2453_v55 = vld [vmem:[#allocation4 + $0x698] sm:$0xff] }
 0x2a8   :  { %2163 = vmatmul.mubr.bf16.gmra.mrb[44].mxu1 %v17976_v40  ;;  %3042 = vmatprep.subr.bf16.mxu0 %v13932_v63  ;;  %v18119_v63 = vld [vmem:[#allocation4 + $0x610] sm:$0xff] }
 0x2a9   :  { %13843 = vmatprep.mubr.msk.bf16.mxu1 %vm1230_vm0, %v17938_v19  ;;  %v13821_v19 = vcombine.low %v526_v43, %v530_v12  ;;  %v2507_v12 = vld [vmem:[#allocation4 + $0x848] sm:$0xff] }
 0x2aa   :  { %2259 = vmatpush1.bf16.msra.mxu1 %v13789_v1  ;;  %v18121_v1 = vld [vmem:[#allocation4 + $0x630] sm:$0xff] }
 0x2ab   :  { %2260 = vmatprep.subr.bf16.mxu1 %v13798_v17  ;;  %3043 = vmatpush1.bf16.msra.mxu0 %v13931_v5  ;;  %v13856_v3 = vcombine.high %v18119_v63, %v18121_v1  ;;  %v18127_v17 = vld [vmem:[#allocation4 + $0x638] sm:$0xff]  ;;  %v13855_v5 = vcombine.low %v18119_v63, %v18121_v1  ;;  %v2464_v63 = vld [vmem:[#allocation4 + $0x6f0] sm:$0xff] }
 0x2ac   :  { %3044 = vmatprep.subr.bf16.mxu0 %v13940_v60  ;;  %v2461_v1 = vld [vmem:[#allocation4 + $0x6d8] sm:$0xff] }
 0x2ae   :  { %2261 = vmatpush1.bf16.msra.mxu1 %v13797_v4  ;;  %v13857_v4 = vcombine.low %v18123_v2, %v18127_v17 }
 0x2af   :  { %2262 = vmatprep.subr.bf16.mxu1 %v13806_v10 }
 0x2b2   :  { %2263 = vmatpush1.bf16.msra.mxu1 %v13805_v11  ;;  %v13918_v11 = vcombine.high %v2499_v61, %v2503_v62 }
 0x2b3   :  { %2264 = vmatprep.subr.bf16.mxu1 %v13814_v16  ;;  %v2511_v16 = vld [vmem:[#allocation4 + $0x868] sm:$0xff] }
 0x2b4   :  { %v13926_v20 = vcombine.high %v2507_v12, %v2511_v16  ;;  %v13925_v23 = vcombine.low %v2507_v12, %v2511_v16  ;;  %v2468_v16 = vld [vmem:[#allocation4 + $0x710] sm:$0xff] }
 0x2b6   :  { %2265 = vmatpush1.bf16.msra.mxu1 %v13813_v18  ;;  %v13917_v18 = vcombine.low %v2499_v61, %v2503_v62  ;;  %v2460_v62 = vld [vmem:[#allocation4 + $0x6d0] sm:$0xff] }
 0x2b7   :  { %2266 = vmatprep.subr.bf16.mxu1 %v13822_v22  ;;  %v2519_v22 = vld [vmem:[#allocation4 + $0x8a8] sm:$0xff] }
 0x2ba   :  { %2267 = vmatpush1.bf16.msra.mxu1 %v13821_v19 }
 0x2bb   :  { %2268 = vmatprep.subr.bf16.mxu1 %v13830_v36  ;;  %v13934_v36 = vcombine.high %v2515_v21, %v2519_v22 }
 0x2be   :  { %2269 = vmatpush1.bf16.msra.mxu1 %v13829_v25 }
 0x2bf   :  { %3095 = vmatprep.subr.bf16.mxu1 %v13854_v28 }
 0x2c1   :  { %2279 = vmatmul.mubr.bf16.vlgmr.msra.gmra.mrb[48].mxu1 %v17934_v15  ;;  %v13877_v15 = vcombine.low %v2459_v34, %v2463_v35  ;;  %v13858_v34 = vcombine.high %v18123_v2, %v18127_v17  ;;  %v2465_v2 = vld [vmem:[#allocation4 + $0x6f8] sm:$0xff] }
 0x2c2   :  { %13844 = vmatprep.mubr.msk.bf16.mxu1 %vm1230_vm0, %v17952_v47  ;;  %3096 = vmatpush1.bf16.msra.mxu1 %v13853_v29  ;;  %v2475_v47 = vld [vmem:[#allocation4 + $0x748] sm:$0xff]  ;;  %v13933_v29 = vcombine.low %v2515_v21, %v2519_v22  ;;  %v13882_v12 = vcombine.high %v2461_v1, %v2465_v2  ;;  %v2473_v21 = vld [vmem:[#allocation4 + $0x738] sm:$0xff] }
 0x2c3   :  { %3097 = vmatprep.subr.bf16.mxu1 %v13862_v32  ;;  %v13894_v44 = vcombine.high %v2475_v47, %v2479_v48  ;;  %v13941_v32 = vcombine.low %v2523_v26, %v2527_v27 }
 0x2c6   :  { %3098 = vmatpush1.bf16.msra.mxu1 %v13861_v33 }
 0x2c7   :  { %3099 = vmatprep.subr.bf16.mxu1 %v13870_v37 }
 0x2c9   :  { %2289 = vmatmul.mubr.bf16.gmra.mrb[52].mxu1 %v17948_v42 }
 0x2ca   :  { %13845 = vmatprep.mubr.msk.bf16.mxu1 %vm1230_vm0, %v17966_v14  ;;  %3100 = vmatpush1.bf16.msra.mxu1 %v13869_v38  ;;  %v13893_v14 = vcombine.low %v2475_v47, %v2479_v48  ;;  %v2445_v47 = vld [vmem:[#allocation4 + $0x658] sm:$0xff] }
 0x2cb   :  { %3101 = vmatprep.subr.bf16.mxu1 %v13878_v46  ;;  %v2449_v48 = vld [vmem:[#allocation4 + $0x678] sm:$0xff] }
 0x2cc   :  { %v13865_v60 = vcombine.low %v2445_v47, %v2449_v48 }
 0x2ce   :  { %3102 = vmatpush1.bf16.msra.mxu1 %v13877_v15  ;;  %v2448_v15 = vld [vmem:[#allocation4 + $0x670] sm:$0xff] }
 0x2cf   :  { %3103 = vmatprep.subr.bf16.mxu1 %v13886_v50  ;;  %v13863_v59 = vcombine.low %v2444_v45, %v2448_v15 }
 0x2d1   :  { %2299 = vmatmul.mubr.bf16.gmra.mrb[56].mxu1 %v17962_v7  ;;  %v13939_v7 = vcombine.low %v2522_v56, %v2526_v57  ;;  %v2457_v56 = vld [vmem:[#allocation4 + $0x6b8] sm:$0xff] }
 0x2d2   :  { %13846 = vmatprep.mubr.msk.bf16.mxu1 %vm1230_vm0, %v17980_v49  ;;  %v18111_v42 = vpop.f32.mrb[16].mxu1  ;;  %3104 = vmatpush1.bf16.msra.mxu1 %v13885_v51  ;;  %v13901_v49 = vcombine.low %v2483_v52, %v2487_v13  ;;  %v13864_v13 = vcombine.high %v2444_v45, %v2448_v15  ;;  %v13874_v61 = vcombine.high %v2453_v55, %v2457_v56 }
 0x2d3   :  { %v18113_v53 = vpop.f32.mrb[17].mxu1  ;;  %3105 = vmatprep.subr.bf16.mxu1 %v13894_v44  ;;  %3045 = vmatpush1.bf16.msra.mxu0 %v13939_v7  ;;  %v13866_v44 = vcombine.high %v2445_v47, %v2449_v48 }
 0x2d4   :  { %v18115_v58 = vpop.f32.mrb[18].mxu1  ;;  %3168 = vmatprep.subr.bf16.mxu0 %v13856_v3 }
 0x2d5   :  { %v18117_v39 = vpop.f32.mrb[19].mxu1 }
 0x2d6   :  { %3106 = vmatpush1.bf16.msra.mxu1 %v13893_v14  ;;  %v2452_v14 = vld [vmem:[#allocation4 + $0x690] sm:$0xff] }
 0x2d7   :  { %3107 = vmatprep.subr.bf16.mxu1 %v13902_v54  ;;  %v2456_v54 = vld [vmem:[#allocation4 + $0x6b0] sm:$0xff] }
 0x2d9   :  { %2309 = vmatmul.mubr.bf16.gmra.mrb[60].mxu1 %v17976_v40 }
 0x2da   :  { %v18134_v6 = vpop.f32.mrb[20].mxu1  ;;  %3108 = vmatpush1.bf16.msra.mxu1 %v13901_v49  ;;  %v13872_v49 = vcombine.high %v2452_v14, %v2456_v54 }
 0x2db   :  { %v18136_v10 = vpop.f32.mrb[21].mxu1  ;;  %3109 = vmatprep.subr.bf16.mxu1 %v13910_v9 }
 0x2dc   :  { %v18138_v43 = vpop.f32.mrb[22].mxu1 }
 0x2dd   :  { %v18140_v40 = vpop.f32.mrb[23].mxu1 }
 0x2de   :  { %3110 = vmatpush1.bf16.msra.mxu1 %v13909_v8 }
 0x2df   :  { %3111 = vmatprep.subr.bf16.mxu1 %v13918_v11  ;;  %v13880_v11 = vcombine.high %v2460_v62, %v2464_v63 }
 0x2e2   :  { %v18142_v19 = vpop.f32.mrb[24].mxu1  ;;  %3112 = vmatpush1.bf16.msra.mxu1 %v13917_v18  ;;  %v2472_v18 = vld [vmem:[#allocation4 + $0x730] sm:$0xff] }
 0x2e3   :  { %v18144_v24 = vpop.f32.mrb[25].mxu1  ;;  %3113 = vmatprep.subr.bf16.mxu1 %v13926_v20  ;;  %v2469_v20 = vld [vmem:[#allocation4 + $0x718] sm:$0xff]  ;;  %v13888_v27 = vcombine.high %v2468_v16, %v2472_v18  ;;  %v13887_v47 = vcombine.low %v2468_v16, %v2472_v18 }
 0x2e4   :  { %v18146_v25 = vpop.f32.mrb[26].mxu1  ;;  %v13889_v48 = vcombine.low %v2469_v20, %v2473_v21 }
 0x2e5   :  { %v18148_v28 = vpop.f32.mrb[27].mxu1 }
 0x2e6   :  { %3114 = vmatpush1.bf16.msra.mxu1 %v13925_v23  ;;  %v13879_v23 = vcombine.low %v2460_v62, %v2464_v63  ;;  %v2492_v62 = vld [vmem:[#allocation4 + $0x7d0] sm:$0xff] }
 0x2e7   :  { %3115 = vmatprep.subr.bf16.mxu1 %v13934_v36  ;;  %v13881_v36 = vcombine.low %v2461_v1, %v2465_v2  ;;  %v2496_v1 = vld [vmem:[#allocation4 + $0x7f0] sm:$0xff]  ;;  %v2493_v2 = vld [vmem:[#allocation4 + $0x7d8] sm:$0xff] }
 0x2e8   :  { %v13912_v16 = vcombine.high %v2492_v62, %v2496_v1 }
 0x2ea   :  { %v18150_v31 = vpop.f32.mrb[28].mxu1  ;;  %3116 = vmatpush1.bf16.msra.mxu1 %v13933_v29  ;;  %v13890_v29 = vcombine.high %v2469_v20, %v2473_v21  ;;  %v2504_v20 = vld [vmem:[#allocation4 + $0x830] sm:$0xff]  ;;  %v2501_v21 = vld [vmem:[#allocation4 + $0x818] sm:$0xff] }
 0x2eb   :  { %v18152_v33 = vpop.f32.mrb[29].mxu1  ;;  %3117 = vmatprep.subr.bf16.mxu1 %v13942_v30  ;;  %v2476_v30 = vld [vmem:[#allocation4 + $0x750] sm:$0xff] }
 0x2ec   :  { %v18156_v35 = vpop.f32.mrb[30].mxu1 }
 0x2ed   :  { %v18158_v37 = vpop.f32.mrb[31].mxu1 }
 0x2ee   :  { %3118 = vmatpush1.bf16.msra.mxu1 %v13941_v32 }
 0x2ef   :  { %3241 = vmatprep.subr.bf16.mxu1 %v13858_v34  ;;  %v2480_v34 = vld [vmem:[#allocation4 + $0x770] sm:$0xff] }
 0x354   :  { %v2386_v38 = vpop.f32.mrb[48].mxu0 }
 0x355   :  { %v2388_v41 = vpop.f32.mrb[49].mxu0 }
 0x356   :  { %v2390_v46 = vpop.f32.mrb[50].mxu0 }
 0x357   :  { %v18160_v50 = vpack.c.bf16 %v2390_v46, %v2386_v38  ;;  %v2392_v51 = vpop.f32.mrb[51].mxu0  ;;  %v2477_v38 = vld [vmem:[#allocation4 + $0x758] sm:$0xff] }
 0x358   :  { %v18162_v52 = vpack.c.bf16 %v2392_v51, %v2388_v41  ;;  %v2481_v41 = vld [vmem:[#allocation4 + $0x778] sm:$0xff]  ;;  %v13896_v51 = vcombine.high %v2476_v30, %v2480_v34 }
 0x35a   :  { %13947 = vmatprep.mubr.msk.bf16.mxu0 %vm1230_vm0, %v18162_v52  ;;  %13951 = vmatprep.mubr.msk.bf16.mxu1 %vm1230_vm0, %v18162_v52 }
 0x35b   :  { %3055 = vmatmul.mubr.bf16.vlgmr.msra.gmra.mrb[32].mxu0 %v18160_v50  ;;  %3128 = vmatmul.mubr.bf16.vlgmr.msra.gmra.mrb[32].mxu1 %v18160_v50 }
 0x35c   :  { %3169 = vmatpush1.bf16.msra.mxu0 %v13855_v5  ;;  %3242 = vmatpush1.bf16.msra.mxu1 %v13857_v4  ;;  %v2396_v57 = vpop.f32.mrb[52].mxu0  ;;  %v13871_v5 = vcombine.low %v2452_v14, %v2456_v54  ;;  %v13873_v4 = vcombine.low %v2453_v55, %v2457_v56  ;;  %v2488_v14 = vld [vmem:[#allocation4 + $0x7b0] sm:$0xff]  ;;  %v2485_v54 = vld [vmem:[#allocation4 + $0x798] sm:$0xff] }
 0x35d   :  { %v2398_v7 = vpop.f32.mrb[53].mxu0  ;;  %3170 = vmatprep.subr.bf16.mxu0 %v13864_v13  ;;  %3243 = vmatprep.subr.bf16.mxu1 %v13866_v44  ;;  %v13898_v13 = vcombine.high %v2477_v38, %v2481_v41  ;;  %v2484_v44 = vld [vmem:[#allocation4 + $0x790] sm:$0xff]  ;;  %v2489_v55 = vld [vmem:[#allocation4 + $0x7b8] sm:$0xff] }
 0x35e   :  { %v2400_v9 = vpop.f32.mrb[54].mxu0 }
 0x35f   :  { %v18170_v3 = vpack.c.bf16 %v2400_v9, %v2396_v57  ;;  %v2402_v17 = vpop.f32.mrb[55].mxu0  ;;  %v13895_v57 = vcombine.low %v2476_v30, %v2480_v34  ;;  %v2512_v30 = vld [vmem:[#allocation4 + $0x870] sm:$0xff]  ;;  %v2513_v34 = vld [vmem:[#allocation4 + $0x878] sm:$0xff] }
 0x360   :  { %v18172_v8 = vpack.c.bf16 %v2402_v17, %v2398_v7  ;;  %3171 = vmatpush1.bf16.msra.mxu0 %v13863_v59  ;;  %3244 = vmatpush1.bf16.msra.mxu1 %v13865_v60  ;;  %v13897_v59 = vcombine.low %v2477_v38, %v2481_v41  ;;  %v13904_v7 = vcombine.high %v2484_v44, %v2488_v14  ;;  %v2497_v17 = vld [vmem:[#allocation4 + $0x7f8] sm:$0xff] }
 0x361   :  { %3172 = vmatprep.subr.bf16.mxu0 %v13872_v49  ;;  %3245 = vmatprep.subr.bf16.mxu1 %v13874_v61  ;;  %v13906_v49 = vcombine.high %v2485_v54, %v2489_v55  ;;  %v13914_v18 = vcombine.high %v2493_v2, %v2497_v17 }
 0x362   :  { %13948 = vmatprep.mubr.msk.bf16.mxu0 %vm1230_vm0, %v18172_v8  ;;  %13952 = vmatprep.mubr.msk.bf16.mxu1 %vm1230_vm0, %v18172_v8 }
 0x363   :  { %3065 = vmatmul.mubr.bf16.gmra.mrb[36].mxu0 %v18170_v3  ;;  %3138 = vmatmul.mubr.bf16.gmra.mrb[36].mxu1 %v18170_v3 }
 0x364   :  { %3173 = vmatpush1.bf16.msra.mxu0 %v13871_v5  ;;  %3246 = vmatpush1.bf16.msra.mxu1 %v13873_v4  ;;  %v2406_v22 = vpop.f32.mrb[56].mxu0  ;;  %v13903_v4 = vcombine.low %v2484_v44, %v2488_v14 }
 0x365   :  { %v2408_v26 = vpop.f32.mrb[57].mxu0  ;;  %3174 = vmatprep.subr.bf16.mxu0 %v13880_v11  ;;  %3247 = vmatprep.subr.bf16.mxu1 %v13882_v12  ;;  %v13905_v11 = vcombine.low %v2485_v54, %v2489_v55  ;;  %v2500_v12 = vld [vmem:[#allocation4 + $0x810] sm:$0xff] }
 0x366   :  { %v2410_v32 = vpop.f32.mrb[58].mxu0  ;;  %v13919_v38 = vcombine.low %v2500_v12, %v2504_v20 }
 0x367   :  { %v18180_v45 = vpack.c.bf16 %v2410_v32, %v2406_v22  ;;  %v2412_v46 = vpop.f32.mrb[59].mxu0  ;;  %v2505_v22 = vld [vmem:[#allocation4 + $0x838] sm:$0xff] }
 0x368   :  { %v18182_v15 = vpack.c.bf16 %v2412_v46, %v2408_v26  ;;  %3175 = vmatpush1.bf16.msra.mxu0 %v13879_v23  ;;  %3248 = vmatpush1.bf16.msra.mxu1 %v13881_v36  ;;  %v13911_v23 = vcombine.low %v2492_v62, %v2496_v1  ;;  %v13913_v36 = vcombine.low %v2493_v2, %v2497_v17  ;;  %v2509_v32 = vld [vmem:[#allocation4 + $0x858] sm:$0xff] }
 0x369   :  { %3176 = vmatprep.subr.bf16.mxu0 %v13888_v27  ;;  %3249 = vmatprep.subr.bf16.mxu1 %v13890_v29  ;;  %v13920_v26 = vcombine.high %v2500_v12, %v2504_v20  ;;  %v13922_v27 = vcombine.high %v2501_v21, %v2505_v22  ;;  %v2508_v29 = vld [vmem:[#allocation4 + $0x850] sm:$0xff]  ;;  %v13921_v41 = vcombine.low %v2501_v21, %v2505_v22 }
 0x36a   :  { %13949 = vmatprep.mubr.msk.bf16.mxu0 %vm1230_vm0, %v18182_v15  ;;  %13953 = vmatprep.mubr.msk.bf16.mxu1 %vm1230_vm0, %v18182_v15  ;;  %v13928_v46 = vcombine.high %v2508_v29, %v2512_v30  ;;  %v13927_v44 = vcombine.low %v2508_v29, %v2512_v30  ;;  %v13929_v14 = vcombine.low %v2509_v32, %v2513_v34 }
 0x36b   :  { %3075 = vmatmul.mubr.bf16.gmra.mrb[40].mxu0 %v18180_v45  ;;  %3148 = vmatmul.mubr.bf16.gmra.mrb[40].mxu1 %v18180_v45 }
 0x36c   :  { %3177 = vmatpush1.bf16.msra.mxu0 %v13887_v47  ;;  %3250 = vmatpush1.bf16.msra.mxu1 %v13889_v48  ;;  %v2416_v56 = vpop.f32.mrb[60].mxu0  ;;  %v13930_v47 = vcombine.high %v2509_v32, %v2513_v34  ;;  %v2516_v48 = vld [vmem:[#allocation4 + $0x890] sm:$0xff] }
 0x36d   :  { %v2418_v60 = vpop.f32.mrb[61].mxu0  ;;  %3178 = vmatprep.subr.bf16.mxu0 %v13896_v51  ;;  %3251 = vmatprep.subr.bf16.mxu1 %v13898_v13  ;;  %v2520_v51 = vld [vmem:[#allocation4 + $0x8b0] sm:$0xff]  ;;  %v2517_v13 = vld [vmem:[#allocation4 + $0x898] sm:$0xff] }
 0x36e   :  { %v2420_v61 = vpop.f32.mrb[62].mxu0  ;;  %v13936_v54 = vcombine.high %v2516_v48, %v2520_v51 }
 0x36f   :  { %v18190_v9 = vpack.c.bf16 %v2420_v61, %v2416_v56  ;;  %v2422_v63 = vpop.f32.mrb[63].mxu0  ;;  %v2524_v56 = vld [vmem:[#allocation4 + $0x8d0] sm:$0xff] }
 0x370   :  { %v18192_v5 = vpack.c.bf16 %v2422_v63, %v2418_v60  ;;  %3179 = vmatpush1.bf16.msra.mxu0 %v13895_v57  ;;  %3252 = vmatpush1.bf16.msra.mxu1 %v13897_v59  ;;  %v2528_v57 = vld [vmem:[#allocation4 + $0x8f0] sm:$0xff]  ;;  %v2525_v59 = vld [vmem:[#allocation4 + $0x8d8] sm:$0xff] }
 0x371   :  { %3180 = vmatprep.subr.bf16.mxu0 %v13904_v7  ;;  %3253 = vmatprep.subr.bf16.mxu1 %v13906_v49  ;;  %v2529_v60 = vld [vmem:[#allocation4 + $0x8f8] sm:$0xff]  ;;  %v13935_v7 = vcombine.low %v2516_v48, %v2520_v51  ;;  %v13944_v61 = vcombine.high %v2524_v56, %v2528_v57  ;;  %v13943_v63 = vcombine.low %v2524_v56, %v2528_v57 }
 0x372   :  { %13950 = vmatprep.mubr.msk.bf16.mxu0 %vm1230_vm0, %v18192_v5  ;;  %13954 = vmatprep.mubr.msk.bf16.mxu1 %vm1230_vm0, %v18192_v5  ;;  %v13946_v62 = vcombine.high %v2525_v59, %v2529_v60  ;;  %v13945_v1 = vcombine.low %v2525_v59, %v2529_v60 }
 0x373   :  { %3085 = vmatmul.mubr.bf16.gmra.mrb[44].mxu0 %v18190_v9  ;;  %3158 = vmatmul.mubr.bf16.gmra.mrb[44].mxu1 %v18190_v9 }
 0x374   :  { %3181 = vmatpush1.bf16.msra.mxu0 %v13903_v4  ;;  %3254 = vmatpush1.bf16.msra.mxu1 %v13905_v11 }
 0x375   :  { %13955 = vmatprep.mubr.msk.bf16.mxu0 %vm1230_vm0, %v18162_v52  ;;  %13959 = vmatprep.mubr.msk.bf16.mxu1 %vm1230_vm0, %v18162_v52  ;;  %v2521_v52 = vld [vmem:[#allocation4 + $0x8b8] sm:$0xff] }
 0x376   :  { %3182 = vmatprep.subr.bf16.mxu0 %v13912_v16  ;;  %3255 = vmatprep.subr.bf16.mxu1 %v13914_v18  ;;  %v13938_v55 = vcombine.high %v2517_v13, %v2521_v52  ;;  %v13937_v49 = vcombine.low %v2517_v13, %v2521_v52 }
 0x378   :  { %3183 = vmatpush1.bf16.msra.mxu0 %v13911_v23  ;;  %3256 = vmatpush1.bf16.msra.mxu1 %v13913_v36 }
 0x379   :  { %3184 = vmatprep.subr.bf16.mxu0 %v13920_v26  ;;  %3257 = vmatprep.subr.bf16.mxu1 %v13922_v27 }
 0x37c   :  { %3185 = vmatpush1.bf16.msra.mxu0 %v13919_v38  ;;  %3258 = vmatpush1.bf16.msra.mxu1 %v13921_v41 }
 0x37d   :  { %3186 = vmatprep.subr.bf16.mxu0 %v13928_v46  ;;  %3259 = vmatprep.subr.bf16.mxu1 %v13930_v47 }
 0x380   :  { %3187 = vmatpush1.bf16.msra.mxu0 %v13927_v44  ;;  %3260 = vmatpush1.bf16.msra.mxu1 %v13929_v14 }
 0x381   :  { %3188 = vmatprep.subr.bf16.mxu0 %v13936_v54  ;;  %3261 = vmatprep.subr.bf16.mxu1 %v13938_v55 }
 0x384   :  { %3189 = vmatpush1.bf16.msra.mxu0 %v13935_v7  ;;  %3262 = vmatpush1.bf16.msra.mxu1 %v13937_v49 }
 0x385   :  { %3190 = vmatprep.subr.bf16.mxu0 %v13944_v61  ;;  %3263 = vmatprep.subr.bf16.mxu1 %v13946_v62 }
 0x388   :  { %3191 = vmatpush1.bf16.msra.mxu0 %v13943_v63  ;;  %3264 = vmatpush1.bf16.msra.mxu1 %v13945_v1 }
 0x38b   :  { %3201 = vmatmul.mubr.bf16.vlgmr.msra.gmra.mrb[16].mxu0 %v18160_v50  ;;  %3274 = vmatmul.mubr.bf16.vlgmr.msra.gmra.mrb[48].mxu1 %v18160_v50  ;;  %v3380_v50 = vlaneseq }
 0x38c   :  { %13956 = vmatprep.mubr.msk.bf16.mxu0 %vm1230_vm0, %v18172_v8  ;;  %13960 = vmatprep.mubr.msk.bf16.mxu1 %vm1230_vm0, %v18172_v8 }
 0x393   :  { %3211 = vmatmul.mubr.bf16.gmra.mrb[20].mxu0 %v18170_v3  ;;  %3284 = vmatmul.mubr.bf16.gmra.mrb[52].mxu1 %v18170_v3  ;;  %v18226_v3 = vshrl.u32 %v3380_v50, 7 }
 0x394   :  { %13957 = vmatprep.mubr.msk.bf16.mxu0 %vm1230_vm0, %v18182_v15  ;;  %13961 = vmatprep.mubr.msk.bf16.mxu1 %vm1230_vm0, %v18182_v15 }
 0x395   :  { %19078 = vst [vmem:[#allocation32_spill] sm:$0xff] %v18226_v3  ;;  %v18229_v8 = vsub.s32 2, %v18226_v3  ;;  %v18234_v15 = vsub.s32 3, %v18226_v3  ;;  %v18237_v2 = vsub.s32 0, %v18226_v3 }
 0x397   :  { %19079 = vst [vmem:[#allocation33_spill] sm:$0xff] %v18229_v8  ;;  %19080 = vst [vmem:[#allocation34_spill] sm:$0xff] %v18234_v15 }
 0x398   :  { %19081 = vst [vmem:[#allocation35_spill] sm:$0xff] %v18237_v2 }
 0x39b   :  { %3221 = vmatmul.mubr.bf16.gmra.mrb[24].mxu0 %v18180_v45  ;;  %3294 = vmatmul.mubr.bf16.gmra.mrb[56].mxu1 %v18180_v45  ;;  %v18231_v45 = vld [vmem:[#allocation6] sm:$0xff] }
 0x39c   :  { %13958 = vmatprep.mubr.msk.bf16.mxu0 %vm1230_vm0, %v18192_v5  ;;  %13962 = vmatprep.mubr.msk.bf16.mxu1 %vm1230_vm0, %v18192_v5  ;;  %v18244_v17 = vrot.slane %v18231_v45, %v18229_v8  ;;  %v18248_v11 = vrot.slane %v18231_v45, %v18234_v15  ;;  %v18253_v16 = vrot.slane %v18231_v45, %v18237_v2 }
 0x3a3   :  { %3231 = vmatmul.mubr.bf16.gmra.mrb[28].mxu0 %v18190_v9  ;;  %3304 = vmatmul.mubr.bf16.gmra.mrb[60].mxu1 %v18190_v9  ;;  %v18240_v9 = vsub.s32 1, %v18226_v3 }
 0x3a4   :  { %3568 = vmatprep.mubr.bf16.mxu1 %v19056_v0  ;;  %3674 = vmatprep.mubr.bf16.mxu0 %v19056_v0 }
 0x3a5   :  { %19082 = vst [vmem:[#allocation36_spill] sm:$0xff] %v18240_v9  ;;  %v18258_v22 = vrot.slane %v18231_v45, %v18240_v9 }
 0x42e   :  { %v3056_v5 = vpop.f32.mrb[32].mxu0  ;;  %v3129_v4 = vpop.f32.mrb[32].mxu1 }
 0x42f   :  { %v15256_v12 = vadd.f32 %v3056_v5, %v18111_v42  ;;  %v3058_v18 = vpop.f32.mrb[33].mxu0  ;;  %v3131_v20 = vpop.f32.mrb[33].mxu1  ;;  %v3422_v26 = vadd.f32 %v18244_v17, %v3129_v4 }
 0x430   :  { %v15257_v21 = vadd.f32 %v3058_v18, %v18113_v53  ;;  %v3060_v23 = vpop.f32.mrb[34].mxu0  ;;  %v3133_v36 = vpop.f32.mrb[34].mxu1  ;;  %v3423_v32 = vadd.f32 %v18248_v11, %v3131_v20 }
 0x431   :  { %v15258_v27 = vadd.f32 %v3060_v23, %v18115_v58  ;;  %v3430_v42 = vadd.f32 %v18244_v17, %v3133_v36  ;;  %v3062_v29 = vpop.f32.mrb[35].mxu0  ;;  %v3135_v30 = vpop.f32.mrb[35].mxu1  ;;  %v3420_v38 = vadd.f32 %v15256_v12, %v18253_v16 }
 0x432   :  { %v15259_v34 = vadd.f32 %v3062_v29, %v18117_v39  ;;  %v3431_v53 = vadd.f32 %v18248_v11, %v3135_v30  ;;  %v3421_v47 = vadd.f32 %v15257_v21, %v18258_v22 }
 0x433   :  { %v3428_v41 = vadd.f32 %v15258_v27, %v18253_v16  ;;  %v18268_v46 = vpack.c.bf16 %v3430_v42, %v3422_v26 }
 0x434   :  { %v3429_v58 = vadd.f32 %v15259_v34, %v18258_v22  ;;  %v18272_v48 = vpack.c.bf16 %v3431_v53, %v3423_v32 }
 0x435   :  { %v18274_v51 = vpack.c.bf16 %v3428_v41, %v3420_v38 }
 0x436   :  { %v3066_v13 = vpop.f32.mrb[36].mxu0  ;;  %v3139_v52 = vpop.f32.mrb[36].mxu1  ;;  %v18276_v44 = vpack.c.bf16 %v3429_v58, %v3421_v47 }
 0x437   :  { %v15260_v39 = vadd.f32 %v3066_v13, %v18134_v6  ;;  %v3068_v14 = vpop.f32.mrb[37].mxu0  ;;  %v3141_v54 = vpop.f32.mrb[37].mxu1  ;;  %v3438_v59 = vadd.f32 %v18244_v17, %v3139_v52 }
 0x438   :  { %v15261_v55 = vadd.f32 %v3068_v14, %v18136_v10  ;;  %v3070_v56 = vpop.f32.mrb[38].mxu0  ;;  %v3143_v57 = vpop.f32.mrb[38].mxu1  ;;  %3536 = vmatprep.subr.bf16.mxu1 %v18276_v44  ;;  %v3439_v6 = vadd.f32 %v18248_v11, %v3141_v54 }
 0x439   :  { %v15262_v60 = vadd.f32 %v3070_v56, %v18138_v43  ;;  %v3446_v7 = vadd.f32 %v18244_v17, %v3143_v57  ;;  %v3072_v49 = vpop.f32.mrb[39].mxu0  ;;  %v3145_v61 = vpop.f32.mrb[39].mxu1  ;;  %3537 = vmatpush1.bf16.msra.mxu1 %v18274_v51  ;;  %v3436_v63 = vadd.f32 %v15260_v39, %v18253_v16 }
 0x43a   :  { %v15263_v62 = vadd.f32 %v3072_v49, %v18140_v40  ;;  %v3447_v10 = vadd.f32 %v18248_v11, %v3145_v61  ;;  %v3437_v43 = vadd.f32 %v15261_v55, %v18258_v22 }
 0x43b   :  { %v3444_v1 = vadd.f32 %v15262_v60, %v18253_v16  ;;  %v18290_v50 = vpack.c.bf16 %v3446_v7, %v3438_v59 }
 0x43c   :  { %v3445_v5 = vadd.f32 %v15263_v62, %v18258_v22  ;;  %v18294_v4 = vpack.c.bf16 %v3447_v10, %v3439_v6 }
 0x43d   :  { %v18296_v12 = vpack.c.bf16 %v3444_v1, %v3436_v63 }
 0x43e   :  { %v3076_v18 = vpop.f32.mrb[40].mxu0  ;;  %v3149_v20 = vpop.f32.mrb[40].mxu1  ;;  %v18298_v21 = vpack.c.bf16 %v3445_v5, %v3437_v43 }
 0x43f   :  { %v15264_v40 = vadd.f32 %v3076_v18, %v18142_v19  ;;  %v3078_v23 = vpop.f32.mrb[41].mxu0  ;;  %v3151_v36 = vpop.f32.mrb[41].mxu1  ;;  %v3454_v29 = vadd.f32 %v18244_v17, %v3149_v20 }
 0x440   :  { %v15265_v26 = vadd.f32 %v3078_v23, %v18144_v24  ;;  %v3080_v27 = vpop.f32.mrb[42].mxu0  ;;  %v3153_v42 = vpop.f32.mrb[42].mxu1  ;;  %3538 = vmatprep.subr.bf16.mxu1 %v18298_v21  ;;  %v3455_v19 = vadd.f32 %v18248_v11, %v3151_v36  ;;  %v3402_v23 = vsub.s32 5, %v18226_v3  ;;  %v3410_v36 = vsub.s32 7, %v18226_v3 }
 0x441   :  { %v15266_v30 = vadd.f32 %v3080_v27, %v18146_v25  ;;  %v3462_v32 = vadd.f32 %v18244_v17, %v3153_v42  ;;  %v3082_v34 = vpop.f32.mrb[43].mxu0  ;;  %v3155_v53 = vpop.f32.mrb[43].mxu1  ;;  %3539 = vmatpush1.bf16.msra.mxu1 %v18296_v12  ;;  %v3452_v41 = vadd.f32 %v15264_v40, %v18253_v16 }
 0x442   :  { %v15267_v38 = vadd.f32 %v3082_v34, %v18148_v28  ;;  %v3463_v24 = vadd.f32 %v18248_v11, %v3155_v53  ;;  %v3453_v25 = vadd.f32 %v15265_v26, %v18258_v22 }
 0x443   :  { %v3460_v47 = vadd.f32 %v15266_v30, %v18253_v16  ;;  %v18312_v58 = vpack.c.bf16 %v3462_v32, %v3454_v29  ;;  %v18373_v30 = vrot.slane %v18231_v45, %v3402_v23  ;;  %v18376_v32 = vrot.slane %v18231_v45, %v3410_v36 }
 0x444   :  { %v3461_v13 = vadd.f32 %v15267_v38, %v18258_v22  ;;  %v18316_v52 = vpack.c.bf16 %v3463_v24, %v3455_v19 }
 0x445   :  { %v18318_v39 = vpack.c.bf16 %v3460_v47, %v3452_v41 }
 0x446   :  { %v3086_v14 = vpop.f32.mrb[44].mxu0  ;;  %v3159_v54 = vpop.f32.mrb[44].mxu1  ;;  %v18320_v55 = vpack.c.bf16 %v3461_v13, %v3453_v25 }
 0x447   :  { %v15268_v28 = vadd.f32 %v3086_v14, %v18150_v31  ;;  %v3088_v56 = vpop.f32.mrb[45].mxu0  ;;  %v3161_v57 = vpop.f32.mrb[45].mxu1  ;;  %v3470_v49 = vadd.f32 %v18244_v17, %v3159_v54 }
 0x448   :  { %v15269_v59 = vadd.f32 %v3088_v56, %v18152_v33  ;;  %v3090_v60 = vpop.f32.mrb[46].mxu0  ;;  %v3163_v7 = vpop.f32.mrb[46].mxu1  ;;  %3540 = vmatprep.subr.bf16.mxu1 %v18320_v55  ;;  %v3471_v31 = vadd.f32 %v18248_v11, %v3161_v57 }
 0x449   :  { %v15270_v61 = vadd.f32 %v3090_v60, %v18156_v35  ;;  %v3478_v6 = vadd.f32 %v18244_v17, %v3163_v7  ;;  %v3092_v62 = vpop.f32.mrb[47].mxu0  ;;  %v3165_v10 = vpop.f32.mrb[47].mxu1  ;;  %3541 = vmatpush1.bf16.msra.mxu1 %v18318_v39  ;;  %v3468_v1 = vadd.f32 %v15268_v28, %v18253_v16 }
 0x44a   :  { %v15271_v63 = vadd.f32 %v3092_v62, %v18158_v37  ;;  %v3479_v33 = vadd.f32 %v18248_v11, %v3165_v10  ;;  %v3469_v35 = vadd.f32 %v15269_v59, %v18258_v22  ;;  %v18345_v37 = vld [vmem:[#allocation7] sm:$0xff]   ;;  %v18354_v11 = vld [vmem:[#allocation7 + $0x8] sm:$0xff]  }
 0x44b   :  { %v3476_v43 = vadd.f32 %v15270_v61, %v18253_v16  ;;  %v18334_v5 = vpack.c.bf16 %v3478_v6, %v3470_v49  ;;  %v3398_v16 = vsub.s32 4, %v18226_v3 }
 0x44c   :  { %v3477_v17 = vadd.f32 %v15271_v63, %v18258_v22  ;;  %v18338_v18 = vpack.c.bf16 %v3479_v33, %v3471_v31  ;;  %v3406_v22 = vsub.s32 6, %v18226_v3 }
 0x44d   :  { %v18340_v20 = vpack.c.bf16 %v3476_v43, %v3468_v1  ;;  %v18365_v26 = vrot.slane %v18231_v45, %v3398_v16 }
 0x44e   :  { %v18342_v40 = vpack.c.bf16 %v3477_v17, %v3469_v35  ;;  %v18368_v27 = vrot.slane %v18231_v45, %v3406_v22 }
 0x450   :  { %3542 = vmatprep.subr.bf16.mxu1 %v18342_v40 }
 0x451   :  { %3543 = vmatpush1.bf16.msra.mxu1 %v18340_v20 }
 0x452   :  { %3589 = vmatprep.subr.bf16.mxu1 %v18272_v48 }
 0x454   :  { %13965 = vmatmul.mubr.msk.bf16.vlgmr.msra.gmra.mrb[64].mxu1 %vm1230_vm0, %v18345_v37 }
 0x455   :  { %3590 = vmatpush1.bf16.msra.mxu1 %v18268_v46  ;;  %3578 = vmatprep.mubr.bf16.mxu1 %v19056_v0 }
 0x456   :  { %3591 = vmatprep.subr.bf16.mxu1 %v18294_v4 }
 0x459   :  { %3592 = vmatpush1.bf16.msra.mxu1 %v18290_v50 }
 0x45a   :  { %3593 = vmatprep.subr.bf16.mxu1 %v18316_v52 }
 0x45c   :  { %13966 = vmatmul.mubr.msk.bf16.gmra.mrb[68].mxu1 %vm1230_vm0, %v18354_v11 }
 0x45d   :  { %3594 = vmatpush1.bf16.msra.mxu1 %v18312_v58  ;;  %3621 = vmatprep.mubr.bf16.mxu1 %v19056_v0 }
 0x45e   :  { %v3202_v42 = vpop.f32.mrb[16].mxu0  ;;  %v3275_v29 = vpop.f32.mrb[48].mxu1  ;;  %3595 = vmatprep.subr.bf16.mxu1 %v18338_v18 }
 0x45f   :  { %v3204_v34 = vpop.f32.mrb[17].mxu0  ;;  %v3277_v53 = vpop.f32.mrb[49].mxu1  ;;  %v3424_v24 = vadd.f32 %v18365_v26, %v3202_v42  ;;  %v3426_v41 = vadd.f32 %v18368_v27, %v3275_v29 }
 0x460   :  { %v3206_v19 = vpop.f32.mrb[18].mxu0  ;;  %v3279_v38 = vpop.f32.mrb[50].mxu1  ;;  %v3425_v45 = vadd.f32 %v18373_v30, %v3204_v34  ;;  %v3427_v54 = vadd.f32 %v18376_v32, %v3277_v53 }
 0x461   :  { %v3432_v47 = vadd.f32 %v18365_v26, %v3206_v19  ;;  %v3434_v25 = vadd.f32 %v18368_v27, %v3279_v38  ;;  %v3208_v13 = vpop.f32.mrb[19].mxu0  ;;  %v3281_v14 = vpop.f32.mrb[51].mxu1  ;;  %3596 = vmatpush1.bf16.msra.mxu1 %v18334_v5 }
 0x462   :  { %v3433_v28 = vadd.f32 %v18373_v30, %v3208_v13  ;;  %v3435_v56 = vadd.f32 %v18376_v32, %v3281_v14 }
 0x463   :  { %v18388_v57 = vpack.c.bf16 %v3432_v47, %v3424_v24  ;;  %v18390_v59 = vpack.c.bf16 %v3434_v25, %v3426_v41 }
 0x464   :  { %v18392_v60 = vpack.c.bf16 %v3433_v28, %v3425_v45  ;;  %v18394_v7 = vpack.c.bf16 %v3435_v56, %v3427_v54  ;;  %13967 = vmatmul.mubr.msk.bf16.vlgmr.msra.gmra.mrb[72].mxu1 %vm1230_vm0, %v18345_v37 }
 0x465   :  { %3631 = vmatprep.mubr.bf16.mxu1 %v19056_v0 }
 0x466   :  { %v3212_v49 = vpop.f32.mrb[20].mxu0  ;;  %v3285_v61 = vpop.f32.mrb[52].mxu1  ;;  %3642 = vmatprep.subr.bf16.mxu0 %v18392_v60  ;;  %3695 = vmatprep.subr.bf16.mxu1 %v18394_v7 }
 0x467   :  { %v3214_v6 = vpop.f32.mrb[21].mxu0  ;;  %v3287_v62 = vpop.f32.mrb[53].mxu1  ;;  %3643 = vmatpush1.bf16.msra.mxu0 %v18388_v57  ;;  %3696 = vmatpush1.bf16.msra.mxu1 %v18390_v59  ;;  %v3440_v63 = vadd.f32 %v18365_v26, %v3212_v49  ;;  %v3442_v33 = vadd.f32 %v18368_v27, %v3285_v61 }
 0x468   :  { %v3216_v10 = vpop.f32.mrb[22].mxu0  ;;  %v3289_v31 = vpop.f32.mrb[54].mxu1  ;;  %v3441_v16 = vadd.f32 %v18373_v30, %v3214_v6  ;;  %v3443_v22 = vadd.f32 %v18376_v32, %v3287_v62 }
 0x469   :  { %v3448_v1 = vadd.f32 %v18365_v26, %v3216_v10  ;;  %v3450_v43 = vadd.f32 %v18368_v27, %v3289_v31  ;;  %v3218_v35 = vpop.f32.mrb[23].mxu0  ;;  %v3291_v17 = vpop.f32.mrb[55].mxu1 }
 0x46a   :  { %v3449_v23 = vadd.f32 %v18373_v30, %v3218_v35  ;;  %v3451_v36 = vadd.f32 %v18376_v32, %v3291_v17 }
 0x46b   :  { %v18411_v42 = vpack.c.bf16 %v3448_v1, %v3440_v63  ;;  %v18413_v29 = vpack.c.bf16 %v3450_v43, %v3442_v33 }
 0x46c   :  { %v18415_v34 = vpack.c.bf16 %v3449_v23, %v3441_v16  ;;  %v18417_v53 = vpack.c.bf16 %v3451_v36, %v3443_v22  ;;  %13968 = vmatmul.mubr.msk.bf16.gmra.mrb[76].mxu1 %vm1230_vm0, %v18354_v11 }
 0x46d   :  { %3727 = vmatprep.mubr.bf16.mxu1 %v19056_v0 }
 0x46e   :  { %v3222_v19 = vpop.f32.mrb[24].mxu0  ;;  %v3295_v38 = vpop.f32.mrb[56].mxu1  ;;  %3644 = vmatprep.subr.bf16.mxu0 %v18415_v34  ;;  %3697 = vmatprep.subr.bf16.mxu1 %v18417_v53 }
 0x46f   :  { %v3224_v24 = vpop.f32.mrb[25].mxu0  ;;  %v3297_v41 = vpop.f32.mrb[57].mxu1  ;;  %3645 = vmatpush1.bf16.msra.mxu0 %v18411_v42  ;;  %3698 = vmatpush1.bf16.msra.mxu1 %v18413_v29  ;;  %v3456_v13 = vadd.f32 %v18365_v26, %v3222_v19  ;;  %v3458_v14 = vadd.f32 %v18368_v27, %v3295_v38 }
 0x470   :  { %v3226_v47 = vpop.f32.mrb[26].mxu0  ;;  %v3299_v25 = vpop.f32.mrb[58].mxu1  ;;  %v3457_v49 = vadd.f32 %v18373_v30, %v3224_v24  ;;  %v3459_v61 = vadd.f32 %v18376_v32, %v3297_v41 }
 0x471   :  { %v3464_v45 = vadd.f32 %v18365_v26, %v3226_v47  ;;  %v3466_v54 = vadd.f32 %v18368_v27, %v3299_v25  ;;  %v3228_v28 = vpop.f32.mrb[27].mxu0  ;;  %v3301_v56 = vpop.f32.mrb[59].mxu1 }
 0x472   :  { %v3465_v6 = vadd.f32 %v18373_v30, %v3228_v28  ;;  %v3467_v62 = vadd.f32 %v18376_v32, %v3301_v56 }
 0x473   :  { %v18434_v10 = vpack.c.bf16 %v3464_v45, %v3456_v13  ;;  %v18436_v31 = vpack.c.bf16 %v3466_v54, %v3458_v14 }
 0x474   :  { %v18438_v63 = vpack.c.bf16 %v3465_v6, %v3457_v49  ;;  %v18440_v33 = vpack.c.bf16 %v3467_v62, %v3459_v61  ;;  %v15655_v49 = vld [vmem:[#allocation9 + $0x824] ss:$16 sps:$4 sm:$0xff]   ;;  %v15658_v61 = vld [vmem:[#allocation9 + $0x82c] ss:$16 sps:$4 sm:$0xff]   ;;  %v15653_v6 = vld [vmem:[#allocation9 + $0x820] ss:$16 sps:$4 sm:$0xff]  }
 0x475   :  { %19083 = vst [vmem:[#allocation37_spill] sm:$0xff] %v18434_v10  ;;  %19084 = vst [vmem:[#allocation38_spill] sm:$0xff] %v18436_v31  ;;  %v15656_v62 = vld [vmem:[#allocation9 + $0x828] ss:$16 sps:$4 sm:$0xff]  }
 0x476   :  { %19085 = vst [vmem:[#allocation39_spill] sm:$0xff] %v18438_v63  ;;  %19086 = vst [vmem:[#allocation40_spill] sm:$0xff] %v18440_v33  ;;  %v3232_v1 = vpop.f32.mrb[28].mxu0  ;;  %v3305_v43 = vpop.f32.mrb[60].mxu1  ;;  %3646 = vmatprep.subr.bf16.mxu0 %v18438_v63  ;;  %3699 = vmatprep.subr.bf16.mxu1 %v18440_v33 }
 0x477   :  { %v3234_v35 = vpop.f32.mrb[29].mxu0  ;;  %v3307_v17 = vpop.f32.mrb[61].mxu1  ;;  %3647 = vmatpush1.bf16.msra.mxu0 %v18434_v10  ;;  %3700 = vmatpush1.bf16.msra.mxu1 %v18436_v31  ;;  %v3472_v23 = vadd.f32 %v18365_v26, %v3232_v1  ;;  %v3474_v36 = vadd.f32 %v18368_v27, %v3305_v43  ;;  %v15661_v1 = vld [vmem:[#allocation9 + $0x844] ss:$16 sps:$4 sm:$0xff]   ;;  %v15664_v43 = vld [vmem:[#allocation9 + $0x84c] ss:$16 sps:$4 sm:$0xff]  }
 0x478   :  { %v3236_v16 = vpop.f32.mrb[30].mxu0  ;;  %v3309_v22 = vpop.f32.mrb[62].mxu1  ;;  %v3473_v47 = vadd.f32 %v18373_v30, %v3234_v35  ;;  %v3475_v25 = vadd.f32 %v18376_v32, %v3307_v17  ;;  %v15659_v35 = vld [vmem:[#allocation9 + $0x840] ss:$16 sps:$4 sm:$0xff]   ;;  %v15662_v17 = vld [vmem:[#allocation9 + $0x848] ss:$16 sps:$4 sm:$0xff]  }
 0x479   :  { %v3480_v19 = vadd.f32 %v18365_v26, %v3236_v16  ;;  %v3482_v38 = vadd.f32 %v18368_v27, %v3309_v22  ;;  %v3238_v24 = vpop.f32.mrb[31].mxu0  ;;  %v3311_v41 = vpop.f32.mrb[63].mxu1  ;;  %v15649_v26 = vld [vmem:[#allocation9 + $0x804] ss:$16 sps:$4 sm:$0xff]   ;;  %v15652_v27 = vld [vmem:[#allocation9 + $0x80c] ss:$16 sps:$4 sm:$0xff]  }
 0x47a   :  { %v3481_v13 = vadd.f32 %v18373_v30, %v3238_v24  ;;  %v3483_v14 = vadd.f32 %v18376_v32, %v3311_v41  ;;  %v15647_v30 = vld [vmem:[#allocation9 + $0x800] ss:$16 sps:$4 sm:$0xff]   ;;  %v15650_v32 = vld [vmem:[#allocation9 + $0x808] ss:$16 sps:$4 sm:$0xff]   ;;  %v15667_v16 = vld [vmem:[#allocation9 + $0x864] ss:$16 sps:$4 sm:$0xff]  }
 0x47b   :  { %v18454_v45 = vpack.c.bf16 %v3480_v19, %v3472_v23  ;;  %v18456_v54 = vpack.c.bf16 %v3482_v38, %v3474_v36  ;;  %v15670_v22 = vld [vmem:[#allocation9 + $0x86c] ss:$16 sps:$4 sm:$0xff]   ;;  %v15665_v23 = vld [vmem:[#allocation9 + $0x860] ss:$16 sps:$4 sm:$0xff]   ;;  %v15668_v36 = vld [vmem:[#allocation9 + $0x868] ss:$16 sps:$4 sm:$0xff]  }
 0x47c   :  { %v18458_v28 = vpack.c.bf16 %v3481_v13, %v3473_v47  ;;  %v18460_v56 = vpack.c.bf16 %v3483_v14, %v3475_v25  ;;  %v15673_v19 = vld [vmem:[#allocation9 + $0x884] ss:$16 sps:$4 sm:$0xff]   ;;  %v15676_v38 = vld [vmem:[#allocation9 + $0x88c] ss:$16 sps:$4 sm:$0xff]   ;;  %v15671_v24 = vld [vmem:[#allocation9 + $0x880] ss:$16 sps:$4 sm:$0xff]  }
 0x47d   :  { %19087 = vst [vmem:[#allocation41_spill] sm:$0xff] %v18454_v45  ;;  %19088 = vst [vmem:[#allocation42_spill] sm:$0xff] %v18456_v54  ;;  %v15674_v41 = vld [vmem:[#allocation9 + $0x888] ss:$16 sps:$4 sm:$0xff]   ;;  %v15679_v47 = vld [vmem:[#allocation9 + $0x8a4] ss:$16 sps:$4 sm:$0xff]  }
 0x47e   :  { %19089 = vst [vmem:[#allocation43_spill] sm:$0xff] %v18458_v28  ;;  %19090 = vst [vmem:[#allocation44_spill] sm:$0xff] %v18460_v56  ;;  %3648 = vmatprep.subr.bf16.mxu0 %v18458_v28  ;;  %3701 = vmatprep.subr.bf16.mxu1 %v18460_v56  ;;  %v15682_v25 = vld [vmem:[#allocation9 + $0x8ac] ss:$16 sps:$4 sm:$0xff]   ;;  %v15677_v13 = vld [vmem:[#allocation9 + $0x8a0] ss:$16 sps:$4 sm:$0xff]  }
 0x47f   :  { %3649 = vmatpush1.bf16.msra.mxu0 %v18454_v45  ;;  %3702 = vmatpush1.bf16.msra.mxu1 %v18456_v54  ;;  %v15680_v14 = vld [vmem:[#allocation9 + $0x8a8] ss:$16 sps:$4 sm:$0xff]  }
 0x480   :  { %4041 = vmatprep.subr.bf16.mxu0 %v18276_v44  ;;  %4094 = vmatprep.subr.bf16.mxu1 %v18272_v48 }
 0x482   :  { %13969 = vmatmul.mubr.msk.bf16.vlgmr.msra.gmra.mrb[64].mxu0 %vm1230_vm0, %v18345_v37  ;;  %13971 = vmatmul.mubr.msk.bf16.vlgmr.msra.gmra.mrb[80].mxu1 %vm1230_vm0, %v18345_v37  ;;  %v15645_v37 = vld [vmem:[#allocation7 + $0x10] sm:$0xff]  }
 0x483   :  { %4042 = vmatpush1.bf16.msra.mxu0 %v18274_v51  ;;  %4095 = vmatpush1.bf16.msra.mxu1 %v18268_v46 }
 0x484   :  { %4043 = vmatprep.subr.bf16.mxu0 %v18298_v21  ;;  %4096 = vmatprep.subr.bf16.mxu1 %v18294_v4 }
 0x485   :  { %3684 = vmatprep.mubr.bf16.mxu0 %v19056_v0  ;;  %3737 = vmatprep.mubr.bf16.mxu1 %v19056_v0 }
 0x487   :  { %4044 = vmatpush1.bf16.msra.mxu0 %v18296_v12  ;;  %4097 = vmatpush1.bf16.msra.mxu1 %v18290_v50 }
 0x488   :  { %4045 = vmatprep.subr.bf16.mxu0 %v18320_v55  ;;  %4098 = vmatprep.subr.bf16.mxu1 %v18316_v52 }
 0x48a   :  { %13970 = vmatmul.mubr.msk.bf16.gmra.mrb[68].mxu0 %vm1230_vm0, %v18354_v11  ;;  %13972 = vmatmul.mubr.msk.bf16.gmra.mrb[84].mxu1 %vm1230_vm0, %v18354_v11  ;;  %v15646_v11 = vld [vmem:[#allocation7 + $0x18] sm:$0xff]  }
 0x48b   :  { %4046 = vmatpush1.bf16.msra.mxu0 %v18318_v39  ;;  %4099 = vmatpush1.bf16.msra.mxu1 %v18312_v58 }
 0x48c   :  { %4047 = vmatprep.subr.bf16.mxu0 %v18342_v40  ;;  %4100 = vmatprep.subr.bf16.mxu1 %v18338_v18 }
 0x48d   :  { %4073 = vmatprep.mubr.bf16.mxu0 %v19056_v0  ;;  %4126 = vmatprep.mubr.bf16.mxu1 %v19056_v0 }
 0x48f   :  { %4048 = vmatpush1.bf16.msra.mxu0 %v18340_v20  ;;  %4101 = vmatpush1.bf16.msra.mxu1 %v18334_v5 }
 0x490   :  { %4147 = vmatprep.subr.bf16.mxu0 %v18392_v60  ;;  %4200 = vmatprep.subr.bf16.mxu1 %v18394_v7 }
 0x492   :  { %13975 = vmatmul.mubr.msk.bf16.vlgmr.msra.gmra.mrb[72].mxu0 %vm1230_vm0, %v15645_v37  ;;  %13977 = vmatmul.mubr.msk.bf16.vlgmr.msra.gmra.mrb[88].mxu1 %vm1230_vm0, %v15645_v37 }
 0x493   :  { %4148 = vmatpush1.bf16.msra.mxu0 %v18388_v57  ;;  %4201 = vmatpush1.bf16.msra.mxu1 %v18390_v59 }
 0x494   :  { %4149 = vmatprep.subr.bf16.mxu0 %v18415_v34  ;;  %4202 = vmatprep.subr.bf16.mxu1 %v18417_v53 }
 0x495   :  { %4083 = vmatprep.mubr.bf16.mxu0 %v19056_v0  ;;  %4136 = vmatprep.mubr.bf16.mxu1 %v19056_v0 }
 0x497   :  { %4150 = vmatpush1.bf16.msra.mxu0 %v18411_v42  ;;  %4203 = vmatpush1.bf16.msra.mxu1 %v18413_v29 }
 0x498   :  { %4151 = vmatprep.subr.bf16.mxu0 %v18438_v63  ;;  %4204 = vmatprep.subr.bf16.mxu1 %v18440_v33  ;;  %v15847_v63 = vld [vmem:[#allocation9 + $0xc24] ss:$16 sps:$4 sm:$0xff]  }
 0x49a   :  { %13976 = vmatmul.mubr.msk.bf16.gmra.mrb[76].mxu0 %vm1230_vm0, %v15646_v11  ;;  %13978 = vmatmul.mubr.msk.bf16.gmra.mrb[92].mxu1 %vm1230_vm0, %v15646_v11 }
 0x49b   :  { %4152 = vmatpush1.bf16.msra.mxu0 %v18434_v10  ;;  %4205 = vmatpush1.bf16.msra.mxu1 %v18436_v31 }
 0x49c   :  { %4153 = vmatprep.subr.bf16.mxu0 %v18458_v28  ;;  %4206 = vmatprep.subr.bf16.mxu1 %v18460_v56  ;;  %v15751_v56 = vld [vmem:[#allocation9 + $0xa24] ss:$16 sps:$4 sm:$0xff]  }
 0x49d   :  { %4179 = vmatprep.mubr.bf16.mxu0 %v19056_v0  ;;  %4232 = vmatprep.mubr.bf16.mxu1 %v19056_v0 }
 0x49f   :  { %4154 = vmatpush1.bf16.msra.mxu0 %v18454_v45  ;;  %4207 = vmatpush1.bf16.msra.mxu1 %v18456_v54  ;;  %v15743_v45 = vld [vmem:[#allocation9 + $0xa00] ss:$16 sps:$4 sm:$0xff]  }
 0x4a0   :  { %5806 = vmatprep.subr.bf16.mxu0 %v15649_v26  ;;  %6018 = vmatprep.subr.bf16.mxu1 %v15652_v27  ;;  %v15683_v26 = vld [vmem:[#allocation9 + $0x8c0] ss:$16 sps:$4 sm:$0xff]   ;;  %v15686_v27 = vld [vmem:[#allocation9 + $0x8c8] ss:$16 sps:$4 sm:$0xff]  }
 0x4a2   :  { %13979 = vmatmul.mubr.msk.bf16.vlgmr.msra.gmra.mrb[80].mxu0 %vm1230_vm0, %v15645_v37  ;;  %13981 = vmatmul.mubr.msk.bf16.vlgmr.msra.gmra.mrb[96].mxu1 %vm1230_vm0, %v15645_v37  ;;  %v15685_v37 = vld [vmem:[#allocation9 + $0x8c4] ss:$16 sps:$4 sm:$0xff]  }
 0x4a3   :  { %5807 = vmatpush1.bf16.msra.mxu0 %v15647_v30  ;;  %6019 = vmatpush1.bf16.msra.mxu1 %v15650_v32  ;;  %v15691_v30 = vld [vmem:[#allocation9 + $0x8e4] ss:$16 sps:$4 sm:$0xff]   ;;  %v15694_v32 = vld [vmem:[#allocation9 + $0x8ec] ss:$16 sps:$4 sm:$0xff]  }
 0x4a4   :  { %5808 = vmatprep.subr.bf16.mxu0 %v15655_v49  ;;  %6020 = vmatprep.subr.bf16.mxu1 %v15658_v61  ;;  %v15689_v49 = vld [vmem:[#allocation9 + $0x8e0] ss:$16 sps:$4 sm:$0xff]   ;;  %v15692_v61 = vld [vmem:[#allocation9 + $0x8e8] ss:$16 sps:$4 sm:$0xff]  }
 0x4a5   :  { %4189 = vmatprep.mubr.bf16.mxu0 %v19056_v0  ;;  %4242 = vmatprep.mubr.bf16.mxu1 %v19056_v0 }
 0x4a7   :  { %5809 = vmatpush1.bf16.msra.mxu0 %v15653_v6  ;;  %6021 = vmatpush1.bf16.msra.mxu1 %v15656_v62  ;;  %v15697_v6 = vld [vmem:[#allocation9 + $0x904] ss:$16 sps:$4 sm:$0xff]   ;;  %v15700_v62 = vld [vmem:[#allocation9 + $0x90c] ss:$16 sps:$4 sm:$0xff]  }
 0x4a8   :  { %5810 = vmatprep.subr.bf16.mxu0 %v15661_v1  ;;  %6022 = vmatprep.subr.bf16.mxu1 %v15664_v43  ;;  %v15695_v1 = vld [vmem:[#allocation9 + $0x900] ss:$16 sps:$4 sm:$0xff]   ;;  %v15698_v43 = vld [vmem:[#allocation9 + $0x908] ss:$16 sps:$4 sm:$0xff]  }
 0x4aa   :  { %13980 = vmatmul.mubr.msk.bf16.gmra.mrb[84].mxu0 %vm1230_vm0, %v15646_v11  ;;  %13982 = vmatmul.mubr.msk.bf16.gmra.mrb[100].mxu1 %vm1230_vm0, %v15646_v11  ;;  %v15688_v11 = vld [vmem:[#allocation9 + $0x8cc] ss:$16 sps:$4 sm:$0xff]  }
 0x4ab   :  { %5811 = vmatpush1.bf16.msra.mxu0 %v15659_v35  ;;  %6023 = vmatpush1.bf16.msra.mxu1 %v15662_v17  ;;  %v15703_v35 = vld [vmem:[#allocation9 + $0x924] ss:$16 sps:$4 sm:$0xff]   ;;  %v15706_v17 = vld [vmem:[#allocation9 + $0x92c] ss:$16 sps:$4 sm:$0xff]  }
 0x4ac   :  { %5812 = vmatprep.subr.bf16.mxu0 %v15667_v16  ;;  %6024 = vmatprep.subr.bf16.mxu1 %v15670_v22  ;;  %v15701_v16 = vld [vmem:[#allocation9 + $0x920] ss:$16 sps:$4 sm:$0xff]   ;;  %v15704_v22 = vld [vmem:[#allocation9 + $0x928] ss:$16 sps:$4 sm:$0xff]  }
 0x4af   :  { %5813 = vmatpush1.bf16.msra.mxu0 %v15665_v23  ;;  %6025 = vmatpush1.bf16.msra.mxu1 %v15668_v36  ;;  %v15709_v23 = vld [vmem:[#allocation9 + $0x944] ss:$16 sps:$4 sm:$0xff]   ;;  %v15712_v36 = vld [vmem:[#allocation9 + $0x94c] ss:$16 sps:$4 sm:$0xff]  }
 0x4b0   :  { %5814 = vmatprep.subr.bf16.mxu0 %v15673_v19  ;;  %6026 = vmatprep.subr.bf16.mxu1 %v15676_v38  ;;  %v15707_v19 = vld [vmem:[#allocation9 + $0x940] ss:$16 sps:$4 sm:$0xff]   ;;  %v15710_v38 = vld [vmem:[#allocation9 + $0x948] ss:$16 sps:$4 sm:$0xff]  }
 0x4b3   :  { %5815 = vmatpush1.bf16.msra.mxu0 %v15671_v24  ;;  %6027 = vmatpush1.bf16.msra.mxu1 %v15674_v41  ;;  %v15715_v24 = vld [vmem:[#allocation9 + $0x964] ss:$16 sps:$4 sm:$0xff]   ;;  %v15718_v41 = vld [vmem:[#allocation9 + $0x96c] ss:$16 sps:$4 sm:$0xff]  }
 0x4b4   :  { %5816 = vmatprep.subr.bf16.mxu0 %v15679_v47  ;;  %6028 = vmatprep.subr.bf16.mxu1 %v15682_v25  ;;  %v15713_v47 = vld [vmem:[#allocation9 + $0x960] ss:$16 sps:$4 sm:$0xff]   ;;  %v15716_v25 = vld [vmem:[#allocation9 + $0x968] ss:$16 sps:$4 sm:$0xff]  }
 0x4b7   :  { %5817 = vmatpush1.bf16.msra.mxu0 %v15677_v13  ;;  %6029 = vmatpush1.bf16.msra.mxu1 %v15680_v14  ;;  %v15719_v13 = vld [vmem:[#allocation9 + $0x980] ss:$16 sps:$4 sm:$0xff]   ;;  %v15721_v14 = vld [vmem:[#allocation9 + $0x984] ss:$16 sps:$4 sm:$0xff]  }
 0x4b8   :  { %5818 = vmatprep.subr.bf16.mxu0 %v15685_v37  ;;  %6030 = vmatprep.subr.bf16.mxu1 %v15688_v11  ;;  %v15722_v37 = vld [vmem:[#allocation9 + $0x988] ss:$16 sps:$4 sm:$0xff]   ;;  %v15724_v11 = vld [vmem:[#allocation9 + $0x98c] ss:$16 sps:$4 sm:$0xff]  }
 0x4bb   :  { %5819 = vmatpush1.bf16.msra.mxu0 %v15683_v26  ;;  %6031 = vmatpush1.bf16.msra.mxu1 %v15686_v27  ;;  %v15727_v26 = vld [vmem:[#allocation9 + $0x9a4] ss:$16 sps:$4 sm:$0xff]   ;;  %v15730_v27 = vld [vmem:[#allocation9 + $0x9ac] ss:$16 sps:$4 sm:$0xff]  }
 0x4bc   :  { %5820 = vmatprep.subr.bf16.mxu0 %v15691_v30  ;;  %6032 = vmatprep.subr.bf16.mxu1 %v15694_v32  ;;  %v15725_v30 = vld [vmem:[#allocation9 + $0x9a0] ss:$16 sps:$4 sm:$0xff]   ;;  %v15728_v32 = vld [vmem:[#allocation9 + $0x9a8] ss:$16 sps:$4 sm:$0xff]  }
 0x4bf   :  { %5821 = vmatpush1.bf16.msra.mxu0 %v15689_v49  ;;  %6033 = vmatpush1.bf16.msra.mxu1 %v15692_v61  ;;  %v15731_v49 = vld [vmem:[#allocation9 + $0x9c0] ss:$16 sps:$4 sm:$0xff]   ;;  %v15733_v61 = vld [vmem:[#allocation9 + $0x9c4] ss:$16 sps:$4 sm:$0xff]  }
 0x4c0   :  { %5822 = vmatprep.subr.bf16.mxu0 %v15697_v6  ;;  %6034 = vmatprep.subr.bf16.mxu1 %v15700_v62  ;;  %v15734_v6 = vld [vmem:[#allocation9 + $0x9c8] ss:$16 sps:$4 sm:$0xff]   ;;  %v15736_v62 = vld [vmem:[#allocation9 + $0x9cc] ss:$16 sps:$4 sm:$0xff]  }
 0x4c3   :  { %5823 = vmatpush1.bf16.msra.mxu0 %v15695_v1  ;;  %6035 = vmatpush1.bf16.msra.mxu1 %v15698_v43  ;;  %v15739_v1 = vld [vmem:[#allocation9 + $0x9e4] ss:$16 sps:$4 sm:$0xff]   ;;  %v15742_v43 = vld [vmem:[#allocation9 + $0x9ec] ss:$16 sps:$4 sm:$0xff]  }
 0x4c4   :  { %5824 = vmatprep.subr.bf16.mxu0 %v15703_v35  ;;  %6036 = vmatprep.subr.bf16.mxu1 %v15706_v17  ;;  %v15737_v35 = vld [vmem:[#allocation9 + $0x9e0] ss:$16 sps:$4 sm:$0xff]   ;;  %v15740_v17 = vld [vmem:[#allocation9 + $0x9e8] ss:$16 sps:$4 sm:$0xff]  }
 0x4c7   :  { %5825 = vmatpush1.bf16.msra.mxu0 %v15701_v16  ;;  %6037 = vmatpush1.bf16.msra.mxu1 %v15704_v22  ;;  %v15745_v16 = vld [vmem:[#allocation9 + $0xa04] ss:$16 sps:$4 sm:$0xff]   ;;  %v15748_v22 = vld [vmem:[#allocation9 + $0xa0c] ss:$16 sps:$4 sm:$0xff]  }
 0x4c8   :  { %5826 = vmatprep.subr.bf16.mxu0 %v15709_v23  ;;  %6038 = vmatprep.subr.bf16.mxu1 %v15712_v36 }
 0x4cb   :  { %5827 = vmatpush1.bf16.msra.mxu0 %v15707_v19  ;;  %6039 = vmatpush1.bf16.msra.mxu1 %v15710_v38 }
 0x4cc   :  { %5828 = vmatprep.subr.bf16.mxu0 %v15715_v24  ;;  %6040 = vmatprep.subr.bf16.mxu1 %v15718_v41 }
 0x4cf   :  { %5829 = vmatpush1.bf16.msra.mxu0 %v15713_v47  ;;  %6041 = vmatpush1.bf16.msra.mxu1 %v15716_v25 }
 0x4d0   :  { %5830 = vmatprep.subr.bf16.mxu0 %v15721_v14  ;;  %6042 = vmatprep.subr.bf16.mxu1 %v15724_v11 }
 0x4d3   :  { %5831 = vmatpush1.bf16.msra.mxu0 %v15719_v13  ;;  %6043 = vmatpush1.bf16.msra.mxu1 %v15722_v37 }
 0x4d4   :  { %5832 = vmatprep.subr.bf16.mxu0 %v15727_v26  ;;  %6044 = vmatprep.subr.bf16.mxu1 %v15730_v27 }
 0x4d7   :  { %5833 = vmatpush1.bf16.msra.mxu0 %v15725_v30  ;;  %6045 = vmatpush1.bf16.msra.mxu1 %v15728_v32 }
 0x4d8   :  { %5834 = vmatprep.subr.bf16.mxu0 %v15733_v61  ;;  %6046 = vmatprep.subr.bf16.mxu1 %v15736_v62 }
 0x4db   :  { %5835 = vmatpush1.bf16.msra.mxu0 %v15731_v49  ;;  %6047 = vmatpush1.bf16.msra.mxu1 %v15734_v6 }
 0x4dc   :  { %5836 = vmatprep.subr.bf16.mxu0 %v15739_v1  ;;  %6048 = vmatprep.subr.bf16.mxu1 %v15742_v43 }
 0x4df   :  { %5837 = vmatpush1.bf16.msra.mxu0 %v15737_v35  ;;  %6049 = vmatpush1.bf16.msra.mxu1 %v15740_v17 }
 0x4e0   :  { %5859 = vmatprep.subr.bf16.mxu0 %v15745_v16  ;;  %6071 = vmatprep.subr.bf16.mxu1 %v15748_v22 }
 0x527   :  { %v3570_v23 = vpop.f32.mrb[64].mxu1 }
 0x528   :  { %v3572_v36 = vpop.f32.mrb[65].mxu1 }
 0x529   :  { %v3574_v19 = vpop.f32.mrb[66].mxu1 }
 0x52a   :  { %v18524_v38 = vpack.c.bf16 %v3574_v19, %v3570_v23  ;;  %v3576_v24 = vpop.f32.mrb[67].mxu1 }
 0x52b   :  { %v18526_v41 = vpack.c.bf16 %v3576_v24, %v3572_v36 }
 0x52f   :  { %v3580_v47 = vpop.f32.mrb[68].mxu1 }
 0x530   :  { %v3582_v25 = vpop.f32.mrb[69].mxu1 }
 0x531   :  { %v3584_v13 = vpop.f32.mrb[70].mxu1 }
 0x532   :  { %v18528_v14 = vpack.c.bf16 %v3584_v13, %v3580_v47  ;;  %v3586_v37 = vpop.f32.mrb[71].mxu1 }
 0x533   :  { %v18530_v11 = vpack.c.bf16 %v3586_v37, %v3582_v25 }
 0x537   :  { %v3623_v26 = vpop.f32.mrb[72].mxu1 }
 0x538   :  { %v3625_v27 = vpop.f32.mrb[73].mxu1 }
 0x539   :  { %v3627_v30 = vpop.f32.mrb[74].mxu1 }
 0x53a   :  { %v18532_v32 = vpack.c.bf16 %v3627_v30, %v3623_v26  ;;  %v3629_v49 = vpop.f32.mrb[75].mxu1 }
 0x53b   :  { %v18534_v61 = vpack.c.bf16 %v3629_v49, %v3625_v27 }
 0x53f   :  { %v3633_v6 = vpop.f32.mrb[76].mxu1 }
 0x540   :  { %v3635_v62 = vpop.f32.mrb[77].mxu1 }
 0x541   :  { %v3637_v1 = vpop.f32.mrb[78].mxu1 }
 0x542   :  { %v18536_v43 = vpack.c.bf16 %v3637_v1, %v3633_v6  ;;  %v3639_v35 = vpop.f32.mrb[79].mxu1 }
 0x543   :  { %v18538_v17 = vpack.c.bf16 %v3639_v35, %v3635_v62 }
 0x555   :  { %v3676_v16 = vpop.f32.mrb[64].mxu0  ;;  %v3729_v22 = vpop.f32.mrb[80].mxu1 }
 0x556   :  { %v3678_v23 = vpop.f32.mrb[65].mxu0  ;;  %v3731_v36 = vpop.f32.mrb[81].mxu1 }
 0x557   :  { %v3680_v19 = vpop.f32.mrb[66].mxu0  ;;  %v3733_v24 = vpop.f32.mrb[82].mxu1 }
 0x558   :  { %v18540_v47 = vpack.c.bf16 %v3680_v19, %v3676_v16  ;;  %v3682_v25 = vpop.f32.mrb[67].mxu0  ;;  %v18542_v13 = vpack.c.bf16 %v3733_v24, %v3729_v22  ;;  %v3735_v37 = vpop.f32.mrb[83].mxu1 }
 0x559   :  { %v18544_v26 = vpack.c.bf16 %v3682_v25, %v3678_v23  ;;  %v18546_v27 = vpack.c.bf16 %v3735_v37, %v3731_v36 }
 0x55d   :  { %v3686_v30 = vpop.f32.mrb[68].mxu0  ;;  %v3739_v49 = vpop.f32.mrb[84].mxu1 }
 0x55e   :  { %v3688_v6 = vpop.f32.mrb[69].mxu0  ;;  %v3741_v62 = vpop.f32.mrb[85].mxu1 }
 0x55f   :  { %v3690_v1 = vpop.f32.mrb[70].mxu0  ;;  %v3743_v35 = vpop.f32.mrb[86].mxu1 }
 0x560   :  { %v18548_v0 = vpack.c.bf16 %v3690_v1, %v3686_v30  ;;  %v3692_v3 = vpop.f32.mrb[71].mxu0  ;;  %v18550_v15 = vpack.c.bf16 %v3743_v35, %v3739_v49  ;;  %v3745_v16 = vpop.f32.mrb[87].mxu1  ;;  %v15746_v49 = vld [vmem:[#allocation9 + $0xa08] ss:$16 sps:$4 sm:$0xff]  }
 0x561   :  { %v18552_v19 = vpack.c.bf16 %v3692_v3, %v3688_v6  ;;  %v18554_v22 = vpack.c.bf16 %v3745_v16, %v3741_v62  ;;  %v15754_v3 = vld [vmem:[#allocation9 + $0xa2c] ss:$16 sps:$4 sm:$0xff]   ;;  %v15749_v6 = vld [vmem:[#allocation9 + $0xa20] ss:$16 sps:$4 sm:$0xff]   ;;  %v15752_v62 = vld [vmem:[#allocation9 + $0xa28] ss:$16 sps:$4 sm:$0xff]  }
 0x565   :  { %v4075_v23 = vpop.f32.mrb[72].mxu0  ;;  %v4128_v24 = vpop.f32.mrb[88].mxu1 }
 0x566   :  { %v4077_v36 = vpop.f32.mrb[73].mxu0  ;;  %v4130_v25 = vpop.f32.mrb[89].mxu1 }
 0x567   :  { %v4079_v37 = vpop.f32.mrb[74].mxu0  ;;  %v4132_v9 = vpop.f32.mrb[90].mxu1 }
 0x568   :  { %v4253_v8 = vpack.c.bf16 %v4079_v37, %v4075_v23  ;;  %v4081_v2 = vpop.f32.mrb[75].mxu0  ;;  %v18556_v54 = vpack.c.bf16 %v4132_v9, %v4128_v24  ;;  %v4134_v30 = vpop.f32.mrb[91].mxu1  ;;  %v15757_v9 = vld [vmem:[#allocation9 + $0xa44] ss:$16 sps:$4 sm:$0xff]   ;;  %v15760_v24 = vld [vmem:[#allocation9 + $0xa4c] ss:$16 sps:$4 sm:$0xff]  }
 0x569   :  { %v4254_v1 = vpack.c.bf16 %v4081_v2, %v4077_v36  ;;  %v4256_v35 = vpack.c.bf16 %v4134_v30, %v4130_v25 }
 0x56b   :  { %5838 = vmatprep.mubr.bf16.mxu0 %v4254_v1  ;;  %6050 = vmatprep.mubr.bf16.mxu1 %v4254_v1 }
 0x56c   :  { %5839 = vmatmul.mubr.bf16.vlgmr.msra.gmra.mrb[88].mxu0 %v4253_v8  ;;  %6051 = vmatmul.mubr.bf16.vlgmr.msra.gmra.mrb[104].mxu1 %v4253_v8  ;;  %v15755_v8 = vld [vmem:[#allocation9 + $0xa40] ss:$16 sps:$4 sm:$0xff]  }
 0x56d   :  { %5860 = vmatpush1.bf16.msra.mxu0 %v15743_v45  ;;  %6072 = vmatpush1.bf16.msra.mxu1 %v15746_v49  ;;  %v4085_v16 = vpop.f32.mrb[76].mxu0  ;;  %v4138_v23 = vpop.f32.mrb[92].mxu1  ;;  %v15758_v45 = vld [vmem:[#allocation9 + $0xa48] ss:$16 sps:$4 sm:$0xff]  }
 0x56e   :  { %5861 = vmatprep.subr.bf16.mxu0 %v15751_v56  ;;  %6073 = vmatprep.subr.bf16.mxu1 %v15754_v3  ;;  %v4087_v2 = vpop.f32.mrb[77].mxu0  ;;  %v4140_v36 = vpop.f32.mrb[93].mxu1  ;;  %v15763_v56 = vld [vmem:[#allocation9 + $0xa64] ss:$16 sps:$4 sm:$0xff]   ;;  %v15766_v3 = vld [vmem:[#allocation9 + $0xa6c] ss:$16 sps:$4 sm:$0xff]  }
 0x56f   :  { %v4089_v37 = vpop.f32.mrb[78].mxu0  ;;  %v4142_v25 = vpop.f32.mrb[94].mxu1 }
 0x570   :  { %v4261_v30 = vpack.c.bf16 %v4089_v37, %v4085_v16  ;;  %v4091_v28 = vpop.f32.mrb[79].mxu0  ;;  %v18558_v31 = vpack.c.bf16 %v4142_v25, %v4138_v23  ;;  %v4144_v1 = vpop.f32.mrb[95].mxu1  ;;  %v15761_v16 = vld [vmem:[#allocation9 + $0xa60] ss:$16 sps:$4 sm:$0xff]   ;;  %v15764_v23 = vld [vmem:[#allocation9 + $0xa68] ss:$16 sps:$4 sm:$0xff]  }
 0x571   :  { %5862 = vmatpush1.bf16.msra.mxu0 %v15749_v6  ;;  %6074 = vmatpush1.bf16.msra.mxu1 %v15752_v62  ;;  %v4262_v49 = vpack.c.bf16 %v4091_v28, %v4087_v2  ;;  %v18560_v10 = vpack.c.bf16 %v4144_v1, %v4140_v36  ;;  %v15769_v6 = vld [vmem:[#allocation9 + $0xa84] ss:$16 sps:$4 sm:$0xff]   ;;  %v15772_v62 = vld [vmem:[#allocation9 + $0xa8c] ss:$16 sps:$4 sm:$0xff]   ;;  %v15767_v36 = vld [vmem:[#allocation9 + $0xa80] ss:$16 sps:$4 sm:$0xff]  }
 0x572   :  { %5863 = vmatprep.subr.bf16.mxu0 %v15757_v9  ;;  %6075 = vmatprep.subr.bf16.mxu1 %v15760_v24  ;;  %v15770_v25 = vld [vmem:[#allocation9 + $0xa88] ss:$16 sps:$4 sm:$0xff]   ;;  %v15775_v1 = vld [vmem:[#allocation9 + $0xaa4] ss:$16 sps:$4 sm:$0xff]  }
 0x573   :  { %5848 = vmatprep.mubr.bf16.mxu0 %v4262_v49  ;;  %6060 = vmatprep.mubr.bf16.mxu1 %v4262_v49  ;;  %v15776_v49 = vld [vmem:[#allocation9 + $0xaa8] ss:$16 sps:$4 sm:$0xff]  }
 0x574   :  { %5849 = vmatmul.mubr.bf16.gmra.mrb[92].mxu0 %v4261_v30  ;;  %6061 = vmatmul.mubr.bf16.gmra.mrb[108].mxu1 %v4261_v30 }
 0x575   :  { %5864 = vmatpush1.bf16.msra.mxu0 %v15755_v8  ;;  %6076 = vmatpush1.bf16.msra.mxu1 %v15758_v45  ;;  %v4181_v37 = vpop.f32.mrb[80].mxu0  ;;  %v15778_v8 = vld [vmem:[#allocation9 + $0xaac] ss:$16 sps:$4 sm:$0xff]   ;;  %v15773_v45 = vld [vmem:[#allocation9 + $0xaa0] ss:$16 sps:$4 sm:$0xff]  }
 0x576   :  { %5865 = vmatprep.subr.bf16.mxu0 %v15763_v56  ;;  %6077 = vmatprep.subr.bf16.mxu1 %v15766_v3  ;;  %v4183_v28 = vpop.f32.mrb[81].mxu0  ;;  %v15784_v56 = vld [vmem:[#allocation9 + $0xacc] ss:$16 sps:$4 sm:$0xff]   ;;  %v15779_v3 = vld [vmem:[#allocation9 + $0xac0] ss:$16 sps:$4 sm:$0xff]  }
 0x577   :  { %5891 = vmatprep.mubr.bf16.mxu0 %v4256_v35  ;;  %6103 = vmatprep.mubr.bf16.mxu1 %v4256_v35  ;;  %v4185_v9 = vpop.f32.mrb[82].mxu0  ;;  %v15781_v35 = vld [vmem:[#allocation9 + $0xac4] ss:$16 sps:$4 sm:$0xff]  }
 0x578   :  { %v18562_v24 = vpack.c.bf16 %v4185_v9, %v4181_v37  ;;  %v4187_v2 = vpop.f32.mrb[83].mxu0  ;;  %v15790_v37 = vld [vmem:[#allocation9 + $0xaec] ss:$16 sps:$4 sm:$0xff]  }
 0x579   :  { %5866 = vmatpush1.bf16.msra.mxu0 %v15761_v16  ;;  %6078 = vmatpush1.bf16.msra.mxu1 %v15764_v23  ;;  %v18564_v30 = vpack.c.bf16 %v4187_v2, %v4183_v28  ;;  %v15782_v16 = vld [vmem:[#allocation9 + $0xac8] ss:$16 sps:$4 sm:$0xff]   ;;  %v15787_v23 = vld [vmem:[#allocation9 + $0xae4] ss:$16 sps:$4 sm:$0xff]   ;;  %v15796_v9 = vld [vmem:[#allocation9 + $0xb0c] ss:$16 sps:$4 sm:$0xff]  }
 0x57a   :  { %5867 = vmatprep.subr.bf16.mxu0 %v15769_v6  ;;  %6079 = vmatprep.subr.bf16.mxu1 %v15772_v62  ;;  %v15785_v6 = vld [vmem:[#allocation9 + $0xae0] ss:$16 sps:$4 sm:$0xff]   ;;  %v15788_v62 = vld [vmem:[#allocation9 + $0xae8] ss:$16 sps:$4 sm:$0xff]   ;;  %v15793_v28 = vld [vmem:[#allocation9 + $0xb04] ss:$16 sps:$4 sm:$0xff]  }
 0x57b   :  { %v15791_v2 = vld [vmem:[#allocation9 + $0xb00] ss:$16 sps:$4 sm:$0xff]  }
 0x57d   :  { %5868 = vmatpush1.bf16.msra.mxu0 %v15767_v36  ;;  %6080 = vmatpush1.bf16.msra.mxu1 %v15770_v25  ;;  %v15794_v36 = vld [vmem:[#allocation9 + $0xb08] ss:$16 sps:$4 sm:$0xff]   ;;  %v15799_v25 = vld [vmem:[#allocation9 + $0xb24] ss:$16 sps:$4 sm:$0xff]  }
 0x57e   :  { %5869 = vmatprep.subr.bf16.mxu0 %v15775_v1  ;;  %6081 = vmatprep.subr.bf16.mxu1 %v15778_v8  ;;  %v15802_v1 = vld [vmem:[#allocation9 + $0xb2c] ss:$16 sps:$4 sm:$0xff]   ;;  %v15797_v8 = vld [vmem:[#allocation9 + $0xb20] ss:$16 sps:$4 sm:$0xff]  }
 0x581   :  { %5870 = vmatpush1.bf16.msra.mxu0 %v15773_v45  ;;  %6082 = vmatpush1.bf16.msra.mxu1 %v15776_v49  ;;  %v15800_v45 = vld [vmem:[#allocation9 + $0xb28] ss:$16 sps:$4 sm:$0xff]   ;;  %v15805_v49 = vld [vmem:[#allocation9 + $0xb44] ss:$16 sps:$4 sm:$0xff]  }
 0x582   :  { %5871 = vmatprep.subr.bf16.mxu0 %v15781_v35  ;;  %6083 = vmatprep.subr.bf16.mxu1 %v15784_v56  ;;  %v15808_v35 = vld [vmem:[#allocation9 + $0xb4c] ss:$16 sps:$4 sm:$0xff]   ;;  %v15803_v56 = vld [vmem:[#allocation9 + $0xb40] ss:$16 sps:$4 sm:$0xff]  }
 0x585   :  { %5872 = vmatpush1.bf16.msra.mxu0 %v15779_v3  ;;  %6084 = vmatpush1.bf16.msra.mxu1 %v15782_v16  ;;  %v15806_v3 = vld [vmem:[#allocation9 + $0xb48] ss:$16 sps:$4 sm:$0xff]   ;;  %v15811_v16 = vld [vmem:[#allocation9 + $0xb64] ss:$16 sps:$4 sm:$0xff]  }
 0x586   :  { %5873 = vmatprep.subr.bf16.mxu0 %v15787_v23  ;;  %6085 = vmatprep.subr.bf16.mxu1 %v15790_v37  ;;  %v15814_v23 = vld [vmem:[#allocation9 + $0xb6c] ss:$16 sps:$4 sm:$0xff]   ;;  %v15809_v37 = vld [vmem:[#allocation9 + $0xb60] ss:$16 sps:$4 sm:$0xff]  }
 0x589   :  { %5874 = vmatpush1.bf16.msra.mxu0 %v15785_v6  ;;  %6086 = vmatpush1.bf16.msra.mxu1 %v15788_v62  ;;  %v15812_v6 = vld [vmem:[#allocation9 + $0xb68] ss:$16 sps:$4 sm:$0xff]   ;;  %v15817_v62 = vld [vmem:[#allocation9 + $0xb84] ss:$16 sps:$4 sm:$0xff]  }
 0x58a   :  { %5875 = vmatprep.subr.bf16.mxu0 %v15793_v28  ;;  %6087 = vmatprep.subr.bf16.mxu1 %v15796_v9  ;;  %v15820_v28 = vld [vmem:[#allocation9 + $0xb8c] ss:$16 sps:$4 sm:$0xff]   ;;  %v15815_v9 = vld [vmem:[#allocation9 + $0xb80] ss:$16 sps:$4 sm:$0xff]  }
 0x58d   :  { %5876 = vmatpush1.bf16.msra.mxu0 %v15791_v2  ;;  %6088 = vmatpush1.bf16.msra.mxu1 %v15794_v36  ;;  %v15818_v2 = vld [vmem:[#allocation9 + $0xb88] ss:$16 sps:$4 sm:$0xff]   ;;  %v4191_v36 = vpop.f32.mrb[84].mxu0 }
 0x58e   :  { %5877 = vmatprep.subr.bf16.mxu0 %v15799_v25  ;;  %6089 = vmatprep.subr.bf16.mxu1 %v15802_v1  ;;  %v15823_v25 = vld [vmem:[#allocation9 + $0xba4] ss:$16 sps:$4 sm:$0xff]   ;;  %v15826_v1 = vld [vmem:[#allocation9 + $0xbac] ss:$16 sps:$4 sm:$0xff]  }
 0x591   :  { %5878 = vmatpush1.bf16.msra.mxu0 %v15797_v8  ;;  %6090 = vmatpush1.bf16.msra.mxu1 %v15800_v45  ;;  %v4193_v8 = vpop.f32.mrb[85].mxu0 }
 0x592   :  { %5879 = vmatprep.subr.bf16.mxu0 %v15805_v49  ;;  %6091 = vmatprep.subr.bf16.mxu1 %v15808_v35  ;;  %v4195_v45 = vpop.f32.mrb[86].mxu0 }
 0x593   :  { %v18566_v49 = vpack.c.bf16 %v4195_v45, %v4191_v36  ;;  %v4197_v35 = vpop.f32.mrb[87].mxu0  ;;  %v15835_v36 = vld [vmem:[#allocation9 + $0xbe4] ss:$16 sps:$4 sm:$0xff]   ;;  %v15838_v45 = vld [vmem:[#allocation9 + $0xbec] ss:$16 sps:$4 sm:$0xff]  }
 0x595   :  { %5880 = vmatpush1.bf16.msra.mxu0 %v15803_v56  ;;  %6092 = vmatpush1.bf16.msra.mxu1 %v15806_v3  ;;  %v15821_v56 = vld [vmem:[#allocation9 + $0xba0] ss:$16 sps:$4 sm:$0xff]   ;;  %v15824_v3 = vld [vmem:[#allocation9 + $0xba8] ss:$16 sps:$4 sm:$0xff]  }
 0x596   :  { %5881 = vmatprep.subr.bf16.mxu0 %v15811_v16  ;;  %6093 = vmatprep.subr.bf16.mxu1 %v15814_v23  ;;  %v18568_v16 = vpack.c.bf16 %v4197_v35, %v4193_v8  ;;  %v15829_v23 = vld [vmem:[#allocation9 + $0xbc4] ss:$16 sps:$4 sm:$0xff]   ;;  %v15833_v8 = vld [vmem:[#allocation9 + $0xbe0] ss:$16 sps:$4 sm:$0xff]  }
 0x597   :  { %v15841_v35 = vld [vmem:[#allocation9 + $0xc04] ss:$16 sps:$4 sm:$0xff]  }
 0x599   :  { %5882 = vmatpush1.bf16.msra.mxu0 %v15809_v37  ;;  %6094 = vmatpush1.bf16.msra.mxu1 %v15812_v6  ;;  %v15832_v37 = vld [vmem:[#allocation9 + $0xbcc] ss:$16 sps:$4 sm:$0xff]   ;;  %v15827_v6 = vld [vmem:[#allocation9 + $0xbc0] ss:$16 sps:$4 sm:$0xff]  }
 0x59a   :  { %5883 = vmatprep.subr.bf16.mxu0 %v15817_v62  ;;  %6095 = vmatprep.subr.bf16.mxu1 %v15820_v28  ;;  %v15830_v62 = vld [vmem:[#allocation9 + $0xbc8] ss:$16 sps:$4 sm:$0xff]   ;;  %v4234_v28 = vpop.f32.mrb[96].mxu1 }
 0x59b   :  { %v4236_v33 = vpop.f32.mrb[97].mxu1 }
 0x59d   :  { %5884 = vmatpush1.bf16.msra.mxu0 %v15815_v9  ;;  %6096 = vmatpush1.bf16.msra.mxu1 %v15818_v2  ;;  %v4238_v9 = vpop.f32.mrb[98].mxu1 }
 0x59e   :  { %5885 = vmatprep.subr.bf16.mxu0 %v15823_v25  ;;  %6097 = vmatprep.subr.bf16.mxu1 %v15826_v1  ;;  %v18570_v2 = vpack.c.bf16 %v4238_v9, %v4234_v28  ;;  %v15836_v25 = vld [vmem:[#allocation9 + $0xbe8] ss:$16 sps:$4 sm:$0xff]   ;;  %v4240_v1 = vpop.f32.mrb[99].mxu1  ;;  %v15850_v28 = vld [vmem:[#allocation9 + $0xc2c] ss:$16 sps:$4 sm:$0xff]  }
 0x59f   :  { %v15856_v9 = vld [vmem:[#allocation9 + $0xc4c] ss:$16 sps:$4 sm:$0xff]  }
 0x5a1   :  { %5886 = vmatpush1.bf16.msra.mxu0 %v15821_v56  ;;  %6098 = vmatpush1.bf16.msra.mxu1 %v15824_v3  ;;  %v15844_v56 = vld [vmem:[#allocation9 + $0xc0c] ss:$16 sps:$4 sm:$0xff]   ;;  %v18572_v3 = vpack.c.bf16 %v4240_v1, %v4236_v33  ;;  %v15853_v33 = vld [vmem:[#allocation9 + $0xc44] ss:$16 sps:$4 sm:$0xff]  }
 0x5a2   :  { %5887 = vmatprep.subr.bf16.mxu0 %v15829_v23  ;;  %6099 = vmatprep.subr.bf16.mxu1 %v15832_v37  ;;  %v15839_v23 = vld [vmem:[#allocation9 + $0xc00] ss:$16 sps:$4 sm:$0xff]   ;;  %v15842_v37 = vld [vmem:[#allocation9 + $0xc08] ss:$16 sps:$4 sm:$0xff]  }
 0x5a5   :  { %5888 = vmatpush1.bf16.msra.mxu0 %v15827_v6  ;;  %6100 = vmatpush1.bf16.msra.mxu1 %v15830_v62  ;;  %v4244_v6 = vpop.f32.mrb[100].mxu1  ;;  %v15845_v62 = vld [vmem:[#allocation9 + $0xc20] ss:$16 sps:$4 sm:$0xff]  }
 0x5a6   :  { %5889 = vmatprep.subr.bf16.mxu0 %v15835_v36  ;;  %6101 = vmatprep.subr.bf16.mxu1 %v15838_v45  ;;  %v15848_v36 = vld [vmem:[#allocation9 + $0xc28] ss:$16 sps:$4 sm:$0xff]   ;;  %v4246_v45 = vpop.f32.mrb[101].mxu1 }
 0x5a9   :  { %5890 = vmatpush1.bf16.msra.mxu0 %v15833_v8  ;;  %6102 = vmatpush1.bf16.msra.mxu1 %v15836_v25  ;;  %v4248_v8 = vpop.f32.mrb[102].mxu1 }
 0x5aa   :  { %5912 = vmatprep.subr.bf16.mxu0 %v15841_v35  ;;  %6124 = vmatprep.subr.bf16.mxu1 %v15844_v56  ;;  %v18578_v25 = vpack.c.bf16 %v4248_v8, %v4244_v6  ;;  %v4250_v1 = vpop.f32.mrb[103].mxu1  ;;  %v15854_v56 = vld [vmem:[#allocation9 + $0xc48] ss:$16 sps:$4 sm:$0xff]   ;;  %v15868_v6 = vld [vmem:[#allocation9 + $0xc8c] ss:$16 sps:$4 sm:$0xff]  }
 0x5ab   :  { %v18580_v35 = vpack.c.bf16 %v4250_v1, %v4246_v45  ;;  %v15871_v45 = vld [vmem:[#allocation9 + $0xca4] ss:$16 sps:$4 sm:$0xff]   ;;  %v15880_v1 = vld [vmem:[#allocation9 + $0xccc] ss:$16 sps:$4 sm:$0xff]  }
 0x5ac   :  { %5892 = vmatmul.mubr.bf16.vlgmr.msra.gmra.mrb[88].mxu0 %v18556_v54  ;;  %6104 = vmatmul.mubr.bf16.vlgmr.msra.gmra.mrb[104].mxu1 %v18556_v54  ;;  %v15851_v54 = vld [vmem:[#allocation9 + $0xc40] ss:$16 sps:$4 sm:$0xff]   ;;  %v15877_v8 = vld [vmem:[#allocation9 + $0xcc4] ss:$16 sps:$4 sm:$0xff]  }
 0x5ad   :  { %5913 = vmatpush1.bf16.msra.mxu0 %v15839_v23  ;;  %6125 = vmatpush1.bf16.msra.mxu1 %v15842_v37  ;;  %v15862_v23 = vld [vmem:[#allocation9 + $0xc6c] ss:$16 sps:$4 sm:$0xff]   ;;  %v15860_v37 = vld [vmem:[#allocation9 + $0xc68] ss:$16 sps:$4 sm:$0xff]  }
 0x5ae   :  { %5914 = vmatprep.subr.bf16.mxu0 %v15847_v63  ;;  %6126 = vmatprep.subr.bf16.mxu1 %v15850_v28  ;;  %v15859_v63 = vld [vmem:[#allocation9 + $0xc64] ss:$16 sps:$4 sm:$0xff]  }
 0x5af   :  { %5901 = vmatprep.mubr.bf16.mxu0 %v18560_v10  ;;  %6113 = vmatprep.mubr.bf16.mxu1 %v18560_v10  ;;  %v15857_v10 = vld [vmem:[#allocation9 + $0xc60] ss:$16 sps:$4 sm:$0xff]   ;;  %v15865_v28 = vld [vmem:[#allocation9 + $0xc84] ss:$16 sps:$4 sm:$0xff]  }
 0x5b1   :  { %5915 = vmatpush1.bf16.msra.mxu0 %v15845_v62  ;;  %6127 = vmatpush1.bf16.msra.mxu1 %v15848_v36  ;;  %v15863_v62 = vld [vmem:[#allocation9 + $0xc80] ss:$16 sps:$4 sm:$0xff]   ;;  %v15866_v36 = vld [vmem:[#allocation9 + $0xc88] ss:$16 sps:$4 sm:$0xff]  }
 0x5b2   :  { %5916 = vmatprep.subr.bf16.mxu0 %v15853_v33  ;;  %6128 = vmatprep.subr.bf16.mxu1 %v15856_v9  ;;  %v15869_v33 = vld [vmem:[#allocation9 + $0xca0] ss:$16 sps:$4 sm:$0xff]   ;;  %v15872_v9 = vld [vmem:[#allocation9 + $0xca8] ss:$16 sps:$4 sm:$0xff]  }
 0x5b4   :  { %5902 = vmatmul.mubr.bf16.gmra.mrb[92].mxu0 %v18558_v31  ;;  %6114 = vmatmul.mubr.bf16.gmra.mrb[108].mxu1 %v18558_v31  ;;  %v15874_v31 = vld [vmem:[#allocation9 + $0xcac] ss:$16 sps:$4 sm:$0xff]  }
 0x5b5   :  { %5917 = vmatpush1.bf16.msra.mxu0 %v15851_v54  ;;  %6129 = vmatpush1.bf16.msra.mxu1 %v15854_v56  ;;  %v15875_v54 = vld [vmem:[#allocation9 + $0xcc0] ss:$16 sps:$4 sm:$0xff]   ;;  %v15883_v56 = vld [vmem:[#allocation9 + $0xce4] ss:$16 sps:$4 sm:$0xff]  }
 0x5b6   :  { %5918 = vmatprep.subr.bf16.mxu0 %v15859_v63  ;;  %6130 = vmatprep.subr.bf16.mxu1 %v15862_v23  ;;  %v15886_v63 = vld [vmem:[#allocation9 + $0xcec] ss:$16 sps:$4 sm:$0xff]   ;;  %v15881_v23 = vld [vmem:[#allocation9 + $0xce0] ss:$16 sps:$4 sm:$0xff]  }
 0x5b7   :  { %5944 = vmatprep.mubr.bf16.mxu0 %v18564_v30  ;;  %6156 = vmatprep.mubr.bf16.mxu1 %v18564_v30  ;;  %v15878_v30 = vld [vmem:[#allocation9 + $0xcc8] ss:$16 sps:$4 sm:$0xff]  }
 0x5b9   :  { %5919 = vmatpush1.bf16.msra.mxu0 %v15857_v10  ;;  %6131 = vmatpush1.bf16.msra.mxu1 %v15860_v37  ;;  %v15884_v10 = vld [vmem:[#allocation9 + $0xce8] ss:$16 sps:$4 sm:$0xff]   ;;  %v15889_v37 = vld [vmem:[#allocation9 + $0xd04] ss:$16 sps:$4 sm:$0xff]  }
 0x5ba   :  { %5920 = vmatprep.subr.bf16.mxu0 %v15865_v28  ;;  %6132 = vmatprep.subr.bf16.mxu1 %v15868_v6  ;;  %v15892_v28 = vld [vmem:[#allocation9 + $0xd0c] ss:$16 sps:$4 sm:$0xff]   ;;  %v15887_v6 = vld [vmem:[#allocation9 + $0xd00] ss:$16 sps:$4 sm:$0xff]  }
 0x5bd   :  { %5921 = vmatpush1.bf16.msra.mxu0 %v15863_v62  ;;  %6133 = vmatpush1.bf16.msra.mxu1 %v15866_v36  ;;  %v15890_v62 = vld [vmem:[#allocation9 + $0xd08] ss:$16 sps:$4 sm:$0xff]   ;;  %v15895_v36 = vld [vmem:[#allocation9 + $0xd24] ss:$16 sps:$4 sm:$0xff]  }
 0x5be   :  { %5922 = vmatprep.subr.bf16.mxu0 %v15871_v45  ;;  %6134 = vmatprep.subr.bf16.mxu1 %v15874_v31  ;;  %v15898_v45 = vld [vmem:[#allocation9 + $0xd2c] ss:$16 sps:$4 sm:$0xff]   ;;  %v15893_v31 = vld [vmem:[#allocation9 + $0xd20] ss:$16 sps:$4 sm:$0xff]  }
 0x5c1   :  { %5923 = vmatpush1.bf16.msra.mxu0 %v15869_v33  ;;  %6135 = vmatpush1.bf16.msra.mxu1 %v15872_v9  ;;  %v15896_v33 = vld [vmem:[#allocation9 + $0xd28] ss:$16 sps:$4 sm:$0xff]   ;;  %v15901_v9 = vld [vmem:[#allocation9 + $0xd44] ss:$16 sps:$4 sm:$0xff]  }
 0x5c2   :  { %5924 = vmatprep.subr.bf16.mxu0 %v15877_v8  ;;  %6136 = vmatprep.subr.bf16.mxu1 %v15880_v1  ;;  %v15904_v8 = vld [vmem:[#allocation9 + $0xd4c] ss:$16 sps:$4 sm:$0xff]   ;;  %v15899_v1 = vld [vmem:[#allocation9 + $0xd40] ss:$16 sps:$4 sm:$0xff]  }
 0x5c5   :  { %5925 = vmatpush1.bf16.msra.mxu0 %v15875_v54  ;;  %6137 = vmatpush1.bf16.msra.mxu1 %v15878_v30  ;;  %v15902_v54 = vld [vmem:[#allocation9 + $0xd48] ss:$16 sps:$4 sm:$0xff]   ;;  %v15907_v30 = vld [vmem:[#allocation9 + $0xd64] ss:$16 sps:$4 sm:$0xff]  }
 0x5c6   :  { %5926 = vmatprep.subr.bf16.mxu0 %v15883_v56  ;;  %6138 = vmatprep.subr.bf16.mxu1 %v15886_v63  ;;  %v15910_v56 = vld [vmem:[#allocation9 + $0xd6c] ss:$16 sps:$4 sm:$0xff]   ;;  %v15905_v63 = vld [vmem:[#allocation9 + $0xd60] ss:$16 sps:$4 sm:$0xff]  }
 0x5c9   :  { %5927 = vmatpush1.bf16.msra.mxu0 %v15881_v23  ;;  %6139 = vmatpush1.bf16.msra.mxu1 %v15884_v10  ;;  %v15908_v23 = vld [vmem:[#allocation9 + $0xd68] ss:$16 sps:$4 sm:$0xff]   ;;  %v15913_v10 = vld [vmem:[#allocation9 + $0xd84] ss:$16 sps:$4 sm:$0xff]  }
 0x5ca   :  { %5928 = vmatprep.subr.bf16.mxu0 %v15889_v37  ;;  %6140 = vmatprep.subr.bf16.mxu1 %v15892_v28  ;;  %v15916_v37 = vld [vmem:[#allocation9 + $0xd8c] ss:$16 sps:$4 sm:$0xff]   ;;  %v15911_v28 = vld [vmem:[#allocation9 + $0xd80] ss:$16 sps:$4 sm:$0xff]  }
 0x5cd   :  { %5929 = vmatpush1.bf16.msra.mxu0 %v15887_v6  ;;  %6141 = vmatpush1.bf16.msra.mxu1 %v15890_v62  ;;  %v15914_v6 = vld [vmem:[#allocation9 + $0xd88] ss:$16 sps:$4 sm:$0xff]   ;;  %v15919_v62 = vld [vmem:[#allocation9 + $0xda4] ss:$16 sps:$4 sm:$0xff]  }
 0x5ce   :  { %5930 = vmatprep.subr.bf16.mxu0 %v15895_v36  ;;  %6142 = vmatprep.subr.bf16.mxu1 %v15898_v45  ;;  %v15922_v36 = vld [vmem:[#allocation9 + $0xdac] ss:$16 sps:$4 sm:$0xff]   ;;  %v15917_v45 = vld [vmem:[#allocation9 + $0xda0] ss:$16 sps:$4 sm:$0xff]  }
 0x5d1   :  { %5931 = vmatpush1.bf16.msra.mxu0 %v15893_v31  ;;  %6143 = vmatpush1.bf16.msra.mxu1 %v15896_v33  ;;  %v15920_v31 = vld [vmem:[#allocation9 + $0xda8] ss:$16 sps:$4 sm:$0xff]   ;;  %v15925_v33 = vld [vmem:[#allocation9 + $0xdc4] ss:$16 sps:$4 sm:$0xff]  }
 0x5d2   :  { %5932 = vmatprep.subr.bf16.mxu0 %v15901_v9  ;;  %6144 = vmatprep.subr.bf16.mxu1 %v15904_v8  ;;  %v15928_v9 = vld [vmem:[#allocation9 + $0xdcc] ss:$16 sps:$4 sm:$0xff]   ;;  %v15923_v8 = vld [vmem:[#allocation9 + $0xdc0] ss:$16 sps:$4 sm:$0xff]  }
 0x5d5   :  { %5933 = vmatpush1.bf16.msra.mxu0 %v15899_v1  ;;  %6145 = vmatpush1.bf16.msra.mxu1 %v15902_v54  ;;  %v15926_v1 = vld [vmem:[#allocation9 + $0xdc8] ss:$16 sps:$4 sm:$0xff]   ;;  %v15931_v54 = vld [vmem:[#allocation9 + $0xde4] ss:$16 sps:$4 sm:$0xff]  }
 0x5d6   :  { %5934 = vmatprep.subr.bf16.mxu0 %v15907_v30  ;;  %6146 = vmatprep.subr.bf16.mxu1 %v15910_v56  ;;  %v15934_v30 = vld [vmem:[#allocation9 + $0xdec] ss:$16 sps:$4 sm:$0xff]   ;;  %v15929_v56 = vld [vmem:[#allocation9 + $0xde0] ss:$16 sps:$4 sm:$0xff]  }
 0x5d9   :  { %5935 = vmatpush1.bf16.msra.mxu0 %v15905_v63  ;;  %6147 = vmatpush1.bf16.msra.mxu1 %v15908_v23  ;;  %v15932_v63 = vld [vmem:[#allocation9 + $0xde8] ss:$16 sps:$4 sm:$0xff]   ;;  %v15937_v23 = vld [vmem:[#allocation9 + $0xe04] ss:$16 sps:$4 sm:$0xff]  }
 0x5da   :  { %5936 = vmatprep.subr.bf16.mxu0 %v15913_v10  ;;  %6148 = vmatprep.subr.bf16.mxu1 %v15916_v37  ;;  %v15940_v10 = vld [vmem:[#allocation9 + $0xe0c] ss:$16 sps:$4 sm:$0xff]   ;;  %v15935_v37 = vld [vmem:[#allocation9 + $0xe00] ss:$16 sps:$4 sm:$0xff]  }
 0x5dd   :  { %5937 = vmatpush1.bf16.msra.mxu0 %v15911_v28  ;;  %6149 = vmatpush1.bf16.msra.mxu1 %v15914_v6  ;;  %v15938_v28 = vld [vmem:[#allocation9 + $0xe08] ss:$16 sps:$4 sm:$0xff]   ;;  %v15943_v6 = vld [vmem:[#allocation9 + $0xe24] ss:$16 sps:$4 sm:$0xff]  }
 0x5de   :  { %5938 = vmatprep.subr.bf16.mxu0 %v15919_v62  ;;  %6150 = vmatprep.subr.bf16.mxu1 %v15922_v36  ;;  %v15946_v62 = vld [vmem:[#allocation9 + $0xe2c] ss:$16 sps:$4 sm:$0xff]   ;;  %v15941_v36 = vld [vmem:[#allocation9 + $0xe20] ss:$16 sps:$4 sm:$0xff]  }
 0x5e1   :  { %5939 = vmatpush1.bf16.msra.mxu0 %v15917_v45  ;;  %6151 = vmatpush1.bf16.msra.mxu1 %v15920_v31  ;;  %v15944_v45 = vld [vmem:[#allocation9 + $0xe28] ss:$16 sps:$4 sm:$0xff]   ;;  %v15949_v31 = vld [vmem:[#allocation9 + $0xe44] ss:$16 sps:$4 sm:$0xff]  }
 0x5e2   :  { %5940 = vmatprep.subr.bf16.mxu0 %v15925_v33  ;;  %6152 = vmatprep.subr.bf16.mxu1 %v15928_v9  ;;  %v15952_v33 = vld [vmem:[#allocation9 + $0xe4c] ss:$16 sps:$4 sm:$0xff]   ;;  %v15947_v9 = vld [vmem:[#allocation9 + $0xe40] ss:$16 sps:$4 sm:$0xff]  }
 0x5e5   :  { %5941 = vmatpush1.bf16.msra.mxu0 %v15923_v8  ;;  %6153 = vmatpush1.bf16.msra.mxu1 %v15926_v1  ;;  %v15950_v8 = vld [vmem:[#allocation9 + $0xe48] ss:$16 sps:$4 sm:$0xff]   ;;  %v15955_v1 = vld [vmem:[#allocation9 + $0xe64] ss:$16 sps:$4 sm:$0xff]  }
 0x5e6   :  { %5942 = vmatprep.subr.bf16.mxu0 %v15931_v54  ;;  %6154 = vmatprep.subr.bf16.mxu1 %v15934_v30  ;;  %v15953_v54 = vld [vmem:[#allocation9 + $0xe60] ss:$16 sps:$4 sm:$0xff]   ;;  %v15956_v30 = vld [vmem:[#allocation9 + $0xe68] ss:$16 sps:$4 sm:$0xff]  }
 0x5e9   :  { %5943 = vmatpush1.bf16.msra.mxu0 %v15929_v56  ;;  %6155 = vmatpush1.bf16.msra.mxu1 %v15932_v63  ;;  %v15961_v56 = vld [vmem:[#allocation9 + $0xe84] ss:$16 sps:$4 sm:$0xff]   ;;  %v15959_v63 = vld [vmem:[#allocation9 + $0xe80] ss:$16 sps:$4 sm:$0xff]  }
 0x5ea   :  { %5965 = vmatprep.subr.bf16.mxu0 %v15937_v23  ;;  %6177 = vmatprep.subr.bf16.mxu1 %v15940_v10  ;;  %v15962_v23 = vld [vmem:[#allocation9 + $0xe88] ss:$16 sps:$4 sm:$0xff]   ;;  %v15967_v10 = vld [vmem:[#allocation9 + $0xea4] ss:$16 sps:$4 sm:$0xff]  }
 0x5ec   :  { %5945 = vmatmul.mubr.bf16.vlgmr.msra.gmra.mrb[88].mxu0 %v18562_v24  ;;  %6157 = vmatmul.mubr.bf16.vlgmr.msra.gmra.mrb[104].mxu1 %v18562_v24  ;;  %v15958_v24 = vld [vmem:[#allocation9 + $0xe6c] ss:$16 sps:$4 sm:$0xff]  }
 0x5ed   :  { %5966 = vmatpush1.bf16.msra.mxu0 %v15935_v37  ;;  %6178 = vmatpush1.bf16.msra.mxu1 %v15938_v28  ;;  %v15965_v37 = vld [vmem:[#allocation9 + $0xea0] ss:$16 sps:$4 sm:$0xff]   ;;  %v15968_v28 = vld [vmem:[#allocation9 + $0xea8] ss:$16 sps:$4 sm:$0xff]  }
 0x5ee   :  { %5967 = vmatprep.subr.bf16.mxu0 %v15943_v6  ;;  %6179 = vmatprep.subr.bf16.mxu1 %v15946_v62  ;;  %v15973_v6 = vld [vmem:[#allocation9 + $0xec4] ss:$16 sps:$4 sm:$0xff]   ;;  %v15976_v62 = vld [vmem:[#allocation9 + $0xecc] ss:$16 sps:$4 sm:$0xff]  }
 0x5ef   :  { %5954 = vmatprep.mubr.bf16.mxu0 %v18568_v16  ;;  %6166 = vmatprep.mubr.bf16.mxu1 %v18568_v16  ;;  %v15964_v16 = vld [vmem:[#allocation9 + $0xe8c] ss:$16 sps:$4 sm:$0xff]  }
 0x5f1   :  { %5968 = vmatpush1.bf16.msra.mxu0 %v15941_v36  ;;  %6180 = vmatpush1.bf16.msra.mxu1 %v15944_v45  ;;  %v15971_v36 = vld [vmem:[#allocation9 + $0xec0] ss:$16 sps:$4 sm:$0xff]   ;;  %v15979_v45 = vld [vmem:[#allocation9 + $0xee4] ss:$16 sps:$4 sm:$0xff]  }
 0x5f2   :  { %5969 = vmatprep.subr.bf16.mxu0 %v15949_v31  ;;  %6181 = vmatprep.subr.bf16.mxu1 %v15952_v33  ;;  %v15982_v31 = vld [vmem:[#allocation9 + $0xeec] ss:$16 sps:$4 sm:$0xff]   ;;  %v15977_v33 = vld [vmem:[#allocation9 + $0xee0] ss:$16 sps:$4 sm:$0xff]  }
 0x5f4   :  { %5955 = vmatmul.mubr.bf16.gmra.mrb[92].mxu0 %v18566_v49  ;;  %6167 = vmatmul.mubr.bf16.gmra.mrb[108].mxu1 %v18566_v49  ;;  %v15970_v49 = vld [vmem:[#allocation9 + $0xeac] ss:$16 sps:$4 sm:$0xff]  }
 0x5f5   :  { %5970 = vmatpush1.bf16.msra.mxu0 %v15947_v9  ;;  %6182 = vmatpush1.bf16.msra.mxu1 %v15950_v8  ;;  %v15980_v9 = vld [vmem:[#allocation9 + $0xee8] ss:$16 sps:$4 sm:$0xff]   ;;  %v15985_v8 = vld [vmem:[#allocation9 + $0xf04] ss:$16 sps:$4 sm:$0xff]  }
 0x5f6   :  { %5971 = vmatprep.subr.bf16.mxu0 %v15955_v1  ;;  %6183 = vmatprep.subr.bf16.mxu1 %v15958_v24  ;;  %v15988_v1 = vld [vmem:[#allocation9 + $0xf0c] ss:$16 sps:$4 sm:$0xff]   ;;  %v15983_v24 = vld [vmem:[#allocation9 + $0xf00] ss:$16 sps:$4 sm:$0xff]  }
 0x5f7   :  { %5997 = vmatprep.mubr.bf16.mxu0 %v18572_v3  ;;  %6209 = vmatprep.mubr.bf16.mxu1 %v18572_v3  ;;  %v15974_v3 = vld [vmem:[#allocation9 + $0xec8] ss:$16 sps:$4 sm:$0xff]  }
 0x5f9   :  { %5972 = vmatpush1.bf16.msra.mxu0 %v15953_v54  ;;  %6184 = vmatpush1.bf16.msra.mxu1 %v15956_v30  ;;  %v15986_v54 = vld [vmem:[#allocation9 + $0xf08] ss:$16 sps:$4 sm:$0xff]   ;;  %v15991_v30 = vld [vmem:[#allocation9 + $0xf24] ss:$16 sps:$4 sm:$0xff]  }
 0x5fa   :  { %5973 = vmatprep.subr.bf16.mxu0 %v15961_v56  ;;  %6185 = vmatprep.subr.bf16.mxu1 %v15964_v16  ;;  %v15994_v56 = vld [vmem:[#allocation9 + $0xf2c] ss:$16 sps:$4 sm:$0xff]   ;;  %v15989_v16 = vld [vmem:[#allocation9 + $0xf20] ss:$16 sps:$4 sm:$0xff]  }
 0x5fd   :  { %5974 = vmatpush1.bf16.msra.mxu0 %v15959_v63  ;;  %6186 = vmatpush1.bf16.msra.mxu1 %v15962_v23  ;;  %v15992_v63 = vld [vmem:[#allocation9 + $0xf28] ss:$16 sps:$4 sm:$0xff]   ;;  %v15997_v23 = vld [vmem:[#allocation9 + $0xf44] ss:$16 sps:$4 sm:$0xff]  }
 0x5fe   :  { %5975 = vmatprep.subr.bf16.mxu0 %v15967_v10  ;;  %6187 = vmatprep.subr.bf16.mxu1 %v15970_v49  ;;  %v16000_v10 = vld [vmem:[#allocation9 + $0xf4c] ss:$16 sps:$4 sm:$0xff]   ;;  %v15995_v49 = vld [vmem:[#allocation9 + $0xf40] ss:$16 sps:$4 sm:$0xff]  }
 0x601   :  { %5976 = vmatpush1.bf16.msra.mxu0 %v15965_v37  ;;  %6188 = vmatpush1.bf16.msra.mxu1 %v15968_v28  ;;  %v15998_v37 = vld [vmem:[#allocation9 + $0xf48] ss:$16 sps:$4 sm:$0xff]   ;;  %v16003_v28 = vld [vmem:[#allocation9 + $0xf64] ss:$16 sps:$4 sm:$0xff]  }
 0x602   :  { %5977 = vmatprep.subr.bf16.mxu0 %v15973_v6  ;;  %6189 = vmatprep.subr.bf16.mxu1 %v15976_v62  ;;  %v16006_v6 = vld [vmem:[#allocation9 + $0xf6c] ss:$16 sps:$4 sm:$0xff]   ;;  %v16001_v62 = vld [vmem:[#allocation9 + $0xf60] ss:$16 sps:$4 sm:$0xff]  }
 0x605   :  { %5978 = vmatpush1.bf16.msra.mxu0 %v15971_v36  ;;  %6190 = vmatpush1.bf16.msra.mxu1 %v15974_v3  ;;  %v16004_v36 = vld [vmem:[#allocation9 + $0xf68] ss:$16 sps:$4 sm:$0xff]   ;;  %v16009_v3 = vld [vmem:[#allocation9 + $0xf84] ss:$16 sps:$4 sm:$0xff]  }
 0x606   :  { %5979 = vmatprep.subr.bf16.mxu0 %v15979_v45  ;;  %6191 = vmatprep.subr.bf16.mxu1 %v15982_v31  ;;  %v16012_v45 = vld [vmem:[#allocation9 + $0xf8c] ss:$16 sps:$4 sm:$0xff]   ;;  %v16007_v31 = vld [vmem:[#allocation9 + $0xf80] ss:$16 sps:$4 sm:$0xff]  }
 0x609   :  { %5980 = vmatpush1.bf16.msra.mxu0 %v15977_v33  ;;  %6192 = vmatpush1.bf16.msra.mxu1 %v15980_v9  ;;  %v16010_v33 = vld [vmem:[#allocation9 + $0xf88] ss:$16 sps:$4 sm:$0xff]   ;;  %v16015_v9 = vld [vmem:[#allocation9 + $0xfa4] ss:$16 sps:$4 sm:$0xff]  }
 0x60a   :  { %5981 = vmatprep.subr.bf16.mxu0 %v15985_v8  ;;  %6193 = vmatprep.subr.bf16.mxu1 %v15988_v1  ;;  %v16018_v8 = vld [vmem:[#allocation9 + $0xfac] ss:$16 sps:$4 sm:$0xff]   ;;  %v16013_v1 = vld [vmem:[#allocation9 + $0xfa0] ss:$16 sps:$4 sm:$0xff]  }
 0x60d   :  { %5982 = vmatpush1.bf16.msra.mxu0 %v15983_v24  ;;  %6194 = vmatpush1.bf16.msra.mxu1 %v15986_v54  ;;  %v16016_v24 = vld [vmem:[#allocation9 + $0xfa8] ss:$16 sps:$4 sm:$0xff]   ;;  %v16021_v54 = vld [vmem:[#allocation9 + $0xfc4] ss:$16 sps:$4 sm:$0xff]  }
 0x60e   :  { %5983 = vmatprep.subr.bf16.mxu0 %v15991_v30  ;;  %6195 = vmatprep.subr.bf16.mxu1 %v15994_v56  ;;  %v16024_v30 = vld [vmem:[#allocation9 + $0xfcc] ss:$16 sps:$4 sm:$0xff]   ;;  %v16019_v56 = vld [vmem:[#allocation9 + $0xfc0] ss:$16 sps:$4 sm:$0xff]  }
 0x611   :  { %5984 = vmatpush1.bf16.msra.mxu0 %v15989_v16  ;;  %6196 = vmatpush1.bf16.msra.mxu1 %v15992_v63  ;;  %v16022_v16 = vld [vmem:[#allocation9 + $0xfc8] ss:$16 sps:$4 sm:$0xff]   ;;  %v16027_v63 = vld [vmem:[#allocation9 + $0xfe4] ss:$16 sps:$4 sm:$0xff]  }
 0x612   :  { %5985 = vmatprep.subr.bf16.mxu0 %v15997_v23  ;;  %6197 = vmatprep.subr.bf16.mxu1 %v16000_v10  ;;  %v16030_v23 = vld [vmem:[#allocation9 + $0xfec] ss:$16 sps:$4 sm:$0xff]   ;;  %v16025_v10 = vld [vmem:[#allocation9 + $0xfe0] ss:$16 sps:$4 sm:$0xff]  }
 0x615   :  { %5986 = vmatpush1.bf16.msra.mxu0 %v15995_v49  ;;  %6198 = vmatpush1.bf16.msra.mxu1 %v15998_v37  ;;  %v16028_v49 = vld [vmem:[#allocation9 + $0xfe8] ss:$16 sps:$4 sm:$0xff]   ;;  %v16033_v37 = vld [vmem:[#allocation9 + $0x4] ss:$16 sps:$4 sm:$0xff]  }
 0x616   :  { %5987 = vmatprep.subr.bf16.mxu0 %v16003_v28  ;;  %6199 = vmatprep.subr.bf16.mxu1 %v16006_v6  ;;  %v16036_v28 = vld [vmem:[#allocation9 + $0xc] ss:$16 sps:$4 sm:$0xff]   ;;  %v16031_v6 = vld [vmem:[#allocation9] ss:$16 sps:$4 sm:$0xff]  }
 0x619   :  { %5988 = vmatpush1.bf16.msra.mxu0 %v16001_v62  ;;  %6200 = vmatpush1.bf16.msra.mxu1 %v16004_v36  ;;  %v16034_v62 = vld [vmem:[#allocation9 + $0x8] ss:$16 sps:$4 sm:$0xff]   ;;  %v16039_v36 = vld [vmem:[#allocation9 + $0x24] ss:$16 sps:$4 sm:$0xff]  }
 0x61a   :  { %5989 = vmatprep.subr.bf16.mxu0 %v16009_v3  ;;  %6201 = vmatprep.subr.bf16.mxu1 %v16012_v45  ;;  %v16042_v3 = vld [vmem:[#allocation9 + $0x2c] ss:$16 sps:$4 sm:$0xff]   ;;  %v16037_v45 = vld [vmem:[#allocation9 + $0x20] ss:$16 sps:$4 sm:$0xff]  }
 0x61d   :  { %5990 = vmatpush1.bf16.msra.mxu0 %v16007_v31  ;;  %6202 = vmatpush1.bf16.msra.mxu1 %v16010_v33  ;;  %v16040_v31 = vld [vmem:[#allocation9 + $0x28] ss:$16 sps:$4 sm:$0xff]   ;;  %v16045_v33 = vld [vmem:[#allocation9 + $0x44] ss:$16 sps:$4 sm:$0xff]  }
 0x61e   :  { %5991 = vmatprep.subr.bf16.mxu0 %v16015_v9  ;;  %6203 = vmatprep.subr.bf16.mxu1 %v16018_v8  ;;  %v16048_v9 = vld [vmem:[#allocation9 + $0x4c] ss:$16 sps:$4 sm:$0xff]   ;;  %v16043_v8 = vld [vmem:[#allocation9 + $0x40] ss:$16 sps:$4 sm:$0xff]  }
 0x621   :  { %5992 = vmatpush1.bf16.msra.mxu0 %v16013_v1  ;;  %6204 = vmatpush1.bf16.msra.mxu1 %v16016_v24  ;;  %v16046_v1 = vld [vmem:[#allocation9 + $0x48] ss:$16 sps:$4 sm:$0xff]   ;;  %v16051_v24 = vld [vmem:[#allocation9 + $0x64] ss:$16 sps:$4 sm:$0xff]  }
 0x622   :  { %5993 = vmatprep.subr.bf16.mxu0 %v16021_v54  ;;  %6205 = vmatprep.subr.bf16.mxu1 %v16024_v30  ;;  %v16049_v54 = vld [vmem:[#allocation9 + $0x60] ss:$16 sps:$4 sm:$0xff]   ;;  %v16057_v30 = vld [vmem:[#allocation9 + $0x84] ss:$16 sps:$4 sm:$0xff]  }
 0x625   :  { %5994 = vmatpush1.bf16.msra.mxu0 %v16019_v56  ;;  %6206 = vmatpush1.bf16.msra.mxu1 %v16022_v16  ;;  %v16060_v56 = vld [vmem:[#allocation9 + $0x8c] ss:$16 sps:$4 sm:$0xff]   ;;  %v16055_v16 = vld [vmem:[#allocation9 + $0x80] ss:$16 sps:$4 sm:$0xff]  }
 0x626   :  { %5995 = vmatprep.subr.bf16.mxu0 %v16027_v63  ;;  %6207 = vmatprep.subr.bf16.mxu1 %v16030_v23  ;;  %v16058_v63 = vld [vmem:[#allocation9 + $0x88] ss:$16 sps:$4 sm:$0xff]   ;;  %v16063_v23 = vld [vmem:[#allocation9 + $0xa4] ss:$16 sps:$4 sm:$0xff]  }
 0x629   :  { %5996 = vmatpush1.bf16.msra.mxu0 %v16025_v10  ;;  %6208 = vmatpush1.bf16.msra.mxu1 %v16028_v49  ;;  %v16061_v10 = vld [vmem:[#allocation9 + $0xa0] ss:$16 sps:$4 sm:$0xff]   ;;  %v16064_v49 = vld [vmem:[#allocation9 + $0xa8] ss:$16 sps:$4 sm:$0xff]  }
 0x62a   :  { %7510 = vmatprep.subr.bf16.mxu0 %v16033_v37  ;;  %7722 = vmatprep.subr.bf16.mxu1 %v16036_v28  ;;  %v16069_v37 = vld [vmem:[#allocation9 + $0xc4] ss:$16 sps:$4 sm:$0xff]   ;;  %v16067_v28 = vld [vmem:[#allocation9 + $0xc0] ss:$16 sps:$4 sm:$0xff]  }
 0x62c   :  { %5998 = vmatmul.mubr.bf16.vlgmr.msra.gmra.mrb[88].mxu0 %v18570_v2  ;;  %6210 = vmatmul.mubr.bf16.vlgmr.msra.gmra.mrb[104].mxu1 %v18570_v2  ;;  %v16054_v2 = vld [vmem:[#allocation9 + $0x6c] ss:$16 sps:$4 sm:$0xff]  }
 0x62d   :  { %7511 = vmatpush1.bf16.msra.mxu0 %v16031_v6  ;;  %7723 = vmatpush1.bf16.msra.mxu1 %v16034_v62  ;;  %v16070_v6 = vld [vmem:[#allocation9 + $0xc8] ss:$16 sps:$4 sm:$0xff]   ;;  %v16075_v62 = vld [vmem:[#allocation9 + $0xe4] ss:$16 sps:$4 sm:$0xff]  }
 0x62e   :  { %7512 = vmatprep.subr.bf16.mxu0 %v16039_v36  ;;  %7724 = vmatprep.subr.bf16.mxu1 %v16042_v3  ;;  %v16078_v36 = vld [vmem:[#allocation9 + $0xec] ss:$16 sps:$4 sm:$0xff]   ;;  %v16073_v3 = vld [vmem:[#allocation9 + $0xe0] ss:$16 sps:$4 sm:$0xff]  }
 0x62f   :  { %6007 = vmatprep.mubr.bf16.mxu0 %v18580_v35  ;;  %6219 = vmatprep.mubr.bf16.mxu1 %v18580_v35  ;;  %v16052_v35 = vld [vmem:[#allocation9 + $0x68] ss:$16 sps:$4 sm:$0xff]  }
 0x631   :  { %7513 = vmatpush1.bf16.msra.mxu0 %v16037_v45  ;;  %7725 = vmatpush1.bf16.msra.mxu1 %v16040_v31  ;;  %v16076_v45 = vld [vmem:[#allocation9 + $0xe8] ss:$16 sps:$4 sm:$0xff]   ;;  %v16081_v31 = vld [vmem:[#allocation9 + $0x104] ss:$16 sps:$4 sm:$0xff]  }
 0x632   :  { %7514 = vmatprep.subr.bf16.mxu0 %v16045_v33  ;;  %7726 = vmatprep.subr.bf16.mxu1 %v16048_v9  ;;  %v16084_v33 = vld [vmem:[#allocation9 + $0x10c] ss:$16 sps:$4 sm:$0xff]   ;;  %v16079_v9 = vld [vmem:[#allocation9 + $0x100] ss:$16 sps:$4 sm:$0xff]  }
 0x634   :  { %6008 = vmatmul.mubr.bf16.gmra.mrb[92].mxu0 %v18578_v25  ;;  %6220 = vmatmul.mubr.bf16.gmra.mrb[108].mxu1 %v18578_v25  ;;  %v16066_v25 = vld [vmem:[#allocation9 + $0xac] ss:$16 sps:$4 sm:$0xff]  }
 0x635   :  { %7515 = vmatpush1.bf16.msra.mxu0 %v16043_v8  ;;  %7542 = vmatprep.mubr.bf16.mxu0 %v18526_v41  ;;  %v16082_v8 = vld [vmem:[#allocation9 + $0x108] ss:$16 sps:$4 sm:$0xff]  }
 0x636   :  { %7727 = vmatpush1.bf16.msra.mxu1 %v16046_v1  ;;  %7754 = vmatprep.mubr.bf16.mxu1 %v18526_v41  ;;  %v16072_v41 = vld [vmem:[#allocation9 + $0xcc] ss:$16 sps:$4 sm:$0xff]   ;;  %v16087_v1 = vld [vmem:[#allocation9 + $0x124] ss:$16 sps:$4 sm:$0xff]  }
 0x637   :  { %7516 = vmatprep.subr.bf16.mxu0 %v16051_v24  ;;  %7728 = vmatprep.subr.bf16.mxu1 %v16054_v2  ;;  %v16090_v24 = vld [vmem:[#allocation9 + $0x12c] ss:$16 sps:$4 sm:$0xff]   ;;  %v16085_v2 = vld [vmem:[#allocation9 + $0x120] ss:$16 sps:$4 sm:$0xff]  }
 0x639   :  { %7517 = vmatpush1.bf16.msra.mxu0 %v16049_v54  ;;  %v16088_v54 = vld [vmem:[#allocation9 + $0x128] ss:$16 sps:$4 sm:$0xff]  }
 0x63a   :  { %7729 = vmatpush1.bf16.msra.mxu1 %v16052_v35  ;;  %7518 = vmatprep.subr.bf16.mxu0 %v16057_v30  ;;  %v16093_v35 = vld [vmem:[#allocation9 + $0x144] ss:$16 sps:$4 sm:$0xff]   ;;  %v16096_v30 = vld [vmem:[#allocation9 + $0x14c] ss:$16 sps:$4 sm:$0xff]  }
 0x63b   :  { %7730 = vmatprep.subr.bf16.mxu1 %v16060_v56  ;;  %v16091_v56 = vld [vmem:[#allocation9 + $0x140] ss:$16 sps:$4 sm:$0xff]  }
 0x63d   :  { %7519 = vmatpush1.bf16.msra.mxu0 %v16055_v16  ;;  %v16094_v16 = vld [vmem:[#allocation9 + $0x148] ss:$16 sps:$4 sm:$0xff]  }
 0x63e   :  { %7731 = vmatpush1.bf16.msra.mxu1 %v16058_v63  ;;  %7520 = vmatprep.subr.bf16.mxu0 %v16063_v23  ;;  %v16099_v63 = vld [vmem:[#allocation9 + $0x164] ss:$16 sps:$4 sm:$0xff]   ;;  %v16102_v23 = vld [vmem:[#allocation9 + $0x16c] ss:$16 sps:$4 sm:$0xff]  }
 0x63f   :  { %7732 = vmatprep.subr.bf16.mxu1 %v16066_v25  ;;  %v16097_v25 = vld [vmem:[#allocation9 + $0x160] ss:$16 sps:$4 sm:$0xff]  }
 0x641   :  { %7521 = vmatpush1.bf16.msra.mxu0 %v16061_v10  ;;  %v16100_v10 = vld [vmem:[#allocation9 + $0x168] ss:$16 sps:$4 sm:$0xff]  }
 0x642   :  { %7733 = vmatpush1.bf16.msra.mxu1 %v16064_v49  ;;  %7522 = vmatprep.subr.bf16.mxu0 %v16069_v37  ;;  %v16105_v49 = vld [vmem:[#allocation9 + $0x184] ss:$16 sps:$4 sm:$0xff]   ;;  %v16108_v37 = vld [vmem:[#allocation9 + $0x18c] ss:$16 sps:$4 sm:$0xff]  }
 0x643   :  { %7734 = vmatprep.subr.bf16.mxu1 %v16072_v41  ;;  %v16103_v41 = vld [vmem:[#allocation9 + $0x180] ss:$16 sps:$4 sm:$0xff]  }
 0x645   :  { %7523 = vmatpush1.bf16.msra.mxu0 %v16067_v28  ;;  %v16106_v28 = vld [vmem:[#allocation9 + $0x188] ss:$16 sps:$4 sm:$0xff]  }
 0x646   :  { %7735 = vmatpush1.bf16.msra.mxu1 %v16070_v6  ;;  %7524 = vmatprep.subr.bf16.mxu0 %v16075_v62  ;;  %v16111_v6 = vld [vmem:[#allocation9 + $0x1a4] ss:$16 sps:$4 sm:$0xff]   ;;  %v16114_v62 = vld [vmem:[#allocation9 + $0x1ac] ss:$16 sps:$4 sm:$0xff]  }
 0x647   :  { %7736 = vmatprep.subr.bf16.mxu1 %v16078_v36  ;;  %v16109_v36 = vld [vmem:[#allocation9 + $0x1a0] ss:$16 sps:$4 sm:$0xff]  }
 0x649   :  { %7525 = vmatpush1.bf16.msra.mxu0 %v16073_v3  ;;  %v16112_v3 = vld [vmem:[#allocation9 + $0x1a8] ss:$16 sps:$4 sm:$0xff]  }
 0x64a   :  { %7737 = vmatpush1.bf16.msra.mxu1 %v16076_v45  ;;  %7526 = vmatprep.subr.bf16.mxu0 %v16081_v31  ;;  %v16117_v45 = vld [vmem:[#allocation9 + $0x1c4] ss:$16 sps:$4 sm:$0xff]   ;;  %v16120_v31 = vld [vmem:[#allocation9 + $0x1cc] ss:$16 sps:$4 sm:$0xff]  }
 0x64b   :  { %7738 = vmatprep.subr.bf16.mxu1 %v16084_v33  ;;  %v16115_v33 = vld [vmem:[#allocation9 + $0x1c0] ss:$16 sps:$4 sm:$0xff]  }
 0x64d   :  { %7527 = vmatpush1.bf16.msra.mxu0 %v16079_v9  ;;  %v16118_v9 = vld [vmem:[#allocation9 + $0x1c8] ss:$16 sps:$4 sm:$0xff]  }
 0x64e   :  { %7739 = vmatpush1.bf16.msra.mxu1 %v16082_v8  ;;  %7528 = vmatprep.subr.bf16.mxu0 %v16087_v1  ;;  %v16123_v8 = vld [vmem:[#allocation9 + $0x1e4] ss:$16 sps:$4 sm:$0xff]   ;;  %v16126_v1 = vld [vmem:[#allocation9 + $0x1ec] ss:$16 sps:$4 sm:$0xff]  }
 0x64f   :  { %7740 = vmatprep.subr.bf16.mxu1 %v16090_v24  ;;  %v16121_v24 = vld [vmem:[#allocation9 + $0x1e0] ss:$16 sps:$4 sm:$0xff]  }
 0x651   :  { %7529 = vmatpush1.bf16.msra.mxu0 %v16085_v2  ;;  %v16124_v2 = vld [vmem:[#allocation9 + $0x1e8] ss:$16 sps:$4 sm:$0xff]  }
 0x652   :  { %7741 = vmatpush1.bf16.msra.mxu1 %v16088_v54  ;;  %7530 = vmatprep.subr.bf16.mxu0 %v16093_v35  ;;  %v16129_v54 = vld [vmem:[#allocation9 + $0x204] ss:$16 sps:$4 sm:$0xff]   ;;  %v16132_v35 = vld [vmem:[#allocation9 + $0x20c] ss:$16 sps:$4 sm:$0xff]  }
 0x653   :  { %7742 = vmatprep.subr.bf16.mxu1 %v16096_v30  ;;  %v16127_v30 = vld [vmem:[#allocation9 + $0x200] ss:$16 sps:$4 sm:$0xff]  }
 0x655   :  { %7531 = vmatpush1.bf16.msra.mxu0 %v16091_v56  ;;  %v16130_v56 = vld [vmem:[#allocation9 + $0x208] ss:$16 sps:$4 sm:$0xff]  }
 0x656   :  { %7743 = vmatpush1.bf16.msra.mxu1 %v16094_v16  ;;  %7532 = vmatprep.subr.bf16.mxu0 %v16099_v63  ;;  %v16135_v16 = vld [vmem:[#allocation9 + $0x224] ss:$16 sps:$4 sm:$0xff]   ;;  %v16138_v63 = vld [vmem:[#allocation9 + $0x22c] ss:$16 sps:$4 sm:$0xff]  }
 0x657   :  { %7744 = vmatprep.subr.bf16.mxu1 %v16102_v23  ;;  %v16133_v23 = vld [vmem:[#allocation9 + $0x220] ss:$16 sps:$4 sm:$0xff]  }
 0x659   :  { %7533 = vmatpush1.bf16.msra.mxu0 %v16097_v25  ;;  %v16136_v25 = vld [vmem:[#allocation9 + $0x228] ss:$16 sps:$4 sm:$0xff]  }
 0x65a   :  { %7745 = vmatpush1.bf16.msra.mxu1 %v16100_v10  ;;  %7534 = vmatprep.subr.bf16.mxu0 %v16105_v49  ;;  %v16141_v10 = vld [vmem:[#allocation9 + $0x244] ss:$16 sps:$4 sm:$0xff]   ;;  %v16144_v49 = vld [vmem:[#allocation9 + $0x24c] ss:$16 sps:$4 sm:$0xff]  }
 0x65b   :  { %7746 = vmatprep.subr.bf16.mxu1 %v16108_v37  ;;  %v16139_v37 = vld [vmem:[#allocation9 + $0x240] ss:$16 sps:$4 sm:$0xff]  }
 0x65d   :  { %7535 = vmatpush1.bf16.msra.mxu0 %v16103_v41  ;;  %v16142_v41 = vld [vmem:[#allocation9 + $0x248] ss:$16 sps:$4 sm:$0xff]  }
 0x65e   :  { %7747 = vmatpush1.bf16.msra.mxu1 %v16106_v28  ;;  %7536 = vmatprep.subr.bf16.mxu0 %v16111_v6  ;;  %v16147_v28 = vld [vmem:[#allocation9 + $0x264] ss:$16 sps:$4 sm:$0xff]   ;;  %v16148_v6 = vld [vmem:[#allocation9 + $0x268] ss:$16 sps:$4 sm:$0xff]  }
 0x65f   :  { %7748 = vmatprep.subr.bf16.mxu1 %v16114_v62  ;;  %v16153_v62 = vld [vmem:[#allocation9 + $0x284] ss:$16 sps:$4 sm:$0xff]  }
 0x661   :  { %7537 = vmatpush1.bf16.msra.mxu0 %v16109_v36  ;;  %v16156_v36 = vld [vmem:[#allocation9 + $0x28c] ss:$16 sps:$4 sm:$0xff]  }
 0x662   :  { %7749 = vmatpush1.bf16.msra.mxu1 %v16112_v3  ;;  %7538 = vmatprep.subr.bf16.mxu0 %v16117_v45  ;;  %v16151_v3 = vld [vmem:[#allocation9 + $0x280] ss:$16 sps:$4 sm:$0xff]   ;;  %v16154_v45 = vld [vmem:[#allocation9 + $0x288] ss:$16 sps:$4 sm:$0xff]  }
 0x663   :  { %7750 = vmatprep.subr.bf16.mxu1 %v16120_v31  ;;  %v16159_v31 = vld [vmem:[#allocation9 + $0x2a4] ss:$16 sps:$4 sm:$0xff]  }
 0x665   :  { %7539 = vmatpush1.bf16.msra.mxu0 %v16115_v33  ;;  %v16157_v33 = vld [vmem:[#allocation9 + $0x2a0] ss:$16 sps:$4 sm:$0xff]  }
 0x666   :  { %7751 = vmatpush1.bf16.msra.mxu1 %v16118_v9  ;;  %7540 = vmatprep.subr.bf16.mxu0 %v16123_v8  ;;  %v16165_v9 = vld [vmem:[#allocation9 + $0x2c4] ss:$16 sps:$4 sm:$0xff]   ;;  %v16168_v8 = vld [vmem:[#allocation9 + $0x2cc] ss:$16 sps:$4 sm:$0xff]  }
 0x667   :  { %7752 = vmatprep.subr.bf16.mxu1 %v16126_v1  ;;  %v16163_v1 = vld [vmem:[#allocation9 + $0x2c0] ss:$16 sps:$4 sm:$0xff]  }
 0x669   :  { %7541 = vmatpush1.bf16.msra.mxu0 %v16121_v24  ;;  %v16166_v24 = vld [vmem:[#allocation9 + $0x2c8] ss:$16 sps:$4 sm:$0xff]  }
 0x66a   :  { %7753 = vmatpush1.bf16.msra.mxu1 %v16124_v2  ;;  %7563 = vmatprep.subr.bf16.mxu0 %v16129_v54  ;;  %v16171_v2 = vld [vmem:[#allocation9 + $0x2e4] ss:$16 sps:$4 sm:$0xff]   ;;  %v16174_v54 = vld [vmem:[#allocation9 + $0x2ec] ss:$16 sps:$4 sm:$0xff]  }
 0x66b   :  { %7775 = vmatprep.subr.bf16.mxu1 %v16132_v35  ;;  %v16169_v35 = vld [vmem:[#allocation9 + $0x2e0] ss:$16 sps:$4 sm:$0xff]  }
 0x66c   :  { %7543 = vmatmul.mubr.bf16.vlgmr.msra.gmra.mrb[88].mxu0 %v18524_v38 }
 0x66d   :  { %7755 = vmatmul.mubr.bf16.vlgmr.msra.gmra.mrb[104].mxu1 %v18524_v38  ;;  %7552 = vmatprep.mubr.bf16.mxu0 %v18530_v11  ;;  %v16150_v38 = vld [vmem:[#allocation9 + $0x26c] ss:$16 sps:$4 sm:$0xff]  }
 0x66e   :  { %7564 = vmatpush1.bf16.msra.mxu0 %v16127_v30  ;;  %7764 = vmatprep.mubr.bf16.mxu1 %v18530_v11  ;;  %v16145_v11 = vld [vmem:[#allocation9 + $0x260] ss:$16 sps:$4 sm:$0xff]   ;;  %v16172_v30 = vld [vmem:[#allocation9 + $0x2e8] ss:$16 sps:$4 sm:$0xff]  }
 0x66f   :  { %7776 = vmatpush1.bf16.msra.mxu1 %v16130_v56  ;;  %7565 = vmatprep.subr.bf16.mxu0 %v16135_v16  ;;  %v16177_v56 = vld [vmem:[#allocation9 + $0x304] ss:$16 sps:$4 sm:$0xff]   ;;  %v16180_v16 = vld [vmem:[#allocation9 + $0x30c] ss:$16 sps:$4 sm:$0xff]  }
 0x670   :  { %7777 = vmatprep.subr.bf16.mxu1 %v16138_v63  ;;  %v16175_v63 = vld [vmem:[#allocation9 + $0x300] ss:$16 sps:$4 sm:$0xff]  }
 0x672   :  { %7566 = vmatpush1.bf16.msra.mxu0 %v16133_v23  ;;  %v16178_v23 = vld [vmem:[#allocation9 + $0x308] ss:$16 sps:$4 sm:$0xff]  }
 0x673   :  { %7778 = vmatpush1.bf16.msra.mxu1 %v16136_v25  ;;  %7567 = vmatprep.subr.bf16.mxu0 %v16141_v10  ;;  %v16183_v25 = vld [vmem:[#allocation9 + $0x324] ss:$16 sps:$4 sm:$0xff]   ;;  %v16186_v10 = vld [vmem:[#allocation9 + $0x32c] ss:$16 sps:$4 sm:$0xff]  }
 0x674   :  { %7553 = vmatmul.mubr.bf16.gmra.mrb[92].mxu0 %v18528_v14  ;;  %7779 = vmatprep.subr.bf16.mxu1 %v16144_v49  ;;  %v16181_v49 = vld [vmem:[#allocation9 + $0x320] ss:$16 sps:$4 sm:$0xff]  }
 0x675   :  { %7765 = vmatmul.mubr.bf16.gmra.mrb[108].mxu1 %v18528_v14  ;;  %7595 = vmatprep.mubr.bf16.mxu0 %v18534_v61  ;;  %v16162_v14 = vld [vmem:[#allocation9 + $0x2ac] ss:$16 sps:$4 sm:$0xff]  }
 0x676   :  { %7568 = vmatpush1.bf16.msra.mxu0 %v16139_v37  ;;  %7807 = vmatprep.mubr.bf16.mxu1 %v18534_v61  ;;  %v16160_v61 = vld [vmem:[#allocation9 + $0x2a8] ss:$16 sps:$4 sm:$0xff]  }
 0x677   :  { %7780 = vmatpush1.bf16.msra.mxu1 %v16142_v41  ;;  %7569 = vmatprep.subr.bf16.mxu0 %v16147_v28  ;;  %v16184_v37 = vld [vmem:[#allocation9 + $0x328] ss:$16 sps:$4 sm:$0xff]   ;;  %v16189_v41 = vld [vmem:[#allocation9 + $0x344] ss:$16 sps:$4 sm:$0xff]   ;;  %v16192_v28 = vld [vmem:[#allocation9 + $0x34c] ss:$16 sps:$4 sm:$0xff]  }
 0x678   :  { %7781 = vmatprep.subr.bf16.mxu1 %v16150_v38  ;;  %v16187_v38 = vld [vmem:[#allocation9 + $0x340] ss:$16 sps:$4 sm:$0xff]  }
 0x67a   :  { %7570 = vmatpush1.bf16.msra.mxu0 %v16145_v11  ;;  %v16190_v11 = vld [vmem:[#allocation9 + $0x348] ss:$16 sps:$4 sm:$0xff]  }
 0x67b   :  { %7782 = vmatpush1.bf16.msra.mxu1 %v16148_v6  ;;  %7571 = vmatprep.subr.bf16.mxu0 %v16153_v62  ;;  %v16195_v6 = vld [vmem:[#allocation9 + $0x364] ss:$16 sps:$4 sm:$0xff]   ;;  %v16198_v62 = vld [vmem:[#allocation9 + $0x36c] ss:$16 sps:$4 sm:$0xff]  }
 0x67c   :  { %7783 = vmatprep.subr.bf16.mxu1 %v16156_v36  ;;  %v16193_v36 = vld [vmem:[#allocation9 + $0x360] ss:$16 sps:$4 sm:$0xff]  }
 0x67e   :  { %7572 = vmatpush1.bf16.msra.mxu0 %v16151_v3  ;;  %v16196_v3 = vld [vmem:[#allocation9 + $0x368] ss:$16 sps:$4 sm:$0xff]  }
 0x67f   :  { %7784 = vmatpush1.bf16.msra.mxu1 %v16154_v45  ;;  %7573 = vmatprep.subr.bf16.mxu0 %v16159_v31  ;;  %v16201_v45 = vld [vmem:[#allocation9 + $0x384] ss:$16 sps:$4 sm:$0xff]   ;;  %v16204_v31 = vld [vmem:[#allocation9 + $0x38c] ss:$16 sps:$4 sm:$0xff]  }
 0x680   :  { %7785 = vmatprep.subr.bf16.mxu1 %v16162_v14  ;;  %v16199_v14 = vld [vmem:[#allocation9 + $0x380] ss:$16 sps:$4 sm:$0xff]  }
 0x682   :  { %7574 = vmatpush1.bf16.msra.mxu0 %v16157_v33  ;;  %v16202_v33 = vld [vmem:[#allocation9 + $0x388] ss:$16 sps:$4 sm:$0xff]  }
 0x683   :  { %7786 = vmatpush1.bf16.msra.mxu1 %v16160_v61  ;;  %7575 = vmatprep.subr.bf16.mxu0 %v16165_v9  ;;  %v16207_v61 = vld [vmem:[#allocation9 + $0x3a4] ss:$16 sps:$4 sm:$0xff]   ;;  %v16210_v9 = vld [vmem:[#allocation9 + $0x3ac] ss:$16 sps:$4 sm:$0xff]  }
 0x684   :  { %7787 = vmatprep.subr.bf16.mxu1 %v16168_v8  ;;  %v16205_v8 = vld [vmem:[#allocation9 + $0x3a0] ss:$16 sps:$4 sm:$0xff]  }
 0x686   :  { %7576 = vmatpush1.bf16.msra.mxu0 %v16163_v1  ;;  %v16208_v1 = vld [vmem:[#allocation9 + $0x3a8] ss:$16 sps:$4 sm:$0xff]  }
 0x687   :  { %7788 = vmatpush1.bf16.msra.mxu1 %v16166_v24  ;;  %7577 = vmatprep.subr.bf16.mxu0 %v16171_v2  ;;  %v16213_v24 = vld [vmem:[#allocation9 + $0x3c4] ss:$16 sps:$4 sm:$0xff]   ;;  %v16216_v2 = vld [vmem:[#allocation9 + $0x3cc] ss:$16 sps:$4 sm:$0xff]  }
 0x688   :  { %7789 = vmatprep.subr.bf16.mxu1 %v16174_v54  ;;  %v16211_v54 = vld [vmem:[#allocation9 + $0x3c0] ss:$16 sps:$4 sm:$0xff]  }
 0x68a   :  { %7578 = vmatpush1.bf16.msra.mxu0 %v16169_v35  ;;  %v16214_v35 = vld [vmem:[#allocation9 + $0x3c8] ss:$16 sps:$4 sm:$0xff]  }
 0x68b   :  { %7790 = vmatpush1.bf16.msra.mxu1 %v16172_v30  ;;  %7579 = vmatprep.subr.bf16.mxu0 %v16177_v56  ;;  %v16219_v30 = vld [vmem:[#allocation9 + $0x3e4] ss:$16 sps:$4 sm:$0xff]   ;;  %v16222_v56 = vld [vmem:[#allocation9 + $0x3ec] ss:$16 sps:$4 sm:$0xff]  }
 0x68c   :  { %7791 = vmatprep.subr.bf16.mxu1 %v16180_v16  ;;  %v16217_v16 = vld [vmem:[#allocation9 + $0x3e0] ss:$16 sps:$4 sm:$0xff]  }
 0x68e   :  { %7580 = vmatpush1.bf16.msra.mxu0 %v16175_v63  ;;  %v16220_v63 = vld [vmem:[#allocation9 + $0x3e8] ss:$16 sps:$4 sm:$0xff]  }
 0x68f   :  { %7792 = vmatpush1.bf16.msra.mxu1 %v16178_v23  ;;  %7581 = vmatprep.subr.bf16.mxu0 %v16183_v25  ;;  %v16225_v23 = vld [vmem:[#allocation9 + $0x404] ss:$16 sps:$4 sm:$0xff]   ;;  %v16228_v25 = vld [vmem:[#allocation9 + $0x40c] ss:$16 sps:$4 sm:$0xff]  }
 0x690   :  { %7793 = vmatprep.subr.bf16.mxu1 %v16186_v10  ;;  %v16223_v10 = vld [vmem:[#allocation9 + $0x400] ss:$16 sps:$4 sm:$0xff]  }
 0x692   :  { %7582 = vmatpush1.bf16.msra.mxu0 %v16181_v49  ;;  %v16226_v49 = vld [vmem:[#allocation9 + $0x408] ss:$16 sps:$4 sm:$0xff]  }
 0x693   :  { %7794 = vmatpush1.bf16.msra.mxu1 %v16184_v37  ;;  %7583 = vmatprep.subr.bf16.mxu0 %v16189_v41  ;;  %v16231_v37 = vld [vmem:[#allocation9 + $0x424] ss:$16 sps:$4 sm:$0xff]   ;;  %v16234_v41 = vld [vmem:[#allocation9 + $0x42c] ss:$16 sps:$4 sm:$0xff]  }
 0x694   :  { %7795 = vmatprep.subr.bf16.mxu1 %v16192_v28  ;;  %v16229_v28 = vld [vmem:[#allocation9 + $0x420] ss:$16 sps:$4 sm:$0xff]  }
 0x696   :  { %7584 = vmatpush1.bf16.msra.mxu0 %v16187_v38  ;;  %v16232_v38 = vld [vmem:[#allocation9 + $0x428] ss:$16 sps:$4 sm:$0xff]  }
 0x697   :  { %7796 = vmatpush1.bf16.msra.mxu1 %v16190_v11  ;;  %7585 = vmatprep.subr.bf16.mxu0 %v16195_v6  ;;  %v16237_v11 = vld [vmem:[#allocation9 + $0x444] ss:$16 sps:$4 sm:$0xff]   ;;  %v16240_v6 = vld [vmem:[#allocation9 + $0x44c] ss:$16 sps:$4 sm:$0xff]  }
 0x698   :  { %7797 = vmatprep.subr.bf16.mxu1 %v16198_v62  ;;  %v16235_v62 = vld [vmem:[#allocation9 + $0x440] ss:$16 sps:$4 sm:$0xff]  }
 0x69a   :  { %7586 = vmatpush1.bf16.msra.mxu0 %v16193_v36  ;;  %v16238_v36 = vld [vmem:[#allocation9 + $0x448] ss:$16 sps:$4 sm:$0xff]  }
 0x69b   :  { %7798 = vmatpush1.bf16.msra.mxu1 %v16196_v3  ;;  %7587 = vmatprep.subr.bf16.mxu0 %v16201_v45  ;;  %v16243_v3 = vld [vmem:[#allocation9 + $0x464] ss:$16 sps:$4 sm:$0xff]   ;;  %v16244_v45 = vld [vmem:[#allocation9 + $0x468] ss:$16 sps:$4 sm:$0xff]  }
 0x69c   :  { %7799 = vmatprep.subr.bf16.mxu1 %v16204_v31  ;;  %v16249_v31 = vld [vmem:[#allocation9 + $0x484] ss:$16 sps:$4 sm:$0xff]  }
 0x69e   :  { %7588 = vmatpush1.bf16.msra.mxu0 %v16199_v14  ;;  %v16252_v14 = vld [vmem:[#allocation9 + $0x48c] ss:$16 sps:$4 sm:$0xff]  }
 0x69f   :  { %7800 = vmatpush1.bf16.msra.mxu1 %v16202_v33  ;;  %7589 = vmatprep.subr.bf16.mxu0 %v16207_v61  ;;  %v16247_v33 = vld [vmem:[#allocation9 + $0x480] ss:$16 sps:$4 sm:$0xff]   ;;  %v16250_v61 = vld [vmem:[#allocation9 + $0x488] ss:$16 sps:$4 sm:$0xff]  }
 0x6a0   :  { %7801 = vmatprep.subr.bf16.mxu1 %v16210_v9  ;;  %v16255_v9 = vld [vmem:[#allocation9 + $0x4a4] ss:$16 sps:$4 sm:$0xff]  }
 0x6a2   :  { %7590 = vmatpush1.bf16.msra.mxu0 %v16205_v8  ;;  %v16253_v8 = vld [vmem:[#allocation9 + $0x4a0] ss:$16 sps:$4 sm:$0xff]  }
 0x6a3   :  { %7802 = vmatpush1.bf16.msra.mxu1 %v16208_v1  ;;  %7591 = vmatprep.subr.bf16.mxu0 %v16213_v24  ;;  %v16261_v1 = vld [vmem:[#allocation9 + $0x4c4] ss:$16 sps:$4 sm:$0xff]   ;;  %v16264_v24 = vld [vmem:[#allocation9 + $0x4cc] ss:$16 sps:$4 sm:$0xff]  }
 0x6a4   :  { %7803 = vmatprep.subr.bf16.mxu1 %v16216_v2  ;;  %v16259_v2 = vld [vmem:[#allocation9 + $0x4c0] ss:$16 sps:$4 sm:$0xff]  }
 0x6a6   :  { %7592 = vmatpush1.bf16.msra.mxu0 %v16211_v54  ;;  %v16262_v54 = vld [vmem:[#allocation9 + $0x4c8] ss:$16 sps:$4 sm:$0xff]  }
 0x6a7   :  { %7804 = vmatpush1.bf16.msra.mxu1 %v16214_v35  ;;  %7593 = vmatprep.subr.bf16.mxu0 %v16219_v30  ;;  %v16267_v35 = vld [vmem:[#allocation9 + $0x4e4] ss:$16 sps:$4 sm:$0xff]   ;;  %v16270_v30 = vld [vmem:[#allocation9 + $0x4ec] ss:$16 sps:$4 sm:$0xff]  }
 0x6a8   :  { %7805 = vmatprep.subr.bf16.mxu1 %v16222_v56  ;;  %v16265_v56 = vld [vmem:[#allocation9 + $0x4e0] ss:$16 sps:$4 sm:$0xff]  }
 0x6aa   :  { %7594 = vmatpush1.bf16.msra.mxu0 %v16217_v16  ;;  %v16268_v16 = vld [vmem:[#allocation9 + $0x4e8] ss:$16 sps:$4 sm:$0xff]  }
 0x6ab   :  { %7806 = vmatpush1.bf16.msra.mxu1 %v16220_v63  ;;  %7616 = vmatprep.subr.bf16.mxu0 %v16225_v23  ;;  %v16273_v63 = vld [vmem:[#allocation9 + $0x504] ss:$16 sps:$4 sm:$0xff]   ;;  %v16276_v23 = vld [vmem:[#allocation9 + $0x50c] ss:$16 sps:$4 sm:$0xff]  }
 0x6ac   :  { %7828 = vmatprep.subr.bf16.mxu1 %v16228_v25  ;;  %v16271_v25 = vld [vmem:[#allocation9 + $0x500] ss:$16 sps:$4 sm:$0xff]  }
 0x6ad   :  { %7596 = vmatmul.mubr.bf16.vlgmr.msra.gmra.mrb[88].mxu0 %v18532_v32 }
 0x6ae   :  { %7808 = vmatmul.mubr.bf16.vlgmr.msra.gmra.mrb[104].mxu1 %v18532_v32  ;;  %7605 = vmatprep.mubr.bf16.mxu0 %v18538_v17  ;;  %v16246_v32 = vld [vmem:[#allocation9 + $0x46c] ss:$16 sps:$4 sm:$0xff]  }
 0x6af   :  { %7617 = vmatpush1.bf16.msra.mxu0 %v16223_v10  ;;  %7817 = vmatprep.mubr.bf16.mxu1 %v18538_v17  ;;  %v16241_v17 = vld [vmem:[#allocation9 + $0x460] ss:$16 sps:$4 sm:$0xff]   ;;  %v16274_v10 = vld [vmem:[#allocation9 + $0x508] ss:$16 sps:$4 sm:$0xff]  }
 0x6b0   :  { %7829 = vmatpush1.bf16.msra.mxu1 %v16226_v49  ;;  %7618 = vmatprep.subr.bf16.mxu0 %v16231_v37  ;;  %v16279_v49 = vld [vmem:[#allocation9 + $0x524] ss:$16 sps:$4 sm:$0xff]   ;;  %v16282_v37 = vld [vmem:[#allocation9 + $0x52c] ss:$16 sps:$4 sm:$0xff]  }
 0x6b1   :  { %7830 = vmatprep.subr.bf16.mxu1 %v16234_v41  ;;  %v16277_v41 = vld [vmem:[#allocation9 + $0x520] ss:$16 sps:$4 sm:$0xff]  }
 0x6b3   :  { %7619 = vmatpush1.bf16.msra.mxu0 %v16229_v28  ;;  %v16280_v28 = vld [vmem:[#allocation9 + $0x528] ss:$16 sps:$4 sm:$0xff]  }
 0x6b4   :  { %7831 = vmatpush1.bf16.msra.mxu1 %v16232_v38  ;;  %7620 = vmatprep.subr.bf16.mxu0 %v16237_v11  ;;  %v16285_v38 = vld [vmem:[#allocation9 + $0x544] ss:$16 sps:$4 sm:$0xff]   ;;  %v16288_v11 = vld [vmem:[#allocation9 + $0x54c] ss:$16 sps:$4 sm:$0xff]  }
 0x6b5   :  { %7606 = vmatmul.mubr.bf16.gmra.mrb[92].mxu0 %v18536_v43  ;;  %7832 = vmatprep.subr.bf16.mxu1 %v16240_v6  ;;  %v16283_v6 = vld [vmem:[#allocation9 + $0x540] ss:$16 sps:$4 sm:$0xff]  }
 0x6b6   :  { %7818 = vmatmul.mubr.bf16.gmra.mrb[108].mxu1 %v18536_v43  ;;  %7648 = vmatprep.mubr.bf16.mxu0 %v18544_v26  ;;  %v16258_v43 = vld [vmem:[#allocation9 + $0x4ac] ss:$16 sps:$4 sm:$0xff]  }
 0x6b7   :  { %7621 = vmatpush1.bf16.msra.mxu0 %v16235_v62  ;;  %7860 = vmatprep.mubr.bf16.mxu1 %v18544_v26  ;;  %v16256_v26 = vld [vmem:[#allocation9 + $0x4a8] ss:$16 sps:$4 sm:$0xff]  }
 0x6b8   :  { %7833 = vmatpush1.bf16.msra.mxu1 %v16238_v36  ;;  %7622 = vmatprep.subr.bf16.mxu0 %v16243_v3  ;;  %v16286_v62 = vld [vmem:[#allocation9 + $0x548] ss:$16 sps:$4 sm:$0xff]   ;;  %v16291_v36 = vld [vmem:[#allocation9 + $0x564] ss:$16 sps:$4 sm:$0xff]   ;;  %v16294_v3 = vld [vmem:[#allocation9 + $0x56c] ss:$16 sps:$4 sm:$0xff]  }
 0x6b9   :  { %7834 = vmatprep.subr.bf16.mxu1 %v16246_v32  ;;  %v16289_v32 = vld [vmem:[#allocation9 + $0x560] ss:$16 sps:$4 sm:$0xff]  }
 0x6bb   :  { %7623 = vmatpush1.bf16.msra.mxu0 %v16241_v17  ;;  %v16292_v17 = vld [vmem:[#allocation9 + $0x568] ss:$16 sps:$4 sm:$0xff]  }
 0x6bc   :  { %7835 = vmatpush1.bf16.msra.mxu1 %v16244_v45  ;;  %7624 = vmatprep.subr.bf16.mxu0 %v16249_v31  ;;  %v16297_v45 = vld [vmem:[#allocation9 + $0x584] ss:$16 sps:$4 sm:$0xff]   ;;  %v16300_v31 = vld [vmem:[#allocation9 + $0x58c] ss:$16 sps:$4 sm:$0xff]  }
 0x6bd   :  { %7836 = vmatprep.subr.bf16.mxu1 %v16252_v14  ;;  %v16295_v14 = vld [vmem:[#allocation9 + $0x580] ss:$16 sps:$4 sm:$0xff]  }
 0x6bf   :  { %7625 = vmatpush1.bf16.msra.mxu0 %v16247_v33  ;;  %v16298_v33 = vld [vmem:[#allocation9 + $0x588] ss:$16 sps:$4 sm:$0xff]  }
 0x6c0   :  { %7837 = vmatpush1.bf16.msra.mxu1 %v16250_v61  ;;  %7626 = vmatprep.subr.bf16.mxu0 %v16255_v9  ;;  %v16303_v61 = vld [vmem:[#allocation9 + $0x5a4] ss:$16 sps:$4 sm:$0xff]   ;;  %v16306_v9 = vld [vmem:[#allocation9 + $0x5ac] ss:$16 sps:$4 sm:$0xff]  }
 0x6c1   :  { %7838 = vmatprep.subr.bf16.mxu1 %v16258_v43  ;;  %v16301_v43 = vld [vmem:[#allocation9 + $0x5a0] ss:$16 sps:$4 sm:$0xff]  }
 0x6c3   :  { %7627 = vmatpush1.bf16.msra.mxu0 %v16253_v8  ;;  %v16304_v8 = vld [vmem:[#allocation9 + $0x5a8] ss:$16 sps:$4 sm:$0xff]  }
 0x6c4   :  { %7839 = vmatpush1.bf16.msra.mxu1 %v16256_v26  ;;  %7628 = vmatprep.subr.bf16.mxu0 %v16261_v1  ;;  %v16309_v26 = vld [vmem:[#allocation9 + $0x5c4] ss:$16 sps:$4 sm:$0xff]   ;;  %v16312_v1 = vld [vmem:[#allocation9 + $0x5cc] ss:$16 sps:$4 sm:$0xff]  }
 0x6c5   :  { %7840 = vmatprep.subr.bf16.mxu1 %v16264_v24  ;;  %v16307_v24 = vld [vmem:[#allocation9 + $0x5c0] ss:$16 sps:$4 sm:$0xff]  }
 0x6c7   :  { %7629 = vmatpush1.bf16.msra.mxu0 %v16259_v2  ;;  %v16310_v2 = vld [vmem:[#allocation9 + $0x5c8] ss:$16 sps:$4 sm:$0xff]  }
 0x6c8   :  { %7841 = vmatpush1.bf16.msra.mxu1 %v16262_v54  ;;  %7630 = vmatprep.subr.bf16.mxu0 %v16267_v35  ;;  %v16315_v54 = vld [vmem:[#allocation9 + $0x5e4] ss:$16 sps:$4 sm:$0xff]   ;;  %v16318_v35 = vld [vmem:[#allocation9 + $0x5ec] ss:$16 sps:$4 sm:$0xff]  }
 0x6c9   :  { %7842 = vmatprep.subr.bf16.mxu1 %v16270_v30  ;;  %v16313_v30 = vld [vmem:[#allocation9 + $0x5e0] ss:$16 sps:$4 sm:$0xff]  }
 0x6cb   :  { %7631 = vmatpush1.bf16.msra.mxu0 %v16265_v56  ;;  %v16316_v56 = vld [vmem:[#allocation9 + $0x5e8] ss:$16 sps:$4 sm:$0xff]  }
 0x6cc   :  { %7843 = vmatpush1.bf16.msra.mxu1 %v16268_v16  ;;  %7632 = vmatprep.subr.bf16.mxu0 %v16273_v63  ;;  %v16321_v16 = vld [vmem:[#allocation9 + $0x604] ss:$16 sps:$4 sm:$0xff]   ;;  %v16324_v63 = vld [vmem:[#allocation9 + $0x60c] ss:$16 sps:$4 sm:$0xff]  }
 0x6cd   :  { %7844 = vmatprep.subr.bf16.mxu1 %v16276_v23  ;;  %v16319_v23 = vld [vmem:[#allocation9 + $0x600] ss:$16 sps:$4 sm:$0xff]  }
 0x6cf   :  { %7633 = vmatpush1.bf16.msra.mxu0 %v16271_v25  ;;  %v16322_v25 = vld [vmem:[#allocation9 + $0x608] ss:$16 sps:$4 sm:$0xff]  }
 0x6d0   :  { %7845 = vmatpush1.bf16.msra.mxu1 %v16274_v10  ;;  %7634 = vmatprep.subr.bf16.mxu0 %v16279_v49  ;;  %v16327_v10 = vld [vmem:[#allocation9 + $0x624] ss:$16 sps:$4 sm:$0xff]   ;;  %v16330_v49 = vld [vmem:[#allocation9 + $0x62c] ss:$16 sps:$4 sm:$0xff]  }
 0x6d1   :  { %7846 = vmatprep.subr.bf16.mxu1 %v16282_v37  ;;  %v16325_v37 = vld [vmem:[#allocation9 + $0x620] ss:$16 sps:$4 sm:$0xff]  }
 0x6d3   :  { %7635 = vmatpush1.bf16.msra.mxu0 %v16277_v41  ;;  %v16328_v41 = vld [vmem:[#allocation9 + $0x628] ss:$16 sps:$4 sm:$0xff]  }
 0x6d4   :  { %7847 = vmatpush1.bf16.msra.mxu1 %v16280_v28  ;;  %7636 = vmatprep.subr.bf16.mxu0 %v16285_v38  ;;  %v16333_v28 = vld [vmem:[#allocation9 + $0x644] ss:$16 sps:$4 sm:$0xff]   ;;  %v16336_v38 = vld [vmem:[#allocation9 + $0x64c] ss:$16 sps:$4 sm:$0xff]  }
 0x6d5   :  { %7848 = vmatprep.subr.bf16.mxu1 %v16288_v11  ;;  %v16331_v11 = vld [vmem:[#allocation9 + $0x640] ss:$16 sps:$4 sm:$0xff]  }
 0x6d7   :  { %7637 = vmatpush1.bf16.msra.mxu0 %v16283_v6  ;;  %v16334_v6 = vld [vmem:[#allocation9 + $0x648] ss:$16 sps:$4 sm:$0xff]  }
 0x6d8   :  { %7849 = vmatpush1.bf16.msra.mxu1 %v16286_v62  ;;  %7638 = vmatprep.subr.bf16.mxu0 %v16291_v36  ;;  %v16339_v62 = vld [vmem:[#allocation9 + $0x664] ss:$16 sps:$4 sm:$0xff]   ;;  %v16340_v36 = vld [vmem:[#allocation9 + $0x668] ss:$16 sps:$4 sm:$0xff]  }
 0x6d9   :  { %7850 = vmatprep.subr.bf16.mxu1 %v16294_v3  ;;  %v16345_v3 = vld [vmem:[#allocation9 + $0x684] ss:$16 sps:$4 sm:$0xff]  }
 0x6db   :  { %7639 = vmatpush1.bf16.msra.mxu0 %v16289_v32  ;;  %v16348_v32 = vld [vmem:[#allocation9 + $0x68c] ss:$16 sps:$4 sm:$0xff]  }
 0x6dc   :  { %7851 = vmatpush1.bf16.msra.mxu1 %v16292_v17  ;;  %7640 = vmatprep.subr.bf16.mxu0 %v16297_v45  ;;  %v16343_v17 = vld [vmem:[#allocation9 + $0x680] ss:$16 sps:$4 sm:$0xff]   ;;  %v16346_v45 = vld [vmem:[#allocation9 + $0x688] ss:$16 sps:$4 sm:$0xff]  }
 0x6dd   :  { %7852 = vmatprep.subr.bf16.mxu1 %v16300_v31  ;;  %v16351_v31 = vld [vmem:[#allocation9 + $0x6a4] ss:$16 sps:$4 sm:$0xff]  }
 0x6df   :  { %7641 = vmatpush1.bf16.msra.mxu0 %v16295_v14  ;;  %v16349_v14 = vld [vmem:[#allocation9 + $0x6a0] ss:$16 sps:$4 sm:$0xff]  }
 0x6e0   :  { %7853 = vmatpush1.bf16.msra.mxu1 %v16298_v33  ;;  %7642 = vmatprep.subr.bf16.mxu0 %v16303_v61  ;;  %v16357_v33 = vld [vmem:[#allocation9 + $0x6c4] ss:$16 sps:$4 sm:$0xff]   ;;  %v16360_v61 = vld [vmem:[#allocation9 + $0x6cc] ss:$16 sps:$4 sm:$0xff]  }
 0x6e1   :  { %7854 = vmatprep.subr.bf16.mxu1 %v16306_v9  ;;  %v16355_v9 = vld [vmem:[#allocation9 + $0x6c0] ss:$16 sps:$4 sm:$0xff]  }
 0x6e3   :  { %7643 = vmatpush1.bf16.msra.mxu0 %v16301_v43  ;;  %v16358_v43 = vld [vmem:[#allocation9 + $0x6c8] ss:$16 sps:$4 sm:$0xff]  }
 0x6e4   :  { %7855 = vmatpush1.bf16.msra.mxu1 %v16304_v8  ;;  %7644 = vmatprep.subr.bf16.mxu0 %v16309_v26  ;;  %v16363_v8 = vld [vmem:[#allocation9 + $0x6e4] ss:$16 sps:$4 sm:$0xff]   ;;  %v16366_v26 = vld [vmem:[#allocation9 + $0x6ec] ss:$16 sps:$4 sm:$0xff]  }
 0x6e5   :  { %7856 = vmatprep.subr.bf16.mxu1 %v16312_v1  ;;  %v16361_v1 = vld [vmem:[#allocation9 + $0x6e0] ss:$16 sps:$4 sm:$0xff]  }
 0x6e7   :  { %7645 = vmatpush1.bf16.msra.mxu0 %v16307_v24  ;;  %v16364_v24 = vld [vmem:[#allocation9 + $0x6e8] ss:$16 sps:$4 sm:$0xff]  }
 0x6e8   :  { %7857 = vmatpush1.bf16.msra.mxu1 %v16310_v2  ;;  %7646 = vmatprep.subr.bf16.mxu0 %v16315_v54  ;;  %v16369_v2 = vld [vmem:[#allocation9 + $0x704] ss:$16 sps:$4 sm:$0xff]   ;;  %v16372_v54 = vld [vmem:[#allocation9 + $0x70c] ss:$16 sps:$4 sm:$0xff]  }
 0x6e9   :  { %7858 = vmatprep.subr.bf16.mxu1 %v16318_v35  ;;  %v16367_v35 = vld [vmem:[#allocation9 + $0x700] ss:$16 sps:$4 sm:$0xff]  }
 0x6eb   :  { %7647 = vmatpush1.bf16.msra.mxu0 %v16313_v30  ;;  %v16370_v30 = vld [vmem:[#allocation9 + $0x708] ss:$16 sps:$4 sm:$0xff]  }
 0x6ec   :  { %7859 = vmatpush1.bf16.msra.mxu1 %v16316_v56  ;;  %7669 = vmatprep.subr.bf16.mxu0 %v16321_v16  ;;  %v16375_v56 = vld [vmem:[#allocation9 + $0x724] ss:$16 sps:$4 sm:$0xff]   ;;  %v16378_v16 = vld [vmem:[#allocation9 + $0x72c] ss:$16 sps:$4 sm:$0xff]  }
 0x6ed   :  { %7881 = vmatprep.subr.bf16.mxu1 %v16324_v63  ;;  %v16373_v63 = vld [vmem:[#allocation9 + $0x720] ss:$16 sps:$4 sm:$0xff]  }
 0x6ee   :  { %7649 = vmatmul.mubr.bf16.vlgmr.msra.gmra.mrb[88].mxu0 %v18540_v47 }
 0x6ef   :  { %7861 = vmatmul.mubr.bf16.vlgmr.msra.gmra.mrb[104].mxu1 %v18540_v47  ;;  %7658 = vmatprep.mubr.bf16.mxu0 %v18552_v19  ;;  %v16342_v47 = vld [vmem:[#allocation9 + $0x66c] ss:$16 sps:$4 sm:$0xff]  }
 0x6f0   :  { %7670 = vmatpush1.bf16.msra.mxu0 %v16319_v23  ;;  %7870 = vmatprep.mubr.bf16.mxu1 %v18552_v19  ;;  %v16337_v19 = vld [vmem:[#allocation9 + $0x660] ss:$16 sps:$4 sm:$0xff]   ;;  %v16376_v23 = vld [vmem:[#allocation9 + $0x728] ss:$16 sps:$4 sm:$0xff]  }
 0x6f1   :  { %7882 = vmatpush1.bf16.msra.mxu1 %v16322_v25  ;;  %7671 = vmatprep.subr.bf16.mxu0 %v16327_v10  ;;  %v16381_v25 = vld [vmem:[#allocation9 + $0x744] ss:$16 sps:$4 sm:$0xff]   ;;  %v16384_v10 = vld [vmem:[#allocation9 + $0x74c] ss:$16 sps:$4 sm:$0xff]  }
 0x6f2   :  { %7883 = vmatprep.subr.bf16.mxu1 %v16330_v49  ;;  %v16379_v49 = vld [vmem:[#allocation9 + $0x740] ss:$16 sps:$4 sm:$0xff]  }
 0x6f4   :  { %7672 = vmatpush1.bf16.msra.mxu0 %v16325_v37  ;;  %v16382_v37 = vld [vmem:[#allocation9 + $0x748] ss:$16 sps:$4 sm:$0xff]  }
 0x6f5   :  { %7884 = vmatpush1.bf16.msra.mxu1 %v16328_v41  ;;  %7673 = vmatprep.subr.bf16.mxu0 %v16333_v28  ;;  %v16387_v41 = vld [vmem:[#allocation9 + $0x764] ss:$16 sps:$4 sm:$0xff]   ;;  %v16390_v28 = vld [vmem:[#allocation9 + $0x76c] ss:$16 sps:$4 sm:$0xff]  }
 0x6f6   :  { %7659 = vmatmul.mubr.bf16.gmra.mrb[92].mxu0 %v18548_v0  ;;  %7885 = vmatprep.subr.bf16.mxu1 %v16336_v38  ;;  %v16385_v38 = vld [vmem:[#allocation9 + $0x760] ss:$16 sps:$4 sm:$0xff]  }
 0x6f7   :  { %7871 = vmatmul.mubr.bf16.gmra.mrb[108].mxu1 %v18548_v0  ;;  %7701 = vmatprep.mubr.bf16.mxu0 %v18546_v27  ;;  %v16354_v0 = vld [vmem:[#allocation9 + $0x6ac] ss:$16 sps:$4 sm:$0xff]  }
 0x6f8   :  { %7674 = vmatpush1.bf16.msra.mxu0 %v16331_v11  ;;  %7913 = vmatprep.mubr.bf16.mxu1 %v18546_v27  ;;  %v16352_v27 = vld [vmem:[#allocation9 + $0x6a8] ss:$16 sps:$4 sm:$0xff]  }
 0x6f9   :  { %7886 = vmatpush1.bf16.msra.mxu1 %v16334_v6  ;;  %7675 = vmatprep.subr.bf16.mxu0 %v16339_v62  ;;  %v16388_v11 = vld [vmem:[#allocation9 + $0x768] ss:$16 sps:$4 sm:$0xff]   ;;  %v16393_v6 = vld [vmem:[#allocation9 + $0x784] ss:$16 sps:$4 sm:$0xff]   ;;  %v16396_v62 = vld [vmem:[#allocation9 + $0x78c] ss:$16 sps:$4 sm:$0xff]  }
 0x6fa   :  { %7887 = vmatprep.subr.bf16.mxu1 %v16342_v47  ;;  %v16391_v47 = vld [vmem:[#allocation9 + $0x780] ss:$16 sps:$4 sm:$0xff]  }
 0x6fc   :  { %7676 = vmatpush1.bf16.msra.mxu0 %v16337_v19  ;;  %v16394_v19 = vld [vmem:[#allocation9 + $0x788] ss:$16 sps:$4 sm:$0xff]  }
 0x6fd   :  { %7888 = vmatpush1.bf16.msra.mxu1 %v16340_v36  ;;  %7677 = vmatprep.subr.bf16.mxu0 %v16345_v3  ;;  %v16399_v36 = vld [vmem:[#allocation9 + $0x7a4] ss:$16 sps:$4 sm:$0xff]   ;;  %v16402_v3 = vld [vmem:[#allocation9 + $0x7ac] ss:$16 sps:$4 sm:$0xff]  }
 0x6fe   :  { %7889 = vmatprep.subr.bf16.mxu1 %v16348_v32  ;;  %v16397_v32 = vld [vmem:[#allocation9 + $0x7a0] ss:$16 sps:$4 sm:$0xff]  }
 0x700   :  { %7678 = vmatpush1.bf16.msra.mxu0 %v16343_v17  ;;  %v16400_v17 = vld [vmem:[#allocation9 + $0x7a8] ss:$16 sps:$4 sm:$0xff]  }
 0x701   :  { %7890 = vmatpush1.bf16.msra.mxu1 %v16346_v45  ;;  %7679 = vmatprep.subr.bf16.mxu0 %v16351_v31  ;;  %v16405_v45 = vld [vmem:[#allocation9 + $0x7c4] ss:$16 sps:$4 sm:$0xff]   ;;  %v16408_v31 = vld [vmem:[#allocation9 + $0x7cc] ss:$16 sps:$4 sm:$0xff]  }
 0x702   :  { %7891 = vmatprep.subr.bf16.mxu1 %v16354_v0  ;;  %v16403_v0 = vld [vmem:[#allocation9 + $0x7c0] ss:$16 sps:$4 sm:$0xff]  }
 0x704   :  { %7680 = vmatpush1.bf16.msra.mxu0 %v16349_v14  ;;  %v16406_v14 = vld [vmem:[#allocation9 + $0x7c8] ss:$16 sps:$4 sm:$0xff]  }
 0x705   :  { %7892 = vmatpush1.bf16.msra.mxu1 %v16352_v27  ;;  %7681 = vmatprep.subr.bf16.mxu0 %v16357_v33  ;;  %v16411_v27 = vld [vmem:[#allocation9 + $0x7e4] ss:$16 sps:$4 sm:$0xff]   ;;  %v16414_v33 = vld [vmem:[#allocation9 + $0x7ec] ss:$16 sps:$4 sm:$0xff]  }
 0x706   :  { %7893 = vmatprep.subr.bf16.mxu1 %v16360_v61  ;;  %v16409_v61 = vld [vmem:[#allocation9 + $0x7e0] ss:$16 sps:$4 sm:$0xff]  }
 0x708   :  { %7682 = vmatpush1.bf16.msra.mxu0 %v16355_v9  ;;  %v16412_v9 = vld [vmem:[#allocation9 + $0x7e8] ss:$16 sps:$4 sm:$0xff]  }
 0x709   :  { %7894 = vmatpush1.bf16.msra.mxu1 %v16358_v43  ;;  %7683 = vmatprep.subr.bf16.mxu0 %v16363_v8  ;;  %v16443_v43 = vld [vmem:[#allocation9 + $0x1084] ss:$16 sps:$4 sm:$0xff]   ;;  %v16446_v8 = vld [vmem:[#allocation9 + $0x108c] ss:$16 sps:$4 sm:$0xff]  }
 0x70a   :  { %7895 = vmatprep.subr.bf16.mxu1 %v16366_v26  ;;  %v16441_v26 = vld [vmem:[#allocation9 + $0x1080] ss:$16 sps:$4 sm:$0xff]  }
 0x70c   :  { %7684 = vmatpush1.bf16.msra.mxu0 %v16361_v1  ;;  %v16444_v1 = vld [vmem:[#allocation9 + $0x1088] ss:$16 sps:$4 sm:$0xff]  }
 0x70d   :  { %7896 = vmatpush1.bf16.msra.mxu1 %v16364_v24  ;;  %7685 = vmatprep.subr.bf16.mxu0 %v16369_v2  ;;  %v16449_v24 = vld [vmem:[#allocation9 + $0x10a4] ss:$16 sps:$4 sm:$0xff]   ;;  %v16452_v2 = vld [vmem:[#allocation9 + $0x10ac] ss:$16 sps:$4 sm:$0xff]  }
 0x70e   :  { %7897 = vmatprep.subr.bf16.mxu1 %v16372_v54  ;;  %v16447_v54 = vld [vmem:[#allocation9 + $0x10a0] ss:$16 sps:$4 sm:$0xff]  }
 0x710   :  { %7686 = vmatpush1.bf16.msra.mxu0 %v16367_v35  ;;  %v16450_v35 = vld [vmem:[#allocation9 + $0x10a8] ss:$16 sps:$4 sm:$0xff]  }
 0x711   :  { %7898 = vmatpush1.bf16.msra.mxu1 %v16370_v30  ;;  %7687 = vmatprep.subr.bf16.mxu0 %v16375_v56  ;;  %v16455_v30 = vld [vmem:[#allocation9 + $0x10c4] ss:$16 sps:$4 sm:$0xff]   ;;  %v16458_v56 = vld [vmem:[#allocation9 + $0x10cc] ss:$16 sps:$4 sm:$0xff]  }
 0x712   :  { %7899 = vmatprep.subr.bf16.mxu1 %v16378_v16  ;;  %v16453_v16 = vld [vmem:[#allocation9 + $0x10c0] ss:$16 sps:$4 sm:$0xff]  }
 0x714   :  { %7688 = vmatpush1.bf16.msra.mxu0 %v16373_v63  ;;  %v16456_v63 = vld [vmem:[#allocation9 + $0x10c8] ss:$16 sps:$4 sm:$0xff]  }
 0x715   :  { %7900 = vmatpush1.bf16.msra.mxu1 %v16376_v23  ;;  %7689 = vmatprep.subr.bf16.mxu0 %v16381_v25  ;;  %v16461_v23 = vld [vmem:[#allocation9 + $0x10e4] ss:$16 sps:$4 sm:$0xff]   ;;  %v16464_v25 = vld [vmem:[#allocation9 + $0x10ec] ss:$16 sps:$4 sm:$0xff]  }
 0x716   :  { %7901 = vmatprep.subr.bf16.mxu1 %v16384_v10  ;;  %v16459_v10 = vld [vmem:[#allocation9 + $0x10e0] ss:$16 sps:$4 sm:$0xff]  }
 0x718   :  { %7690 = vmatpush1.bf16.msra.mxu0 %v16379_v49  ;;  %v16462_v49 = vld [vmem:[#allocation9 + $0x10e8] ss:$16 sps:$4 sm:$0xff]  }
 0x719   :  { %7902 = vmatpush1.bf16.msra.mxu1 %v16382_v37  ;;  %7691 = vmatprep.subr.bf16.mxu0 %v16387_v41  ;;  %v16467_v37 = vld [vmem:[#allocation9 + $0x1104] ss:$16 sps:$4 sm:$0xff]   ;;  %v16470_v41 = vld [vmem:[#allocation9 + $0x110c] ss:$16 sps:$4 sm:$0xff]  }
 0x71a   :  { %7903 = vmatprep.subr.bf16.mxu1 %v16390_v28  ;;  %v16465_v28 = vld [vmem:[#allocation9 + $0x1100] ss:$16 sps:$4 sm:$0xff]  }
 0x71c   :  { %7692 = vmatpush1.bf16.msra.mxu0 %v16385_v38  ;;  %v16468_v38 = vld [vmem:[#allocation9 + $0x1108] ss:$16 sps:$4 sm:$0xff]  }
 0x71d   :  { %7904 = vmatpush1.bf16.msra.mxu1 %v16388_v11  ;;  %7693 = vmatprep.subr.bf16.mxu0 %v16393_v6  ;;  %v16473_v11 = vld [vmem:[#allocation9 + $0x1124] ss:$16 sps:$4 sm:$0xff]   ;;  %v16476_v6 = vld [vmem:[#allocation9 + $0x112c] ss:$16 sps:$4 sm:$0xff]  }
 0x71e   :  { %7905 = vmatprep.subr.bf16.mxu1 %v16396_v62  ;;  %v16471_v62 = vld [vmem:[#allocation9 + $0x1120] ss:$16 sps:$4 sm:$0xff]  }
 0x720   :  { %7694 = vmatpush1.bf16.msra.mxu0 %v16391_v47  ;;  %v16474_v47 = vld [vmem:[#allocation9 + $0x1128] ss:$16 sps:$4 sm:$0xff]  }
 0x721   :  { %7906 = vmatpush1.bf16.msra.mxu1 %v16394_v19  ;;  %7695 = vmatprep.subr.bf16.mxu0 %v16399_v36  ;;  %v16479_v19 = vld [vmem:[#allocation9 + $0x1144] ss:$16 sps:$4 sm:$0xff]   ;;  %v16482_v36 = vld [vmem:[#allocation9 + $0x114c] ss:$16 sps:$4 sm:$0xff]  }
 0x722   :  { %7907 = vmatprep.subr.bf16.mxu1 %v16402_v3  ;;  %v16477_v3 = vld [vmem:[#allocation9 + $0x1140] ss:$16 sps:$4 sm:$0xff]  }
 0x724   :  { %7696 = vmatpush1.bf16.msra.mxu0 %v16397_v32  ;;  %v16480_v32 = vld [vmem:[#allocation9 + $0x1148] ss:$16 sps:$4 sm:$0xff]  }
 0x725   :  { %7908 = vmatpush1.bf16.msra.mxu1 %v16400_v17  ;;  %7697 = vmatprep.subr.bf16.mxu0 %v16405_v45  ;;  %v16485_v17 = vld [vmem:[#allocation9 + $0x1164] ss:$16 sps:$4 sm:$0xff]   ;;  %v16488_v45 = vld [vmem:[#allocation9 + $0x116c] ss:$16 sps:$4 sm:$0xff]  }
 0x726   :  { %7909 = vmatprep.subr.bf16.mxu1 %v16408_v31  ;;  %v16483_v31 = vld [vmem:[#allocation9 + $0x1160] ss:$16 sps:$4 sm:$0xff]  }
 0x728   :  { %7698 = vmatpush1.bf16.msra.mxu0 %v16403_v0  ;;  %v16486_v0 = vld [vmem:[#allocation9 + $0x1168] ss:$16 sps:$4 sm:$0xff]  }
 0x729   :  { %7910 = vmatpush1.bf16.msra.mxu1 %v16406_v14  ;;  %7699 = vmatprep.subr.bf16.mxu0 %v16411_v27  ;;  %v16491_v14 = vld [vmem:[#allocation9 + $0x1184] ss:$16 sps:$4 sm:$0xff]   ;;  %v16494_v27 = vld [vmem:[#allocation9 + $0x118c] ss:$16 sps:$4 sm:$0xff]  }
 0x72a   :  { %7911 = vmatprep.subr.bf16.mxu1 %v16414_v33  ;;  %v16489_v33 = vld [vmem:[#allocation9 + $0x1180] ss:$16 sps:$4 sm:$0xff]  }
 0x72c   :  { %7700 = vmatpush1.bf16.msra.mxu0 %v16409_v61  ;;  %v16492_v61 = vld [vmem:[#allocation9 + $0x1188] ss:$16 sps:$4 sm:$0xff]  }
 0x72d   :  { %7912 = vmatpush1.bf16.msra.mxu1 %v16412_v9  ;;  %7955 = vmatprep.subr.bf16.mxu0 %v18276_v44  ;;  %v19093_v44 = vld [vmem:[#allocation40_spill] sm:$0xff] }
 0x72e   :  { %8008 = vmatprep.subr.bf16.mxu1 %v18272_v48  ;;  %v19091_v48 = vmov 0   ;;  %v16497_v9 = vld [vmem:[#allocation9 + $0x11a4] ss:$16 sps:$4 sm:$0xff]  }
 0x72f   :  { %7702 = vmatmul.mubr.bf16.vlgmr.msra.gmra.mrb[88].mxu0 %v18542_v13 }
 0x730   :  { %7914 = vmatmul.mubr.bf16.vlgmr.msra.gmra.mrb[104].mxu1 %v18542_v13  ;;  %7711 = vmatprep.mubr.bf16.mxu0 %v18554_v22  ;;  %v16435_v13 = vld [vmem:[#allocation9 + $0x1060] ss:$16 sps:$4 sm:$0xff]  }
 0x731   :  { %7923 = vmatprep.mubr.bf16.mxu1 %v18554_v22  ;;  %7956 = vmatpush1.bf16.msra.mxu0 %v18274_v51  ;;  %v19092_v51 = vld [vmem:[#allocation39_spill] sm:$0xff]  ;;  %v16438_v22 = vld [vmem:[#allocation9 + $0x1068] ss:$16 sps:$4 sm:$0xff]  }
 0x732   :  { %8009 = vmatpush1.bf16.msra.mxu1 %v18268_v46  ;;  %7957 = vmatprep.subr.bf16.mxu0 %v18298_v21  ;;  %v16415_v46 = vld [vmem:[#allocation7 + $0x20] sm:$0xff]  }
 0x733   :  { %8010 = vmatprep.subr.bf16.mxu1 %v18294_v4  ;;  %v19095_v4 = vld [vmem:[#allocation38_spill] sm:$0xff] }
 0x734   :  { %v16419_v21 = vld [vmem:[#allocation9 + $0x1004] ss:$16 sps:$4 sm:$0xff]  }
 0x735   :  { %7958 = vmatpush1.bf16.msra.mxu0 %v18296_v12  ;;  %v19096_v12 = vld [vmem:[#allocation43_spill] sm:$0xff] }
 0x736   :  { %8011 = vmatpush1.bf16.msra.mxu1 %v18290_v50  ;;  %7959 = vmatprep.subr.bf16.mxu0 %v18320_v55  ;;  %v19094_v50 = vld [vmem:[#allocation37_spill] sm:$0xff] }
 0x737   :  { %8012 = vmatprep.subr.bf16.mxu1 %v18316_v52  ;;  %7712 = vmatmul.mubr.bf16.gmra.mrb[92].mxu0 %v18550_v15  ;;  %v16422_v52 = vld [vmem:[#allocation9 + $0x100c] ss:$16 sps:$4 sm:$0xff]   ;;  %v16417_v55 = vld [vmem:[#allocation9 + $0x1000] ss:$16 sps:$4 sm:$0xff]  }
 0x738   :  { %7924 = vmatmul.mubr.bf16.gmra.mrb[108].mxu1 %v18550_v15  ;;  %7987 = vmatprep.mubr.bf16.mxu0 %v19091_v48  ;;  %v16416_v15 = vld [vmem:[#allocation7 + $0x28] sm:$0xff]  }
 0x739   :  { %7960 = vmatpush1.bf16.msra.mxu0 %v18318_v39  ;;  %8040 = vmatprep.mubr.bf16.mxu1 %v19091_v48  ;;  %v19098_v39 = vld [vmem:[#allocation41_spill] sm:$0xff] }
 0x73a   :  { %8013 = vmatpush1.bf16.msra.mxu1 %v18312_v58  ;;  %7961 = vmatprep.subr.bf16.mxu0 %v18342_v40  ;;  %v19097_v58 = vld [vmem:[#allocation44_spill] sm:$0xff]  ;;  %v16428_v40 = vld [vmem:[#allocation9 + $0x102c] ss:$16 sps:$4 sm:$0xff]  }
 0x73b   :  { %8014 = vmatprep.subr.bf16.mxu1 %v18338_v18  ;;  %v16420_v18 = vld [vmem:[#allocation9 + $0x1008] ss:$16 sps:$4 sm:$0xff]  }
 0x73d   :  { %7962 = vmatpush1.bf16.msra.mxu0 %v18340_v20  ;;  %v16425_v20 = vld [vmem:[#allocation9 + $0x1024] ss:$16 sps:$4 sm:$0xff]  }
 0x73e   :  { %8015 = vmatpush1.bf16.msra.mxu1 %v18334_v5  ;;  %8061 = vmatprep.subr.bf16.mxu0 %v18392_v60  ;;  %v19099_v5 = vld [vmem:[#allocation42_spill] sm:$0xff] }
 0x73f   :  { %8114 = vmatprep.subr.bf16.mxu1 %v18394_v7  ;;  %v16431_v60 = vld [vmem:[#allocation9 + $0x1044] ss:$16 sps:$4 sm:$0xff]   ;;  %v16434_v7 = vld [vmem:[#allocation9 + $0x104c] ss:$16 sps:$4 sm:$0xff]  }
 0x740   :  { %14497 = vmatmul.mubr.msk.bf16.vlgmr.msra.gmra.mrb[96].mxu0 %vm1230_vm0, %v16415_v46 }
 0x741   :  { %14499 = vmatmul.mubr.msk.bf16.vlgmr.msra.gmra.mrb[112].mxu1 %vm1230_vm0, %v16415_v46  ;;  %8062 = vmatpush1.bf16.msra.mxu0 %v18388_v57  ;;  %v16423_v57 = vld [vmem:[#allocation9 + $0x1020] ss:$16 sps:$4 sm:$0xff]  }
 0x742   :  { %8115 = vmatpush1.bf16.msra.mxu1 %v18390_v59  ;;  %8063 = vmatprep.subr.bf16.mxu0 %v18415_v34  ;;  %v16426_v59 = vld [vmem:[#allocation9 + $0x1028] ss:$16 sps:$4 sm:$0xff]   ;;  %v16437_v34 = vld [vmem:[#allocation9 + $0x1064] ss:$16 sps:$4 sm:$0xff]  }
 0x743   :  { %8116 = vmatprep.subr.bf16.mxu1 %v18417_v53  ;;  %7997 = vmatprep.mubr.bf16.mxu0 %v19091_v48  ;;  %v16440_v53 = vld [vmem:[#allocation9 + $0x106c] ss:$16 sps:$4 sm:$0xff]  }
 0x744   :  { %8050 = vmatprep.mubr.bf16.mxu1 %v19091_v48 }
 0x745   :  { %8064 = vmatpush1.bf16.msra.mxu0 %v18411_v42  ;;  %v16429_v42 = vld [vmem:[#allocation9 + $0x1040] ss:$16 sps:$4 sm:$0xff]  }
 0x746   :  { %8117 = vmatpush1.bf16.msra.mxu1 %v18413_v29  ;;  %8065 = vmatprep.subr.bf16.mxu0 %v19092_v51  ;;  %v16432_v29 = vld [vmem:[#allocation9 + $0x1048] ss:$16 sps:$4 sm:$0xff]  }
 0x747   :  { %8118 = vmatprep.subr.bf16.mxu1 %v19093_v44  ;;  %v16498_v51 = vld [vmem:[#allocation9 + $0x11a8] ss:$16 sps:$4 sm:$0xff]   ;;  %v16503_v44 = vld [vmem:[#allocation9 + $0x11c4] ss:$16 sps:$4 sm:$0xff]  }
 0x748   :  { %14498 = vmatmul.mubr.msk.bf16.gmra.mrb[100].mxu0 %vm1230_vm0, %v16416_v15 }
 0x749   :  { %8066 = vmatpush1.bf16.msra.mxu0 %v19094_v50  ;;  %14500 = vmatmul.mubr.msk.bf16.gmra.mrb[116].mxu1 %vm1230_vm0, %v16416_v15  ;;  %v16506_v50 = vld [vmem:[#allocation9 + $0x11cc] ss:$16 sps:$4 sm:$0xff]  }
 0x74a   :  { %8119 = vmatpush1.bf16.msra.mxu1 %v19095_v4  ;;  %8067 = vmatprep.subr.bf16.mxu0 %v19096_v12  ;;  %v16501_v4 = vld [vmem:[#allocation9 + $0x11c0] ss:$16 sps:$4 sm:$0xff]   ;;  %v16504_v12 = vld [vmem:[#allocation9 + $0x11c8] ss:$16 sps:$4 sm:$0xff]  }
 0x74b   :  { %8120 = vmatprep.subr.bf16.mxu1 %v19097_v58  ;;  %8093 = vmatprep.mubr.bf16.mxu0 %v19091_v48  ;;  %v16512_v58 = vld [vmem:[#allocation9 + $0x11ec] ss:$16 sps:$4 sm:$0xff]  }
 0x74c   :  { %8146 = vmatprep.mubr.bf16.mxu1 %v19091_v48 }
 0x74d   :  { %8068 = vmatpush1.bf16.msra.mxu0 %v19098_v39  ;;  %v16510_v39 = vld [vmem:[#allocation9 + $0x11e8] ss:$16 sps:$4 sm:$0xff]  }
 0x74e   :  { %8121 = vmatpush1.bf16.msra.mxu1 %v19099_v5  ;;  %9720 = vmatprep.subr.bf16.mxu0 %v16419_v21  ;;  %v16509_v21 = vld [vmem:[#allocation9 + $0x11e4] ss:$16 sps:$4 sm:$0xff]   ;;  %v16518_v5 = vld [vmem:[#allocation9 + $0x120c] ss:$16 sps:$4 sm:$0xff]  }
 0x74f   :  { %9932 = vmatprep.subr.bf16.mxu1 %v16422_v52  ;;  %v16507_v52 = vld [vmem:[#allocation9 + $0x11e0] ss:$16 sps:$4 sm:$0xff]  }
 0x750   :  { %14501 = vmatmul.mubr.msk.bf16.vlgmr.msra.gmra.mrb[104].mxu0 %vm1230_vm0, %v16415_v46 }
 0x751   :  { %14503 = vmatmul.mubr.msk.bf16.vlgmr.msra.gmra.mrb[120].mxu1 %vm1230_vm0, %v16415_v46  ;;  %9721 = vmatpush1.bf16.msra.mxu0 %v16417_v55  ;;  %v16500_v46 = vld [vmem:[#allocation9 + $0x11ac] ss:$16 sps:$4 sm:$0xff]   ;;  %v16515_v55 = vld [vmem:[#allocation9 + $0x1204] ss:$16 sps:$4 sm:$0xff]  }
 0x752   :  { %9933 = vmatpush1.bf16.msra.mxu1 %v16420_v18  ;;  %9722 = vmatprep.subr.bf16.mxu0 %v16425_v20 }
 0x753   :  { %9934 = vmatprep.subr.bf16.mxu1 %v16428_v40  ;;  %8103 = vmatprep.mubr.bf16.mxu0 %v19091_v48 }
 0x754   :  { %8156 = vmatprep.mubr.bf16.mxu1 %v19091_v48 }
 0x755   :  { %9723 = vmatpush1.bf16.msra.mxu0 %v16423_v57 }
 0x756   :  { %9935 = vmatpush1.bf16.msra.mxu1 %v16426_v59  ;;  %9724 = vmatprep.subr.bf16.mxu0 %v16431_v60 }
 0x757   :  { %9936 = vmatprep.subr.bf16.mxu1 %v16434_v7 }
 0x758   :  { %14502 = vmatmul.mubr.msk.bf16.gmra.mrb[108].mxu0 %vm1230_vm0, %v16416_v15 }
 0x759   :  { %9725 = vmatpush1.bf16.msra.mxu0 %v16429_v42  ;;  %14504 = vmatmul.mubr.msk.bf16.gmra.mrb[124].mxu1 %vm1230_vm0, %v16416_v15  ;;  %v16495_v15 = vld [vmem:[#allocation9 + $0x11a0] ss:$16 sps:$4 sm:$0xff]  }
 0x75a   :  { %9937 = vmatpush1.bf16.msra.mxu1 %v16432_v29  ;;  %9726 = vmatprep.subr.bf16.mxu0 %v16437_v34  ;;  %v16513_v34 = vld [vmem:[#allocation9 + $0x1200] ss:$16 sps:$4 sm:$0xff]  }
 0x75b   :  { %9938 = vmatprep.subr.bf16.mxu1 %v16440_v53  ;;  %v16516_v53 = vld [vmem:[#allocation9 + $0x1208] ss:$16 sps:$4 sm:$0xff]  }
 0x75d   :  { %9727 = vmatpush1.bf16.msra.mxu0 %v16435_v13 }
 0x75e   :  { %9939 = vmatpush1.bf16.msra.mxu1 %v16438_v22  ;;  %9728 = vmatprep.subr.bf16.mxu0 %v16443_v43  ;;  %v16521_v43 = vld [vmem:[#allocation9 + $0x1224] ss:$16 sps:$4 sm:$0xff]  }
 0x75f   :  { %9940 = vmatprep.subr.bf16.mxu1 %v16446_v8  ;;  %v16524_v8 = vld [vmem:[#allocation9 + $0x122c] ss:$16 sps:$4 sm:$0xff]  }
 0x761   :  { %9729 = vmatpush1.bf16.msra.mxu0 %v16441_v26 }
 0x762   :  { %9941 = vmatpush1.bf16.msra.mxu1 %v16444_v1  ;;  %9730 = vmatprep.subr.bf16.mxu0 %v16449_v24  ;;  %v16519_v1 = vld [vmem:[#allocation9 + $0x1220] ss:$16 sps:$4 sm:$0xff]   ;;  %v16522_v24 = vld [vmem:[#allocation9 + $0x1228] ss:$16 sps:$4 sm:$0xff]  }
 0x763   :  { %9942 = vmatprep.subr.bf16.mxu1 %v16452_v2 }
 0x765   :  { %9731 = vmatpush1.bf16.msra.mxu0 %v16447_v54  ;;  %v16527_v54 = vld [vmem:[#allocation9 + $0x1244] ss:$16 sps:$4 sm:$0xff]  }
 0x766   :  { %9943 = vmatpush1.bf16.msra.mxu1 %v16450_v35  ;;  %9732 = vmatprep.subr.bf16.mxu0 %v16455_v30  ;;  %v16530_v35 = vld [vmem:[#allocation9 + $0x124c] ss:$16 sps:$4 sm:$0xff]  }
 0x767   :  { %9944 = vmatprep.subr.bf16.mxu1 %v16458_v56 }
 0x769   :  { %9733 = vmatpush1.bf16.msra.mxu0 %v16453_v16 }
 0x76a   :  { %9945 = vmatpush1.bf16.msra.mxu1 %v16456_v63  ;;  %9734 = vmatprep.subr.bf16.mxu0 %v16461_v23 }
 0x76b   :  { %9946 = vmatprep.subr.bf16.mxu1 %v16464_v25 }
 0x76d   :  { %9735 = vmatpush1.bf16.msra.mxu0 %v16459_v10 }
 0x76e   :  { %9947 = vmatpush1.bf16.msra.mxu1 %v16462_v49  ;;  %9736 = vmatprep.subr.bf16.mxu0 %v16467_v37  ;;  %v16525_v49 = vld [vmem:[#allocation9 + $0x1240] ss:$16 sps:$4 sm:$0xff]   ;;  %v16528_v37 = vld [vmem:[#allocation9 + $0x1248] ss:$16 sps:$4 sm:$0xff]  }
 0x76f   :  { %9948 = vmatprep.subr.bf16.mxu1 %v16470_v41 }
 0x771   :  { %9737 = vmatpush1.bf16.msra.mxu0 %v16465_v28 }
 0x772   :  { %9949 = vmatpush1.bf16.msra.mxu1 %v16468_v38  ;;  %9738 = vmatprep.subr.bf16.mxu0 %v16473_v11  ;;  %v16533_v11 = vld [vmem:[#allocation9 + $0x1264] ss:$16 sps:$4 sm:$0xff]  }
 0x773   :  { %9950 = vmatprep.subr.bf16.mxu1 %v16476_v6  ;;  %v16536_v6 = vld [vmem:[#allocation9 + $0x126c] ss:$16 sps:$4 sm:$0xff]  }
 0x775   :  { %9739 = vmatpush1.bf16.msra.mxu0 %v16471_v62 }
 0x776   :  { %9951 = vmatpush1.bf16.msra.mxu1 %v16474_v47  ;;  %9740 = vmatprep.subr.bf16.mxu0 %v16479_v19  ;;  %v16531_v47 = vld [vmem:[#allocation9 + $0x1260] ss:$16 sps:$4 sm:$0xff]   ;;  %v16534_v19 = vld [vmem:[#allocation9 + $0x1268] ss:$16 sps:$4 sm:$0xff]  }
 0x777   :  { %9952 = vmatprep.subr.bf16.mxu1 %v16482_v36 }
 0x779   :  { %9741 = vmatpush1.bf16.msra.mxu0 %v16477_v3  ;;  %v16539_v3 = vld [vmem:[#allocation9 + $0x1284] ss:$16 sps:$4 sm:$0xff]  }
 0x77a   :  { %9953 = vmatpush1.bf16.msra.mxu1 %v16480_v32  ;;  %9742 = vmatprep.subr.bf16.mxu0 %v16485_v17  ;;  %v16542_v32 = vld [vmem:[#allocation9 + $0x128c] ss:$16 sps:$4 sm:$0xff]  }
 0x77b   :  { %9954 = vmatprep.subr.bf16.mxu1 %v16488_v45 }
 0x77d   :  { %9743 = vmatpush1.bf16.msra.mxu0 %v16483_v31 }
 0x77e   :  { %9955 = vmatpush1.bf16.msra.mxu1 %v16486_v0  ;;  %9744 = vmatprep.subr.bf16.mxu0 %v16491_v14  ;;  %v16537_v14 = vld [vmem:[#allocation9 + $0x1280] ss:$16 sps:$4 sm:$0xff]  }
 0x77f   :  { %9956 = vmatprep.subr.bf16.mxu1 %v16494_v27  ;;  %v16540_v27 = vld [vmem:[#allocation9 + $0x1288] ss:$16 sps:$4 sm:$0xff]  }
 0x781   :  { %9745 = vmatpush1.bf16.msra.mxu0 %v16489_v33 }
 0x782   :  { %9957 = vmatpush1.bf16.msra.mxu1 %v16492_v61  ;;  %9746 = vmatprep.subr.bf16.mxu0 %v16497_v9  ;;  %v16545_v61 = vld [vmem:[#allocation9 + $0x12a4] ss:$16 sps:$4 sm:$0xff]   ;;  %v16548_v9 = vld [vmem:[#allocation9 + $0x12ac] ss:$16 sps:$4 sm:$0xff]  }
 0x783   :  { %9958 = vmatprep.subr.bf16.mxu1 %v16500_v46  ;;  %v16543_v46 = vld [vmem:[#allocation9 + $0x12a0] ss:$16 sps:$4 sm:$0xff]  }
 0x785   :  { %9747 = vmatpush1.bf16.msra.mxu0 %v16495_v15  ;;  %v16546_v15 = vld [vmem:[#allocation9 + $0x12a8] ss:$16 sps:$4 sm:$0xff]  }
 0x786   :  { %9959 = vmatpush1.bf16.msra.mxu1 %v16498_v51  ;;  %9748 = vmatprep.subr.bf16.mxu0 %v16503_v44  ;;  %v16551_v51 = vld [vmem:[#allocation9 + $0x12c4] ss:$16 sps:$4 sm:$0xff]   ;;  %v16554_v44 = vld [vmem:[#allocation9 + $0x12cc] ss:$16 sps:$4 sm:$0xff]  }
 0x787   :  { %9960 = vmatprep.subr.bf16.mxu1 %v16506_v50  ;;  %v16549_v50 = vld [vmem:[#allocation9 + $0x12c0] ss:$16 sps:$4 sm:$0xff]  }
 0x789   :  { %9749 = vmatpush1.bf16.msra.mxu0 %v16501_v4  ;;  %v16552_v4 = vld [vmem:[#allocation9 + $0x12c8] ss:$16 sps:$4 sm:$0xff]  }
 0x78a   :  { %9961 = vmatpush1.bf16.msra.mxu1 %v16504_v12  ;;  %9750 = vmatprep.subr.bf16.mxu0 %v16509_v21  ;;  %v16557_v12 = vld [vmem:[#allocation9 + $0x12e4] ss:$16 sps:$4 sm:$0xff]   ;;  %v16560_v21 = vld [vmem:[#allocation9 + $0x12ec] ss:$16 sps:$4 sm:$0xff]  }
 0x78b   :  { %9962 = vmatprep.subr.bf16.mxu1 %v16512_v58  ;;  %v16555_v58 = vld [vmem:[#allocation9 + $0x12e0] ss:$16 sps:$4 sm:$0xff]  }
 0x78d   :  { %9751 = vmatpush1.bf16.msra.mxu0 %v16507_v52  ;;  %v16558_v52 = vld [vmem:[#allocation9 + $0x12e8] ss:$16 sps:$4 sm:$0xff]  }
 0x78e   :  { %9963 = vmatpush1.bf16.msra.mxu1 %v16510_v39  ;;  %9773 = vmatprep.subr.bf16.mxu0 %v16515_v55  ;;  %v16563_v39 = vld [vmem:[#allocation9 + $0x1304] ss:$16 sps:$4 sm:$0xff]   ;;  %v16566_v55 = vld [vmem:[#allocation9 + $0x130c] ss:$16 sps:$4 sm:$0xff]  }
 0x78f   :  { %9985 = vmatprep.subr.bf16.mxu1 %v16518_v5  ;;  %v16561_v5 = vld [vmem:[#allocation9 + $0x1300] ss:$16 sps:$4 sm:$0xff]  }
 0x813   :  { %v7989_v18 = vpop.f32.mrb[96].mxu0 }
 0x814   :  { %v7991_v20 = vpop.f32.mrb[97].mxu0  ;;  %v8042_v40 = vpop.f32.mrb[112].mxu1 }
 0x815   :  { %v7993_v57 = vpop.f32.mrb[98].mxu0  ;;  %v8044_v59 = vpop.f32.mrb[113].mxu1 }
 0x816   :  { %v8167_v60 = vpack.c.bf16 %v7993_v57, %v7989_v18  ;;  %v7995_v7 = vpop.f32.mrb[99].mxu0  ;;  %v8046_v42 = vpop.f32.mrb[114].mxu1  ;;  %v16564_v18 = vld [vmem:[#allocation9 + $0x1308] ss:$16 sps:$4 sm:$0xff]   ;;  %v16567_v57 = vld [vmem:[#allocation9 + $0x1320] ss:$16 sps:$4 sm:$0xff]  }
 0x817   :  { %v8168_v29 = vpack.c.bf16 %v7995_v7, %v7991_v20  ;;  %v18680_v13 = vpack.c.bf16 %v8046_v42, %v8042_v40  ;;  %v8048_v22 = vpop.f32.mrb[115].mxu1  ;;  %v16569_v20 = vld [vmem:[#allocation9 + $0x1324] ss:$16 sps:$4 sm:$0xff]   ;;  %v16572_v40 = vld [vmem:[#allocation9 + $0x132c] ss:$16 sps:$4 sm:$0xff]  }
 0x818   :  { %v8170_v26 = vpack.c.bf16 %v8048_v22, %v8044_v59  ;;  %v16570_v59 = vld [vmem:[#allocation9 + $0x1328] ss:$16 sps:$4 sm:$0xff]   ;;  %v16578_v7 = vld [vmem:[#allocation9 + $0x134c] ss:$16 sps:$4 sm:$0xff]   ;;  %v16573_v42 = vld [vmem:[#allocation9 + $0x1340] ss:$16 sps:$4 sm:$0xff]  }
 0x819   :  { %9752 = vmatprep.mubr.bf16.mxu0 %v8168_v29  ;;  %9964 = vmatprep.mubr.bf16.mxu1 %v8168_v29  ;;  %v16576_v29 = vld [vmem:[#allocation9 + $0x1348] ss:$16 sps:$4 sm:$0xff]   ;;  %v16579_v22 = vld [vmem:[#allocation9 + $0x1360] ss:$16 sps:$4 sm:$0xff]  }
 0x81a   :  { %9753 = vmatmul.mubr.bf16.vlgmr.msra.gmra.mrb[88].mxu0 %v8167_v60  ;;  %9965 = vmatmul.mubr.bf16.vlgmr.msra.gmra.mrb[104].mxu1 %v8167_v60  ;;  %v16575_v60 = vld [vmem:[#allocation9 + $0x1344] ss:$16 sps:$4 sm:$0xff]  }
 0x81b   :  { %9774 = vmatpush1.bf16.msra.mxu0 %v16513_v34  ;;  %9986 = vmatpush1.bf16.msra.mxu1 %v16516_v53  ;;  %v7999_v2 = vpop.f32.mrb[100].mxu0  ;;  %v16581_v34 = vld [vmem:[#allocation9 + $0x1364] ss:$16 sps:$4 sm:$0xff]   ;;  %v16584_v53 = vld [vmem:[#allocation9 + $0x136c] ss:$16 sps:$4 sm:$0xff]  }
 0x81c   :  { %9775 = vmatprep.subr.bf16.mxu0 %v16521_v43  ;;  %9987 = vmatprep.subr.bf16.mxu1 %v16524_v8  ;;  %v8001_v30 = vpop.f32.mrb[101].mxu0  ;;  %v8052_v56 = vpop.f32.mrb[116].mxu1  ;;  %v16582_v43 = vld [vmem:[#allocation9 + $0x1368] ss:$16 sps:$4 sm:$0xff]   ;;  %v16587_v8 = vld [vmem:[#allocation9 + $0x1384] ss:$16 sps:$4 sm:$0xff]  }
 0x81d   :  { %v8003_v16 = vpop.f32.mrb[102].mxu0  ;;  %v8054_v63 = vpop.f32.mrb[117].mxu1 }
 0x81e   :  { %v8175_v23 = vpack.c.bf16 %v8003_v16, %v7999_v2  ;;  %v8005_v25 = vpop.f32.mrb[103].mxu0  ;;  %v8056_v10 = vpop.f32.mrb[118].mxu1  ;;  %v16588_v2 = vld [vmem:[#allocation9 + $0x1388] ss:$16 sps:$4 sm:$0xff]  }
 0x81f   :  { %9776 = vmatpush1.bf16.msra.mxu0 %v16519_v1  ;;  %9988 = vmatpush1.bf16.msra.mxu1 %v16522_v24  ;;  %v8176_v41 = vpack.c.bf16 %v8005_v25, %v8001_v30  ;;  %v18682_v28 = vpack.c.bf16 %v8056_v10, %v8052_v56  ;;  %v8058_v38 = vpop.f32.mrb[119].mxu1  ;;  %v16585_v24 = vld [vmem:[#allocation9 + $0x1380] ss:$16 sps:$4 sm:$0xff]   ;;  %v16596_v30 = vld [vmem:[#allocation9 + $0x13ac] ss:$16 sps:$4 sm:$0xff]  }
 0x820   :  { %9777 = vmatprep.subr.bf16.mxu0 %v16527_v54  ;;  %9989 = vmatprep.subr.bf16.mxu1 %v16530_v35  ;;  %v18684_v62 = vpack.c.bf16 %v8058_v38, %v8054_v63  ;;  %v16593_v35 = vld [vmem:[#allocation9 + $0x13a4] ss:$16 sps:$4 sm:$0xff]   ;;  %v16591_v25 = vld [vmem:[#allocation9 + $0x13a0] ss:$16 sps:$4 sm:$0xff]   ;;  %v16594_v10 = vld [vmem:[#allocation9 + $0x13a8] ss:$16 sps:$4 sm:$0xff]  }
 0x821   :  { %9762 = vmatprep.mubr.bf16.mxu0 %v8176_v41  ;;  %9974 = vmatprep.mubr.bf16.mxu1 %v8176_v41  ;;  %v16597_v41 = vld [vmem:[#allocation9 + $0x13c0] ss:$16 sps:$4 sm:$0xff]   ;;  %v16600_v38 = vld [vmem:[#allocation9 + $0x13c8] ss:$16 sps:$4 sm:$0xff]  }
 0x822   :  { %9763 = vmatmul.mubr.bf16.gmra.mrb[92].mxu0 %v8175_v23  ;;  %9975 = vmatmul.mubr.bf16.gmra.mrb[108].mxu1 %v8175_v23 }
 0x823   :  { %9778 = vmatpush1.bf16.msra.mxu0 %v16525_v49  ;;  %9990 = vmatpush1.bf16.msra.mxu1 %v16528_v37  ;;  %v8095_v36 = vpop.f32.mrb[104].mxu0  ;;  %v16599_v49 = vld [vmem:[#allocation9 + $0x13c4] ss:$16 sps:$4 sm:$0xff]   ;;  %v16602_v37 = vld [vmem:[#allocation9 + $0x13cc] ss:$16 sps:$4 sm:$0xff]  }
 0x824   :  { %9779 = vmatprep.subr.bf16.mxu0 %v16533_v11  ;;  %9991 = vmatprep.subr.bf16.mxu1 %v16536_v6  ;;  %v8097_v17 = vpop.f32.mrb[105].mxu0  ;;  %v8148_v11 = vpop.f32.mrb[120].mxu1  ;;  %v16605_v6 = vld [vmem:[#allocation9 + $0x13e4] ss:$16 sps:$4 sm:$0xff]  }
 0x825   :  { %9805 = vmatprep.mubr.bf16.mxu0 %v8170_v26  ;;  %10017 = vmatprep.mubr.bf16.mxu1 %v8170_v26  ;;  %v8099_v45 = vpop.f32.mrb[106].mxu0  ;;  %v16590_v26 = vld [vmem:[#allocation9 + $0x138c] ss:$16 sps:$4 sm:$0xff]  }
 0x826   :  { %v18686_v31 = vpack.c.bf16 %v8099_v45, %v8095_v36  ;;  %v8101_v0 = vpop.f32.mrb[107].mxu0  ;;  %v16606_v45 = vld [vmem:[#allocation9 + $0x13e8] ss:$16 sps:$4 sm:$0xff]  }
 0x827   :  { %9780 = vmatpush1.bf16.msra.mxu0 %v16531_v47  ;;  %9992 = vmatpush1.bf16.msra.mxu1 %v16534_v19  ;;  %v18688_v33 = vpack.c.bf16 %v8101_v0, %v8097_v17  ;;  %v16608_v47 = vld [vmem:[#allocation9 + $0x13ec] ss:$16 sps:$4 sm:$0xff]   ;;  %v8150_v19 = vpop.f32.mrb[121].mxu1  ;;  %v16603_v17 = vld [vmem:[#allocation9 + $0x13e0] ss:$16 sps:$4 sm:$0xff]  }
 0x828   :  { %9781 = vmatprep.subr.bf16.mxu0 %v16539_v3  ;;  %9993 = vmatprep.subr.bf16.mxu1 %v16542_v32  ;;  %v8152_v36 = vpop.f32.mrb[122].mxu1 }
 0x829   :  { %v18694_v3 = vpack.c.bf16 %v8152_v36, %v8148_v11  ;;  %v8154_v32 = vpop.f32.mrb[123].mxu1  ;;  %v16677_v11 = vld [vmem:[#allocation9 + $0x1564] ss:$16 sps:$4 sm:$0xff]  }
 0x82a   :  { %v18696_v0 = vpack.c.bf16 %v8154_v32, %v8150_v19  ;;  %v16678_v19 = vld [vmem:[#allocation9 + $0x1568] ss:$16 sps:$4 sm:$0xff]   ;;  %v16683_v36 = vld [vmem:[#allocation9 + $0x1584] ss:$16 sps:$4 sm:$0xff]   ;;  %v16686_v32 = vld [vmem:[#allocation9 + $0x158c] ss:$16 sps:$4 sm:$0xff]  }
 0x82b   :  { %9782 = vmatpush1.bf16.msra.mxu0 %v16537_v14  ;;  %9994 = vmatpush1.bf16.msra.mxu1 %v16540_v27  ;;  %v8105_v1 = vpop.f32.mrb[108].mxu0  ;;  %v16611_v14 = vld [vmem:[#allocation9 + $0x1404] ss:$16 sps:$4 sm:$0xff]   ;;  %v16614_v27 = vld [vmem:[#allocation9 + $0x140c] ss:$16 sps:$4 sm:$0xff]  }
 0x82c   :  { %9783 = vmatprep.subr.bf16.mxu0 %v16545_v61  ;;  %9995 = vmatprep.subr.bf16.mxu1 %v16548_v9  ;;  %v8107_v54 = vpop.f32.mrb[109].mxu0  ;;  %v16609_v61 = vld [vmem:[#allocation9 + $0x1400] ss:$16 sps:$4 sm:$0xff]   ;;  %v16612_v9 = vld [vmem:[#allocation9 + $0x1408] ss:$16 sps:$4 sm:$0xff]  }
 0x82d   :  { %v8109_v56 = vpop.f32.mrb[110].mxu0 }
 0x82e   :  { %v18690_v16 = vpack.c.bf16 %v8109_v56, %v8105_v1  ;;  %v8111_v63 = vpop.f32.mrb[111].mxu0  ;;  %v16651_v1 = vld [vmem:[#allocation9 + $0x14e0] ss:$16 sps:$4 sm:$0xff]   ;;  %v16665_v56 = vld [vmem:[#allocation9 + $0x1524] ss:$16 sps:$4 sm:$0xff]  }
 0x82f   :  { %9784 = vmatpush1.bf16.msra.mxu0 %v16543_v46  ;;  %9996 = vmatpush1.bf16.msra.mxu1 %v16546_v15  ;;  %v18692_v23 = vpack.c.bf16 %v8111_v63, %v8107_v54  ;;  %v8158_v46 = vpop.f32.mrb[124].mxu1  ;;  %v16617_v15 = vld [vmem:[#allocation9 + $0x1424] ss:$16 sps:$4 sm:$0xff]   ;;  %v16662_v54 = vld [vmem:[#allocation9 + $0x150c] ss:$16 sps:$4 sm:$0xff]  }
 0x830   :  { %9785 = vmatprep.subr.bf16.mxu0 %v16551_v51  ;;  %9997 = vmatprep.subr.bf16.mxu1 %v16554_v44  ;;  %v16620_v51 = vld [vmem:[#allocation9 + $0x142c] ss:$16 sps:$4 sm:$0xff]   ;;  %v8160_v44 = vpop.f32.mrb[125].mxu1 }
 0x831   :  { %v16668_v63 = vld [vmem:[#allocation9 + $0x152c] ss:$16 sps:$4 sm:$0xff]  }
 0x833   :  { %9786 = vmatpush1.bf16.msra.mxu0 %v16549_v50  ;;  %9998 = vmatpush1.bf16.msra.mxu1 %v16552_v4  ;;  %v8162_v50 = vpop.f32.mrb[126].mxu1 }
 0x834   :  { %9787 = vmatprep.subr.bf16.mxu0 %v16557_v12  ;;  %9999 = vmatprep.subr.bf16.mxu1 %v16560_v21  ;;  %v18700_v4 = vpack.c.bf16 %v8162_v50, %v8158_v46  ;;  %v8164_v12 = vpop.f32.mrb[127].mxu1  ;;  %v16615_v21 = vld [vmem:[#allocation9 + $0x1420] ss:$16 sps:$4 sm:$0xff]   ;;  %v16695_v46 = vld [vmem:[#allocation9 + $0x15c4] ss:$16 sps:$4 sm:$0xff]  }
 0x835   :  { %v16701_v50 = vld [vmem:[#allocation9 + $0x15e4] ss:$16 sps:$4 sm:$0xff]  }
 0x837   :  { %9788 = vmatpush1.bf16.msra.mxu0 %v16555_v58  ;;  %10000 = vmatpush1.bf16.msra.mxu1 %v16558_v52  ;;  %v16618_v58 = vld [vmem:[#allocation9 + $0x1428] ss:$16 sps:$4 sm:$0xff]   ;;  %v18702_v52 = vpack.c.bf16 %v8164_v12, %v8160_v44  ;;  %v16704_v12 = vld [vmem:[#allocation9 + $0x15ec] ss:$16 sps:$4 sm:$0xff]  }
 0x838   :  { %9789 = vmatprep.subr.bf16.mxu0 %v16563_v39  ;;  %10001 = vmatprep.subr.bf16.mxu1 %v16566_v55  ;;  %v16623_v39 = vld [vmem:[#allocation9 + $0x1444] ss:$16 sps:$4 sm:$0xff]   ;;  %v16626_v55 = vld [vmem:[#allocation9 + $0x144c] ss:$16 sps:$4 sm:$0xff]   ;;  %v16696_v44 = vld [vmem:[#allocation9 + $0x15c8] ss:$16 sps:$4 sm:$0xff]  }
 0x83b   :  { %9790 = vmatpush1.bf16.msra.mxu0 %v16561_v5  ;;  %10002 = vmatpush1.bf16.msra.mxu1 %v16564_v18  ;;  %v16624_v5 = vld [vmem:[#allocation9 + $0x1448] ss:$16 sps:$4 sm:$0xff]   ;;  %v16629_v18 = vld [vmem:[#allocation9 + $0x1464] ss:$16 sps:$4 sm:$0xff]  }
 0x83c   :  { %9791 = vmatprep.subr.bf16.mxu0 %v16569_v20  ;;  %10003 = vmatprep.subr.bf16.mxu1 %v16572_v40  ;;  %v16632_v20 = vld [vmem:[#allocation9 + $0x146c] ss:$16 sps:$4 sm:$0xff]   ;;  %v16627_v40 = vld [vmem:[#allocation9 + $0x1460] ss:$16 sps:$4 sm:$0xff]  }
 0x83f   :  { %9792 = vmatpush1.bf16.msra.mxu0 %v16567_v57  ;;  %10004 = vmatpush1.bf16.msra.mxu1 %v16570_v59  ;;  %v16630_v57 = vld [vmem:[#allocation9 + $0x1468] ss:$16 sps:$4 sm:$0xff]   ;;  %v16635_v59 = vld [vmem:[#allocation9 + $0x1484] ss:$16 sps:$4 sm:$0xff]  }
 0x840   :  { %9793 = vmatprep.subr.bf16.mxu0 %v16575_v60  ;;  %10005 = vmatprep.subr.bf16.mxu1 %v16578_v7  ;;  %v16633_v60 = vld [vmem:[#allocation9 + $0x1480] ss:$16 sps:$4 sm:$0xff]   ;;  %v16636_v7 = vld [vmem:[#allocation9 + $0x1488] ss:$16 sps:$4 sm:$0xff]  }
 0x843   :  { %9794 = vmatpush1.bf16.msra.mxu0 %v16573_v42  ;;  %10006 = vmatpush1.bf16.msra.mxu1 %v16576_v29  ;;  %v16641_v42 = vld [vmem:[#allocation9 + $0x14a4] ss:$16 sps:$4 sm:$0xff]   ;;  %v16639_v29 = vld [vmem:[#allocation9 + $0x14a0] ss:$16 sps:$4 sm:$0xff]  }
 0x844   :  { %9795 = vmatprep.subr.bf16.mxu0 %v16581_v34  ;;  %10007 = vmatprep.subr.bf16.mxu1 %v16584_v53  ;;  %v16642_v34 = vld [vmem:[#allocation9 + $0x14a8] ss:$16 sps:$4 sm:$0xff]   ;;  %v16647_v53 = vld [vmem:[#allocation9 + $0x14c4] ss:$16 sps:$4 sm:$0xff]  }
 0x847   :  { %9796 = vmatpush1.bf16.msra.mxu0 %v16579_v22  ;;  %10008 = vmatpush1.bf16.msra.mxu1 %v16582_v43  ;;  %v16650_v22 = vld [vmem:[#allocation9 + $0x14cc] ss:$16 sps:$4 sm:$0xff]   ;;  %v16645_v43 = vld [vmem:[#allocation9 + $0x14c0] ss:$16 sps:$4 sm:$0xff]  }
 0x848   :  { %9797 = vmatprep.subr.bf16.mxu0 %v16587_v8  ;;  %10009 = vmatprep.subr.bf16.mxu1 %v16590_v26  ;;  %v16653_v8 = vld [vmem:[#allocation9 + $0x14e4] ss:$16 sps:$4 sm:$0xff]   ;;  %v16656_v26 = vld [vmem:[#allocation9 + $0x14ec] ss:$16 sps:$4 sm:$0xff]  }
 0x84b   :  { %9798 = vmatpush1.bf16.msra.mxu0 %v16585_v24  ;;  %10010 = vmatpush1.bf16.msra.mxu1 %v16588_v2  ;;  %v16654_v24 = vld [vmem:[#allocation9 + $0x14e8] ss:$16 sps:$4 sm:$0xff]   ;;  %v16659_v2 = vld [vmem:[#allocation9 + $0x1504] ss:$16 sps:$4 sm:$0xff]  }
 0x84c   :  { %9799 = vmatprep.subr.bf16.mxu0 %v16593_v35  ;;  %10011 = vmatprep.subr.bf16.mxu1 %v16596_v30  ;;  %v16657_v35 = vld [vmem:[#allocation9 + $0x1500] ss:$16 sps:$4 sm:$0xff]   ;;  %v16660_v30 = vld [vmem:[#allocation9 + $0x1508] ss:$16 sps:$4 sm:$0xff]  }
 0x84f   :  { %9800 = vmatpush1.bf16.msra.mxu0 %v16591_v25  ;;  %10012 = vmatpush1.bf16.msra.mxu1 %v16594_v10  ;;  %v16663_v25 = vld [vmem:[#allocation9 + $0x1520] ss:$16 sps:$4 sm:$0xff]   ;;  %v16666_v10 = vld [vmem:[#allocation9 + $0x1528] ss:$16 sps:$4 sm:$0xff]  }
 0x850   :  { %9801 = vmatprep.subr.bf16.mxu0 %v16599_v49  ;;  %10013 = vmatprep.subr.bf16.mxu1 %v16602_v37  ;;  %v16671_v49 = vld [vmem:[#allocation9 + $0x1544] ss:$16 sps:$4 sm:$0xff]   ;;  %v16674_v37 = vld [vmem:[#allocation9 + $0x154c] ss:$16 sps:$4 sm:$0xff]  }
 0x853   :  { %9802 = vmatpush1.bf16.msra.mxu0 %v16597_v41  ;;  %10014 = vmatpush1.bf16.msra.mxu1 %v16600_v38  ;;  %v16669_v41 = vld [vmem:[#allocation9 + $0x1540] ss:$16 sps:$4 sm:$0xff]   ;;  %v16672_v38 = vld [vmem:[#allocation9 + $0x1548] ss:$16 sps:$4 sm:$0xff]  }
 0x854   :  { %9803 = vmatprep.subr.bf16.mxu0 %v16605_v6  ;;  %10015 = vmatprep.subr.bf16.mxu1 %v16608_v47  ;;  %v16680_v6 = vld [vmem:[#allocation9 + $0x156c] ss:$16 sps:$4 sm:$0xff]   ;;  %v16675_v47 = vld [vmem:[#allocation9 + $0x1560] ss:$16 sps:$4 sm:$0xff]  }
 0x857   :  { %9804 = vmatpush1.bf16.msra.mxu0 %v16603_v17  ;;  %10016 = vmatpush1.bf16.msra.mxu1 %v16606_v45  ;;  %v16681_v17 = vld [vmem:[#allocation9 + $0x1580] ss:$16 sps:$4 sm:$0xff]   ;;  %v16684_v45 = vld [vmem:[#allocation9 + $0x1588] ss:$16 sps:$4 sm:$0xff]  }
 0x858   :  { %9826 = vmatprep.subr.bf16.mxu0 %v16611_v14  ;;  %10038 = vmatprep.subr.bf16.mxu1 %v16614_v27  ;;  %v16689_v14 = vld [vmem:[#allocation9 + $0x15a4] ss:$16 sps:$4 sm:$0xff]   ;;  %v16692_v27 = vld [vmem:[#allocation9 + $0x15ac] ss:$16 sps:$4 sm:$0xff]  }
 0x85a   :  { %9806 = vmatmul.mubr.bf16.vlgmr.msra.gmra.mrb[88].mxu0 %v18680_v13  ;;  %10018 = vmatmul.mubr.bf16.vlgmr.msra.gmra.mrb[104].mxu1 %v18680_v13  ;;  %v16621_v13 = vld [vmem:[#allocation9 + $0x1440] ss:$16 sps:$4 sm:$0xff]  }
 0x85b   :  { %9827 = vmatpush1.bf16.msra.mxu0 %v16609_v61  ;;  %10039 = vmatpush1.bf16.msra.mxu1 %v16612_v9  ;;  %v16687_v61 = vld [vmem:[#allocation9 + $0x15a0] ss:$16 sps:$4 sm:$0xff]   ;;  %v16690_v9 = vld [vmem:[#allocation9 + $0x15a8] ss:$16 sps:$4 sm:$0xff]  }
 0x85c   :  { %9828 = vmatprep.subr.bf16.mxu0 %v16617_v15  ;;  %10040 = vmatprep.subr.bf16.mxu1 %v16620_v51  ;;  %v16698_v15 = vld [vmem:[#allocation9 + $0x15cc] ss:$16 sps:$4 sm:$0xff]   ;;  %v16693_v51 = vld [vmem:[#allocation9 + $0x15c0] ss:$16 sps:$4 sm:$0xff]  }
 0x85d   :  { %9815 = vmatprep.mubr.bf16.mxu0 %v18684_v62  ;;  %10027 = vmatprep.mubr.bf16.mxu1 %v18684_v62  ;;  %v16638_v62 = vld [vmem:[#allocation9 + $0x148c] ss:$16 sps:$4 sm:$0xff]  }
 0x85f   :  { %9829 = vmatpush1.bf16.msra.mxu0 %v16615_v21  ;;  %10041 = vmatpush1.bf16.msra.mxu1 %v16618_v58  ;;  %v16699_v21 = vld [vmem:[#allocation9 + $0x15e0] ss:$16 sps:$4 sm:$0xff]   ;;  %v16702_v58 = vld [vmem:[#allocation9 + $0x15e8] ss:$16 sps:$4 sm:$0xff]  }
 0x860   :  { %9830 = vmatprep.subr.bf16.mxu0 %v16623_v39  ;;  %10042 = vmatprep.subr.bf16.mxu1 %v16626_v55  ;;  %v16707_v39 = vld [vmem:[#allocation9 + $0x1604] ss:$16 sps:$4 sm:$0xff]   ;;  %v16710_v55 = vld [vmem:[#allocation9 + $0x160c] ss:$16 sps:$4 sm:$0xff]  }
 0x862   :  { %9816 = vmatmul.mubr.bf16.gmra.mrb[92].mxu0 %v18682_v28  ;;  %10028 = vmatmul.mubr.bf16.gmra.mrb[108].mxu1 %v18682_v28  ;;  %v16644_v28 = vld [vmem:[#allocation9 + $0x14ac] ss:$16 sps:$4 sm:$0xff]  }
 0x863   :  { %9831 = vmatpush1.bf16.msra.mxu0 %v16621_v13  ;;  %10043 = vmatpush1.bf16.msra.mxu1 %v16624_v5  ;;  %v16705_v13 = vld [vmem:[#allocation9 + $0x1600] ss:$16 sps:$4 sm:$0xff]   ;;  %v16708_v5 = vld [vmem:[#allocation9 + $0x1608] ss:$16 sps:$4 sm:$0xff]  }
 0x864   :  { %9832 = vmatprep.subr.bf16.mxu0 %v16629_v18  ;;  %10044 = vmatprep.subr.bf16.mxu1 %v16632_v20  ;;  %v16713_v18 = vld [vmem:[#allocation9 + $0x1624] ss:$16 sps:$4 sm:$0xff]   ;;  %v16716_v20 = vld [vmem:[#allocation9 + $0x162c] ss:$16 sps:$4 sm:$0xff]  }
 0x865   :  { %9858 = vmatprep.mubr.bf16.mxu0 %v18688_v33  ;;  %10070 = vmatprep.mubr.bf16.mxu1 %v18688_v33  ;;  %v16648_v33 = vld [vmem:[#allocation9 + $0x14c8] ss:$16 sps:$4 sm:$0xff]  }
 0x867   :  { %9833 = vmatpush1.bf16.msra.mxu0 %v16627_v40  ;;  %10045 = vmatpush1.bf16.msra.mxu1 %v16630_v57  ;;  %v16711_v40 = vld [vmem:[#allocation9 + $0x1620] ss:$16 sps:$4 sm:$0xff]   ;;  %v16714_v57 = vld [vmem:[#allocation9 + $0x1628] ss:$16 sps:$4 sm:$0xff]  }
 0x868   :  { %9834 = vmatprep.subr.bf16.mxu0 %v16635_v59  ;;  %10046 = vmatprep.subr.bf16.mxu1 %v16638_v62  ;;  %v16719_v59 = vld [vmem:[#allocation9 + $0x1644] ss:$16 sps:$4 sm:$0xff]   ;;  %v16722_v62 = vld [vmem:[#allocation9 + $0x164c] ss:$16 sps:$4 sm:$0xff]  }
 0x86b   :  { %9835 = vmatpush1.bf16.msra.mxu0 %v16633_v60  ;;  %10047 = vmatpush1.bf16.msra.mxu1 %v16636_v7  ;;  %v16717_v60 = vld [vmem:[#allocation9 + $0x1640] ss:$16 sps:$4 sm:$0xff]   ;;  %v16720_v7 = vld [vmem:[#allocation9 + $0x1648] ss:$16 sps:$4 sm:$0xff]  }
 0x86c   :  { %9836 = vmatprep.subr.bf16.mxu0 %v16641_v42  ;;  %10048 = vmatprep.subr.bf16.mxu1 %v16644_v28  ;;  %v16725_v42 = vld [vmem:[#allocation9 + $0x1664] ss:$16 sps:$4 sm:$0xff]   ;;  %v16723_v28 = vld [vmem:[#allocation9 + $0x1660] ss:$16 sps:$4 sm:$0xff]  }
 0x86f   :  { %9837 = vmatpush1.bf16.msra.mxu0 %v16639_v29  ;;  %10049 = vmatpush1.bf16.msra.mxu1 %v16642_v34  ;;  %v16726_v29 = vld [vmem:[#allocation9 + $0x1668] ss:$16 sps:$4 sm:$0xff]   ;;  %v16731_v34 = vld [vmem:[#allocation9 + $0x1684] ss:$16 sps:$4 sm:$0xff]  }
 0x870   :  { %9838 = vmatprep.subr.bf16.mxu0 %v16647_v53  ;;  %10050 = vmatprep.subr.bf16.mxu1 %v16650_v22  ;;  %v16729_v53 = vld [vmem:[#allocation9 + $0x1680] ss:$16 sps:$4 sm:$0xff]   ;;  %v16732_v22 = vld [vmem:[#allocation9 + $0x1688] ss:$16 sps:$4 sm:$0xff]  }
 0x873   :  { %9839 = vmatpush1.bf16.msra.mxu0 %v16645_v43  ;;  %10051 = vmatpush1.bf16.msra.mxu1 %v16648_v33  ;;  %v16737_v43 = vld [vmem:[#allocation9 + $0x16a4] ss:$16 sps:$4 sm:$0xff]   ;;  %v16735_v33 = vld [vmem:[#allocation9 + $0x16a0] ss:$16 sps:$4 sm:$0xff]  }
 0x874   :  { %9840 = vmatprep.subr.bf16.mxu0 %v16653_v8  ;;  %10052 = vmatprep.subr.bf16.mxu1 %v16656_v26  ;;  %v16738_v8 = vld [vmem:[#allocation9 + $0x16a8] ss:$16 sps:$4 sm:$0xff]   ;;  %v16743_v26 = vld [vmem:[#allocation9 + $0x16c4] ss:$16 sps:$4 sm:$0xff]  }
 0x877   :  { %9841 = vmatpush1.bf16.msra.mxu0 %v16651_v1  ;;  %10053 = vmatpush1.bf16.msra.mxu1 %v16654_v24  ;;  %v16746_v1 = vld [vmem:[#allocation9 + $0x16cc] ss:$16 sps:$4 sm:$0xff]   ;;  %v16741_v24 = vld [vmem:[#allocation9 + $0x16c0] ss:$16 sps:$4 sm:$0xff]  }
 0x878   :  { %9842 = vmatprep.subr.bf16.mxu0 %v16659_v2  ;;  %10054 = vmatprep.subr.bf16.mxu1 %v16662_v54  ;;  %v16749_v2 = vld [vmem:[#allocation9 + $0x16e4] ss:$16 sps:$4 sm:$0xff]   ;;  %v16752_v54 = vld [vmem:[#allocation9 + $0x16ec] ss:$16 sps:$4 sm:$0xff]  }
 0x87b   :  { %9843 = vmatpush1.bf16.msra.mxu0 %v16657_v35  ;;  %10055 = vmatpush1.bf16.msra.mxu1 %v16660_v30  ;;  %v16747_v35 = vld [vmem:[#allocation9 + $0x16e0] ss:$16 sps:$4 sm:$0xff]   ;;  %v16750_v30 = vld [vmem:[#allocation9 + $0x16e8] ss:$16 sps:$4 sm:$0xff]  }
 0x87c   :  { %9844 = vmatprep.subr.bf16.mxu0 %v16665_v56  ;;  %10056 = vmatprep.subr.bf16.mxu1 %v16668_v63  ;;  %v16755_v56 = vld [vmem:[#allocation9 + $0x1704] ss:$16 sps:$4 sm:$0xff]   ;;  %v16758_v63 = vld [vmem:[#allocation9 + $0x170c] ss:$16 sps:$4 sm:$0xff]  }
 0x87f   :  { %9845 = vmatpush1.bf16.msra.mxu0 %v16663_v25  ;;  %10057 = vmatpush1.bf16.msra.mxu1 %v16666_v10  ;;  %v16753_v25 = vld [vmem:[#allocation9 + $0x1700] ss:$16 sps:$4 sm:$0xff]   ;;  %v16756_v10 = vld [vmem:[#allocation9 + $0x1708] ss:$16 sps:$4 sm:$0xff]  }
 0x880   :  { %9846 = vmatprep.subr.bf16.mxu0 %v16671_v49  ;;  %10058 = vmatprep.subr.bf16.mxu1 %v16674_v37  ;;  %v16761_v49 = vld [vmem:[#allocation9 + $0x1724] ss:$16 sps:$4 sm:$0xff]   ;;  %v16764_v37 = vld [vmem:[#allocation9 + $0x172c] ss:$16 sps:$4 sm:$0xff]  }
 0x883   :  { %9847 = vmatpush1.bf16.msra.mxu0 %v16669_v41  ;;  %10059 = vmatpush1.bf16.msra.mxu1 %v16672_v38  ;;  %v16759_v41 = vld [vmem:[#allocation9 + $0x1720] ss:$16 sps:$4 sm:$0xff]   ;;  %v16762_v38 = vld [vmem:[#allocation9 + $0x1728] ss:$16 sps:$4 sm:$0xff]  }
 0x884   :  { %9848 = vmatprep.subr.bf16.mxu0 %v16677_v11  ;;  %10060 = vmatprep.subr.bf16.mxu1 %v16680_v6  ;;  %v16767_v11 = vld [vmem:[#allocation9 + $0x1744] ss:$16 sps:$4 sm:$0xff]   ;;  %v16770_v6 = vld [vmem:[#allocation9 + $0x174c] ss:$16 sps:$4 sm:$0xff]  }
 0x887   :  { %9849 = vmatpush1.bf16.msra.mxu0 %v16675_v47  ;;  %10061 = vmatpush1.bf16.msra.mxu1 %v16678_v19  ;;  %v16765_v47 = vld [vmem:[#allocation9 + $0x1740] ss:$16 sps:$4 sm:$0xff]   ;;  %v16768_v19 = vld [vmem:[#allocation9 + $0x1748] ss:$16 sps:$4 sm:$0xff]  }
 0x888   :  { %9850 = vmatprep.subr.bf16.mxu0 %v16683_v36  ;;  %10062 = vmatprep.subr.bf16.mxu1 %v16686_v32  ;;  %v16773_v36 = vld [vmem:[#allocation9 + $0x1764] ss:$16 sps:$4 sm:$0xff]   ;;  %v16776_v32 = vld [vmem:[#allocation9 + $0x176c] ss:$16 sps:$4 sm:$0xff]  }
 0x88b   :  { %9851 = vmatpush1.bf16.msra.mxu0 %v16681_v17  ;;  %10063 = vmatpush1.bf16.msra.mxu1 %v16684_v45  ;;  %v16771_v17 = vld [vmem:[#allocation9 + $0x1760] ss:$16 sps:$4 sm:$0xff]   ;;  %v16774_v45 = vld [vmem:[#allocation9 + $0x1768] ss:$16 sps:$4 sm:$0xff]  }
 0x88c   :  { %9852 = vmatprep.subr.bf16.mxu0 %v16689_v14  ;;  %10064 = vmatprep.subr.bf16.mxu1 %v16692_v27  ;;  %v16779_v14 = vld [vmem:[#allocation9 + $0x1784] ss:$16 sps:$4 sm:$0xff]   ;;  %v16782_v27 = vld [vmem:[#allocation9 + $0x178c] ss:$16 sps:$4 sm:$0xff]  }
 0x88f   :  { %9853 = vmatpush1.bf16.msra.mxu0 %v16687_v61  ;;  %10065 = vmatpush1.bf16.msra.mxu1 %v16690_v9  ;;  %v16777_v61 = vld [vmem:[#allocation9 + $0x1780] ss:$16 sps:$4 sm:$0xff]   ;;  %v16780_v9 = vld [vmem:[#allocation9 + $0x1788] ss:$16 sps:$4 sm:$0xff]  }
 0x890   :  { %9854 = vmatprep.subr.bf16.mxu0 %v16695_v46  ;;  %10066 = vmatprep.subr.bf16.mxu1 %v16698_v15  ;;  %v16785_v46 = vld [vmem:[#allocation9 + $0x17a4] ss:$16 sps:$4 sm:$0xff]   ;;  %v16788_v15 = vld [vmem:[#allocation9 + $0x17ac] ss:$16 sps:$4 sm:$0xff]  }
 0x893   :  { %9855 = vmatpush1.bf16.msra.mxu0 %v16693_v51  ;;  %10067 = vmatpush1.bf16.msra.mxu1 %v16696_v44  ;;  %v16783_v51 = vld [vmem:[#allocation9 + $0x17a0] ss:$16 sps:$4 sm:$0xff]   ;;  %v16786_v44 = vld [vmem:[#allocation9 + $0x17a8] ss:$16 sps:$4 sm:$0xff]  }
 0x894   :  { %9856 = vmatprep.subr.bf16.mxu0 %v16701_v50  ;;  %10068 = vmatprep.subr.bf16.mxu1 %v16704_v12  ;;  %v16791_v50 = vld [vmem:[#allocation9 + $0x17c4] ss:$16 sps:$4 sm:$0xff]   ;;  %v16794_v12 = vld [vmem:[#allocation9 + $0x17cc] ss:$16 sps:$4 sm:$0xff]  }
 0x897   :  { %9857 = vmatpush1.bf16.msra.mxu0 %v16699_v21  ;;  %10069 = vmatpush1.bf16.msra.mxu1 %v16702_v58  ;;  %v16789_v21 = vld [vmem:[#allocation9 + $0x17c0] ss:$16 sps:$4 sm:$0xff]   ;;  %v16792_v58 = vld [vmem:[#allocation9 + $0x17c8] ss:$16 sps:$4 sm:$0xff]  }
 0x898   :  { %9879 = vmatprep.subr.bf16.mxu0 %v16707_v39  ;;  %10091 = vmatprep.subr.bf16.mxu1 %v16710_v55  ;;  %v16797_v39 = vld [vmem:[#allocation9 + $0x17e4] ss:$16 sps:$4 sm:$0xff]   ;;  %v16800_v55 = vld [vmem:[#allocation9 + $0x17ec] ss:$16 sps:$4 sm:$0xff]  }
 0x89a   :  { %9859 = vmatmul.mubr.bf16.vlgmr.msra.gmra.mrb[88].mxu0 %v18686_v31  ;;  %10071 = vmatmul.mubr.bf16.vlgmr.msra.gmra.mrb[104].mxu1 %v18686_v31  ;;  %v16728_v31 = vld [vmem:[#allocation9 + $0x166c] ss:$16 sps:$4 sm:$0xff]  }
 0x89b   :  { %9880 = vmatpush1.bf16.msra.mxu0 %v16705_v13  ;;  %10092 = vmatpush1.bf16.msra.mxu1 %v16708_v5  ;;  %v16795_v13 = vld [vmem:[#allocation9 + $0x17e0] ss:$16 sps:$4 sm:$0xff]   ;;  %v16798_v5 = vld [vmem:[#allocation9 + $0x17e8] ss:$16 sps:$4 sm:$0xff]  }
 0x89c   :  { %9881 = vmatprep.subr.bf16.mxu0 %v16713_v18  ;;  %10093 = vmatprep.subr.bf16.mxu1 %v16716_v20  ;;  %v10160_v18 = vld [vmem:[#allocation10] sm:$0xf]  ;;  %v19100_v20 = vld [vmem:[#allocation35_spill] sm:$0xff] }
 0x89d   :  { %9868 = vmatprep.mubr.bf16.mxu0 %v18692_v23  ;;  %10080 = vmatprep.mubr.bf16.mxu1 %v18692_v23  ;;  %v16734_v23 = vld [vmem:[#allocation9 + $0x168c] ss:$16 sps:$4 sm:$0xff]  }
 0x89f   :  { %9882 = vmatpush1.bf16.msra.mxu0 %v16711_v40  ;;  %10094 = vmatpush1.bf16.msra.mxu1 %v16714_v57  ;;  %v10165_v40 = vrot.slane %v10160_v18, %v19100_v20  ;;  %v19101_v57 = vld [vmem:[#allocation33_spill] sm:$0xff] }
 0x8a0   :  { %9883 = vmatprep.subr.bf16.mxu0 %v16719_v59  ;;  %10095 = vmatprep.subr.bf16.mxu1 %v16722_v62  ;;  %v10173_v59 = vrot.slane %v10160_v18, %v19101_v57 }
 0x8a2   :  { %9869 = vmatmul.mubr.bf16.gmra.mrb[92].mxu0 %v18690_v16  ;;  %10081 = vmatmul.mubr.bf16.gmra.mrb[108].mxu1 %v18690_v16  ;;  %v16740_v16 = vld [vmem:[#allocation9 + $0x16ac] ss:$16 sps:$4 sm:$0xff]  }
 0x8a3   :  { %9884 = vmatpush1.bf16.msra.mxu0 %v16717_v60  ;;  %10096 = vmatpush1.bf16.msra.mxu1 %v16720_v7 }
 0x8a4   :  { %9885 = vmatprep.subr.bf16.mxu0 %v16725_v42  ;;  %10097 = vmatprep.subr.bf16.mxu1 %v16728_v31  ;;  %v19103_v42 = vld [vmem:[#allocation34_spill] sm:$0xff] }
 0x8a5   :  { %9911 = vmatprep.mubr.bf16.mxu0 %v18696_v0  ;;  %10123 = vmatprep.mubr.bf16.mxu1 %v18696_v0  ;;  %v16744_v0 = vld [vmem:[#allocation9 + $0x16c8] ss:$16 sps:$4 sm:$0xff]   ;;  %v10177_v31 = vrot.slane %v10160_v18, %v19103_v42 }
 0x8a7   :  { %9886 = vmatpush1.bf16.msra.mxu0 %v16723_v28  ;;  %10098 = vmatpush1.bf16.msra.mxu1 %v16726_v29 }
 0x8a8   :  { %9887 = vmatprep.subr.bf16.mxu0 %v16731_v34  ;;  %10099 = vmatprep.subr.bf16.mxu1 %v16734_v23 }
 0x8ab   :  { %9888 = vmatpush1.bf16.msra.mxu0 %v16729_v53  ;;  %10100 = vmatpush1.bf16.msra.mxu1 %v16732_v22 }
 0x8ac   :  { %9889 = vmatprep.subr.bf16.mxu0 %v16737_v43  ;;  %10101 = vmatprep.subr.bf16.mxu1 %v16740_v16 }
 0x8af   :  { %9890 = vmatpush1.bf16.msra.mxu0 %v16735_v33  ;;  %10102 = vmatpush1.bf16.msra.mxu1 %v16738_v8 }
 0x8b0   :  { %9891 = vmatprep.subr.bf16.mxu0 %v16743_v26  ;;  %10103 = vmatprep.subr.bf16.mxu1 %v16746_v1 }
 0x8b3   :  { %9892 = vmatpush1.bf16.msra.mxu0 %v16741_v24  ;;  %10104 = vmatpush1.bf16.msra.mxu1 %v16744_v0 }
 0x8b4   :  { %9893 = vmatprep.subr.bf16.mxu0 %v16749_v2  ;;  %10105 = vmatprep.subr.bf16.mxu1 %v16752_v54 }
 0x8b7   :  { %9894 = vmatpush1.bf16.msra.mxu0 %v16747_v35  ;;  %10106 = vmatpush1.bf16.msra.mxu1 %v16750_v30 }
 0x8b8   :  { %9895 = vmatprep.subr.bf16.mxu0 %v16755_v56  ;;  %10107 = vmatprep.subr.bf16.mxu1 %v16758_v63 }
 0x8bb   :  { %9896 = vmatpush1.bf16.msra.mxu0 %v16753_v25  ;;  %10108 = vmatpush1.bf16.msra.mxu1 %v16756_v10 }
 0x8bc   :  { %9897 = vmatprep.subr.bf16.mxu0 %v16761_v49  ;;  %10109 = vmatprep.subr.bf16.mxu1 %v16764_v37 }
 0x8bf   :  { %9898 = vmatpush1.bf16.msra.mxu0 %v16759_v41  ;;  %10110 = vmatpush1.bf16.msra.mxu1 %v16762_v38 }
 0x8c0   :  { %9899 = vmatprep.subr.bf16.mxu0 %v16767_v11  ;;  %10111 = vmatprep.subr.bf16.mxu1 %v16770_v6 }
 0x8c3   :  { %9900 = vmatpush1.bf16.msra.mxu0 %v16765_v47  ;;  %10112 = vmatpush1.bf16.msra.mxu1 %v16768_v19 }
 0x8c4   :  { %9901 = vmatprep.subr.bf16.mxu0 %v16773_v36  ;;  %10113 = vmatprep.subr.bf16.mxu1 %v16776_v32 }
 0x8c7   :  { %9902 = vmatpush1.bf16.msra.mxu0 %v16771_v17  ;;  %10114 = vmatpush1.bf16.msra.mxu1 %v16774_v45 }
 0x8c8   :  { %9903 = vmatprep.subr.bf16.mxu0 %v16779_v14  ;;  %10115 = vmatprep.subr.bf16.mxu1 %v16782_v27 }
 0x8cb   :  { %9904 = vmatpush1.bf16.msra.mxu0 %v16777_v61  ;;  %10116 = vmatpush1.bf16.msra.mxu1 %v16780_v9  ;;  %v16801_v61 = vld [vmem:[#allocation12] sm:$0xff]  }
 0x8cc   :  { %9905 = vmatprep.subr.bf16.mxu0 %v16785_v46  ;;  %10117 = vmatprep.subr.bf16.mxu1 %v16788_v15  ;;  %v16806_v9 = vld [vmem:[#allocation13 + $0x204] ss:$8 sps:$4 sm:$0xff]   ;;  %v16802_v46 = vld [vmem:[#allocation12 + $0x8] sm:$0xff]   ;;  %v16804_v15 = vld [vmem:[#allocation13 + $0x200] ss:$8 sps:$4 sm:$0xff]  }
 0x8cf   :  { %9906 = vmatpush1.bf16.msra.mxu0 %v16783_v51  ;;  %10118 = vmatpush1.bf16.msra.mxu1 %v16786_v44  ;;  %v16809_v51 = vld [vmem:[#allocation13 + $0x214] ss:$8 sps:$4 sm:$0xff]   ;;  %v16807_v44 = vld [vmem:[#allocation13 + $0x210] ss:$8 sps:$4 sm:$0xff]  }
 0x8d0   :  { %9907 = vmatprep.subr.bf16.mxu0 %v16791_v50  ;;  %10119 = vmatprep.subr.bf16.mxu1 %v16794_v12  ;;  %v16812_v50 = vld [vmem:[#allocation13 + $0x224] ss:$8 sps:$4 sm:$0xff]   ;;  %v16803_v12 = vld [vmem:[#allocation12 + $0x10] sm:$0xff]  }
 0x8d3   :  { %9908 = vmatpush1.bf16.msra.mxu0 %v16789_v21  ;;  %10120 = vmatpush1.bf16.msra.mxu1 %v16792_v58  ;;  %v16810_v21 = vld [vmem:[#allocation13 + $0x220] ss:$8 sps:$4 sm:$0xff]   ;;  %v16815_v58 = vld [vmem:[#allocation13 + $0x234] ss:$8 sps:$4 sm:$0xff]  }
 0x8d4   :  { %9909 = vmatprep.subr.bf16.mxu0 %v16797_v39  ;;  %10121 = vmatprep.subr.bf16.mxu1 %v16800_v55  ;;  %v16813_v39 = vld [vmem:[#allocation13 + $0x230] ss:$8 sps:$4 sm:$0xff]   ;;  %v16818_v55 = vld [vmem:[#allocation13 + $0x244] ss:$8 sps:$4 sm:$0xff]  }
 0x8d7   :  { %9910 = vmatpush1.bf16.msra.mxu0 %v16795_v13  ;;  %10122 = vmatpush1.bf16.msra.mxu1 %v16798_v5  ;;  %v16816_v13 = vld [vmem:[#allocation13 + $0x240] ss:$8 sps:$4 sm:$0xff]   ;;  %v16821_v5 = vld [vmem:[#allocation13 + $0x254] ss:$8 sps:$4 sm:$0xff]  }
 0x8da   :  { %9912 = vmatmul.mubr.bf16.vlgmr.msra.gmra.mrb[88].mxu0 %v18694_v3  ;;  %10124 = vmatmul.mubr.bf16.vlgmr.msra.gmra.mrb[104].mxu1 %v18694_v3  ;;  %v19102_v3 = vld [vmem:[#allocation36_spill] sm:$0xff] }
 0x8db   :  { %9921 = vmatprep.mubr.bf16.mxu0 %v18702_v52  ;;  %10133 = vmatprep.mubr.bf16.mxu1 %v18702_v52  ;;  %v10169_v7 = vrot.slane %v10160_v18, %v19102_v3  ;;  %v16819_v18 = vld [vmem:[#allocation13 + $0x250] ss:$8 sps:$4 sm:$0xff]  }
 0x8e2   :  { %9922 = vmatmul.mubr.bf16.gmra.mrb[92].mxu0 %v18700_v4  ;;  %10134 = vmatmul.mubr.bf16.gmra.mrb[108].mxu1 %v18700_v4 }
 0x8e3   :  { %10249 = vmatprep.mubr.bf16.mxu0 %v19091_v48  ;;  %10292 = vmatprep.mubr.bf16.mxu1 %v19091_v48 }
 0x9ad   :  { %v9913_v62 = vpop.f32.mrb[88].mxu0  ;;  %v10125_v60 = vpop.f32.mrb[104].mxu1 }
 0x9ae   :  { %v9915_v52 = vpop.f32.mrb[89].mxu0  ;;  %v10127_v28 = vpop.f32.mrb[105].mxu1  ;;  %v10182_v4 = vadd.f32 %v10165_v40, %v9913_v62  ;;  %v10184_v23 = vadd.f32 %v10173_v59, %v10125_v60  ;;  %v16827_v62 = vld [vmem:[#allocation13 + $0x274] ss:$8 sps:$4 sm:$0xff]   ;;  %v16825_v60 = vld [vmem:[#allocation13 + $0x270] ss:$8 sps:$4 sm:$0xff]  }
 0x9af   :  { %v9917_v29 = vpop.f32.mrb[90].mxu0  ;;  %v10129_v34 = vpop.f32.mrb[106].mxu1  ;;  %v10183_v33 = vadd.f32 %v10169_v7, %v9915_v52  ;;  %v10185_v8 = vadd.f32 %v10177_v31, %v10127_v28  ;;  %v16833_v52 = vld [vmem:[#allocation13 + $0x294] ss:$8 sps:$4 sm:$0xff]   ;;  %v16831_v28 = vld [vmem:[#allocation13 + $0x290] ss:$8 sps:$4 sm:$0xff]  }
 0x9b0   :  { %v10186_v53 = vadd.f32 %v10165_v40, %v9917_v29  ;;  %v10188_v22 = vadd.f32 %v10173_v59, %v10129_v34  ;;  %v9919_v43 = vpop.f32.mrb[91].mxu0  ;;  %v10131_v16 = vpop.f32.mrb[107].mxu1  ;;  %v16836_v29 = vld [vmem:[#allocation13 + $0x2a4] ss:$8 sps:$4 sm:$0xff]   ;;  %v16834_v34 = vld [vmem:[#allocation13 + $0x2a0] ss:$8 sps:$4 sm:$0xff]  }
 0x9b1   :  { %v10187_v26 = vadd.f32 %v10169_v7, %v9919_v43  ;;  %v10189_v1 = vadd.f32 %v10177_v31, %v10131_v16  ;;  %v16845_v43 = vld [vmem:[#allocation13 + $0x2d4] ss:$8 sps:$4 sm:$0xff]   ;;  %v16843_v16 = vld [vmem:[#allocation13 + $0x2d0] ss:$8 sps:$4 sm:$0xff]  }
 0x9b2   :  { %v10198_v24 = vpack.c.bf16 %v10186_v53, %v10182_v4  ;;  %v18730_v0 = vpack.c.bf16 %v10188_v22, %v10184_v23  ;;  %v16839_v4 = vld [vmem:[#allocation13 + $0x2b4] ss:$8 sps:$4 sm:$0xff]   ;;  %v16837_v23 = vld [vmem:[#allocation13 + $0x2b0] ss:$8 sps:$4 sm:$0xff]   ;;  %v16842_v53 = vld [vmem:[#allocation13 + $0x2c4] ss:$8 sps:$4 sm:$0xff]  }
 0x9b3   :  { %v10199_v2 = vpack.c.bf16 %v10187_v26, %v10183_v33  ;;  %v10201_v54 = vpack.c.bf16 %v10189_v1, %v10185_v8  ;;  %v16840_v22 = vld [vmem:[#allocation13 + $0x2c0] ss:$8 sps:$4 sm:$0xff]   ;;  %v16848_v8 = vld [vmem:[#allocation13 + $0x2e4] ss:$8 sps:$4 sm:$0xff]   ;;  %v16851_v26 = vld [vmem:[#allocation13 + $0x2f4] ss:$8 sps:$4 sm:$0xff]  }
 0x9b4   :  { %v16846_v33 = vld [vmem:[#allocation13 + $0x2e0] ss:$8 sps:$4 sm:$0xff]   ;;  %v16849_v1 = vld [vmem:[#allocation13 + $0x2f0] ss:$8 sps:$4 sm:$0xff]  }
 0x9b5   :  { %v9923_v35 = vpop.f32.mrb[92].mxu0  ;;  %v10135_v30 = vpop.f32.mrb[108].mxu1  ;;  %10217 = vmatprep.subr.bf16.mxu0 %v10199_v2  ;;  %10260 = vmatprep.subr.bf16.mxu1 %v10201_v54 }
 0x9b6   :  { %v9925_v56 = vpop.f32.mrb[93].mxu0  ;;  %v10137_v63 = vpop.f32.mrb[109].mxu1  ;;  %10218 = vmatpush1.bf16.msra.mxu0 %v10198_v24  ;;  %10261 = vmatpush1.bf16.msra.mxu1 %v18730_v0  ;;  %v10190_v49 = vadd.f32 %v10165_v40, %v9923_v35  ;;  %v10192_v37 = vadd.f32 %v10173_v59, %v10135_v30 }
 0x9b7   :  { %v9927_v25 = vpop.f32.mrb[94].mxu0  ;;  %v10139_v10 = vpop.f32.mrb[110].mxu1  ;;  %v10191_v47 = vadd.f32 %v10169_v7, %v9925_v56  ;;  %v10193_v19 = vadd.f32 %v10177_v31, %v10137_v63 }
 0x9b8   :  { %v10194_v41 = vadd.f32 %v10165_v40, %v9927_v25  ;;  %v10196_v38 = vadd.f32 %v10173_v59, %v10139_v10  ;;  %v9929_v11 = vpop.f32.mrb[95].mxu0  ;;  %v10141_v6 = vpop.f32.mrb[111].mxu1  ;;  %v16824_v40 = vld [vmem:[#allocation13 + $0x264] ss:$8 sps:$4 sm:$0xff]   ;;  %v16822_v59 = vld [vmem:[#allocation13 + $0x260] ss:$8 sps:$4 sm:$0xff]  }
 0x9b9   :  { %v10195_v36 = vadd.f32 %v10169_v7, %v9929_v11  ;;  %v10197_v32 = vadd.f32 %v10177_v31, %v10141_v6  ;;  %v16830_v7 = vld [vmem:[#allocation13 + $0x284] ss:$8 sps:$4 sm:$0xff]   ;;  %v16828_v31 = vld [vmem:[#allocation13 + $0x280] ss:$8 sps:$4 sm:$0xff]  }
 0x9ba   :  { %v10202_v17 = vpack.c.bf16 %v10194_v41, %v10190_v49  ;;  %v10204_v45 = vpack.c.bf16 %v10196_v38, %v10192_v37 }
 0x9bb   :  { %v10203_v14 = vpack.c.bf16 %v10195_v36, %v10191_v47  ;;  %v10205_v27 = vpack.c.bf16 %v10197_v32, %v10193_v19 }
 0x9bd   :  { %10219 = vmatprep.subr.bf16.mxu0 %v10203_v14  ;;  %10262 = vmatprep.subr.bf16.mxu1 %v10205_v27 }
 0x9be   :  { %10220 = vmatpush1.bf16.msra.mxu0 %v10202_v17  ;;  %10263 = vmatpush1.bf16.msra.mxu1 %v10204_v45 }
 0x9bf   :  { %10382 = vmatprep.subr.bf16.mxu0 %v10199_v2  ;;  %10425 = vmatprep.subr.bf16.mxu1 %v10201_v54 }
 0x9c1   :  { %14762 = vmatmul.mubr.msk.bf16.vlgmr.msra.gmra.mrb[112].mxu0 %vm10213_vm1, %v16801_v61  ;;  %14763 = vmatmul.mubr.msk.bf16.vlgmr.msra.gmra.mrb[128].mxu1 %vm10213_vm1, %v16801_v61  ;;  %v16852_v61 = vld [vmem:[#allocation13 + $0x300] ss:$8 sps:$4 sm:$0xff]  }
 0x9c2   :  { %10383 = vmatpush1.bf16.msra.mxu0 %v10198_v24  ;;  %10426 = vmatpush1.bf16.msra.mxu1 %v18730_v0 }
 0x9c3   :  { %10384 = vmatprep.subr.bf16.mxu0 %v10203_v14  ;;  %10427 = vmatprep.subr.bf16.mxu1 %v10205_v27 }
 0x9c4   :  { %10414 = vmatprep.mubr.bf16.mxu0 %v19091_v48  ;;  %10457 = vmatprep.mubr.bf16.mxu1 %v19091_v48 }
 0x9c6   :  { %10385 = vmatpush1.bf16.msra.mxu0 %v10202_v17  ;;  %10428 = vmatpush1.bf16.msra.mxu1 %v10204_v45 }
 0x9c7   :  { %11360 = vmatprep.subr.bf16.mxu1 %v10199_v2  ;;  %10857 = vmatprep.subr.bf16.mxu0 %v16806_v9 }
 0x9c9   :  { %14765 = vmatmul.mubr.msk.bf16.vlgmr.msra.gmra.mrb[116].mxu0 %vm10213_vm1, %v16802_v46  ;;  %14766 = vmatmul.mubr.msk.bf16.vlgmr.msra.gmra.mrb[132].mxu1 %vm10213_vm1, %v16802_v46  ;;  %v16857_v46 = vld [vmem:[#allocation13 + $0x314] ss:$8 sps:$4 sm:$0xff]  }
 0x9ca   :  { %11361 = vmatpush1.bf16.msra.mxu1 %v10198_v24  ;;  %11392 = vmatprep.mubr.bf16.mxu1 %v19091_v48  ;;  %v16854_v24 = vld [vmem:[#allocation13 + $0x304] ss:$8 sps:$4 sm:$0xff]  }
 0x9cb   :  { %11362 = vmatprep.subr.bf16.mxu1 %v10203_v14  ;;  %10858 = vmatpush1.bf16.msra.mxu0 %v16804_v15  ;;  %v16855_v15 = vld [vmem:[#allocation13 + $0x310] ss:$8 sps:$4 sm:$0xff]  }
 0x9cc   :  { %10859 = vmatprep.subr.bf16.mxu0 %v16809_v51  ;;  %v16860_v51 = vld [vmem:[#allocation13 + $0x324] ss:$8 sps:$4 sm:$0xff]  }
 0x9ce   :  { %11363 = vmatpush1.bf16.msra.mxu1 %v10202_v17 }
 0x9cf   :  { %11403 = vmatprep.subr.bf16.mxu1 %v10201_v54  ;;  %10860 = vmatpush1.bf16.msra.mxu0 %v16807_v44  ;;  %v16858_v44 = vld [vmem:[#allocation13 + $0x320] ss:$8 sps:$4 sm:$0xff]  }
 0x9d0   :  { %10861 = vmatprep.subr.bf16.mxu0 %v16812_v50  ;;  %v16863_v50 = vld [vmem:[#allocation13 + $0x334] ss:$8 sps:$4 sm:$0xff]  }
 0x9d1   :  { %14896 = vmatmul.mubr.msk.bf16.vlgmr.msra.gmra.mrb[136].mxu1 %vm10213_vm1, %v16803_v12 }
 0x9d2   :  { %11404 = vmatpush1.bf16.msra.mxu1 %v18730_v0  ;;  %11435 = vmatprep.mubr.bf16.mxu1 %v19091_v48 }
 0x9d3   :  { %11405 = vmatprep.subr.bf16.mxu1 %v10205_v27  ;;  %10862 = vmatpush1.bf16.msra.mxu0 %v16810_v21  ;;  %v16866_v21 = vld [vmem:[#allocation13 + $0x344] ss:$8 sps:$4 sm:$0xff]  }
 0x9d4   :  { %10863 = vmatprep.subr.bf16.mxu0 %v16815_v58  ;;  %v16864_v58 = vld [vmem:[#allocation13 + $0x340] ss:$8 sps:$4 sm:$0xff]  }
 0x9d6   :  { %11406 = vmatpush1.bf16.msra.mxu1 %v10204_v45 }
 0x9d7   :  { %10864 = vmatpush1.bf16.msra.mxu0 %v16813_v39  ;;  %v16869_v39 = vld [vmem:[#allocation13 + $0x354] ss:$8 sps:$4 sm:$0xff]  }
 0x9d8   :  { %10865 = vmatprep.subr.bf16.mxu0 %v16818_v55  ;;  %v16867_v55 = vld [vmem:[#allocation13 + $0x350] ss:$8 sps:$4 sm:$0xff]  }
 0x9d9   :  { %14897 = vmatmul.mubr.msk.bf16.vlgmr.msra.gmra.mrb[140].mxu1 %vm10213_vm1, %v16803_v12  ;;  %v16861_v12 = vld [vmem:[#allocation13 + $0x330] ss:$8 sps:$4 sm:$0xff]  }
 0x9da   :  { %11980 = vmatprep.mubr.bf16.mxu1 %v19091_v48 }
 0x9db   :  { %10866 = vmatpush1.bf16.msra.mxu0 %v16816_v13  ;;  %v16872_v13 = vld [vmem:[#allocation13 + $0x364] ss:$8 sps:$4 sm:$0xff]  }
 0x9dc   :  { %10867 = vmatprep.subr.bf16.mxu0 %v16821_v5  ;;  %v16870_v5 = vld [vmem:[#allocation13 + $0x360] ss:$8 sps:$4 sm:$0xff]  }
 0x9df   :  { %10868 = vmatpush1.bf16.msra.mxu0 %v16819_v18  ;;  %v16875_v18 = vld [vmem:[#allocation13 + $0x374] ss:$8 sps:$4 sm:$0xff]  }
 0x9e0   :  { %10869 = vmatprep.subr.bf16.mxu0 %v16824_v40  ;;  %v16873_v40 = vld [vmem:[#allocation13 + $0x370] ss:$8 sps:$4 sm:$0xff]  }
 0x9e3   :  { %10870 = vmatpush1.bf16.msra.mxu0 %v16822_v59  ;;  %v16878_v59 = vld [vmem:[#allocation13 + $0x384] ss:$8 sps:$4 sm:$0xff]  }
 0x9e4   :  { %10871 = vmatprep.subr.bf16.mxu0 %v16827_v62  ;;  %v16876_v62 = vld [vmem:[#allocation13 + $0x380] ss:$8 sps:$4 sm:$0xff]  }
 0x9e7   :  { %10872 = vmatpush1.bf16.msra.mxu0 %v16825_v60  ;;  %v16881_v60 = vld [vmem:[#allocation13 + $0x394] ss:$8 sps:$4 sm:$0xff]  }
 0x9e8   :  { %10873 = vmatprep.subr.bf16.mxu0 %v16830_v7  ;;  %v16879_v7 = vld [vmem:[#allocation13 + $0x390] ss:$8 sps:$4 sm:$0xff]  }
 0x9eb   :  { %10874 = vmatpush1.bf16.msra.mxu0 %v16828_v31  ;;  %v16884_v31 = vld [vmem:[#allocation13 + $0x3a4] ss:$8 sps:$4 sm:$0xff]  }
 0x9ec   :  { %10875 = vmatprep.subr.bf16.mxu0 %v16833_v52  ;;  %v16882_v52 = vld [vmem:[#allocation13 + $0x3a0] ss:$8 sps:$4 sm:$0xff]  }
 0x9ef   :  { %10876 = vmatpush1.bf16.msra.mxu0 %v16831_v28  ;;  %v16887_v28 = vld [vmem:[#allocation13 + $0x3b4] ss:$8 sps:$4 sm:$0xff]  }
 0x9f0   :  { %10877 = vmatprep.subr.bf16.mxu0 %v16836_v29  ;;  %v16885_v29 = vld [vmem:[#allocation13 + $0x3b0] ss:$8 sps:$4 sm:$0xff]  }
 0x9f3   :  { %10878 = vmatpush1.bf16.msra.mxu0 %v16834_v34  ;;  %v16890_v34 = vld [vmem:[#allocation13 + $0x3c4] ss:$8 sps:$4 sm:$0xff]  }
 0x9f4   :  { %10879 = vmatprep.subr.bf16.mxu0 %v16839_v4  ;;  %v16888_v4 = vld [vmem:[#allocation13 + $0x3c0] ss:$8 sps:$4 sm:$0xff]  }
 0x9f7   :  { %10880 = vmatpush1.bf16.msra.mxu0 %v16837_v23  ;;  %v16893_v23 = vld [vmem:[#allocation13 + $0x3d4] ss:$8 sps:$4 sm:$0xff]  }
 0x9f8   :  { %10881 = vmatprep.subr.bf16.mxu0 %v16842_v53  ;;  %v16891_v53 = vld [vmem:[#allocation13 + $0x3d0] ss:$8 sps:$4 sm:$0xff]  }
 0x9fb   :  { %10882 = vmatpush1.bf16.msra.mxu0 %v16840_v22  ;;  %v16896_v22 = vld [vmem:[#allocation13 + $0x3e4] ss:$8 sps:$4 sm:$0xff]  }
 0x9fc   :  { %10883 = vmatprep.subr.bf16.mxu0 %v16845_v43  ;;  %v16894_v43 = vld [vmem:[#allocation13 + $0x3e0] ss:$8 sps:$4 sm:$0xff]  }
 0x9ff   :  { %10884 = vmatpush1.bf16.msra.mxu0 %v16843_v16  ;;  %v16899_v16 = vld [vmem:[#allocation13 + $0x3f4] ss:$8 sps:$4 sm:$0xff]  }
 0xa00   :  { %10885 = vmatprep.subr.bf16.mxu0 %v16848_v8  ;;  %v16902_v8 = vld [vmem:[#allocation13 + $0x4] ss:$8 sps:$4 sm:$0xff]  }
 0xa03   :  { %10886 = vmatpush1.bf16.msra.mxu0 %v16846_v33  ;;  %v16897_v33 = vld [vmem:[#allocation13 + $0x3f0] ss:$8 sps:$4 sm:$0xff]  }
 0xa04   :  { %10887 = vmatprep.subr.bf16.mxu0 %v16851_v26  ;;  %v16900_v26 = vld [vmem:[#allocation13] ss:$8 sps:$4 sm:$0xff]  }
 0xa07   :  { %10888 = vmatpush1.bf16.msra.mxu0 %v16849_v1  ;;  %v16905_v1 = vld [vmem:[#allocation13 + $0x14] ss:$8 sps:$4 sm:$0xff]  }
 0xa08   :  { %10900 = vmatprep.subr.bf16.mxu0 %v16854_v24  ;;  %v16903_v24 = vld [vmem:[#allocation13 + $0x10] ss:$8 sps:$4 sm:$0xff]  }
 0xa94   :  { %v18746_v0 = vpop.f32.mrb[112].mxu0  ;;  %v18748_v2 = vpop.f32.mrb[128].mxu1 }
 0xa95   :  { %v18750_v54 = vpop.f32.mrb[113].mxu0  ;;  %v18752_v35 = vpop.f32.mrb[129].mxu1 }
 0xa96   :  { %v18754_v30 = vpop.f32.mrb[114].mxu0  ;;  %v18756_v56 = vpop.f32.mrb[130].mxu1 }
 0xa97   :  { %v10303_v63 = vpack.c.bf16 %v18754_v30, %v18746_v0  ;;  %v18760_v25 = vpop.f32.mrb[115].mxu0  ;;  %v10305_v10 = vpack.c.bf16 %v18756_v56, %v18748_v2  ;;  %v18764_v49 = vpop.f32.mrb[131].mxu1  ;;  %v16965_v0 = vld [vmem:[#allocation13 + $0x154] ss:$8 sps:$4 sm:$0xff]   ;;  %v16963_v30 = vld [vmem:[#allocation13 + $0x150] ss:$8 sps:$4 sm:$0xff]  }
 0xa98   :  { %v10304_v37 = vpack.c.bf16 %v18760_v25, %v18750_v54  ;;  %v10306_v41 = vpack.c.bf16 %v18764_v49, %v18752_v35  ;;  %v16920_v54 = vld [vmem:[#allocation13 + $0x64] ss:$8 sps:$4 sm:$0xff]   ;;  %v16918_v25 = vld [vmem:[#allocation13 + $0x60] ss:$8 sps:$4 sm:$0xff]   ;;  %v16971_v49 = vld [vmem:[#allocation13 + $0x174] ss:$8 sps:$4 sm:$0xff]  }
 0xa99   :  { %v16968_v35 = vld [vmem:[#allocation13 + $0x164] ss:$8 sps:$4 sm:$0xff]   ;;  %v17013_v2 = vld [vmem:[#allocation13 + $0x454] ss:$8 sps:$4 sm:$0xff]   ;;  %v17011_v56 = vld [vmem:[#allocation13 + $0x450] ss:$8 sps:$4 sm:$0xff]  }
 0xa9c   :  { %v10416_v38 = vpop.f32.mrb[116].mxu0  ;;  %v18770_v11 = vpop.f32.mrb[132].mxu1 }
 0xa9d   :  { %v10418_v6 = vpop.f32.mrb[117].mxu0  ;;  %v10461_v47 = vpop.f32.mrb[133].mxu1 }
 0xa9e   :  { %v10420_v19 = vpop.f32.mrb[118].mxu0  ;;  %v18772_v36 = vpop.f32.mrb[134].mxu1 }
 0xa9f   :  { %v10468_v32 = vpack.c.bf16 %v10420_v19, %v10416_v38  ;;  %v10422_v17 = vpop.f32.mrb[119].mxu0  ;;  %v10470_v45 = vpack.c.bf16 %v18772_v36, %v18770_v11  ;;  %v10465_v14 = vpop.f32.mrb[135].mxu1  ;;  %v16908_v38 = vld [vmem:[#allocation13 + $0x24] ss:$8 sps:$4 sm:$0xff]   ;;  %v16909_v19 = vld [vmem:[#allocation13 + $0x30] ss:$8 sps:$4 sm:$0xff]  }
 0xaa0   :  { %v10469_v27 = vpack.c.bf16 %v10422_v17, %v10418_v6  ;;  %v10471_v9 = vpack.c.bf16 %v10465_v14, %v10461_v47  ;;  %v16906_v6 = vld [vmem:[#allocation13 + $0x20] ss:$8 sps:$4 sm:$0xff]   ;;  %v16911_v47 = vld [vmem:[#allocation13 + $0x34] ss:$8 sps:$4 sm:$0xff]   ;;  %v16915_v36 = vld [vmem:[#allocation13 + $0x50] ss:$8 sps:$4 sm:$0xff]  }
 0xaa1   :  { %v16912_v17 = vld [vmem:[#allocation13 + $0x40] ss:$8 sps:$4 sm:$0xff]   ;;  %v16917_v11 = vld [vmem:[#allocation13 + $0x54] ss:$8 sps:$4 sm:$0xff]   ;;  %v16926_v14 = vld [vmem:[#allocation13 + $0x84] ss:$8 sps:$4 sm:$0xff]  }
 0xaa2   :  { %10889 = vmatprep.mubr.bf16.mxu0 %v10469_v27  ;;  %v16924_v27 = vld [vmem:[#allocation13 + $0x80] ss:$8 sps:$4 sm:$0xff]  }
 0xaa3   :  { %10890 = vmatmul.mubr.bf16.vlgmr.msra.gmra.mrb[120].mxu0 %v10468_v32  ;;  %v16914_v32 = vld [vmem:[#allocation13 + $0x44] ss:$8 sps:$4 sm:$0xff]  }
 0xaa4   :  { %10901 = vmatpush1.bf16.msra.mxu0 %v16852_v61  ;;  %10932 = vmatprep.mubr.bf16.mxu0 %v10471_v9  ;;  %v16929_v61 = vld [vmem:[#allocation13 + $0x94] ss:$8 sps:$4 sm:$0xff]   ;;  %v16927_v9 = vld [vmem:[#allocation13 + $0x90] ss:$8 sps:$4 sm:$0xff]  }
 0xaa5   :  { %10902 = vmatprep.subr.bf16.mxu0 %v16857_v46  ;;  %v16932_v46 = vld [vmem:[#allocation13 + $0xa4] ss:$8 sps:$4 sm:$0xff]  }
 0xaa8   :  { %10903 = vmatpush1.bf16.msra.mxu0 %v16855_v15  ;;  %v16930_v15 = vld [vmem:[#allocation13 + $0xa0] ss:$8 sps:$4 sm:$0xff]  }
 0xaa9   :  { %10904 = vmatprep.subr.bf16.mxu0 %v16860_v51  ;;  %v16935_v51 = vld [vmem:[#allocation13 + $0xb4] ss:$8 sps:$4 sm:$0xff]  }
 0xaac   :  { %10905 = vmatpush1.bf16.msra.mxu0 %v16858_v44  ;;  %v16933_v44 = vld [vmem:[#allocation13 + $0xb0] ss:$8 sps:$4 sm:$0xff]  }
 0xaad   :  { %10906 = vmatprep.subr.bf16.mxu0 %v16863_v50  ;;  %v16938_v50 = vld [vmem:[#allocation13 + $0xc4] ss:$8 sps:$4 sm:$0xff]  }
 0xab0   :  { %10907 = vmatpush1.bf16.msra.mxu0 %v16861_v12  ;;  %v16936_v12 = vld [vmem:[#allocation13 + $0xc0] ss:$8 sps:$4 sm:$0xff]  }
 0xab1   :  { %10908 = vmatprep.subr.bf16.mxu0 %v16866_v21  ;;  %v16941_v21 = vld [vmem:[#allocation13 + $0xd4] ss:$8 sps:$4 sm:$0xff]  }
 0xab4   :  { %10909 = vmatpush1.bf16.msra.mxu0 %v16864_v58  ;;  %v16939_v58 = vld [vmem:[#allocation13 + $0xd0] ss:$8 sps:$4 sm:$0xff]  }
 0xab5   :  { %10910 = vmatprep.subr.bf16.mxu0 %v16869_v39  ;;  %v16944_v39 = vld [vmem:[#allocation13 + $0xe4] ss:$8 sps:$4 sm:$0xff]  }
 0xab8   :  { %10911 = vmatpush1.bf16.msra.mxu0 %v16867_v55  ;;  %v16942_v55 = vld [vmem:[#allocation13 + $0xe0] ss:$8 sps:$4 sm:$0xff]  }
 0xab9   :  { %10912 = vmatprep.subr.bf16.mxu0 %v16872_v13  ;;  %v18782_v13 = vpop.f32.mrb[136].mxu1 }
 0xabc   :  { %10913 = vmatpush1.bf16.msra.mxu0 %v16870_v5  ;;  %v16947_v5 = vld [vmem:[#allocation13 + $0xf4] ss:$8 sps:$4 sm:$0xff]  }
 0xabd   :  { %10914 = vmatprep.subr.bf16.mxu0 %v16875_v18  ;;  %v18784_v18 = vpop.f32.mrb[137].mxu1 }
 0xac0   :  { %10915 = vmatpush1.bf16.msra.mxu0 %v16873_v40  ;;  %v18786_v40 = vpop.f32.mrb[138].mxu1 }
 0xac1   :  { %10916 = vmatprep.subr.bf16.mxu0 %v16878_v59  ;;  %v11446_v59 = vpack.c.bf16 %v18786_v40, %v18782_v13  ;;  %v17061_v13 = vld [vmem:[#allocation13 + $0x554] ss:$8 sps:$4 sm:$0xff]   ;;  %v17059_v40 = vld [vmem:[#allocation13 + $0x550] ss:$8 sps:$4 sm:$0xff]  }
 0xac4   :  { %10917 = vmatpush1.bf16.msra.mxu0 %v16876_v62  ;;  %v16945_v62 = vld [vmem:[#allocation13 + $0xf0] ss:$8 sps:$4 sm:$0xff]  }
 0xac5   :  { %10918 = vmatprep.subr.bf16.mxu0 %v16881_v60  ;;  %v18790_v60 = vpop.f32.mrb[139].mxu1 }
 0xac8   :  { %10919 = vmatpush1.bf16.msra.mxu0 %v16879_v7  ;;  %v16950_v7 = vld [vmem:[#allocation13 + $0x104] ss:$8 sps:$4 sm:$0xff]  }
 0xac9   :  { %10920 = vmatprep.subr.bf16.mxu0 %v16884_v31  ;;  %v11447_v31 = vpack.c.bf16 %v18790_v60, %v18784_v18  ;;  %v17019_v18 = vld [vmem:[#allocation13 + $0x474] ss:$8 sps:$4 sm:$0xff]   ;;  %v17022_v60 = vld [vmem:[#allocation13 + $0x484] ss:$8 sps:$4 sm:$0xff]  }
 0xacc   :  { %10921 = vmatpush1.bf16.msra.mxu0 %v16882_v52  ;;  %v16948_v52 = vld [vmem:[#allocation13 + $0x100] ss:$8 sps:$4 sm:$0xff]  }
 0xacd   :  { %10922 = vmatprep.subr.bf16.mxu0 %v16887_v28  ;;  %v16953_v28 = vld [vmem:[#allocation13 + $0x114] ss:$8 sps:$4 sm:$0xff]  }
 0xad0   :  { %10923 = vmatpush1.bf16.msra.mxu0 %v16885_v29  ;;  %v16951_v29 = vld [vmem:[#allocation13 + $0x110] ss:$8 sps:$4 sm:$0xff]  }
 0xad1   :  { %10924 = vmatprep.subr.bf16.mxu0 %v16890_v34  ;;  %v16956_v34 = vld [vmem:[#allocation13 + $0x124] ss:$8 sps:$4 sm:$0xff]  }
 0xad4   :  { %10925 = vmatpush1.bf16.msra.mxu0 %v16888_v4  ;;  %v16954_v4 = vld [vmem:[#allocation13 + $0x120] ss:$8 sps:$4 sm:$0xff]  }
 0xad5   :  { %10926 = vmatprep.subr.bf16.mxu0 %v16893_v23  ;;  %v16959_v23 = vld [vmem:[#allocation13 + $0x134] ss:$8 sps:$4 sm:$0xff]  }
 0xad8   :  { %10927 = vmatpush1.bf16.msra.mxu0 %v16891_v53  ;;  %v16957_v53 = vld [vmem:[#allocation13 + $0x130] ss:$8 sps:$4 sm:$0xff]  }
 0xad9   :  { %10928 = vmatprep.subr.bf16.mxu0 %v16896_v22  ;;  %v16962_v22 = vld [vmem:[#allocation13 + $0x144] ss:$8 sps:$4 sm:$0xff]  }
 0xadc   :  { %10929 = vmatpush1.bf16.msra.mxu0 %v16894_v43  ;;  %v16960_v43 = vld [vmem:[#allocation13 + $0x140] ss:$8 sps:$4 sm:$0xff]  }
 0xadd   :  { %10930 = vmatprep.subr.bf16.mxu0 %v16899_v16  ;;  %v16974_v16 = vld [vmem:[#allocation13 + $0x184] ss:$8 sps:$4 sm:$0xff]  }
 0xae0   :  { %10931 = vmatpush1.bf16.msra.mxu0 %v16897_v33  ;;  %v16972_v33 = vld [vmem:[#allocation13 + $0x180] ss:$8 sps:$4 sm:$0xff]  }
 0xae1   :  { %11263 = vmatprep.subr.bf16.mxu0 %v16902_v8  ;;  %v16977_v8 = vld [vmem:[#allocation13 + $0x194] ss:$8 sps:$4 sm:$0xff]  }
 0xae3   :  { %10933 = vmatmul.mubr.bf16.vlgmr.msra.gmra.mrb[120].mxu0 %v10470_v45  ;;  %v16921_v45 = vld [vmem:[#allocation13 + $0x70] ss:$8 sps:$4 sm:$0xff]  }
 0xae4   :  { %11264 = vmatpush1.bf16.msra.mxu0 %v16900_v26  ;;  %11295 = vmatprep.mubr.bf16.mxu0 %v10304_v37  ;;  %v16923_v37 = vld [vmem:[#allocation13 + $0x74] ss:$8 sps:$4 sm:$0xff]   ;;  %v16975_v26 = vld [vmem:[#allocation13 + $0x190] ss:$8 sps:$4 sm:$0xff]  }
 0xae5   :  { %11265 = vmatprep.subr.bf16.mxu0 %v16905_v1  ;;  %v16980_v1 = vld [vmem:[#allocation13 + $0x1a4] ss:$8 sps:$4 sm:$0xff]  }
 0xae8   :  { %11266 = vmatpush1.bf16.msra.mxu0 %v16903_v24  ;;  %v16978_v24 = vld [vmem:[#allocation13 + $0x1a0] ss:$8 sps:$4 sm:$0xff]  }
 0xae9   :  { %11267 = vmatprep.subr.bf16.mxu0 %v16908_v38  ;;  %v16983_v38 = vld [vmem:[#allocation13 + $0x1b4] ss:$8 sps:$4 sm:$0xff]  }
 0xaec   :  { %11268 = vmatpush1.bf16.msra.mxu0 %v16906_v6  ;;  %v16981_v6 = vld [vmem:[#allocation13 + $0x1b0] ss:$8 sps:$4 sm:$0xff]  }
 0xaed   :  { %11269 = vmatprep.subr.bf16.mxu0 %v16911_v47  ;;  %v16986_v47 = vld [vmem:[#allocation13 + $0x1c4] ss:$8 sps:$4 sm:$0xff]  }
 0xaf0   :  { %11270 = vmatpush1.bf16.msra.mxu0 %v16909_v19  ;;  %v16984_v19 = vld [vmem:[#allocation13 + $0x1c0] ss:$8 sps:$4 sm:$0xff]  }
 0xaf1   :  { %11271 = vmatprep.subr.bf16.mxu0 %v16914_v32  ;;  %v16989_v32 = vld [vmem:[#allocation13 + $0x1d4] ss:$8 sps:$4 sm:$0xff]  }
 0xaf4   :  { %11272 = vmatpush1.bf16.msra.mxu0 %v16912_v17  ;;  %v16987_v17 = vld [vmem:[#allocation13 + $0x1d0] ss:$8 sps:$4 sm:$0xff]  }
 0xaf5   :  { %11273 = vmatprep.subr.bf16.mxu0 %v16917_v11  ;;  %v16992_v11 = vld [vmem:[#allocation13 + $0x1e4] ss:$8 sps:$4 sm:$0xff]  }
 0xaf8   :  { %11274 = vmatpush1.bf16.msra.mxu0 %v16915_v36  ;;  %v16990_v36 = vld [vmem:[#allocation13 + $0x1e0] ss:$8 sps:$4 sm:$0xff]  }
 0xaf9   :  { %11275 = vmatprep.subr.bf16.mxu0 %v16920_v54  ;;  %v18800_v54 = vpop.f32.mrb[140].mxu1 }
 0xafc   :  { %11276 = vmatpush1.bf16.msra.mxu0 %v16918_v25  ;;  %v16995_v25 = vld [vmem:[#allocation13 + $0x1f4] ss:$8 sps:$4 sm:$0xff]  }
 0xafd   :  { %11277 = vmatprep.subr.bf16.mxu0 %v16923_v37  ;;  %v18802_v37 = vpop.f32.mrb[141].mxu1 }
 0xb00   :  { %11278 = vmatpush1.bf16.msra.mxu0 %v16921_v45  ;;  %v18804_v45 = vpop.f32.mrb[142].mxu1 }
 0xb01   :  { %11279 = vmatprep.subr.bf16.mxu0 %v16926_v14  ;;  %v11448_v14 = vpack.c.bf16 %v18804_v45, %v18800_v54  ;;  %v11943_v54 = vld [vmem:[#allocation16] sm:$0xf]  ;;  %v17092_v45 = vld [vmem:[%s19049_s11 + $0xc0] sm:$0xff]  }
 0xb04   :  { %11280 = vmatpush1.bf16.msra.mxu0 %v16924_v27  ;;  %v18808_v27 = vpop.f32.mrb[143].mxu1 }
 0xb05   :  { %11281 = vmatprep.subr.bf16.mxu0 %v16929_v61  ;;  %v16993_v61 = vld [vmem:[#allocation13 + $0x1f0] ss:$8 sps:$4 sm:$0xff]  }
 0xb08   :  { %11282 = vmatpush1.bf16.msra.mxu0 %v16927_v9  ;;  %v11449_v9 = vpack.c.bf16 %v18808_v27, %v18802_v37  ;;  %v17076_v37 = vld [vmem:[#allocation13 + $0x5a4] ss:$8 sps:$4 sm:$0xff]   ;;  %v17074_v27 = vld [vmem:[#allocation13 + $0x5a0] ss:$8 sps:$4 sm:$0xff]  }
 0xb09   :  { %11283 = vmatprep.subr.bf16.mxu0 %v16932_v46  ;;  %v16998_v46 = vld [vmem:[#allocation13 + $0x404] ss:$8 sps:$4 sm:$0xff]  }
 0xb0c   :  { %11284 = vmatpush1.bf16.msra.mxu0 %v16930_v15  ;;  %v16996_v15 = vld [vmem:[#allocation13 + $0x400] ss:$8 sps:$4 sm:$0xff]  }
 0xb0d   :  { %11285 = vmatprep.subr.bf16.mxu0 %v16935_v51  ;;  %v17001_v51 = vld [vmem:[#allocation13 + $0x414] ss:$8 sps:$4 sm:$0xff]  }
 0xb10   :  { %11286 = vmatpush1.bf16.msra.mxu0 %v16933_v44  ;;  %v16999_v44 = vld [vmem:[#allocation13 + $0x410] ss:$8 sps:$4 sm:$0xff]  }
 0xb11   :  { %11287 = vmatprep.subr.bf16.mxu0 %v16938_v50  ;;  %v17004_v50 = vld [vmem:[#allocation13 + $0x424] ss:$8 sps:$4 sm:$0xff]  }
 0xb14   :  { %11288 = vmatpush1.bf16.msra.mxu0 %v16936_v12  ;;  %v17002_v12 = vld [vmem:[#allocation13 + $0x420] ss:$8 sps:$4 sm:$0xff]  }
 0xb15   :  { %11289 = vmatprep.subr.bf16.mxu0 %v16941_v21  ;;  %v17007_v21 = vld [vmem:[#allocation13 + $0x434] ss:$8 sps:$4 sm:$0xff]  }
 0xb18   :  { %11290 = vmatpush1.bf16.msra.mxu0 %v16939_v58  ;;  %v17005_v58 = vld [vmem:[#allocation13 + $0x430] ss:$8 sps:$4 sm:$0xff]  }
 0xb19   :  { %11291 = vmatprep.subr.bf16.mxu0 %v16944_v39  ;;  %v17010_v39 = vld [vmem:[#allocation13 + $0x444] ss:$8 sps:$4 sm:$0xff]  }
 0xb1c   :  { %11292 = vmatpush1.bf16.msra.mxu0 %v16942_v55  ;;  %v17008_v55 = vld [vmem:[#allocation13 + $0x440] ss:$8 sps:$4 sm:$0xff]  }
 0xb1d   :  { %11293 = vmatprep.subr.bf16.mxu0 %v16947_v5  ;;  %v17014_v5 = vld [vmem:[#allocation13 + $0x460] ss:$8 sps:$4 sm:$0xff]  }
 0xb20   :  { %11294 = vmatpush1.bf16.msra.mxu0 %v16945_v62  ;;  %v17017_v62 = vld [vmem:[#allocation13 + $0x470] ss:$8 sps:$4 sm:$0xff]  }
 0xb21   :  { %11306 = vmatprep.subr.bf16.mxu0 %v16950_v7  ;;  %v17020_v7 = vld [vmem:[#allocation13 + $0x480] ss:$8 sps:$4 sm:$0xff]  }
 0xb23   :  { %11296 = vmatmul.mubr.bf16.vlgmr.msra.gmra.mrb[120].mxu0 %v10303_v63  ;;  %v16966_v63 = vld [vmem:[#allocation13 + $0x160] ss:$8 sps:$4 sm:$0xff]  }
 0xb24   :  { %11307 = vmatpush1.bf16.msra.mxu0 %v16948_v52  ;;  %11338 = vmatprep.mubr.bf16.mxu0 %v10306_v41  ;;  %v16969_v41 = vld [vmem:[#allocation13 + $0x170] ss:$8 sps:$4 sm:$0xff]  }
 0xb25   :  { %11308 = vmatprep.subr.bf16.mxu0 %v16953_v28  ;;  %v17023_v52 = vld [vmem:[#allocation13 + $0x490] ss:$8 sps:$4 sm:$0xff]   ;;  %v17028_v28 = vld [vmem:[#allocation13 + $0x4a4] ss:$8 sps:$4 sm:$0xff]  }
 0xb28   :  { %11309 = vmatpush1.bf16.msra.mxu0 %v16951_v29  ;;  %v17026_v29 = vld [vmem:[#allocation13 + $0x4a0] ss:$8 sps:$4 sm:$0xff]  }
 0xb29   :  { %11310 = vmatprep.subr.bf16.mxu0 %v16956_v34  ;;  %v17031_v34 = vld [vmem:[#allocation13 + $0x4b4] ss:$8 sps:$4 sm:$0xff]  }
 0xb2c   :  { %11311 = vmatpush1.bf16.msra.mxu0 %v16954_v4  ;;  %v17029_v4 = vld [vmem:[#allocation13 + $0x4b0] ss:$8 sps:$4 sm:$0xff]  }
 0xb2d   :  { %11312 = vmatprep.subr.bf16.mxu0 %v16959_v23  ;;  %v17034_v23 = vld [vmem:[#allocation13 + $0x4c4] ss:$8 sps:$4 sm:$0xff]  }
 0xb30   :  { %11313 = vmatpush1.bf16.msra.mxu0 %v16957_v53  ;;  %v17032_v53 = vld [vmem:[#allocation13 + $0x4c0] ss:$8 sps:$4 sm:$0xff]  }
 0xb31   :  { %11314 = vmatprep.subr.bf16.mxu0 %v16962_v22  ;;  %v17037_v22 = vld [vmem:[#allocation13 + $0x4d4] ss:$8 sps:$4 sm:$0xff]  }
 0xb34   :  { %11315 = vmatpush1.bf16.msra.mxu0 %v16960_v43  ;;  %v17035_v43 = vld [vmem:[#allocation13 + $0x4d0] ss:$8 sps:$4 sm:$0xff]  }
 0xb35   :  { %11316 = vmatprep.subr.bf16.mxu0 %v16965_v0  ;;  %v17040_v0 = vld [vmem:[#allocation13 + $0x4e4] ss:$8 sps:$4 sm:$0xff]  }
 0xb38   :  { %11317 = vmatpush1.bf16.msra.mxu0 %v16963_v30  ;;  %v17038_v30 = vld [vmem:[#allocation13 + $0x4e0] ss:$8 sps:$4 sm:$0xff]  }
 0xb39   :  { %11318 = vmatprep.subr.bf16.mxu0 %v16968_v35  ;;  %v17043_v35 = vld [vmem:[#allocation13 + $0x4f4] ss:$8 sps:$4 sm:$0xff]  }
 0xb3c   :  { %11319 = vmatpush1.bf16.msra.mxu0 %v16966_v63  ;;  %v17041_v63 = vld [vmem:[#allocation13 + $0x4f0] ss:$8 sps:$4 sm:$0xff]  }
 0xb3d   :  { %11320 = vmatprep.subr.bf16.mxu0 %v16971_v49  ;;  %v17046_v49 = vld [vmem:[#allocation13 + $0x504] ss:$8 sps:$4 sm:$0xff]  }
 0xb40   :  { %11321 = vmatpush1.bf16.msra.mxu0 %v16969_v41  ;;  %v17044_v41 = vld [vmem:[#allocation13 + $0x500] ss:$8 sps:$4 sm:$0xff]  }
 0xb41   :  { %11322 = vmatprep.subr.bf16.mxu0 %v16974_v16  ;;  %v17049_v16 = vld [vmem:[#allocation13 + $0x514] ss:$8 sps:$4 sm:$0xff]  }
 0xb44   :  { %11323 = vmatpush1.bf16.msra.mxu0 %v16972_v33  ;;  %v17047_v33 = vld [vmem:[#allocation13 + $0x510] ss:$8 sps:$4 sm:$0xff]  }
 0xb45   :  { %11324 = vmatprep.subr.bf16.mxu0 %v16977_v8  ;;  %v17052_v8 = vld [vmem:[#allocation13 + $0x524] ss:$8 sps:$4 sm:$0xff]  }
 0xb48   :  { %11325 = vmatpush1.bf16.msra.mxu0 %v16975_v26  ;;  %v17050_v26 = vld [vmem:[#allocation13 + $0x520] ss:$8 sps:$4 sm:$0xff]  }
 0xb49   :  { %11326 = vmatprep.subr.bf16.mxu0 %v16980_v1  ;;  %v17055_v1 = vld [vmem:[#allocation13 + $0x534] ss:$8 sps:$4 sm:$0xff]  }
 0xb4c   :  { %11327 = vmatpush1.bf16.msra.mxu0 %v16978_v24  ;;  %v17053_v24 = vld [vmem:[#allocation13 + $0x530] ss:$8 sps:$4 sm:$0xff]  }
 0xb4d   :  { %11328 = vmatprep.subr.bf16.mxu0 %v16983_v38  ;;  %v17058_v38 = vld [vmem:[#allocation13 + $0x544] ss:$8 sps:$4 sm:$0xff]  }
 0xb50   :  { %11329 = vmatpush1.bf16.msra.mxu0 %v16981_v6  ;;  %v17056_v6 = vld [vmem:[#allocation13 + $0x540] ss:$8 sps:$4 sm:$0xff]  }
 0xb51   :  { %11330 = vmatprep.subr.bf16.mxu0 %v16986_v47  ;;  %v17062_v47 = vld [vmem:[#allocation13 + $0x560] ss:$8 sps:$4 sm:$0xff]  }
 0xb54   :  { %11331 = vmatpush1.bf16.msra.mxu0 %v16984_v19  ;;  %v17067_v19 = vld [vmem:[#allocation13 + $0x574] ss:$8 sps:$4 sm:$0xff]  }
 0xb55   :  { %11332 = vmatprep.subr.bf16.mxu0 %v16989_v32  ;;  %v17065_v32 = vld [vmem:[#allocation13 + $0x570] ss:$8 sps:$4 sm:$0xff]  }
 0xb58   :  { %11333 = vmatpush1.bf16.msra.mxu0 %v16987_v17  ;;  %v17070_v17 = vld [vmem:[#allocation13 + $0x584] ss:$8 sps:$4 sm:$0xff]  }
 0xb59   :  { %11334 = vmatprep.subr.bf16.mxu0 %v16992_v11  ;;  %v17068_v11 = vld [vmem:[#allocation13 + $0x580] ss:$8 sps:$4 sm:$0xff]  }
 0xb5c   :  { %11335 = vmatpush1.bf16.msra.mxu0 %v16990_v36  ;;  %v17073_v36 = vld [vmem:[#allocation13 + $0x594] ss:$8 sps:$4 sm:$0xff]  }
 0xb5d   :  { %11336 = vmatprep.subr.bf16.mxu0 %v16995_v25  ;;  %v17071_v25 = vld [vmem:[#allocation13 + $0x590] ss:$8 sps:$4 sm:$0xff]  }
 0xb60   :  { %11337 = vmatpush1.bf16.msra.mxu0 %v16993_v61  ;;  %v17079_v61 = vld [vmem:[#allocation13 + $0x5b4] ss:$8 sps:$4 sm:$0xff]  }
 0xb61   :  { %11835 = vmatprep.subr.bf16.mxu0 %v16998_v46  ;;  %v17082_v46 = vld [vmem:[#allocation13 + $0x5c4] ss:$8 sps:$4 sm:$0xff]  }
 0xb63   :  { %11339 = vmatmul.mubr.bf16.vlgmr.msra.gmra.mrb[120].mxu0 %v10305_v10  ;;  %v17016_v10 = vld [vmem:[#allocation13 + $0x464] ss:$8 sps:$4 sm:$0xff]  }
 0xb64   :  { %11836 = vmatpush1.bf16.msra.mxu0 %v16996_v15  ;;  %11867 = vmatprep.mubr.bf16.mxu0 %v11447_v31  ;;  %v17025_v31 = vld [vmem:[#allocation13 + $0x494] ss:$8 sps:$4 sm:$0xff]   ;;  %v17080_v15 = vld [vmem:[#allocation13 + $0x5c0] ss:$8 sps:$4 sm:$0xff]  }
 0xb65   :  { %11837 = vmatprep.subr.bf16.mxu0 %v17001_v51  ;;  %v17085_v51 = vld [vmem:[#allocation13 + $0x5d4] ss:$8 sps:$4 sm:$0xff]  }
 0xb68   :  { %11838 = vmatpush1.bf16.msra.mxu0 %v16999_v44  ;;  %v17083_v44 = vld [vmem:[#allocation13 + $0x5d0] ss:$8 sps:$4 sm:$0xff]  }
 0xb69   :  { %11839 = vmatprep.subr.bf16.mxu0 %v17004_v50  ;;  %v17088_v50 = vld [vmem:[#allocation13 + $0x5e4] ss:$8 sps:$4 sm:$0xff]  }
 0xb6c   :  { %11840 = vmatpush1.bf16.msra.mxu0 %v17002_v12  ;;  %v17086_v12 = vld [vmem:[#allocation13 + $0x5e0] ss:$8 sps:$4 sm:$0xff]  }
 0xb6d   :  { %11841 = vmatprep.subr.bf16.mxu0 %v17007_v21  ;;  %v17091_v21 = vld [vmem:[#allocation13 + $0x5f4] ss:$8 sps:$4 sm:$0xff]  }
 0xb70   :  { %11842 = vmatpush1.bf16.msra.mxu0 %v17005_v58  ;;  %v17089_v58 = vld [vmem:[#allocation13 + $0x5f0] ss:$8 sps:$4 sm:$0xff]  }
 0xb71   :  { %11843 = vmatprep.subr.bf16.mxu0 %v17010_v39  ;;  %v11925_v39 = vld [vmem:[#allocation15] sm:$0x3] }
 0xb74   :  { %11844 = vmatpush1.bf16.msra.mxu0 %v17008_v55  ;;  %v11930_v55 = vrot.slane %v11925_v39, %v19100_v20 }
 0xb75   :  { %11845 = vmatprep.subr.bf16.mxu0 %v17013_v2 }
 0xb78   :  { %11846 = vmatpush1.bf16.msra.mxu0 %v17011_v56  ;;  %v11934_v56 = vrot.slane %v11925_v39, %v19102_v3  ;;  %v12377_v39 = vld [vmem:[#allocation16 + $0x8] sm:$0xf] }
 0xb79   :  { %11847 = vmatprep.subr.bf16.mxu0 %v17016_v10 }
 0xb7c   :  { %11848 = vmatpush1.bf16.msra.mxu0 %v17014_v5 }
 0xb7d   :  { %11849 = vmatprep.subr.bf16.mxu0 %v17019_v18 }
 0xb80   :  { %11850 = vmatpush1.bf16.msra.mxu0 %v17017_v62 }
 0xb81   :  { %11851 = vmatprep.subr.bf16.mxu0 %v17022_v60 }
 0xb84   :  { %11852 = vmatpush1.bf16.msra.mxu0 %v17020_v7 }
 0xb85   :  { %11853 = vmatprep.subr.bf16.mxu0 %v17025_v31 }
 0xb88   :  { %11854 = vmatpush1.bf16.msra.mxu0 %v17023_v52 }
 0xb89   :  { %11855 = vmatprep.subr.bf16.mxu0 %v17028_v28 }
 0xb8c   :  { %11856 = vmatpush1.bf16.msra.mxu0 %v17026_v29  ;;  %v17093_v29 = vld [vmem:[%s19049_s11 + $0x80] sm:$0xff]  }
 0xb8d   :  { %11857 = vmatprep.subr.bf16.mxu0 %v17031_v34  ;;  %v17094_v34 = vld [vmem:[%s19049_s11 + $0xc8] sm:$0xff]  }
 0xb90   :  { %11858 = vmatpush1.bf16.msra.mxu0 %v17029_v4  ;;  %v17095_v4 = vld [vmem:[%s19049_s11 + $0x88] sm:$0xff]  }
 0xb91   :  { %11859 = vmatprep.subr.bf16.mxu0 %v17034_v23  ;;  %v17096_v23 = vld [vmem:[%s19049_s11 + $0xd0] sm:$0xff]  }
 0xb94   :  { %11860 = vmatpush1.bf16.msra.mxu0 %v17032_v53  ;;  %v17097_v53 = vld [vmem:[%s19049_s11 + $0x90] sm:$0xff]  }
 0xb95   :  { %11861 = vmatprep.subr.bf16.mxu0 %v17037_v22  ;;  %v17098_v22 = vld [vmem:[%s19049_s11 + $0xd8] sm:$0xff]  }
 0xb98   :  { %11862 = vmatpush1.bf16.msra.mxu0 %v17035_v43  ;;  %v17099_v43 = vld [vmem:[%s19049_s11 + $0x98] sm:$0xff]  }
 0xb99   :  { %11863 = vmatprep.subr.bf16.mxu0 %v17040_v0  ;;  %v17100_v0 = vld [vmem:[%s19049_s11 + $0xe0] sm:$0xff]  }
 0xb9c   :  { %11864 = vmatpush1.bf16.msra.mxu0 %v17038_v30  ;;  %v17101_v30 = vld [vmem:[%s19049_s11 + $0xa0] sm:$0xff]  }
 0xb9d   :  { %11865 = vmatprep.subr.bf16.mxu0 %v17043_v35  ;;  %v17102_v35 = vld [vmem:[%s19049_s11 + $0xe8] sm:$0xff]  }
 0xba0   :  { %11866 = vmatpush1.bf16.msra.mxu0 %v17041_v63  ;;  %v17103_v63 = vld [vmem:[%s19049_s11 + $0xa8] sm:$0xff]  }
 0xba1   :  { %11878 = vmatprep.subr.bf16.mxu0 %v17046_v49  ;;  %v17104_v49 = vld [vmem:[%s19049_s11 + $0xf0] sm:$0xff]  }
 0xba3   :  { %11868 = vmatmul.mubr.bf16.vlgmr.msra.gmra.mrb[120].mxu0 %v11446_v59  ;;  %v17064_v59 = vld [vmem:[#allocation13 + $0x564] ss:$8 sps:$4 sm:$0xff]  }
 0xba4   :  { %11879 = vmatpush1.bf16.msra.mxu0 %v17044_v41  ;;  %11910 = vmatprep.mubr.bf16.mxu0 %v11449_v9  ;;  %v17077_v9 = vld [vmem:[#allocation13 + $0x5b0] ss:$8 sps:$4 sm:$0xff]   ;;  %v17105_v41 = vld [vmem:[%s19049_s11 + $0xb0] sm:$0xff]  }
 0xba5   :  { %11880 = vmatprep.subr.bf16.mxu0 %v17049_v16  ;;  %v17106_v16 = vld [vmem:[%s19049_s11 + $0xf8] sm:$0xff]  }
 0xba8   :  { %11881 = vmatpush1.bf16.msra.mxu0 %v17047_v33  ;;  %v17107_v33 = vld [vmem:[%s19049_s11 + $0xb8] sm:$0xff]  }
 0xba9   :  { %11882 = vmatprep.subr.bf16.mxu0 %v17052_v8  ;;  %v17108_v8 = vld [vmem:[%s19049_s11 + $0x40] sm:$0xff]  }
 0xbac   :  { %11883 = vmatpush1.bf16.msra.mxu0 %v17050_v26 }
 0xbad   :  { %11884 = vmatprep.subr.bf16.mxu0 %v17055_v1 }
 0xbb0   :  { %11885 = vmatpush1.bf16.msra.mxu0 %v17053_v24 }
 0xbb1   :  { %11886 = vmatprep.subr.bf16.mxu0 %v17058_v38 }
 0xbb4   :  { %11887 = vmatpush1.bf16.msra.mxu0 %v17056_v6 }
 0xbb5   :  { %11888 = vmatprep.subr.bf16.mxu0 %v17061_v13 }
 0xbb8   :  { %11889 = vmatpush1.bf16.msra.mxu0 %v17059_v40 }
 0xbb9   :  { %11890 = vmatprep.subr.bf16.mxu0 %v17064_v59 }
 0xbbc   :  { %11891 = vmatpush1.bf16.msra.mxu0 %v17062_v47  ;;  %v17109_v47 = vld [vmem:[%s19049_s11] sm:$0xff]  }
 0xbbd   :  { %11892 = vmatprep.subr.bf16.mxu0 %v17067_v19 }
 0xbc0   :  { %11893 = vmatpush1.bf16.msra.mxu0 %v17065_v32 }
 0xbc1   :  { %11894 = vmatprep.subr.bf16.mxu0 %v17070_v17  ;;  %v17110_v17 = vld [vmem:[%s19049_s11 + $0x48] sm:$0xff]  }
 0xbc4   :  { %11895 = vmatpush1.bf16.msra.mxu0 %v17068_v11 }
 0xbc5   :  { %11896 = vmatprep.subr.bf16.mxu0 %v17073_v36  ;;  %v17111_v36 = vld [vmem:[%s19049_s11 + $0x8] sm:$0xff]  }
 0xbc8   :  { %11897 = vmatpush1.bf16.msra.mxu0 %v17071_v25  ;;  %v17112_v25 = vld [vmem:[%s19049_s11 + $0x50] sm:$0xff]  }
 0xbc9   :  { %11898 = vmatprep.subr.bf16.mxu0 %v17076_v37  ;;  %v17113_v37 = vld [vmem:[%s19049_s11 + $0x10] sm:$0xff]  }
 0xbcc   :  { %11899 = vmatpush1.bf16.msra.mxu0 %v17074_v27  ;;  %v17114_v27 = vld [vmem:[%s19049_s11 + $0x58] sm:$0xff]  }
 0xbcd   :  { %11900 = vmatprep.subr.bf16.mxu0 %v17079_v61  ;;  %v17115_v61 = vld [vmem:[%s19049_s11 + $0x18] sm:$0xff]  }
 0xbd0   :  { %11901 = vmatpush1.bf16.msra.mxu0 %v17077_v9  ;;  %v17116_v9 = vld [vmem:[%s19049_s11 + $0x60] sm:$0xff]  }
 0xbd1   :  { %11902 = vmatprep.subr.bf16.mxu0 %v17082_v46  ;;  %v17117_v46 = vld [vmem:[%s19049_s11 + $0x20] sm:$0xff]  }
 0xbd4   :  { %11903 = vmatpush1.bf16.msra.mxu0 %v17080_v15  ;;  %v17118_v15 = vld [vmem:[%s19049_s11 + $0x68] sm:$0xff]  }
 0xbd5   :  { %11904 = vmatprep.subr.bf16.mxu0 %v17085_v51  ;;  %v17119_v51 = vld [vmem:[%s19049_s11 + $0x28] sm:$0xff]  }
 0xbd8   :  { %11905 = vmatpush1.bf16.msra.mxu0 %v17083_v44  ;;  %v17120_v44 = vld [vmem:[%s19049_s11 + $0x70] sm:$0xff]  }
 0xbd9   :  { %11906 = vmatprep.subr.bf16.mxu0 %v17088_v50  ;;  %v17121_v50 = vld [vmem:[%s19049_s11 + $0x30] sm:$0xff]  }
 0xbdc   :  { %11907 = vmatpush1.bf16.msra.mxu0 %v17086_v12  ;;  %v17122_v12 = vld [vmem:[%s19049_s11 + $0x78] sm:$0xff]  }
 0xbdd   :  { %11908 = vmatprep.subr.bf16.mxu0 %v17091_v21  ;;  %v17123_v21 = vld [vmem:[%s19049_s11 + $0x38] sm:$0xff]  }
 0xbe0   :  { %11909 = vmatpush1.bf16.msra.mxu0 %v17089_v58 }
 0xbe3   :  { %11911 = vmatmul.mubr.bf16.vlgmr.msra.gmra.mrb[120].mxu0 %v11448_v14  ;;  %v12024_v14 = vld [vmem:[#allocation16 + $0x4] sm:$0xf] }
 0xcb6   :  { %v11912_v2 = vpop.f32.mrb[120].mxu0 }
 0xcb7   :  { %v11914_v10 = vpop.f32.mrb[121].mxu0  ;;  %v11937_v18 = vadd.f32 %v11930_v55, %v11912_v2  ;;  %v17125_v2 = vld [vmem:[%s19049_s11 + $0x100] sm:$0xff]  }
 0xcb8   :  { %v11916_v5 = vpop.f32.mrb[122].mxu0  ;;  %v11938_v7 = vadd.f32 %v11934_v56, %v11914_v10  ;;  %v17127_v10 = vld [vmem:[%s19049_s11 + $0x108] sm:$0xff]  }
 0xcb9   :  { %v11939_v62 = vadd.f32 %v11930_v55, %v11916_v5  ;;  %v11918_v60 = vpop.f32.mrb[123].mxu0  ;;  %v17124_v55 = vld [vmem:[%s19049_s11 + $0x140] sm:$0xff]   ;;  %v17128_v5 = vld [vmem:[%s19049_s11 + $0x150] sm:$0xff]  }
 0xcba   :  { %v11940_v31 = vadd.f32 %v11934_v56, %v11918_v60  ;;  %v17126_v56 = vld [vmem:[%s19049_s11 + $0x148] sm:$0xff]   ;;  %v17131_v60 = vld [vmem:[%s19049_s11 + $0x118] sm:$0xff]  }
 0xcbb   :  { %v18829_v52 = vpack.c.bf16 %v11939_v62, %v11937_v18  ;;  %v17129_v18 = vld [vmem:[%s19049_s11 + $0x110] sm:$0xff]   ;;  %v17130_v62 = vld [vmem:[%s19049_s11 + $0x158] sm:$0xff]  }
 0xcbc   :  { %v18831_v28 = vpack.c.bf16 %v11940_v31, %v11938_v7  ;;  %v17132_v7 = vld [vmem:[%s19049_s11 + $0x160] sm:$0xff]  }
 0xcbd   :  { %v17133_v31 = vld [vmem:[%s19049_s11 + $0x120] sm:$0xff]  }
 0xcbe   :  { %11948 = vmatprep.subr.bf16.mxu1 %v18831_v28 }
 0xcbf   :  { %11949 = vmatpush1.bf16.msra.mxu1 %v18829_v52 }
 0xcc0   :  { %12028 = vmatprep.subr.bf16.mxu1 %v18831_v28 }
 0xcc2   :  { %14962 = vmatmul.mubr.msk.bf16.vlgmr.msra.gmra.mrb[144].mxu1 %vm11944_vm2, %v11943_v54  ;;  %v17136_v54 = vld [vmem:[%s19049_s11 + $0x170] sm:$0xff]  }
 0xcc3   :  { %12029 = vmatpush1.bf16.msra.mxu1 %v18829_v52  ;;  %12060 = vmatprep.mubr.bf16.mxu1 %v19091_v48 }
 0xcc4   :  { %15158 = vmatprep.subr.bf16.mxu1 %v17092_v45  ;;  %v17137_v45 = vld [vmem:[%s19049_s11 + $0x130] sm:$0xff]  }
 0xcca   :  { %14963 = vmatmul.mubr.msk.bf16.vlgmr.msra.gmra.mrb[148].mxu1 %vm11944_vm2, %v12024_v14  ;;  %v17138_v14 = vld [vmem:[%s19049_s11 + $0x178] sm:$0xff]  }
 0xccb   :  { %15159 = vmatpush3.bf16.msra.mxu1 %v17093_v29  ;;  %v17139_v29 = vld [vmem:[%s19049_s11 + $0x138] sm:$0xff]  }
 0xccc   :  { %15160 = vmatprep.subr.bf16.mxu1 %v17094_v34 }
 0xccf   :  { %15161 = vmatpush3.bf16.msra.mxu1 %v17095_v4 }
 0xcd0   :  { %15162 = vmatprep.subr.bf16.mxu1 %v17096_v23 }
 0xcd3   :  { %15163 = vmatpush3.bf16.msra.mxu1 %v17097_v53 }
 0xcd4   :  { %15164 = vmatprep.subr.bf16.mxu1 %v17098_v22 }
 0xcd7   :  { %15165 = vmatpush3.bf16.msra.mxu1 %v17099_v43 }
 0xcd8   :  { %15166 = vmatprep.subr.bf16.mxu1 %v17100_v0 }
 0xcdb   :  { %15167 = vmatpush3.bf16.msra.mxu1 %v17101_v30 }
 0xcdc   :  { %15168 = vmatprep.subr.bf16.mxu1 %v17102_v35 }
 0xcdf   :  { %15169 = vmatpush3.bf16.msra.mxu1 %v17103_v63 }
 0xce0   :  { %15170 = vmatprep.subr.bf16.mxu1 %v17104_v49 }
 0xce3   :  { %15171 = vmatpush3.bf16.msra.mxu1 %v17105_v41 }
 0xce4   :  { %15172 = vmatprep.subr.bf16.mxu1 %v17106_v16 }
 0xce7   :  { %15173 = vmatpush3.bf16.msra.mxu1 %v17107_v33 }
 0xce8   :  { %15180 = vmatprep.subr.bf16.mxu1 %v17108_v8 }
 0xd95   :  { %v11982_v26 = vpop.f32.mrb[144].mxu1 }
 0xd96   :  { %v11984_v1 = vpop.f32.mrb[145].mxu1  ;;  %v11989_v58 = vpack.c.bf16 %v11982_v26, %v11982_v26 }
 0xd97   :  { %v11986_v24 = vpop.f32.mrb[146].mxu1  ;;  %v11990_v11 = vpack.c.bf16 %v11984_v1, %v11984_v1 }
 0xd98   :  { %v11987_v38 = vpop.f32.mrb[147].mxu1  ;;  %v17600_v24 = vmov 0.0  }
 0xd9d   :  { %v12062_v6 = vpop.f32.mrb[148].mxu1 }
 0xd9e   :  { %v12064_v13 = vpop.f32.mrb[149].mxu1  ;;  %v12069_v19 = vpack.c.bf16 %v12062_v6, %v12062_v6 }
 0xd9f   :  { %v12070_v40 = vpack.c.bf16 %v12064_v13, %v12064_v13  ;;  %v12066_v59 = vpop.f32.mrb[150].mxu1 }
 0xda0   :  { %v12067_v32 = vpop.f32.mrb[151].mxu1  ;;  %v15077_v59 = vld [vmem:[#allocation18] ss:$0 sm:$0xff] }
 0xda1   :  { %12232 = vmatprep.mubr.bf16.mxu1 %v12070_v40 }
 0xda2   :  { %12233 = vmatmul.mubr.bf16.vlgmr.msra.gmra.mrb[152].mxu1 %v12069_v19 }
 0xda3   :  { %15181 = vmatpush3.bf16.msra.mxu1 %v17109_v47  ;;  %12368 = vmatprep.mubr.bf16.mxu1 %v11990_v11 }
 0xda4   :  { %15182 = vmatprep.subr.bf16.mxu1 %v17110_v17 }
 0xda7   :  { %15183 = vmatpush3.bf16.msra.mxu1 %v17111_v36  ;;  %v12603_v36 = vld [vmem:[#allocation19] sm:$0x1] }
 0xda8   :  { %15184 = vmatprep.subr.bf16.mxu1 %v17112_v25  ;;  %v17142_v25 = vld [vmem:[#allocation21 + $0x84] ss:$16 sps:$4 sm:$0xff]  }
 0xdab   :  { %15185 = vmatpush3.bf16.msra.mxu1 %v17113_v37  ;;  %v12670_v37 = vld [vmem:[#allocation19 + $0x1] sm:$0x1] }
 0xdac   :  { %15186 = vmatprep.subr.bf16.mxu1 %v17114_v27  ;;  %v17140_v27 = vld [vmem:[#allocation21 + $0x80] ss:$16 sps:$4 sm:$0xff]  }
 0xdaf   :  { %15187 = vmatpush3.bf16.msra.mxu1 %v17115_v61  ;;  %v17145_v61 = vld [vmem:[#allocation21 + $0xa4] ss:$16 sps:$4 sm:$0xff]  }
 0xdb0   :  { %15188 = vmatprep.subr.bf16.mxu1 %v17116_v9  ;;  %v17143_v9 = vld [vmem:[#allocation21 + $0xa0] ss:$16 sps:$4 sm:$0xff]  }
 0xdb3   :  { %15189 = vmatpush3.bf16.msra.mxu1 %v17117_v46  ;;  %v17148_v46 = vld [vmem:[#allocation21 + $0xc4] ss:$16 sps:$4 sm:$0xff]  }
 0xdb4   :  { %15190 = vmatprep.subr.bf16.mxu1 %v17118_v15  ;;  %v17146_v15 = vld [vmem:[#allocation21 + $0xc0] ss:$16 sps:$4 sm:$0xff]  }
 0xdb7   :  { %15191 = vmatpush3.bf16.msra.mxu1 %v17119_v51  ;;  %v17149_v51 = vld [vmem:[#allocation21 + $0xe0] ss:$16 sps:$4 sm:$0xff]  }
 0xdb8   :  { %15192 = vmatprep.subr.bf16.mxu1 %v17120_v44  ;;  %v17151_v44 = vld [vmem:[#allocation21 + $0xe4] ss:$16 sps:$4 sm:$0xff]  }
 0xdbb   :  { %15193 = vmatpush3.bf16.msra.mxu1 %v17121_v50  ;;  %v17154_v50 = vld [vmem:[#allocation21 + $0x8c] ss:$16 sps:$4 sm:$0xff]  }
 0xdbc   :  { %15194 = vmatprep.subr.bf16.mxu1 %v17122_v12 }
 0xdbf   :  { %15195 = vmatpush3.bf16.msra.mxu1 %v17123_v21 }
 0xdc0   :  { %12381 = vmatprep.subr.bf16.mxu1 %v18831_v28  ;;  %v17135_v28 = vld [vmem:[%s19049_s11 + $0x128] sm:$0xff]  }
 0xdc2   :  { %12369 = vmatmul.mubr.bf16.vlgmr.msra.gmra.mrb[156].mxu1 %v11989_v58 }
 0xdc3   :  { %12382 = vmatpush1.bf16.msra.mxu1 %v18829_v52  ;;  %12413 = vmatprep.mubr.bf16.mxu1 %v19091_v48  ;;  %v17134_v52 = vld [vmem:[%s19049_s11 + $0x168] sm:$0xff]  }
 0xdc4   :  { %15202 = vmatprep.subr.bf16.mxu1 %v17124_v55 }
 0xdca   :  { %15028 = vmatmul.mubr.msk.bf16.vlgmr.msra.gmra.mrb[160].mxu1 %vm11944_vm2, %v12377_v39 }
 0xdcb   :  { %15203 = vmatpush3.bf16.msra.mxu1 %v17125_v2  ;;  %v17152_v2 = vld [vmem:[#allocation21 + $0x88] ss:$16 sps:$4 sm:$0xff]  }
 0xdcc   :  { %15204 = vmatprep.subr.bf16.mxu1 %v17126_v56 }
 0xdcf   :  { %15205 = vmatpush3.bf16.msra.mxu1 %v17127_v10 }
 0xdd0   :  { %15206 = vmatprep.subr.bf16.mxu1 %v17128_v5  ;;  %v17157_v5 = vld [vmem:[#allocation21 + $0xac] ss:$16 sps:$4 sm:$0xff]  }
 0xdd3   :  { %15207 = vmatpush3.bf16.msra.mxu1 %v17129_v18 }
 0xdd4   :  { %15208 = vmatprep.subr.bf16.mxu1 %v17130_v62 }
 0xdd7   :  { %15209 = vmatpush3.bf16.msra.mxu1 %v17131_v60  ;;  %v17155_v60 = vld [vmem:[#allocation21 + $0xa8] ss:$16 sps:$4 sm:$0xff]  }
 0xdd8   :  { %15210 = vmatprep.subr.bf16.mxu1 %v17132_v7  ;;  %v17160_v7 = vld [vmem:[#allocation21 + $0xcc] ss:$16 sps:$4 sm:$0xff]  }
 0xddb   :  { %15211 = vmatpush3.bf16.msra.mxu1 %v17133_v31  ;;  %v17158_v31 = vld [vmem:[#allocation21 + $0xc8] ss:$16 sps:$4 sm:$0xff]  }
 0xddc   :  { %15212 = vmatprep.subr.bf16.mxu1 %v17134_v52  ;;  %v17163_v52 = vld [vmem:[#allocation21 + $0xec] ss:$16 sps:$4 sm:$0xff]  }
 0xddf   :  { %15213 = vmatpush3.bf16.msra.mxu1 %v17135_v28  ;;  %v17161_v28 = vld [vmem:[#allocation21 + $0xe8] ss:$16 sps:$4 sm:$0xff]  }
 0xde0   :  { %15214 = vmatprep.subr.bf16.mxu1 %v17136_v54  ;;  %v17166_v54 = vld [vmem:[#allocation21 + $0x4] ss:$16 sps:$4 sm:$0xff]  }
 0xde3   :  { %15215 = vmatpush3.bf16.msra.mxu1 %v17137_v45  ;;  %v17164_v45 = vld [vmem:[#allocation21] ss:$16 sps:$4 sm:$0xff]  }
 0xde4   :  { %15216 = vmatprep.subr.bf16.mxu1 %v17138_v14  ;;  %v17169_v14 = vld [vmem:[#allocation21 + $0x24] ss:$16 sps:$4 sm:$0xff]  }
 0xde7   :  { %15217 = vmatpush3.bf16.msra.mxu1 %v17139_v29  ;;  %v17167_v29 = vld [vmem:[#allocation21 + $0x20] ss:$16 sps:$4 sm:$0xff]  }
 0xde8   :  { %15232 = vmatprep.subr.bf16.mxu1 %v17600_v24 }
 0xe75   :  { %v15174_v34 = vpop.f32.mrb[152].mxu1 }
 0xe76   :  { %v15175_v4 = vpop.f32.mrb[153].mxu1 }
 0xe77   :  { %v15176_v23 = vadd.f32 %v15175_v4, %v15174_v34  ;;  %v15177_v53 = vpop.f32.mrb[154].mxu1  ;;  %v17172_v34 = vld [vmem:[#allocation21 + $0x44] ss:$16 sps:$4 sm:$0xff]   ;;  %v17170_v4 = vld [vmem:[#allocation21 + $0x40] ss:$16 sps:$4 sm:$0xff]  }
 0xe78   :  { %v15178_v22 = vpop.f32.mrb[155].mxu1  ;;  %v17173_v53 = vld [vmem:[#allocation21 + $0x60] ss:$16 sps:$4 sm:$0xff]  }
 0xe79   :  { %v17178_v22 = vld [vmem:[#allocation21 + $0xc] ss:$16 sps:$4 sm:$0xff]  }
 0xe95   :  { %v15196_v43 = vpop.f32.mrb[156].mxu1 }
 0xe96   :  { %v15197_v0 = vpop.f32.mrb[157].mxu1 }
 0xe97   :  { %v15198_v30 = vadd.f32 %v15197_v0, %v15196_v43  ;;  %v15199_v35 = vpop.f32.mrb[158].mxu1  ;;  %v17176_v43 = vld [vmem:[#allocation21 + $0x8] ss:$16 sps:$4 sm:$0xff]  }
 0xe98   :  { %v15200_v63 = vpop.f32.mrb[159].mxu1  ;;  %v17179_v35 = vld [vmem:[#allocation21 + $0x28] ss:$16 sps:$4 sm:$0xff]  }
 0xe99   :  { %v12371_v49 = vadd.f32 %v15198_v30, %v15176_v23  ;;  %v17175_v23 = vld [vmem:[#allocation21 + $0x64] ss:$16 sps:$4 sm:$0xff]   ;;  %v17181_v30 = vld [vmem:[#allocation21 + $0x2c] ss:$16 sps:$4 sm:$0xff]  }
 0xe9a   :  { %v17184_v63 = vld [vmem:[#allocation21 + $0x4c] ss:$16 sps:$4 sm:$0xff]  }
 0xe9d   :  { %v12415_v41 = vpop.f32.mrb[160].mxu1 }
 0xe9e   :  { %v12417_v16 = vpop.f32.mrb[161].mxu1  ;;  %v12422_v26 = vpack.c.bf16 %v12415_v41, %v12415_v41  ;;  %v17187_v41 = vld [vmem:[#allocation21 + $0x6c] ss:$16 sps:$4 sm:$0xff]  }
 0xe9f   :  { %v12423_v33 = vpack.c.bf16 %v12417_v16, %v12417_v16  ;;  %v12419_v8 = vpop.f32.mrb[162].mxu1  ;;  %v17185_v16 = vld [vmem:[#allocation21 + $0x68] ss:$16 sps:$4 sm:$0xff]  }
 0xea0   :  { %v12420_v1 = vpop.f32.mrb[163].mxu1  ;;  %v17188_v8 = vld [vmem:[#allocation21 + $0x100] ss:$16 sps:$4 sm:$0xff]  }
 0xea1   :  { %12585 = vmatprep.mubr.bf16.mxu1 %v12423_v33  ;;  %v13063_v33 = vld [vmem:[#allocation19 + $0x2] sm:$0x1]  ;;  %v17193_v1 = vld [vmem:[#allocation21 + $0x124] ss:$16 sps:$4 sm:$0xff]  }
 0xea2   :  { %12586 = vmatmul.mubr.bf16.vlgmr.msra.gmra.mrb[164].mxu1 %v12422_v26  ;;  %v17190_v26 = vld [vmem:[#allocation21 + $0x104] ss:$16 sps:$4 sm:$0xff]  }
 0xea3   :  { %15234 = vmatprep.mubr.msk.bf16.mxu1 %vm17601_vm3, %v17600_v24 }
 0xf75   :  { %v15218_v38 = vpop.f32.mrb[164].mxu1 }
 0xf76   :  { %v15219_v6 = vpop.f32.mrb[165].mxu1 }
 0xf77   :  { %v15220_v13 = vadd.f32 %v15219_v6, %v15218_v38  ;;  %v15221_v40 = vpop.f32.mrb[166].mxu1  ;;  %v17191_v38 = vld [vmem:[#allocation21 + $0x120] ss:$16 sps:$4 sm:$0xff]   ;;  %v17196_v6 = vld [vmem:[#allocation21 + $0x144] ss:$16 sps:$4 sm:$0xff]  }
 0xf78   :  { %v15222_v47 = vpop.f32.mrb[167].mxu1  ;;  %v17197_v40 = vld [vmem:[#allocation21 + $0x160] ss:$16 sps:$4 sm:$0xff]  }
 0xf79   :  { %v12593_v19 = vadd.f32 %v15220_v13, %v12371_v49  ;;  %v17182_v49 = vld [vmem:[#allocation21 + $0x48] ss:$16 sps:$4 sm:$0xff]   ;;  %v17194_v13 = vld [vmem:[#allocation21 + $0x140] ss:$16 sps:$4 sm:$0xff]   ;;  %v17202_v47 = vld [vmem:[#allocation21 + $0x10c] ss:$16 sps:$4 sm:$0xff]  }
 0xf7b   :  { %v12601_v32 = vadd.f32 %v15077_v59, %v12593_v19  ;;  %v17199_v59 = vld [vmem:[#allocation21 + $0x164] ss:$16 sps:$4 sm:$0xff]  }
 0xf7d   :  { %v12602_v17 = vpack.c.bf16 %v12601_v32, %v12601_v32 }
 0xf7f   :  { %v18991_v11 = vsel %vm12608_vm4, %v12602_v17, 0 }
 0xf80   :  { %15233 = vmatpush3.bf16.msra.mxu1 %v18991_v11 }
 0xf81   :  { %15238 = vmatprep.subr.bf16.mxu1 %v17600_v24 }
 0xf83   :  { %15235 = vmatmul.mubr.msk.bf16.vlgmr.msra.gmra.mrb[168].mxu1 %vm12604_vm5, %v12603_v36 }
 0xf84   :  { %15239 = vmatpush3.bf16.msra.mxu1 %v18991_v11  ;;  %15240 = vmatprep.mubr.msk.bf16.mxu1 %vm17601_vm3, %v17600_v24 }
 0xf85   :  { %12815 = vmatprep.subr.bf16.mxu1 %v17142_v25 }
 0xf8b   :  { %15241 = vmatmul.mubr.msk.bf16.vlgmr.msra.gmra.mrb[172].mxu1 %vm12604_vm5, %v12670_v37 }
 0xf8c   :  { %12816 = vmatpush1.bf16.msra.mxu1 %v17140_v27  ;;  %12847 = vmatprep.mubr.bf16.mxu1 %v19091_v48 }
 0xf8d   :  { %12817 = vmatprep.subr.bf16.mxu1 %v17145_v61 }
 0xf90   :  { %12818 = vmatpush1.bf16.msra.mxu1 %v17143_v9 }
 0xf91   :  { %12819 = vmatprep.subr.bf16.mxu1 %v17148_v46 }
 0xf94   :  { %12820 = vmatpush1.bf16.msra.mxu1 %v17146_v15 }
 0xf95   :  { %12821 = vmatprep.subr.bf16.mxu1 %v17151_v44 }
 0xf98   :  { %12822 = vmatpush1.bf16.msra.mxu1 %v17149_v51 }
 0xf99   :  { %12856 = vmatprep.subr.bf16.mxu1 %v17154_v50 }
0x1056   :  { %v12646_v12 = vpop.f32.mrb[168].mxu1 }
0x1057   :  { %v15236_v21 = vpop.f32.mrb[169].mxu1  ;;  %v12652_v0 = vpack.c.bf16 %v12646_v12, %v12646_v12 }
0x1058   :  { %v12649_v58 = vpop.f32.mrb[170].mxu1 }
0x1059   :  { %v15237_v39 = vpop.f32.mrb[171].mxu1 }
0x105e   :  { %v12708_v55 = vpop.f32.mrb[172].mxu1 }
0x105f   :  { %v12714_v56 = vpack.c.bf16 %v12708_v55, %v12708_v55  ;;  %v15242_v10 = vpop.f32.mrb[173].mxu1 }
0x1060   :  { %v12711_v18 = vpop.f32.mrb[174].mxu1  ;;  %v17200_v10 = vld [vmem:[#allocation21 + $0x108] ss:$16 sps:$4 sm:$0xff]  }
0x1061   :  { %15096 = vmatmul.mubr.msk.bf16.vlgmr.msra.gmra.mrb[176].mxu1 %vm1230_vm0, %v12714_v56  ;;  %v15243_v62 = vpop.f32.mrb[175].mxu1 }
0x1062   :  { %12857 = vmatpush1.bf16.msra.mxu1 %v17152_v2  ;;  %12888 = vmatprep.mubr.bf16.mxu1 %v19091_v48  ;;  %v17205_v62 = vld [vmem:[#allocation21 + $0x12c] ss:$16 sps:$4 sm:$0xff]  }
0x1063   :  { %12858 = vmatprep.subr.bf16.mxu1 %v17157_v5 }
0x1066   :  { %12859 = vmatpush1.bf16.msra.mxu1 %v17155_v60 }
0x1067   :  { %12860 = vmatprep.subr.bf16.mxu1 %v17160_v7 }
0x106a   :  { %12861 = vmatpush1.bf16.msra.mxu1 %v17158_v31  ;;  %v17203_v31 = vld [vmem:[#allocation21 + $0x128] ss:$16 sps:$4 sm:$0xff]  }
0x106b   :  { %12862 = vmatprep.subr.bf16.mxu1 %v17163_v52  ;;  %v17208_v52 = vld [vmem:[#allocation21 + $0x14c] ss:$16 sps:$4 sm:$0xff]  }
0x106e   :  { %12863 = vmatpush1.bf16.msra.mxu1 %v17161_v28  ;;  %v17206_v28 = vld [vmem:[#allocation21 + $0x148] ss:$16 sps:$4 sm:$0xff]  }
0x106f   :  { %12980 = vmatprep.subr.bf16.mxu1 %v17166_v54  ;;  %v17211_v54 = vld [vmem:[#allocation21 + $0x16c] ss:$16 sps:$4 sm:$0xff]  }
0x1071   :  { %15097 = vmatmul.mubr.msk.bf16.vlgmr.msra.gmra.mrb[180].mxu1 %vm1230_vm0, %v12714_v56 }
0x1072   :  { %12981 = vmatpush1.bf16.msra.mxu1 %v17164_v45  ;;  %13012 = vmatprep.mubr.bf16.mxu1 %v19091_v48  ;;  %v17209_v45 = vld [vmem:[#allocation21 + $0x168] ss:$16 sps:$4 sm:$0xff]  }
0x1073   :  { %12982 = vmatprep.subr.bf16.mxu1 %v17169_v14  ;;  %v13295_v14 = vld [vmem:[#allocation19 + $0x3] sm:$0x1] }
0x1076   :  { %12983 = vmatpush1.bf16.msra.mxu1 %v17167_v29  ;;  %v17212_v29 = vld [vmem:[#allocation21 + $0x180] ss:$16 sps:$4 sm:$0xff]  }
0x1077   :  { %12984 = vmatprep.subr.bf16.mxu1 %v17172_v34  ;;  %v17214_v34 = vld [vmem:[#allocation21 + $0x184] ss:$16 sps:$4 sm:$0xff]  }
0x107a   :  { %12985 = vmatpush1.bf16.msra.mxu1 %v17170_v4  ;;  %v17217_v4 = vld [vmem:[#allocation21 + $0x1a4] ss:$16 sps:$4 sm:$0xff]  }
0x107b   :  { %12986 = vmatprep.subr.bf16.mxu1 %v17175_v23  ;;  %v17215_v23 = vld [vmem:[#allocation21 + $0x1a0] ss:$16 sps:$4 sm:$0xff]  }
0x107e   :  { %12987 = vmatpush1.bf16.msra.mxu1 %v17173_v53  ;;  %v17220_v53 = vld [vmem:[#allocation21 + $0x1c4] ss:$16 sps:$4 sm:$0xff]  }
0x107f   :  { %13021 = vmatprep.subr.bf16.mxu1 %v17178_v22  ;;  %v17218_v22 = vld [vmem:[#allocation21 + $0x1c0] ss:$16 sps:$4 sm:$0xff]  }
0x1081   :  { %15114 = vmatmul.mubr.msk.bf16.vlgmr.msra.gmra.mrb[184].mxu1 %vm1230_vm0, %v12652_v0 }
0x1082   :  { %13022 = vmatpush1.bf16.msra.mxu1 %v17176_v43  ;;  %13053 = vmatprep.mubr.bf16.mxu1 %v19091_v48  ;;  %v17223_v43 = vld [vmem:[#allocation21 + $0x1e4] ss:$16 sps:$4 sm:$0xff]  }
0x1083   :  { %13023 = vmatprep.subr.bf16.mxu1 %v17181_v30 }
0x1086   :  { %13024 = vmatpush1.bf16.msra.mxu1 %v17179_v35 }
0x1087   :  { %13025 = vmatprep.subr.bf16.mxu1 %v17184_v63 }
0x108a   :  { %13026 = vmatpush1.bf16.msra.mxu1 %v17182_v49 }
0x108b   :  { %13027 = vmatprep.subr.bf16.mxu1 %v17187_v41 }
0x108e   :  { %13028 = vmatpush1.bf16.msra.mxu1 %v17185_v16 }
0x108f   :  { %15244 = vmatprep.subr.bf16.mxu1 %v17600_v24 }
0x1091   :  { %15115 = vmatmul.mubr.msk.bf16.vlgmr.msra.gmra.mrb[188].mxu1 %vm1230_vm0, %v12652_v0  ;;  %v17226_v0 = vld [vmem:[#allocation21 + $0x18c] ss:$16 sps:$4 sm:$0xff]  }
0x1092   :  { %15245 = vmatpush3.bf16.msra.mxu1 %v18991_v11  ;;  %15246 = vmatprep.mubr.msk.bf16.mxu1 %vm17601_vm3, %v17600_v24 }
0x1093   :  { %13208 = vmatprep.subr.bf16.mxu1 %v17190_v26 }
0x1099   :  { %15247 = vmatmul.mubr.msk.bf16.vlgmr.msra.gmra.mrb[192].mxu1 %vm12604_vm5, %v13063_v33 }
0x109a   :  { %13240 = vmatprep.mubr.bf16.mxu1 %v19091_v48  ;;  %13209 = vmatpush1.bf16.msra.mxu1 %v17188_v8 }
0x109b   :  { %13210 = vmatprep.subr.bf16.mxu1 %v17193_v1 }
0x109e   :  { %13211 = vmatpush1.bf16.msra.mxu1 %v17191_v38 }
0x109f   :  { %13212 = vmatprep.subr.bf16.mxu1 %v17196_v6 }
0x10a2   :  { %13213 = vmatpush1.bf16.msra.mxu1 %v17194_v13 }
0x10a3   :  { %13214 = vmatprep.subr.bf16.mxu1 %v17199_v59 }
0x10a6   :  { %13215 = vmatpush1.bf16.msra.mxu1 %v17197_v40  ;;  %v17224_v40 = vld [vmem:[#allocation21 + $0x188] ss:$16 sps:$4 sm:$0xff]  }
0x10a7   :  { %13249 = vmatprep.subr.bf16.mxu1 %v17202_v47 }
0x1134   :  { %v12849_v19 = vpop.f32.mrb[176].mxu1 }
0x1135   :  { %v12851_v32 = vpop.f32.mrb[177].mxu1 }
0x1136   :  { %v12853_v17 = vpop.f32.mrb[178].mxu1 }
0x1137   :  { %v12854_v36 = vpop.f32.mrb[179].mxu1 }
0x1138   :  { %v17227_v36 = vld [vmem:[#allocation21 + $0x1a8] ss:$16 sps:$4 sm:$0xff]  }
0x1144   :  { %v12890_v25 = vpop.f32.mrb[180].mxu1 }
0x1145   :  { %v12892_v37 = vpop.f32.mrb[181].mxu1 }
0x1146   :  { %v12894_v27 = vpop.f32.mrb[182].mxu1 }
0x1147   :  { %v12895_v61 = vpop.f32.mrb[183].mxu1  ;;  %v17235_v27 = vld [vmem:[#allocation21 + $0x1ec] ss:$16 sps:$4 sm:$0xff]  }
0x1148   :  { %v17233_v61 = vld [vmem:[#allocation21 + $0x1e8] ss:$16 sps:$4 sm:$0xff]  }
0x1154   :  { %v13014_v9 = vpop.f32.mrb[184].mxu1 }
0x1155   :  { %v13015_v46 = vadd.f32 %v13014_v9, %v12849_v19  ;;  %v13016_v15 = vpop.f32.mrb[185].mxu1  ;;  %v17229_v19 = vld [vmem:[#allocation21 + $0x1ac] ss:$16 sps:$4 sm:$0xff]   ;;  %v13526_v9 = vld [vmem:[#allocation22] sm:$0xf] }
0x1156   :  { %v13017_v51 = vadd.f32 %v13016_v15, %v12851_v32  ;;  %v13018_v44 = vpop.f32.mrb[186].mxu1 }
0x1157   :  { %v13019_v50 = vpop.f32.mrb[187].mxu1 }
0x1164   :  { %v13055_v12 = vpop.f32.mrb[188].mxu1 }
0x1165   :  { %v13056_v21 = vadd.f32 %v13055_v12, %v12890_v25  ;;  %v13057_v58 = vpop.f32.mrb[189].mxu1  ;;  %v17232_v25 = vld [vmem:[#allocation21 + $0x1cc] ss:$16 sps:$4 sm:$0xff]  }
0x1166   :  { %v13058_v39 = vadd.f32 %v13057_v58, %v12892_v37  ;;  %v13059_v55 = vpop.f32.mrb[190].mxu1  ;;  %v17230_v37 = vld [vmem:[#allocation21 + $0x1c8] ss:$16 sps:$4 sm:$0xff]  }
0x1167   :  { %v13060_v2 = vpop.f32.mrb[191].mxu1 }
0x116c   :  { %v13101_v56 = vpop.f32.mrb[192].mxu1 }
0x116d   :  { %v13107_v5 = vpack.c.bf16 %v13101_v56, %v13101_v56  ;;  %v15248_v18 = vpop.f32.mrb[193].mxu1 }
0x116e   :  { %v13104_v60 = vpop.f32.mrb[194].mxu1 }
0x116f   :  { %15133 = vmatmul.mubr.msk.bf16.vlgmr.msra.gmra.mrb[196].mxu1 %vm1230_vm0, %v13107_v5  ;;  %v15249_v7 = vpop.f32.mrb[195].mxu1 }
0x1170   :  { %13250 = vmatpush1.bf16.msra.mxu1 %v17200_v10  ;;  %13281 = vmatprep.mubr.bf16.mxu1 %v19091_v48  ;;  %v17602_v10 = vmov 1983009808  }
0x1171   :  { %13251 = vmatprep.subr.bf16.mxu1 %v17205_v62 }
0x1174   :  { %13252 = vmatpush1.bf16.msra.mxu1 %v17203_v31 }
0x1175   :  { %13253 = vmatprep.subr.bf16.mxu1 %v17208_v52 }
0x1178   :  { %13254 = vmatpush1.bf16.msra.mxu1 %v17206_v28 }
0x1179   :  { %13255 = vmatprep.subr.bf16.mxu1 %v17211_v54 }
0x117c   :  { %13256 = vmatpush1.bf16.msra.mxu1 %v17209_v45 }
0x117d   :  { %15250 = vmatprep.subr.bf16.mxu1 %v17600_v24 }
0x117f   :  { %15134 = vmatmul.mubr.msk.bf16.vlgmr.msra.gmra.mrb[200].mxu1 %vm1230_vm0, %v13107_v5  ;;  %v13571_v5 = vunpack.c.l.s4 %v17602_v10 }
0x1180   :  { %15251 = vmatpush3.bf16.msra.mxu1 %v18991_v11  ;;  %15252 = vmatprep.mubr.msk.bf16.mxu1 %vm17601_vm3, %v17600_v24  ;;  %v17221_v11 = vld [vmem:[#allocation21 + $0x1e0] ss:$16 sps:$4 sm:$0xff]  }
0x1181   :  { %13440 = vmatprep.subr.bf16.mxu1 %v17214_v34  ;;  %v13572_v7 = vunpack.c.0.s8 %v13571_v5 }
0x1187   :  { %15253 = vmatmul.mubr.msk.bf16.vlgmr.msra.gmra.mrb[204].mxu1 %vm12604_vm5, %v13295_v14  ;;  %v19104_v14 = vld [vmem:[#allocation32_spill] sm:$0xff] }
0x1188   :  { %13472 = vmatprep.mubr.bf16.mxu1 %v19091_v48  ;;  %13441 = vmatpush1.bf16.msra.mxu1 %v17212_v29  ;;  %v13575_v29 = vsub.s32 %v13572_v7, %v19104_v14 }
0x1189   :  { %13442 = vmatprep.subr.bf16.mxu1 %v17217_v4 }
0x118c   :  { %13443 = vmatpush1.bf16.msra.mxu1 %v17215_v23 }
0x118d   :  { %13444 = vmatprep.subr.bf16.mxu1 %v17220_v53 }
0x1190   :  { %13445 = vmatpush1.bf16.msra.mxu1 %v17218_v22 }
0x1191   :  { %13446 = vmatprep.subr.bf16.mxu1 %v17223_v43 }
0x1194   :  { %13447 = vmatpush1.bf16.msra.mxu1 %v17221_v11 }
0x1195   :  { %13481 = vmatprep.subr.bf16.mxu1 %v17226_v0 }
0x1242   :  { %v13242_v30 = vpop.f32.mrb[196].mxu1 }
0x1243   :  { %v13290_v35 = vadd.f32 %v13242_v30, %v13015_v46  ;;  %v13244_v63 = vpop.f32.mrb[197].mxu1  ;;  %v13531_v46 = vrot.slane %v13526_v9, %v19100_v20  ;;  %v13539_v20 = vrot.slane %v13526_v9, %v19101_v57 }
0x1244   :  { %v13291_v49 = vadd.f32 %v13244_v63, %v13017_v51  ;;  %v13246_v41 = vpop.f32.mrb[198].mxu1  ;;  %v13535_v51 = vrot.slane %v13526_v9, %v19102_v3  ;;  %v13543_v3 = vrot.slane %v13526_v9, %v19103_v42 }
0x1245   :  { %v13247_v16 = vpop.f32.mrb[199].mxu1 }
0x1252   :  { %v13283_v33 = vpop.f32.mrb[200].mxu1 }
0x1253   :  { %v13292_v8 = vadd.f32 %v13283_v33, %v13056_v21  ;;  %v13285_v26 = vpop.f32.mrb[201].mxu1 }
0x1254   :  { %v13293_v1 = vadd.f32 %v13285_v26, %v13058_v39  ;;  %v13287_v38 = vpop.f32.mrb[202].mxu1 }
0x1255   :  { %v13288_v6 = vpop.f32.mrb[203].mxu1 }
0x125a   :  { %v13333_v13 = vpop.f32.mrb[204].mxu1 }
0x125b   :  { %v13339_v59 = vpack.c.bf16 %v13333_v13, %v13333_v13  ;;  %v15254_v47 = vpop.f32.mrb[205].mxu1 }
0x125c   :  { %v13336_v32 = vpop.f32.mrb[206].mxu1 }
0x125d   :  { %15152 = vmatmul.mubr.msk.bf16.vlgmr.msra.gmra.mrb[208].mxu1 %vm1230_vm0, %v13339_v59  ;;  %v15255_v17 = vpop.f32.mrb[207].mxu1 }
0x125e   :  { %13482 = vmatpush1.bf16.msra.mxu1 %v17224_v40  ;;  %13513 = vmatprep.mubr.bf16.mxu1 %v19091_v48 }
0x125f   :  { %13483 = vmatprep.subr.bf16.mxu1 %v17229_v19 }
0x1262   :  { %13484 = vmatpush1.bf16.msra.mxu1 %v17227_v36 }
0x1263   :  { %13485 = vmatprep.subr.bf16.mxu1 %v17232_v25 }
0x1266   :  { %13486 = vmatpush1.bf16.msra.mxu1 %v17230_v37 }
0x1267   :  { %13487 = vmatprep.subr.bf16.mxu1 %v17235_v27 }
0x126a   :  { %13488 = vmatpush1.bf16.msra.mxu1 %v17233_v61 }
0x126d   :  { %15153 = vmatmul.mubr.msk.bf16.vlgmr.msra.gmra.mrb[212].mxu1 %vm1230_vm0, %v13339_v59 }
0x1330   :  { %v13474_v15 = vpop.f32.mrb[208].mxu1 }
0x1331   :  { %v13522_v44 = vadd.f32 %v13474_v15, %v13290_v35  ;;  %v13476_v48 = vpop.f32.mrb[209].mxu1 }
0x1332   :  { %v13523_v50 = vadd.f32 %v13476_v48, %v13291_v49  ;;  %v13478_v12 = vpop.f32.mrb[210].mxu1 }
0x1333   :  { %v13548_v21 = vadd.f32 %v13531_v46, %v13522_v44  ;;  %v13479_v58 = vpop.f32.mrb[211].mxu1 }
0x1334   :  { %v13549_v39 = vadd.f32 %v13535_v51, %v13523_v50 }
0x1335   :  { %vm13552_vm6 = vcmp.gt.f32.partialorder %v13548_v21, 0.0 }
0x1336   :  { %v15154_v55 = vsel %vm13552_vm6, 1.0, %v17600_v24  ;;  %vm13553_vm7 = vcmp.gt.f32.partialorder %v13549_v39, 0.0 }
0x1337   :  { %v15155_v2 = vsel %vm13553_vm7, 1.0, %v17600_v24 }
0x1338   :  { %v13568_v56 = vcombine.low %v15154_v55, %v15155_v2 }
0x133a   :  { %v13576_v23 = vrot.slane %v13568_v56, %v13575_v29 }
0x1340   :  { %v13515_v18 = vpop.f32.mrb[212].mxu1 }
0x1341   :  { %v13524_v62 = vadd.f32 %v13515_v18, %v13292_v8  ;;  %v13517_v60 = vpop.f32.mrb[213].mxu1 }
0x1342   :  { %v13525_v31 = vadd.f32 %v13517_v60, %v13293_v1  ;;  %v13519_v52 = vpop.f32.mrb[214].mxu1 }
0x1343   :  { %v13550_v28 = vadd.f32 %v13539_v20, %v13524_v62  ;;  %v13520_v54 = vpop.f32.mrb[215].mxu1 }
0x1344   :  { %v13551_v45 = vadd.f32 %v13543_v3, %v13525_v31 }
0x1345   :  { %vm13554_vm8 = vcmp.gt.f32.partialorder %v13550_v28, 0.0 }
0x1346   :  { %v15156_v34 = vsel %vm13554_vm8, 1.0, %v17600_v24  ;;  %vm13555_vm9 = vcmp.gt.f32.partialorder %v13551_v45, 0.0 }
0x1347   :  { %v15157_v4 = vsel %vm13555_vm9, 1.0, %v17600_v24 }
0x1348   :  { %v13569_v57 = vcombine.low %v15156_v34, %v15157_v4 }
0x134a   :  { %v13583_v53 = vrot.slane %v13569_v57, %v13575_v29 }
0x134c   :  { %v13584_v42 = vcombine.low %v13576_v23, %v13583_v53 }
0x134e   :  { %13586 = vst [vmem:[%s19105_s4] sm:$0xff] %v13584_v42 }
0x134f   :  { %13591 = vsyncpa [#allocation3], 1 }
0x1350   :  { %13592 = vsyncpa [#allocation5], 1 }
0x1351   :  { %13593 = vsyncpa [#allocation8], 1 }
0x1352   :  { %13594 = vsyncpa [#allocation11], 1 }
0x1353   :  { %13595 = vsyncpa [#allocation14], 1 }
0x1354   :  { %13596 = vsyncpa [#allocation17], 1 }
0x1355   :  { %13597 = vsyncpa [#allocation20], 1 }
0x1356   :  { %13598 = vsyncpa [#allocation23], 1 }

</bundles_post_ra>
